<compile_context>
chip_gen: v7x
topology: tpu7x:2x2x1
jax: 0.10.0
libtpu: 0.0.40
codegen_flags: <defaults>
</compile_context>

<pallas_src>
from functools import partial

import jax
import jax.numpy as jnp
from jax.experimental import pallas as pl
from jax.experimental.pallas import tpu as pltpu

EPS = 1e-5
LEAKY_SLOPE = 0.2

_VMEM_LIMIT = 32 * 1024 * 1024    # requested scoped VMEM (valid on v5e/v6e/v7x)
_VMEM_BUDGET = 26 * 1024 * 1024   # tile-plan budget (headroom under _VMEM_LIMIT)


def _round_up(x, m):
    return (x + m - 1) // m * m


def _plan_m(M, K, Cp, out_itemsize, budget=_VMEM_BUDGET):
    """Pick the M tile: as large as the VMEM budget allows, shrunk (and split in
    two when possible, for v7x megacore) when M itself is small."""
    def est(tm):
        return (2 * tm * K * 2              # double-buffered bf16 X tile
                + 2 * K * Cp * 2            # resident bf16 weights (2 buffers budgeted)
                + 2 * tm * Cp * out_itemsize  # double-buffered output tile
                + 4 * Cp * 4                # bias / stats vectors
                + (1 << 20))                # Mosaic internal scratch headroom
    tm = 512
    while tm > 16 and est(tm) > budget:
        tm //= 2
    m16 = _round_up(M, 16)
    if m16 <= 2 * tm:
        # shrink to the actual work; use two tiles when there is enough of it
        tm = _round_up(-(-m16 // 2), 16) if m16 >= 64 else m16
    Mp = _round_up(M, tm)
    return tm, Mp


# ----------------------------------------------------------------------------
# Pallas kernels
# ----------------------------------------------------------------------------
def _matmul_bias_kernel(x_ref, w_ref, b_ref, o_ref, *, slope):
    """(tm,K)x(K,Cp) MXU matmul with resident W, fused bias + LeakyReLU epilogue."""
    z = jnp.dot(x_ref[...], w_ref[...], preferred_element_type=jnp.float32)
    z = z + b_ref[...]
    if slope != 1.0:
        z = jnp.maximum(z, slope * z)
    o_ref[...] = z.astype(o_ref.dtype)


def pallas_conv_bias(x, w, b, tm, *, slope, out_dtype):
    """x: (Mp, K) bf16, w: (K, Cp) bf16 (resident), b: (1, Cp) f32 -> (Mp, Cp)."""
    Mp, K = x.shape
    _, Cp = w.shape
    return pl.pallas_call(
        partial(_matmul_bias_kernel, slope=slope),
        out_shape=jax.ShapeDtypeStruct((Mp, Cp), out_dtype),
        grid_spec=pltpu.PrefetchScalarGridSpec(
            num_scalar_prefetch=0,
            grid=(Mp // tm,),
            in_specs=[
                pl.BlockSpec((tm, K), lambda i: (i, 0)),
                pl.BlockSpec((K, Cp), lambda i: (0, 0)),   # resident weights
                pl.BlockSpec((1, Cp), lambda i: (0, 0)),
            ],
            out_specs=pl.BlockSpec((tm, Cp), lambda i: (i, 0)),
        ),
        compiler_params=pltpu.CompilerParams(
            dimension_semantics=("parallel",),
            vmem_limit_bytes=_VMEM_LIMIT),
    )(x, w, b)


def _matmul_bn_kernel(x_ref, w_ref, z_ref, mean_ref, var_ref, sum_sc, sq_sc,
                      *, inv_count):
    """Conv matmul with BN statistics fused: per-channel sum / sumsq accumulated
    from the f32 accumulator; mean & biased var emitted at the last grid step.
    Zero-padded M rows contribute zero, so stats stay exact with inv_count=1/M."""
    @pl.when(pl.program_id(0) == 0)
    def _():
        sum_sc[...] = jnp.zeros_like(sum_sc)
        sq_sc[...] = jnp.zeros_like(sq_sc)

    acc = jnp.dot(x_ref[...], w_ref[...], preferred_element_type=jnp.float32)
    z_ref[...] = acc
    sum_sc[...] += jnp.sum(acc, axis=0, keepdims=True)
    sq_sc[...] += jnp.sum(acc * acc, axis=0, keepdims=True)

    @pl.when(pl.program_id(0) == pl.num_programs(0) - 1)
    def _():
        m = sum_sc[...] * inv_count
        v = sq_sc[...] * inv_count - m * m
        mean_ref[...] = m
        var_ref[...] = jnp.maximum(v, 0.0)      # guard E[x^2]-m^2 cancellation


def pallas_conv_bn(x, w, tm, *, true_m):
    """x: (Mp, K) bf16, w: (K, Cp) bf16 -> (z (Mp,Cp) f32, mean (1,Cp), var (1,Cp))."""
    Mp, K = x.shape
    _, Cp = w.shape
    return pl.pallas_call(
        partial(_matmul_bn_kernel, inv_count=1.0 / float(true_m)),
        out_shape=(jax.ShapeDtypeStruct((Mp, Cp), jnp.float32),
                   jax.ShapeDtypeStruct((1, Cp), jnp.float32),
                   jax.ShapeDtypeStruct((1, Cp), jnp.float32)),
        grid_spec=pltpu.PrefetchScalarGridSpec(
            num_scalar_prefetch=0,
            grid=(Mp // tm,),
            in_specs=[
                pl.BlockSpec((tm, K), lambda i: (i, 0)),
                pl.BlockSpec((K, Cp), lambda i: (0, 0)),   # resident weights
            ],
            out_specs=(pl.BlockSpec((tm, Cp), lambda i: (i, 0)),
                       pl.BlockSpec((1, Cp), lambda i: (0, 0)),
                       pl.BlockSpec((1, Cp), lambda i: (0, 0))),
            scratch_shapes=[pltpu.VMEM((1, Cp), jnp.float32),
                            pltpu.VMEM((1, Cp), jnp.float32)],
        ),
        compiler_params=pltpu.CompilerParams(
            dimension_semantics=("arbitrary",),   # stats accumulate across M tiles
            vmem_limit_bytes=_VMEM_LIMIT),
    )(x, w)


def _affine_act_kernel(z_ref, s_ref, b_ref, o_ref, *, slope):
    """out = leaky_relu(z * scale + bias), emitted in the output dtype (bf16)."""
    y = z_ref[...] * s_ref[...] + b_ref[...]
    o_ref[...] = jnp.maximum(y, slope * y).astype(o_ref.dtype)


def pallas_affine_act(z, scale, bias, tm, *, slope):
    """z: (Mp, Cp) f32; scale, bias: (1, Cp) f32 -> (Mp, Cp) bf16, tiled over M."""
    Mp, Cp = z.shape
    return pl.pallas_call(
        partial(_affine_act_kernel, slope=slope),
        out_shape=jax.ShapeDtypeStruct((Mp, Cp), jnp.bfloat16),
        grid_spec=pltpu.PrefetchScalarGridSpec(
            num_scalar_prefetch=0,
            grid=(Mp // tm,),
            in_specs=[pl.BlockSpec((tm, Cp), lambda i: (i, 0)),
                      pl.BlockSpec((1, Cp), lambda i: (0, 0)),
                      pl.BlockSpec((1, Cp), lambda i: (0, 0))],
            out_specs=pl.BlockSpec((tm, Cp), lambda i: (i, 0)),
        ),
        compiler_params=pltpu.CompilerParams(
            dimension_semantics=("parallel",)),
    )(z, scale, bias)


# ----------------------------------------------------------------------------
# Glue: reflect padding + im2col (bf16 layout plumbing), layer composition
# ----------------------------------------------------------------------------
def _im2col(x_nhwc, kh, kw, stride, pad):
    """Reflect-pad and extract patches in bf16.  Returns ((M, kh*kw*Cin), meta)."""
    x_p = jnp.pad(x_nhwc.astype(jnp.bfloat16),
                  ((0, 0), (pad, pad), (pad, pad), (0, 0)), mode="reflect")
    N, Hp, Wp, C = x_p.shape
    OH = (Hp - kh) // stride + 1
    OW = (Wp - kw) // stride + 1
    cols = [x_p[:, i:i + stride * OH:stride, j:j + stride * OW:stride, :]
            for i in range(kh) for j in range(kw)]
    # (N, OH, OW, kh*kw, C) -> flatten K axis in (kh, kw, Cin) order
    patches = jnp.stack(cols, axis=3).reshape(N * OH * OW, kh * kw * C)
    return patches, (N, OH, OW)


def _prep_conv(x_nhwc, w_oihw, stride, out_itemsize):
    """im2col + K/C/M padding + tile plan for one conv layer."""
    Cout, Cin, KH, KW = w_oihw.shape
    patches, (N, OH, OW) = _im2col(x_nhwc, KH, KW, stride, pad=1)
    M, K = patches.shape

    Kp = _round_up(K, 128)                    # lane-dense X loads (layer-0 K=96)
    Cp = _round_up(Cout, 128)                 # lane-dense output stores
    w2d = jnp.transpose(w_oihw, (2, 3, 1, 0)).reshape(K, Cout).astype(jnp.bfloat16)
    if Kp != K:
        patches = jnp.pad(patches, ((0, 0), (0, Kp - K)))
        w2d = jnp.pad(w2d, ((0, Kp - K), (0, 0)))
    if Cp != Cout:
        w2d = jnp.pad(w2d, ((0, 0), (0, Cp - Cout)))

    tm, Mp = _plan_m(M, Kp, Cp, out_itemsize)
    if Mp != M:
        patches = jnp.pad(patches, ((0, Mp - M), (0, 0)))
    return patches, w2d, tm, (N, OH, OW, M, Cout, Cp)


def _conv_bias_act(x_nhwc, w, b, stride, slope, out_dtype):
    """Conv2d (reflect) + bias + LeakyReLU, fully fused in the matmul epilogue."""
    patches, w2d, tm, (N, OH, OW, M, Cout, Cp) = _prep_conv(
        x_nhwc, w, stride, jnp.dtype(out_dtype).itemsize)
    bvec = jnp.pad(b.astype(jnp.float32), (0, Cp - Cout))[None, :]
    y = pallas_conv_bias(patches, w2d, bvec, tm, slope=slope, out_dtype=out_dtype)
    return y[:M, :Cout].reshape(N, OH, OW, Cout)


def _conv_bn_act(x_nhwc, w, gamma, beta, stride, slope):
    """Conv2d (reflect, no bias) + BatchNorm2d(train stats) + LeakyReLU."""
    patches, w2d, tm, (N, OH, OW, M, Cout, Cp) = _prep_conv(x_nhwc, w, stride, 4)
    z, mean, var = pallas_conv_bn(patches, w2d, tm, true_m=M)
    gamma_p = jnp.pad(gamma.astype(jnp.float32), (0, Cp - Cout))[None, :]
    beta_p = jnp.pad(beta.astype(jnp.float32), (0, Cp - Cout))[None, :]
    scale = gamma_p * jax.lax.rsqrt(var + EPS)
    bias = beta_p - mean * scale
    h = pallas_affine_act(z, scale, bias, tm, slope=slope)
    return h[:M, :Cout].reshape(N, OH, OW, Cout)


def discriminator_forward(params, x_nchw, y_nchw):
    """PatchGAN discriminator forward.  Inputs / output in NCHW."""
    x = jnp.transpose(x_nchw, (0, 2, 3, 1))
    y = jnp.transpose(y_nchw, (0, 2, 3, 1))
    h = jnp.concatenate([x, y], axis=-1)                 # channel concat (dim=1 NCHW)

    # initial: Conv(6 -> 64, k4 s2 p1, bias, reflect) + LeakyReLU(0.2), bf16 out
    h = _conv_bias_act(h, params["w0"], params["b0"], stride=2,
                       slope=LEAKY_SLOPE, out_dtype=jnp.bfloat16)

    # CNNBlocks: Conv(bias=False, reflect) + BatchNorm2d(train stats) + LeakyReLU(0.2)
    for w, gamma, beta in params["blocks"]:
        h = _conv_bn_act(h, w, gamma, beta, stride=2, slope=LEAKY_SLOPE)

    # final: Conv(512 -> 1, k4 s1 p1, bias, reflect), no activation, f32 logits
    out = _conv_bias_act(h, params["wf"], params["bf"], stride=1,
                         slope=1.0, out_dtype=jnp.float32)
    return jnp.transpose(out, (0, 3, 1, 2))              # NHWC -> NCHW


# ----------------------------------------------------------------------------
# Deterministic parameter init (shapes follow the PyTorch module's __init__)
# ----------------------------------------------------------------------------
def init_params(key, in_channels=3):
    features = [64, 128, 256, 512]
    keys = jax.random.split(key, 16)
    ki = iter(range(16))

    def conv_w(k, cout, cin, kh=4, kw=4):
        fan_in = cin * kh * kw
        return (jax.random.normal(k, (cout, cin, kh, kw), jnp.float32)
                / jnp.sqrt(fan_in)).astype(jnp.float32)

    params = {}
    params["w0"] = conv_w(keys[next(ki)], features[0], in_channels * 2)
    params["b0"] = 0.01 * jax.random.normal(keys[next(ki)], (features[0],), jnp.float32)

    blocks = []
    for f in features[:-1]:
        w = conv_w(keys[next(ki)], f * 2, f)
        gamma = 1.0 + 0.1 * jax.random.normal(keys[next(ki)], (f * 2,), jnp.float32)
        beta = 0.1 * jax.random.normal(keys[next(ki)], (f * 2,), jnp.float32)
        blocks.append((w, gamma, beta))
    params["blocks"] = blocks

    params["wf"] = conv_w(keys[next(ki)], 1, features[-1])
    params["bf"] = 0.01 * jax.random.normal(keys[next(ki)], (1,), jnp.float32)
    return params


# ----------------------------------------------------------------------------
# Pure-JAX reference (lax.conv, bf16 operands / f32 accumulation to match precision)
# ----------------------------------------------------------------------------
def reference_forward(params, x_nchw, y_nchw):
    def conv(h, w, b, stride):
        hp = jnp.pad(h, ((0, 0), (0, 0), (1, 1), (1, 1)), mode="reflect")
        out = jax.lax.conv_general_dilated(
            hp.astype(jnp.bfloat16), w.astype(jnp.bfloat16), (stride, stride), "VALID",
            dimension_numbers=("NCHW", "OIHW", "NCHW"),
            preferred_element_type=jnp.float32)
        if b is not None:
            out = out + b[None, :, None, None]
        return out

    def lrelu(h, s=LEAKY_SLOPE):
        return jnp.where(h >= 0, h, s * h)

    h = jnp.concatenate([x_nchw, y_nchw], axis=1)
    h = lrelu(conv(h, params["w0"], params["b0"], 2))
    for w, gamma, beta in params["blocks"]:
        h = conv(h, w, None, 2)
        mean = jnp.mean(h, axis=(0, 2, 3), keepdims=True)
        var = jnp.mean(jnp.square(h - mean), axis=(0, 2, 3), keepdims=True)
        h = (h - mean) / jnp.sqrt(var + EPS) * gamma[None, :, None, None] \
            + beta[None, :, None, None]
        h = lrelu(h)
        h = h.astype(jnp.bfloat16).astype(jnp.float32)   # mirror bf16 activation storage
    return conv(h, params["wf"], params["bf"], 1)


# ----------------------------------------------------------------------------
if __name__ == "__main__":
    key = jax.random.PRNGKey(0)
    kp, kx, ky = jax.random.split(key, 3)

    # Smallest spatial size compatible with 4 stride-2 convs + final k4/s1/p1 conv.
    N, C, H, W = 2, 3, 32, 32
    x = jax.random.normal(kx, (N, C, H, W), jnp.float32)
    y = jax.random.normal(ky, (N, C, H, W), jnp.float32)

    params = init_params(kp, in_channels=C)

    fwd = jax.jit(discriminator_forward)
    out = fwd(params, x, y)
    out = jax.block_until_ready(out)

    assert out.shape == (N, 1, 1, 1), out.shape

    ref = jax.block_until_ready(reference_forward(params, x, y))
    if not bool(jnp.allclose(out, ref, atol=5e-3, rtol=5e-3)):
        raise AssertionError(
            f"Pallas output mismatch vs reference: max abs diff = "
            f"{float(jnp.max(jnp.abs(out - ref)))}")

    print("KERNEL_OK")
</pallas_src>

<mosaic_0001>
module attributes {stable_mosaic.version = 11 : i64} {
  func.func @_matmul_bias_kernel(%arg0: i32, %arg1: memref<256x128xbf16, #tpu.memory_space<vmem>>, %arg2: memref<128x128xbf16, #tpu.memory_space<vmem>>, %arg3: memref<1x128xf32, #tpu.memory_space<vmem>>, %arg4: memref<256x128xbf16, #tpu.memory_space<vmem>>) attributes {dimension_semantics = [#tpu.dimension_semantics<parallel>], iteration_bounds = array<i64: 2>, scalar_prefetch = 0 : i64, scratch_operands = 0 : i64, tpu.core_type = #tpu.core_type<tc>, window_params = [{transform_indices = @transform_0, window_bounds = array<i64: 256, 128>}, {pipeline_mode = #tpu.pipeline_mode<synchronous>, transform_indices = @transform_1, window_bounds = array<i64: 128, 128>}, {pipeline_mode = #tpu.pipeline_mode<synchronous>, transform_indices = @transform_2, window_bounds = array<i64: 1, 128>}, {transform_indices = @transform_3, window_bounds = array<i64: 256, 128>}]} {
    %c0 = arith.constant 0 : index
    %c0_0 = arith.constant 0 : index
    %0 = vector.load %arg1[%c0, %c0_0] : memref<256x128xbf16, #tpu.memory_space<vmem>>, vector<256x128xbf16>
    %c0_1 = arith.constant 0 : index
    %c0_2 = arith.constant 0 : index
    %1 = vector.load %arg2[%c0_1, %c0_2] : memref<128x128xbf16, #tpu.memory_space<vmem>>, vector<128x128xbf16>
    %cst = arith.constant dense<0.000000e+00> : vector<256x128xf32>
    %2 = tpu.matmul %0, %1, %cst {dimension_numbers = #tpu.dot_dimension_numbers<[1], [0], [0], [1], [0, 0, 1, 1], [], []>} : vector<256x128xbf16>, vector<128x128xbf16>, vector<256x128xf32> -> vector<256x128xf32>
    %c0_3 = arith.constant 0 : index
    %c0_4 = arith.constant 0 : index
    %3 = vector.load %arg3[%c0_3, %c0_4] : memref<1x128xf32, #tpu.memory_space<vmem>>, vector<1x128xf32>
    %4 = vector.broadcast %3 : vector<1x128xf32> to vector<256x128xf32>
    %5 = arith.addf %2, %4 : vector<256x128xf32>
    %cst_5 = arith.constant 2.000000e-01 : f32
    %6 = vector.broadcast %cst_5 : f32 to vector<256x128xf32>
    %7 = arith.mulf %6, %5 : vector<256x128xf32>
    %8 = arith.maximumf %5, %7 : vector<256x128xf32>
    %9 = arith.truncf %8 : vector<256x128xf32> to vector<256x128xbf16>
    %c0_6 = arith.constant 0 : index
    %c0_7 = arith.constant 0 : index
    %10 = vector.load %arg4[%c0_6, %c0_7] : memref<256x128xbf16, #tpu.memory_space<vmem>>, vector<256x128xbf16>
    tpu.vector_store %arg4[%c0_6, %c0_7], %9 {strides = array<i32>} : memref<256x128xbf16, #tpu.memory_space<vmem>>, vector<256x128xbf16>,
    return
  }
  func.func @transform_0(%arg0: i32) -> (i32, i32) {
    %c0_i32 = arith.constant 0 : i32
    %c0_i32_0 = arith.constant 0 : i32
    return %arg0, %c0_i32 : i32, i32
  }
  func.func @transform_1(%arg0: i32) -> (i32, i32) {
    %c0_i32 = arith.constant 0 : i32
    %c0_i32_0 = arith.constant 0 : i32
    %c0_i32_1 = arith.constant 0 : i32
    return %c0_i32, %c0_i32_0 : i32, i32
  }
  func.func @transform_2(%arg0: i32) -> (i32, i32) {
    %c0_i32 = arith.constant 0 : i32
    %c0_i32_0 = arith.constant 0 : i32
    %c0_i32_1 = arith.constant 0 : i32
    return %c0_i32, %c0_i32_0 : i32, i32
  }
  func.func @transform_3(%arg0: i32) -> (i32, i32) {
    %c0_i32 = arith.constant 0 : i32
    %c0_i32_0 = arith.constant 0 : i32
    return %arg0, %c0_i32 : i32, i32
  }
}

module attributes {stable_mosaic.version = 11 : i64} {
  func.func @_matmul_bn_kernel(%arg0: i32, %arg1: memref<64x1024xbf16, #tpu.memory_space<vmem>>, %arg2: memref<1024x128xbf16, #tpu.memory_space<vmem>>, %arg3: memref<64x128xf32, #tpu.memory_space<vmem>>, %arg4: memref<1x128xf32, #tpu.memory_space<vmem>>, %arg5: memref<1x128xf32, #tpu.memory_space<vmem>>, %arg6: memref<1x128xf32, #tpu.memory_space<vmem>>, %arg7: memref<1x128xf32, #tpu.memory_space<vmem>>) attributes {dimension_semantics = [#tpu.dimension_semantics<arbitrary>], iteration_bounds = array<i64: 2>, scalar_prefetch = 0 : i64, scratch_operands = 2 : i64, tpu.core_type = #tpu.core_type<tc>, window_params = [{transform_indices = @transform_0, window_bounds = array<i64: 64, 1024>}, {pipeline_mode = #tpu.pipeline_mode<synchronous>, transform_indices = @transform_1, window_bounds = array<i64: 1024, 128>}, {transform_indices = @transform_2, window_bounds = array<i64: 64, 128>}, {pipeline_mode = #tpu.pipeline_mode<synchronous>, transform_indices = @transform_3, window_bounds = array<i64: 1, 128>}, {pipeline_mode = #tpu.pipeline_mode<synchronous>, transform_indices = @transform_4, window_bounds = array<i64: 1, 128>}]} {
    %c0_i32 = arith.constant 0 : i32
    %0 = arith.cmpi eq, %arg0, %c0_i32 : i32
    %1 = arith.extui %0 : i1 to i32
    %c0_i32_0 = arith.constant 0 : i32
    %2 = arith.cmpi ne, %1, %c0_i32_0 : i32
    scf.if %2 {
      %cst_17 = arith.constant 0.000000e+00 : f32
      %21 = vector.broadcast %cst_17 : f32 to vector<1x128xf32>
      %c0_18 = arith.constant 0 : index
      %c0_19 = arith.constant 0 : index
      %22 = vector.load %arg6[%c0_18, %c0_19] : memref<1x128xf32, #tpu.memory_space<vmem>>, vector<1x128xf32>
      tpu.vector_store %arg6[%c0_18, %c0_19], %21 {strides = array<i32>} : memref<1x128xf32, #tpu.memory_space<vmem>>, vector<1x128xf32>,
      %cst_20 = arith.constant 0.000000e+00 : f32
      %23 = vector.broadcast %cst_20 : f32 to vector<1x128xf32>
      %c0_21 = arith.constant 0 : index
      %c0_22 = arith.constant 0 : index
      %24 = vector.load %arg7[%c0_21, %c0_22] : memref<1x128xf32, #tpu.memory_space<vmem>>, vector<1x128xf32>
      tpu.vector_store %arg7[%c0_21, %c0_22], %23 {strides = array<i32>} : memref<1x128xf32, #tpu.memory_space<vmem>>, vector<1x128xf32>,
    } else {
    }
    %c0 = arith.constant 0 : index
    %c0_1 = arith.constant 0 : index
    %3 = vector.load %arg1[%c0, %c0_1] : memref<64x1024xbf16, #tpu.memory_space<vmem>>, vector<64x1024xbf16>
    %c0_2 = arith.constant 0 : index
    %c0_3 = arith.constant 0 : index
    %4 = vector.load %arg2[%c0_2, %c0_3] : memref<1024x128xbf16, #tpu.memory_space<vmem>>, vector<1024x128xbf16>
    %cst = arith.constant dense<0.000000e+00> : vector<64x128xf32>
    %5 = tpu.matmul %3, %4, %cst {dimension_numbers = #tpu.dot_dimension_numbers<[1], [0], [0], [1], [0, 0, 1, 1], [], []>} : vector<64x1024xbf16>, vector<1024x128xbf16>, vector<64x128xf32> -> vector<64x128xf32>
    %c0_4 = arith.constant 0 : index
    %c0_5 = arith.constant 0 : index
    %6 = vector.load %arg3[%c0_4, %c0_5] : memref<64x128xf32, #tpu.memory_space<vmem>>, vector<64x128xf32>
    tpu.vector_store %arg3[%c0_4, %c0_5], %5 {strides = array<i32>} : memref<64x128xf32, #tpu.memory_space<vmem>>, vector<64x128xf32>,
    %c0_6 = arith.constant 0 : index
    %c0_7 = arith.constant 0 : index
    %7 = vector.load %arg6[%c0_6, %c0_7] : memref<1x128xf32, #tpu.memory_space<vmem>>, vector<1x128xf32>
    %cst_8 = arith.constant dense<0.000000e+00> : vector<128xf32>
    %8 = vector.multi_reduction <add>, %5, %cst_8 [0] : vector<64x128xf32> to vector<128xf32>
    %9 = vector.shape_cast %8 : vector<128xf32> to vector<1x128xf32>
    %10 = arith.addf %7, %9 : vector<1x128xf32>
    %c0_9 = arith.constant 0 : index
    %c0_10 = arith.constant 0 : index
    %11 = vector.load %arg6[%c0_9, %c0_10] : memref<1x128xf32, #tpu.memory_space<vmem>>, vector<1x128xf32>
    tpu.vector_store %arg6[%c0_9, %c0_10], %10 {strides = array<i32>} : memref<1x128xf32, #tpu.memory_space<vmem>>, vector<1x128xf32>,
    %c0_11 = arith.constant 0 : index
    %c0_12 = arith.constant 0 : index
    %12 = vector.load %arg7[%c0_11, %c0_12] : memref<1x128xf32, #tpu.memory_space<vmem>>, vector<1x128xf32>
    %13 = arith.mulf %5, %5 : vector<64x128xf32>
    %cst_13 = arith.constant dense<0.000000e+00> : vector<128xf32>
    %14 = vector.multi_reduction <add>, %13, %cst_13 [0] : vector<64x128xf32> to vector<128xf32>
    %15 = vector.shape_cast %14 : vector<128xf32> to vector<1x128xf32>
    %16 = arith.addf %12, %15 : vector<1x128xf32>
    %c0_14 = arith.constant 0 : index
    %c0_15 = arith.constant 0 : index
    %17 = vector.load %arg7[%c0_14, %c0_15] : memref<1x128xf32, #tpu.memory_space<vmem>>, vector<1x128xf32>
    tpu.vector_store %arg7[%c0_14, %c0_15], %16 {strides = array<i32>} : memref<1x128xf32, #tpu.memory_space<vmem>>, vector<1x128xf32>,
    %c1_i32 = arith.constant 1 : i32
    %18 = arith.cmpi eq, %arg0, %c1_i32 : i32
    %19 = arith.extui %18 : i1 to i32
    %c0_i32_16 = arith.constant 0 : i32
    %20 = arith.cmpi ne, %19, %c0_i32_16 : i32
    scf.if %20 {
      %c0_17 = arith.constant 0 : index
      %c0_18 = arith.constant 0 : index
      %21 = vector.load %arg6[%c0_17, %c0_18] : memref<1x128xf32, #tpu.memory_space<vmem>>, vector<1x128xf32>
      %cst_19 = arith.constant 7.812500e-03 : f32
      %22 = vector.broadcast %cst_19 : f32 to vector<1x128xf32>
      %23 = arith.mulf %21, %22 : vector<1x128xf32>
      %c0_20 = arith.constant 0 : index
      %c0_21 = arith.constant 0 : index
      %24 = vector.load %arg7[%c0_20, %c0_21] : memref<1x128xf32, #tpu.memory_space<vmem>>, vector<1x128xf32>
      %cst_22 = arith.constant 7.812500e-03 : f32
      %25 = vector.broadcast %cst_22 : f32 to vector<1x128xf32>
      %26 = arith.mulf %24, %25 : vector<1x128xf32>
      %27 = arith.mulf %23, %23 : vector<1x128xf32>
      %28 = arith.subf %26, %27 : vector<1x128xf32>
      %c0_23 = arith.constant 0 : index
      %c0_24 = arith.constant 0 : index
      %29 = vector.load %arg4[%c0_23, %c0_24] : memref<1x128xf32, #tpu.memory_space<vmem>>, vector<1x128xf32>
      tpu.vector_store %arg4[%c0_23, %c0_24], %23 {strides = array<i32>} : memref<1x128xf32, #tpu.memory_space<vmem>>, vector<1x128xf32>,
      %cst_25 = arith.constant 0.000000e+00 : f32
      %30 = vector.broadcast %cst_25 : f32 to vector<1x128xf32>
      %31 = arith.maximumf %28, %30 : vector<1x128xf32>
      %c0_26 = arith.constant 0 : index
      %c0_27 = arith.constant 0 : index
      %32 = vector.load %arg5[%c0_26, %c0_27] : memref<1x128xf32, #tpu.memory_space<vmem>>, vector<1x128xf32>
      tpu.vector_store %arg5[%c0_26, %c0_27], %31 {strides = array<i32>} : memref<1x128xf32, #tpu.memory_space<vmem>>, vector<1x128xf32>,
    } else {
    }
    return
  }
  func.func @transform_0(%arg0: i32) -> (i32, i32) {
    %c0_i32 = arith.constant 0 : i32
    %c0_i32_0 = arith.constant 0 : i32
    return %arg0, %c0_i32 : i32, i32
  }
  func.func @transform_1(%arg0: i32) -> (i32, i32) {
    %c0_i32 = arith.constant 0 : i32
    %c0_i32_0 = arith.constant 0 : i32
    %c0_i32_1 = arith.constant 0 : i32
    return %c0_i32, %c0_i32_0 : i32, i32
  }
  func.func @transform_2(%arg0: i32) -> (i32, i32) {
    %c0_i32 = arith.constant 0 : i32
    %c0_i32_0 = arith.constant 0 : i32
    return %arg0, %c0_i32 : i32, i32
  }
  func.func @transform_3(%arg0: i32) -> (i32, i32) {
    %c0_i32 = arith.constant 0 : i32
    %c0_i32_0 = arith.constant 0 : i32
    %c0_i32_1 = arith.constant 0 : i32
    return %c0_i32, %c0_i32_0 : i32, i32
  }
  func.func @transform_4(%arg0: i32) -> (i32, i32) {
    %c0_i32 = arith.constant 0 : i32
    %c0_i32_0 = arith.constant 0 : i32
    %c0_i32_1 = arith.constant 0 : i32
    return %c0_i32, %c0_i32_0 : i32, i32
  }
}

module attributes {stable_mosaic.version = 11 : i64} {
  func.func @_affine_act_kernel(%arg0: i32, %arg1: memref<64x128xf32, #tpu.memory_space<vmem>>, %arg2: memref<1x128xf32, #tpu.memory_space<vmem>>, %arg3: memref<1x128xf32, #tpu.memory_space<vmem>>, %arg4: memref<64x128xbf16, #tpu.memory_space<vmem>>) attributes {dimension_semantics = [#tpu.dimension_semantics<parallel>], iteration_bounds = array<i64: 2>, scalar_prefetch = 0 : i64, scratch_operands = 0 : i64, tpu.core_type = #tpu.core_type<tc>, window_params = [{transform_indices = @transform_0, window_bounds = array<i64: 64, 128>}, {pipeline_mode = #tpu.pipeline_mode<synchronous>, transform_indices = @transform_1, window_bounds = array<i64: 1, 128>}, {pipeline_mode = #tpu.pipeline_mode<synchronous>, transform_indices = @transform_2, window_bounds = array<i64: 1, 128>}, {transform_indices = @transform_3, window_bounds = array<i64: 64, 128>}]} {
    %c0 = arith.constant 0 : index
    %c0_0 = arith.constant 0 : index
    %0 = vector.load %arg1[%c0, %c0_0] : memref<64x128xf32, #tpu.memory_space<vmem>>, vector<64x128xf32>
    %c0_1 = arith.constant 0 : index
    %c0_2 = arith.constant 0 : index
    %1 = vector.load %arg2[%c0_1, %c0_2] : memref<1x128xf32, #tpu.memory_space<vmem>>, vector<1x128xf32>
    %2 = vector.broadcast %1 : vector<1x128xf32> to vector<64x128xf32>
    %3 = arith.mulf %0, %2 : vector<64x128xf32>
    %c0_3 = arith.constant 0 : index
    %c0_4 = arith.constant 0 : index
    %4 = vector.load %arg3[%c0_3, %c0_4] : memref<1x128xf32, #tpu.memory_space<vmem>>, vector<1x128xf32>
    %5 = vector.broadcast %4 : vector<1x128xf32> to vector<64x128xf32>
    %6 = arith.addf %3, %5 : vector<64x128xf32>
    %cst = arith.constant 2.000000e-01 : f32
    %7 = vector.broadcast %cst : f32 to vector<64x128xf32>
    %8 = arith.mulf %7, %6 : vector<64x128xf32>
    %9 = arith.maximumf %6, %8 : vector<64x128xf32>
    %10 = arith.truncf %9 : vector<64x128xf32> to vector<64x128xbf16>
    %c0_5 = arith.constant 0 : index
    %c0_6 = arith.constant 0 : index
    %11 = vector.load %arg4[%c0_5, %c0_6] : memref<64x128xbf16, #tpu.memory_space<vmem>>, vector<64x128xbf16>
    tpu.vector_store %arg4[%c0_5, %c0_6], %10 {strides = array<i32>} : memref<64x128xbf16, #tpu.memory_space<vmem>>, vector<64x128xbf16>,
    return
  }
  func.func @transform_0(%arg0: i32) -> (i32, i32) {
    %c0_i32 = arith.constant 0 : i32
    %c0_i32_0 = arith.constant 0 : i32
    return %arg0, %c0_i32 : i32, i32
  }
  func.func @transform_1(%arg0: i32) -> (i32, i32) {
    %c0_i32 = arith.constant 0 : i32
    %c0_i32_0 = arith.constant 0 : i32
    %c0_i32_1 = arith.constant 0 : i32
    return %c0_i32, %c0_i32_0 : i32, i32
  }
  func.func @transform_2(%arg0: i32) -> (i32, i32) {
    %c0_i32 = arith.constant 0 : i32
    %c0_i32_0 = arith.constant 0 : i32
    %c0_i32_1 = arith.constant 0 : i32
    return %c0_i32, %c0_i32_0 : i32, i32
  }
  func.func @transform_3(%arg0: i32) -> (i32, i32) {
    %c0_i32 = arith.constant 0 : i32
    %c0_i32_0 = arith.constant 0 : i32
    return %arg0, %c0_i32 : i32, i32
  }
}

module attributes {stable_mosaic.version = 11 : i64} {
  func.func @_matmul_bn_kernel(%arg0: i32, %arg1: memref<32x2048xbf16, #tpu.memory_space<vmem>>, %arg2: memref<2048x256xbf16, #tpu.memory_space<vmem>>, %arg3: memref<32x256xf32, #tpu.memory_space<vmem>>, %arg4: memref<1x256xf32, #tpu.memory_space<vmem>>, %arg5: memref<1x256xf32, #tpu.memory_space<vmem>>, %arg6: memref<1x256xf32, #tpu.memory_space<vmem>>, %arg7: memref<1x256xf32, #tpu.memory_space<vmem>>) attributes {dimension_semantics = [#tpu.dimension_semantics<arbitrary>], iteration_bounds = array<i64: 1>, scalar_prefetch = 0 : i64, scratch_operands = 2 : i64, tpu.core_type = #tpu.core_type<tc>, window_params = [{transform_indices = @transform_0, window_bounds = array<i64: 32, 2048>}, {pipeline_mode = #tpu.pipeline_mode<synchronous>, transform_indices = @transform_1, window_bounds = array<i64: 2048, 256>}, {transform_indices = @transform_2, window_bounds = array<i64: 32, 256>}, {pipeline_mode = #tpu.pipeline_mode<synchronous>, transform_indices = @transform_3, window_bounds = array<i64: 1, 256>}, {pipeline_mode = #tpu.pipeline_mode<synchronous>, transform_indices = @transform_4, window_bounds = array<i64: 1, 256>}]} {
    %c0_i32 = arith.constant 0 : i32
    %0 = arith.cmpi eq, %arg0, %c0_i32 : i32
    %1 = arith.extui %0 : i1 to i32
    %c0_i32_0 = arith.constant 0 : i32
    %2 = arith.cmpi ne, %1, %c0_i32_0 : i32
    scf.if %2 {
      %cst_18 = arith.constant 0.000000e+00 : f32
      %21 = vector.broadcast %cst_18 : f32 to vector<1x256xf32>
      %c0_19 = arith.constant 0 : index
      %c0_20 = arith.constant 0 : index
      %22 = vector.load %arg6[%c0_19, %c0_20] : memref<1x256xf32, #tpu.memory_space<vmem>>, vector<1x256xf32>
      tpu.vector_store %arg6[%c0_19, %c0_20], %21 {strides = array<i32>} : memref<1x256xf32, #tpu.memory_space<vmem>>, vector<1x256xf32>,
      %cst_21 = arith.constant 0.000000e+00 : f32
      %23 = vector.broadcast %cst_21 : f32 to vector<1x256xf32>
      %c0_22 = arith.constant 0 : index
      %c0_23 = arith.constant 0 : index
      %24 = vector.load %arg7[%c0_22, %c0_23] : memref<1x256xf32, #tpu.memory_space<vmem>>, vector<1x256xf32>
      tpu.vector_store %arg7[%c0_22, %c0_23], %23 {strides = array<i32>} : memref<1x256xf32, #tpu.memory_space<vmem>>, vector<1x256xf32>,
    } else {
    }
    %c0 = arith.constant 0 : index
    %c0_1 = arith.constant 0 : index
    %3 = vector.load %arg1[%c0, %c0_1] : memref<32x2048xbf16, #tpu.memory_space<vmem>>, vector<32x2048xbf16>
    %c0_2 = arith.constant 0 : index
    %c0_3 = arith.constant 0 : index
    %4 = vector.load %arg2[%c0_2, %c0_3] : memref<2048x256xbf16, #tpu.memory_space<vmem>>, vector<2048x256xbf16>
    %cst = arith.constant dense<0.000000e+00> : vector<32x256xf32>
    %5 = tpu.matmul %3, %4, %cst {dimension_numbers = #tpu.dot_dimension_numbers<[1], [0], [0], [1], [0, 0, 1, 1], [], []>} : vector<32x2048xbf16>, vector<2048x256xbf16>, vector<32x256xf32> -> vector<32x256xf32>
    %c0_4 = arith.constant 0 : index
    %c0_5 = arith.constant 0 : index
    %6 = vector.load %arg3[%c0_4, %c0_5] : memref<32x256xf32, #tpu.memory_space<vmem>>, vector<32x256xf32>
    tpu.vector_store %arg3[%c0_4, %c0_5], %5 {strides = array<i32>} : memref<32x256xf32, #tpu.memory_space<vmem>>, vector<32x256xf32>,
    %c0_6 = arith.constant 0 : index
    %c0_7 = arith.constant 0 : index
    %7 = vector.load %arg6[%c0_6, %c0_7] : memref<1x256xf32, #tpu.memory_space<vmem>>, vector<1x256xf32>
    %cst_8 = arith.constant dense<0.000000e+00> : vector<256xf32>
    %8 = vector.multi_reduction <add>, %5, %cst_8 [0] : vector<32x256xf32> to vector<256xf32>
    %9 = vector.shape_cast %8 : vector<256xf32> to vector<1x256xf32>
    %10 = arith.addf %7, %9 : vector<1x256xf32>
    %c0_9 = arith.constant 0 : index
    %c0_10 = arith.constant 0 : index
    %11 = vector.load %arg6[%c0_9, %c0_10] : memref<1x256xf32, #tpu.memory_space<vmem>>, vector<1x256xf32>
    tpu.vector_store %arg6[%c0_9, %c0_10], %10 {strides = array<i32>} : memref<1x256xf32, #tpu.memory_space<vmem>>, vector<1x256xf32>,
    %c0_11 = arith.constant 0 : index
    %c0_12 = arith.constant 0 : index
    %12 = vector.load %arg7[%c0_11, %c0_12] : memref<1x256xf32, #tpu.memory_space<vmem>>, vector<1x256xf32>
    %13 = arith.mulf %5, %5 : vector<32x256xf32>
    %cst_13 = arith.constant dense<0.000000e+00> : vector<256xf32>
    %14 = vector.multi_reduction <add>, %13, %cst_13 [0] : vector<32x256xf32> to vector<256xf32>
    %15 = vector.shape_cast %14 : vector<256xf32> to vector<1x256xf32>
    %16 = arith.addf %12, %15 : vector<1x256xf32>
    %c0_14 = arith.constant 0 : index
    %c0_15 = arith.constant 0 : index
    %17 = vector.load %arg7[%c0_14, %c0_15] : memref<1x256xf32, #tpu.memory_space<vmem>>, vector<1x256xf32>
    tpu.vector_store %arg7[%c0_14, %c0_15], %16 {strides = array<i32>} : memref<1x256xf32, #tpu.memory_space<vmem>>, vector<1x256xf32>,
    %c0_i32_16 = arith.constant 0 : i32
    %18 = arith.cmpi eq, %arg0, %c0_i32_16 : i32
    %19 = arith.extui %18 : i1 to i32
    %c0_i32_17 = arith.constant 0 : i32
    %20 = arith.cmpi ne, %19, %c0_i32_17 : i32
    scf.if %20 {
      %c0_18 = arith.constant 0 : index
      %c0_19 = arith.constant 0 : index
      %21 = vector.load %arg6[%c0_18, %c0_19] : memref<1x256xf32, #tpu.memory_space<vmem>>, vector<1x256xf32>
      %cst_20 = arith.constant 3.125000e-02 : f32
      %22 = vector.broadcast %cst_20 : f32 to vector<1x256xf32>
      %23 = arith.mulf %21, %22 : vector<1x256xf32>
      %c0_21 = arith.constant 0 : index
      %c0_22 = arith.constant 0 : index
      %24 = vector.load %arg7[%c0_21, %c0_22] : memref<1x256xf32, #tpu.memory_space<vmem>>, vector<1x256xf32>
      %cst_23 = arith.constant 3.125000e-02 : f32
      %25 = vector.broadcast %cst_23 : f32 to vector<1x256xf32>
      %26 = arith.mulf %24, %25 : vector<1x256xf32>
      %27 = arith.mulf %23, %23 : vector<1x256xf32>
      %28 = arith.subf %26, %27 : vector<1x256xf32>
      %c0_24 = arith.constant 0 : index
      %c0_25 = arith.constant 0 : index
      %29 = vector.load %arg4[%c0_24, %c0_25] : memref<1x256xf32, #tpu.memory_space<vmem>>, vector<1x256xf32>
      tpu.vector_store %arg4[%c0_24, %c0_25], %23 {strides = array<i32>} : memref<1x256xf32, #tpu.memory_space<vmem>>, vector<1x256xf32>,
      %cst_26 = arith.constant 0.000000e+00 : f32
      %30 = vector.broadcast %cst_26 : f32 to vector<1x256xf32>
      %31 = arith.maximumf %28, %30 : vector<1x256xf32>
      %c0_27 = arith.constant 0 : index
      %c0_28 = arith.constant 0 : index
      %32 = vector.load %arg5[%c0_27, %c0_28] : memref<1x256xf32, #tpu.memory_space<vmem>>, vector<1x256xf32>
      tpu.vector_store %arg5[%c0_27, %c0_28], %31 {strides = array<i32>} : memref<1x256xf32, #tpu.memory_space<vmem>>, vector<1x256xf32>,
    } else {
    }
    return
  }
  func.func @transform_0(%arg0: i32) -> (i32, i32) {
    %c0_i32 = arith.constant 0 : i32
    %c0_i32_0 = arith.constant 0 : i32
    return %arg0, %c0_i32 : i32, i32
  }
  func.func @transform_1(%arg0: i32) -> (i32, i32) {
    %c0_i32 = arith.constant 0 : i32
    %c0_i32_0 = arith.constant 0 : i32
    %c0_i32_1 = arith.constant 0 : i32
    return %c0_i32, %c0_i32_0 : i32, i32
  }
  func.func @transform_2(%arg0: i32) -> (i32, i32) {
    %c0_i32 = arith.constant 0 : i32
    %c0_i32_0 = arith.constant 0 : i32
    return %arg0, %c0_i32 : i32, i32
  }
  func.func @transform_3(%arg0: i32) -> (i32, i32) {
    %c0_i32 = arith.constant 0 : i32
    %c0_i32_0 = arith.constant 0 : i32
    %c0_i32_1 = arith.constant 0 : i32
    return %c0_i32, %c0_i32_0 : i32, i32
  }
  func.func @transform_4(%arg0: i32) -> (i32, i32) {
    %c0_i32 = arith.constant 0 : i32
    %c0_i32_0 = arith.constant 0 : i32
    %c0_i32_1 = arith.constant 0 : i32
    return %c0_i32, %c0_i32_0 : i32, i32
  }
}

module attributes {stable_mosaic.version = 11 : i64} {
  func.func @_affine_act_kernel(%arg0: i32, %arg1: memref<32x256xf32, #tpu.memory_space<vmem>>, %arg2: memref<1x256xf32, #tpu.memory_space<vmem>>, %arg3: memref<1x256xf32, #tpu.memory_space<vmem>>, %arg4: memref<32x256xbf16, #tpu.memory_space<vmem>>) attributes {dimension_semantics = [#tpu.dimension_semantics<parallel>], iteration_bounds = array<i64: 1>, scalar_prefetch = 0 : i64, scratch_operands = 0 : i64, tpu.core_type = #tpu.core_type<tc>, window_params = [{transform_indices = @transform_0, window_bounds = array<i64: 32, 256>}, {pipeline_mode = #tpu.pipeline_mode<synchronous>, transform_indices = @transform_1, window_bounds = array<i64: 1, 256>}, {pipeline_mode = #tpu.pipeline_mode<synchronous>, transform_indices = @transform_2, window_bounds = array<i64: 1, 256>}, {transform_indices = @transform_3, window_bounds = array<i64: 32, 256>}]} {
    %c0 = arith.constant 0 : index
    %c0_0 = arith.constant 0 : index
    %0 = vector.load %arg1[%c0, %c0_0] : memref<32x256xf32, #tpu.memory_space<vmem>>, vector<32x256xf32>
    %c0_1 = arith.constant 0 : index
    %c0_2 = arith.constant 0 : index
    %1 = vector.load %arg2[%c0_1, %c0_2] : memref<1x256xf32, #tpu.memory_space<vmem>>, vector<1x256xf32>
    %2 = vector.broadcast %1 : vector<1x256xf32> to vector<32x256xf32>
    %3 = arith.mulf %0, %2 : vector<32x256xf32>
    %c0_3 = arith.constant 0 : index
    %c0_4 = arith.constant 0 : index
    %4 = vector.load %arg3[%c0_3, %c0_4] : memref<1x256xf32, #tpu.memory_space<vmem>>, vector<1x256xf32>
    %5 = vector.broadcast %4 : vector<1x256xf32> to vector<32x256xf32>
    %6 = arith.addf %3, %5 : vector<32x256xf32>
    %cst = arith.constant 2.000000e-01 : f32
    %7 = vector.broadcast %cst : f32 to vector<32x256xf32>
    %8 = arith.mulf %7, %6 : vector<32x256xf32>
    %9 = arith.maximumf %6, %8 : vector<32x256xf32>
    %10 = arith.truncf %9 : vector<32x256xf32> to vector<32x256xbf16>
    %c0_5 = arith.constant 0 : index
    %c0_6 = arith.constant 0 : index
    %11 = vector.load %arg4[%c0_5, %c0_6] : memref<32x256xbf16, #tpu.memory_space<vmem>>, vector<32x256xbf16>
    tpu.vector_store %arg4[%c0_5, %c0_6], %10 {strides = array<i32>} : memref<32x256xbf16, #tpu.memory_space<vmem>>, vector<32x256xbf16>,
    return
  }
  func.func @transform_0(%arg0: i32) -> (i32, i32) {
    %c0_i32 = arith.constant 0 : i32
    %c0_i32_0 = arith.constant 0 : i32
    return %arg0, %c0_i32 : i32, i32
  }
  func.func @transform_1(%arg0: i32) -> (i32, i32) {
    %c0_i32 = arith.constant 0 : i32
    %c0_i32_0 = arith.constant 0 : i32
    %c0_i32_1 = arith.constant 0 : i32
    return %c0_i32, %c0_i32_0 : i32, i32
  }
  func.func @transform_2(%arg0: i32) -> (i32, i32) {
    %c0_i32 = arith.constant 0 : i32
    %c0_i32_0 = arith.constant 0 : i32
    %c0_i32_1 = arith.constant 0 : i32
    return %c0_i32, %c0_i32_0 : i32, i32
  }
  func.func @transform_3(%arg0: i32) -> (i32, i32) {
    %c0_i32 = arith.constant 0 : i32
    %c0_i32_0 = arith.constant 0 : i32
    return %arg0, %c0_i32 : i32, i32
  }
}

module attributes {stable_mosaic.version = 11 : i64} {
  func.func @_matmul_bn_kernel(%arg0: i32, %arg1: memref<16x4096xbf16, #tpu.memory_space<vmem>>, %arg2: memref<4096x512xbf16, #tpu.memory_space<vmem>>, %arg3: memref<16x512xf32, #tpu.memory_space<vmem>>, %arg4: memref<1x512xf32, #tpu.memory_space<vmem>>, %arg5: memref<1x512xf32, #tpu.memory_space<vmem>>, %arg6: memref<1x512xf32, #tpu.memory_space<vmem>>, %arg7: memref<1x512xf32, #tpu.memory_space<vmem>>) attributes {dimension_semantics = [#tpu.dimension_semantics<arbitrary>], iteration_bounds = array<i64: 1>, scalar_prefetch = 0 : i64, scratch_operands = 2 : i64, tpu.core_type = #tpu.core_type<tc>, window_params = [{transform_indices = @transform_0, window_bounds = array<i64: 16, 4096>}, {pipeline_mode = #tpu.pipeline_mode<synchronous>, transform_indices = @transform_1, window_bounds = array<i64: 4096, 512>}, {transform_indices = @transform_2, window_bounds = array<i64: 16, 512>}, {pipeline_mode = #tpu.pipeline_mode<synchronous>, transform_indices = @transform_3, window_bounds = array<i64: 1, 512>}, {pipeline_mode = #tpu.pipeline_mode<synchronous>, transform_indices = @transform_4, window_bounds = array<i64: 1, 512>}]} {
    %c0_i32 = arith.constant 0 : i32
    %0 = arith.cmpi eq, %arg0, %c0_i32 : i32
    %1 = arith.extui %0 : i1 to i32
    %c0_i32_0 = arith.constant 0 : i32
    %2 = arith.cmpi ne, %1, %c0_i32_0 : i32
    scf.if %2 {
      %cst_18 = arith.constant 0.000000e+00 : f32
      %21 = vector.broadcast %cst_18 : f32 to vector<1x512xf32>
      %c0_19 = arith.constant 0 : index
      %c0_20 = arith.constant 0 : index
      %22 = vector.load %arg6[%c0_19, %c0_20] : memref<1x512xf32, #tpu.memory_space<vmem>>, vector<1x512xf32>
      tpu.vector_store %arg6[%c0_19, %c0_20], %21 {strides = array<i32>} : memref<1x512xf32, #tpu.memory_space<vmem>>, vector<1x512xf32>,
      %cst_21 = arith.constant 0.000000e+00 : f32
      %23 = vector.broadcast %cst_21 : f32 to vector<1x512xf32>
      %c0_22 = arith.constant 0 : index
      %c0_23 = arith.constant 0 : index
      %24 = vector.load %arg7[%c0_22, %c0_23] : memref<1x512xf32, #tpu.memory_space<vmem>>, vector<1x512xf32>
      tpu.vector_store %arg7[%c0_22, %c0_23], %23 {strides = array<i32>} : memref<1x512xf32, #tpu.memory_space<vmem>>, vector<1x512xf32>,
    } else {
    }
    %c0 = arith.constant 0 : index
    %c0_1 = arith.constant 0 : index
    %3 = vector.load %arg1[%c0, %c0_1] : memref<16x4096xbf16, #tpu.memory_space<vmem>>, vector<16x4096xbf16>
    %c0_2 = arith.constant 0 : index
    %c0_3 = arith.constant 0 : index
    %4 = vector.load %arg2[%c0_2, %c0_3] : memref<4096x512xbf16, #tpu.memory_space<vmem>>, vector<4096x512xbf16>
    %cst = arith.constant dense<0.000000e+00> : vector<16x512xf32>
    %5 = tpu.matmul %3, %4, %cst {dimension_numbers = #tpu.dot_dimension_numbers<[1], [0], [0], [1], [0, 0, 1, 1], [], []>} : vector<16x4096xbf16>, vector<4096x512xbf16>, vector<16x512xf32> -> vector<16x512xf32>
    %c0_4 = arith.constant 0 : index
    %c0_5 = arith.constant 0 : index
    %6 = vector.load %arg3[%c0_4, %c0_5] : memref<16x512xf32, #tpu.memory_space<vmem>>, vector<16x512xf32>
    tpu.vector_store %arg3[%c0_4, %c0_5], %5 {strides = array<i32>} : memref<16x512xf32, #tpu.memory_space<vmem>>, vector<16x512xf32>,
    %c0_6 = arith.constant 0 : index
    %c0_7 = arith.constant 0 : index
    %7 = vector.load %arg6[%c0_6, %c0_7] : memref<1x512xf32, #tpu.memory_space<vmem>>, vector<1x512xf32>
    %cst_8 = arith.constant dense<0.000000e+00> : vector<512xf32>
    %8 = vector.multi_reduction <add>, %5, %cst_8 [0] : vector<16x512xf32> to vector<512xf32>
    %9 = vector.shape_cast %8 : vector<512xf32> to vector<1x512xf32>
    %10 = arith.addf %7, %9 : vector<1x512xf32>
    %c0_9 = arith.constant 0 : index
    %c0_10 = arith.constant 0 : index
    %11 = vector.load %arg6[%c0_9, %c0_10] : memref<1x512xf32, #tpu.memory_space<vmem>>, vector<1x512xf32>
    tpu.vector_store %arg6[%c0_9, %c0_10], %10 {strides = array<i32>} : memref<1x512xf32, #tpu.memory_space<vmem>>, vector<1x512xf32>,
    %c0_11 = arith.constant 0 : index
    %c0_12 = arith.constant 0 : index
    %12 = vector.load %arg7[%c0_11, %c0_12] : memref<1x512xf32, #tpu.memory_space<vmem>>, vector<1x512xf32>
    %13 = arith.mulf %5, %5 : vector<16x512xf32>
    %cst_13 = arith.constant dense<0.000000e+00> : vector<512xf32>
    %14 = vector.multi_reduction <add>, %13, %cst_13 [0] : vector<16x512xf32> to vector<512xf32>
    %15 = vector.shape_cast %14 : vector<512xf32> to vector<1x512xf32>
    %16 = arith.addf %12, %15 : vector<1x512xf32>
    %c0_14 = arith.constant 0 : index
    %c0_15 = arith.constant 0 : index
    %17 = vector.load %arg7[%c0_14, %c0_15] : memref<1x512xf32, #tpu.memory_space<vmem>>, vector<1x512xf32>
    tpu.vector_store %arg7[%c0_14, %c0_15], %16 {strides = array<i32>} : memref<1x512xf32, #tpu.memory_space<vmem>>, vector<1x512xf32>,
    %c0_i32_16 = arith.constant 0 : i32
    %18 = arith.cmpi eq, %arg0, %c0_i32_16 : i32
    %19 = arith.extui %18 : i1 to i32
    %c0_i32_17 = arith.constant 0 : i32
    %20 = arith.cmpi ne, %19, %c0_i32_17 : i32
    scf.if %20 {
      %c0_18 = arith.constant 0 : index
      %c0_19 = arith.constant 0 : index
      %21 = vector.load %arg6[%c0_18, %c0_19] : memref<1x512xf32, #tpu.memory_space<vmem>>, vector<1x512xf32>
      %cst_20 = arith.constant 1.250000e-01 : f32
      %22 = vector.broadcast %cst_20 : f32 to vector<1x512xf32>
      %23 = arith.mulf %21, %22 : vector<1x512xf32>
      %c0_21 = arith.constant 0 : index
      %c0_22 = arith.constant 0 : index
      %24 = vector.load %arg7[%c0_21, %c0_22] : memref<1x512xf32, #tpu.memory_space<vmem>>, vector<1x512xf32>
      %cst_23 = arith.constant 1.250000e-01 : f32
      %25 = vector.broadcast %cst_23 : f32 to vector<1x512xf32>
      %26 = arith.mulf %24, %25 : vector<1x512xf32>
      %27 = arith.mulf %23, %23 : vector<1x512xf32>
      %28 = arith.subf %26, %27 : vector<1x512xf32>
      %c0_24 = arith.constant 0 : index
      %c0_25 = arith.constant 0 : index
      %29 = vector.load %arg4[%c0_24, %c0_25] : memref<1x512xf32, #tpu.memory_space<vmem>>, vector<1x512xf32>
      tpu.vector_store %arg4[%c0_24, %c0_25], %23 {strides = array<i32>} : memref<1x512xf32, #tpu.memory_space<vmem>>, vector<1x512xf32>,
      %cst_26 = arith.constant 0.000000e+00 : f32
      %30 = vector.broadcast %cst_26 : f32 to vector<1x512xf32>
      %31 = arith.maximumf %28, %30 : vector<1x512xf32>
      %c0_27 = arith.constant 0 : index
      %c0_28 = arith.constant 0 : index
      %32 = vector.load %arg5[%c0_27, %c0_28] : memref<1x512xf32, #tpu.memory_space<vmem>>, vector<1x512xf32>
      tpu.vector_store %arg5[%c0_27, %c0_28], %31 {strides = array<i32>} : memref<1x512xf32, #tpu.memory_space<vmem>>, vector<1x512xf32>,
    } else {
    }
    return
  }
  func.func @transform_0(%arg0: i32) -> (i32, i32) {
    %c0_i32 = arith.constant 0 : i32
    %c0_i32_0 = arith.constant 0 : i32
    return %arg0, %c0_i32 : i32, i32
  }
  func.func @transform_1(%arg0: i32) -> (i32, i32) {
    %c0_i32 = arith.constant 0 : i32
    %c0_i32_0 = arith.constant 0 : i32
    %c0_i32_1 = arith.constant 0 : i32
    return %c0_i32, %c0_i32_0 : i32, i32
  }
  func.func @transform_2(%arg0: i32) -> (i32, i32) {
    %c0_i32 = arith.constant 0 : i32
    %c0_i32_0 = arith.constant 0 : i32
    return %arg0, %c0_i32 : i32, i32
  }
  func.func @transform_3(%arg0: i32) -> (i32, i32) {
    %c0_i32 = arith.constant 0 : i32
    %c0_i32_0 = arith.constant 0 : i32
    %c0_i32_1 = arith.constant 0 : i32
    return %c0_i32, %c0_i32_0 : i32, i32
  }
  func.func @transform_4(%arg0: i32) -> (i32, i32) {
    %c0_i32 = arith.constant 0 : i32
    %c0_i32_0 = arith.constant 0 : i32
    %c0_i32_1 = arith.constant 0 : i32
    return %c0_i32, %c0_i32_0 : i32, i32
  }
}

module attributes {stable_mosaic.version = 11 : i64} {
  func.func @_affine_act_kernel(%arg0: i32, %arg1: memref<16x512xf32, #tpu.memory_space<vmem>>, %arg2: memref<1x512xf32, #tpu.memory_space<vmem>>, %arg3: memref<1x512xf32, #tpu.memory_space<vmem>>, %arg4: memref<16x512xbf16, #tpu.memory_space<vmem>>) attributes {dimension_semantics = [#tpu.dimension_semantics<parallel>], iteration_bounds = array<i64: 1>, scalar_prefetch = 0 : i64, scratch_operands = 0 : i64, tpu.core_type = #tpu.core_type<tc>, window_params = [{transform_indices = @transform_0, window_bounds = array<i64: 16, 512>}, {pipeline_mode = #tpu.pipeline_mode<synchronous>, transform_indices = @transform_1, window_bounds = array<i64: 1, 512>}, {pipeline_mode = #tpu.pipeline_mode<synchronous>, transform_indices = @transform_2, window_bounds = array<i64: 1, 512>}, {transform_indices = @transform_3, window_bounds = array<i64: 16, 512>}]} {
    %c0 = arith.constant 0 : index
    %c0_0 = arith.constant 0 : index
    %0 = vector.load %arg1[%c0, %c0_0] : memref<16x512xf32, #tpu.memory_space<vmem>>, vector<16x512xf32>
    %c0_1 = arith.constant 0 : index
    %c0_2 = arith.constant 0 : index
    %1 = vector.load %arg2[%c0_1, %c0_2] : memref<1x512xf32, #tpu.memory_space<vmem>>, vector<1x512xf32>
    %2 = vector.broadcast %1 : vector<1x512xf32> to vector<16x512xf32>
    %3 = arith.mulf %0, %2 : vector<16x512xf32>
    %c0_3 = arith.constant 0 : index
    %c0_4 = arith.constant 0 : index
    %4 = vector.load %arg3[%c0_3, %c0_4] : memref<1x512xf32, #tpu.memory_space<vmem>>, vector<1x512xf32>
    %5 = vector.broadcast %4 : vector<1x512xf32> to vector<16x512xf32>
    %6 = arith.addf %3, %5 : vector<16x512xf32>
    %cst = arith.constant 2.000000e-01 : f32
    %7 = vector.broadcast %cst : f32 to vector<16x512xf32>
    %8 = arith.mulf %7, %6 : vector<16x512xf32>
    %9 = arith.maximumf %6, %8 : vector<16x512xf32>
    %10 = arith.truncf %9 : vector<16x512xf32> to vector<16x512xbf16>
    %c0_5 = arith.constant 0 : index
    %c0_6 = arith.constant 0 : index
    %11 = vector.load %arg4[%c0_5, %c0_6] : memref<16x512xbf16, #tpu.memory_space<vmem>>, vector<16x512xbf16>
    tpu.vector_store %arg4[%c0_5, %c0_6], %10 {strides = array<i32>} : memref<16x512xbf16, #tpu.memory_space<vmem>>, vector<16x512xbf16>,
    return
  }
  func.func @transform_0(%arg0: i32) -> (i32, i32) {
    %c0_i32 = arith.constant 0 : i32
    %c0_i32_0 = arith.constant 0 : i32
    return %arg0, %c0_i32 : i32, i32
  }
  func.func @transform_1(%arg0: i32) -> (i32, i32) {
    %c0_i32 = arith.constant 0 : i32
    %c0_i32_0 = arith.constant 0 : i32
    %c0_i32_1 = arith.constant 0 : i32
    return %c0_i32, %c0_i32_0 : i32, i32
  }
  func.func @transform_2(%arg0: i32) -> (i32, i32) {
    %c0_i32 = arith.constant 0 : i32
    %c0_i32_0 = arith.constant 0 : i32
    %c0_i32_1 = arith.constant 0 : i32
    return %c0_i32, %c0_i32_0 : i32, i32
  }
  func.func @transform_3(%arg0: i32) -> (i32, i32) {
    %c0_i32 = arith.constant 0 : i32
    %c0_i32_0 = arith.constant 0 : i32
    return %arg0, %c0_i32 : i32, i32
  }
}

module attributes {stable_mosaic.version = 11 : i64} {
  func.func @_matmul_bias_kernel(%arg0: i32, %arg1: memref<16x8192xbf16, #tpu.memory_space<vmem>>, %arg2: memref<8192x128xbf16, #tpu.memory_space<vmem>>, %arg3: memref<1x128xf32, #tpu.memory_space<vmem>>, %arg4: memref<16x128xf32, #tpu.memory_space<vmem>>) attributes {dimension_semantics = [#tpu.dimension_semantics<parallel>], iteration_bounds = array<i64: 1>, scalar_prefetch = 0 : i64, scratch_operands = 0 : i64, tpu.core_type = #tpu.core_type<tc>, window_params = [{transform_indices = @transform_0, window_bounds = array<i64: 16, 8192>}, {pipeline_mode = #tpu.pipeline_mode<synchronous>, transform_indices = @transform_1, window_bounds = array<i64: 8192, 128>}, {pipeline_mode = #tpu.pipeline_mode<synchronous>, transform_indices = @transform_2, window_bounds = array<i64: 1, 128>}, {transform_indices = @transform_3, window_bounds = array<i64: 16, 128>}]} {
    %c0 = arith.constant 0 : index
    %c0_0 = arith.constant 0 : index
    %0 = vector.load %arg1[%c0, %c0_0] : memref<16x8192xbf16, #tpu.memory_space<vmem>>, vector<16x8192xbf16>
    %c0_1 = arith.constant 0 : index
    %c0_2 = arith.constant 0 : index
    %1 = vector.load %arg2[%c0_1, %c0_2] : memref<8192x128xbf16, #tpu.memory_space<vmem>>, vector<8192x128xbf16>
    %cst = arith.constant dense<0.000000e+00> : vector<16x128xf32>
    %2 = tpu.matmul %0, %1, %cst {dimension_numbers = #tpu.dot_dimension_numbers<[1], [0], [0], [1], [0, 0, 1, 1], [], []>} : vector<16x8192xbf16>, vector<8192x128xbf16>, vector<16x128xf32> -> vector<16x128xf32>
    %c0_3 = arith.constant 0 : index
    %c0_4 = arith.constant 0 : index
    %3 = vector.load %arg3[%c0_3, %c0_4] : memref<1x128xf32, #tpu.memory_space<vmem>>, vector<1x128xf32>
    %4 = vector.broadcast %3 : vector<1x128xf32> to vector<16x128xf32>
    %5 = arith.addf %2, %4 : vector<16x128xf32>
    %c0_5 = arith.constant 0 : index
    %c0_6 = arith.constant 0 : index
    %6 = vector.load %arg4[%c0_5, %c0_6] : memref<16x128xf32, #tpu.memory_space<vmem>>, vector<16x128xf32>
    tpu.vector_store %arg4[%c0_5, %c0_6], %5 {strides = array<i32>} : memref<16x128xf32, #tpu.memory_space<vmem>>, vector<16x128xf32>,
    return
  }
  func.func @transform_0(%arg0: i32) -> (i32, i32) {
    %c0_i32 = arith.constant 0 : i32
    %c0_i32_0 = arith.constant 0 : i32
    return %arg0, %c0_i32 : i32, i32
  }
  func.func @transform_1(%arg0: i32) -> (i32, i32) {
    %c0_i32 = arith.constant 0 : i32
    %c0_i32_0 = arith.constant 0 : i32
    %c0_i32_1 = arith.constant 0 : i32
    return %c0_i32, %c0_i32_0 : i32, i32
  }
  func.func @transform_2(%arg0: i32) -> (i32, i32) {
    %c0_i32 = arith.constant 0 : i32
    %c0_i32_0 = arith.constant 0 : i32
    %c0_i32_1 = arith.constant 0 : i32
    return %c0_i32, %c0_i32_0 : i32, i32
  }
  func.func @transform_3(%arg0: i32) -> (i32, i32) {
    %c0_i32 = arith.constant 0 : i32
    %c0_i32_0 = arith.constant 0 : i32
    return %arg0, %c0_i32 : i32, i32
  }
}

</mosaic_0001>

<bundles_post_ra>
// kernel: discriminator_forward.8
= control target key start
LH: loop header
LB: loop body
LE: loop exit
PB: predicated region body
PF: predicated region fallthrough
CT: control target
= control target key end

     0   :  { %s1158_s12 = smov 0   ;;  %s1279_s0 = inlined_call_operand.vmem [shape: bf16[512,128], index: 0, kind: input, shape index: {}]   ;;  %s1280_s1 = inlined_call_operand.vmem [shape: bf16[128,128], index: 1, kind: input, shape index: {}]   ;;  %s1281_s2 = inlined_call_operand.vmem [shape: f32[1,128], index: 2, kind: input, shape index: {}]   ;;  %s1282_s3 = inlined_call_operand.vmem [shape: bf16[512,128], index: 3, kind: output, shape index: {}]  }
   0x1 LB: > { %s815_s13 = sadd.s32 4294967295, %s1136_s12   ;;  %p819_p0 = scmp.ge.s32.totalorder %s1136_s12, 1  ;;  %s1136_s12 = sphi %s1158_s12, %s13_s12  }
   0x2   : > { %p138_p1 = scmp.lt.s32.totalorder %s1136_s12, 3 }
   0x4   : > { %p139_p2 = pnand %p819_p0, %p138_p1 }
   0x5   : > { %v1106_v0 = vld [vmem:[%s1280_s1] sm:$0xff] (!%p139_p2)   ;;  %s820_s16 = sshll.u32 (!%p139_p2), %s815_s13, 5  ;;  %v1107_v1 = vld [vmem:[%s1280_s1 + $0x8] sm:$0xff] (!%p139_p2)   ;;  %v1108_v2 = vld [vmem:[%s1280_s1 + $0x10] sm:$0xff] (!%p139_p2)  }
   0x6   : > { %142 = sbr.rel (%p139_p2) target bundleno = 287 (0x11f), region = 32  ;;  %p163_p3 = scmp.lt.s32.totalorder (!%p139_p2), %s820_s16, 63  ;;  %1034 = vmatprep.subr.bf16.mxu0 (!%p139_p2), %v1106_v0  ;;  %1082 = vmatprep.subr.bf16.mxu1 (!%p139_p2), %v1106_v0  ;;  %v1109_v3 = vld [vmem:[%s1280_s1 + $0x18] sm:$0xff] (!%p139_p2)   ;;  %v1110_v6 = vld [vmem:[%s1280_s1 + $0x20] sm:$0xff] (!%p139_p2)   ;;  %v1111_v7 = vld [vmem:[%s1280_s1 + $0x28] sm:$0xff] (!%p139_p2)  }
   0x7   : > { %1035 = vmatpush3.bf16.msra.mxu0 (!%p139_p2), %v1106_v0  ;;  %1090 = vmatpush3.bf16.msra.mxu1 (!%p139_p2), %v1106_v0  ;;  %v1112_v8 = vld [vmem:[%s1280_s1 + $0x30] sm:$0xff] (!%p139_p2)   ;;  %v1113_v9 = vld [vmem:[%s1280_s1 + $0x38] sm:$0xff] (!%p139_p2)   ;;  %v1219_v24 = vld [vmem:[%s1281_s2] ss:$0 sm:$0xff] (!%p139_p2) }
   0x8   : > { %1036 = vmatprep.subr.bf16.mxu0 (!%p139_p2), %v1107_v1  ;;  %1083 = vmatprep.subr.bf16.mxu1 (!%p139_p2), %v1107_v1 }
   0xb   : > { %1037 = vmatpush3.bf16.msra.mxu0 (!%p139_p2), %v1107_v1  ;;  %1091 = vmatpush3.bf16.msra.mxu1 (!%p139_p2), %v1107_v1 }
   0xc   : > { %1038 = vmatprep.subr.bf16.mxu0 (!%p139_p2), %v1108_v2  ;;  %1084 = vmatprep.subr.bf16.mxu1 (!%p139_p2), %v1108_v2 }
   0xd   : > { %s1284_s16 = smov (!%p163_p3, %s820_s16), 63 }
   0xe   : > { %s821_s21 = sshll.u32 %s1284_s16, 2 }
   0xf   : > { %s1183_s24 = scalar_lea.vmem %s1279_s0, %s821_s21  ;;  %1039 = vmatpush3.bf16.msra.mxu0 %v1108_v2  ;;  %1092 = vmatpush3.bf16.msra.mxu1 %v1108_v2  ;;  %s1234_s13 = scalar_lea.vmem %s1282_s3, %s821_s21 }
  0x10   : > { %v1114_v4 = vld [vmem:[%s1183_s24] sm:$0xff]   ;;  %1040 = vmatprep.subr.bf16.mxu0 %v1109_v3  ;;  %1085 = vmatprep.subr.bf16.mxu1 %v1109_v3  ;;  %v1116_v10 = vld [vmem:[%s1183_s24 + $0x8] sm:$0xff]   ;;  %v1118_v12 = vld [vmem:[%s1183_s24 + $0x10] sm:$0xff]  }
  0x11   : > { %v1115_v5 = vld [vmem:[%s1183_s24 + $0x40] sm:$0xff]   ;;  %1050 = vmatprep.mubr.bf16.mxu0 %v1114_v4  ;;  %v1117_v11 = vld [vmem:[%s1183_s24 + $0x48] sm:$0xff]   ;;  %v1119_v13 = vld [vmem:[%s1183_s24 + $0x50] sm:$0xff]  }
  0x12   : > { %1066 = vmatprep.mubr.bf16.mxu1 %v1115_v5  ;;  %v1120_v14 = vld [vmem:[%s1183_s24 + $0x18] sm:$0xff]   ;;  %v1122_v16 = vld [vmem:[%s1183_s24 + $0x20] sm:$0xff]   ;;  %v1124_v18 = vld [vmem:[%s1183_s24 + $0x28] sm:$0xff]  }
  0x13   : > { %1041 = vmatpush3.bf16.msra.mxu0 %v1109_v3  ;;  %1093 = vmatpush3.bf16.msra.mxu1 %v1109_v3  ;;  %v1121_v15 = vld [vmem:[%s1183_s24 + $0x58] sm:$0xff]   ;;  %v1123_v17 = vld [vmem:[%s1183_s24 + $0x60] sm:$0xff]   ;;  %v1125_v19 = vld [vmem:[%s1183_s24 + $0x68] sm:$0xff]  }
  0x14   : > { %1042 = vmatprep.subr.bf16.mxu0 %v1110_v6  ;;  %1086 = vmatprep.subr.bf16.mxu1 %v1110_v6  ;;  %v1126_v20 = vld [vmem:[%s1183_s24 + $0x30] sm:$0xff]   ;;  %v1128_v22 = vld [vmem:[%s1183_s24 + $0x38] sm:$0xff]  }
  0x15   : > { %v1127_v21 = vld [vmem:[%s1183_s24 + $0x70] sm:$0xff]   ;;  %v1129_v23 = vld [vmem:[%s1183_s24 + $0x78] sm:$0xff]  }
  0x17   : > { %1043 = vmatpush3.bf16.msra.mxu0 %v1110_v6  ;;  %1094 = vmatpush3.bf16.msra.mxu1 %v1110_v6 }
  0x18   : > { %1044 = vmatprep.subr.bf16.mxu0 %v1111_v7  ;;  %1087 = vmatprep.subr.bf16.mxu1 %v1111_v7 }
  0x1b   : > { %1045 = vmatpush3.bf16.msra.mxu0 %v1111_v7  ;;  %1095 = vmatpush3.bf16.msra.mxu1 %v1111_v7 }
  0x1c   : > { %1046 = vmatprep.subr.bf16.mxu0 %v1112_v8  ;;  %1088 = vmatprep.subr.bf16.mxu1 %v1112_v8 }
  0x1f   : > { %1047 = vmatpush3.bf16.msra.mxu0 %v1112_v8  ;;  %1096 = vmatpush3.bf16.msra.mxu1 %v1112_v8 }
  0x20   : > { %1048 = vmatprep.subr.bf16.mxu0 %v1113_v9  ;;  %1089 = vmatprep.subr.bf16.mxu1 %v1113_v9 }
  0x23   : > { %1049 = vmatpush3.bf16.msra.mxu0 %v1113_v9  ;;  %1097 = vmatpush3.bf16.msra.mxu1 %v1113_v9 }
  0x26   : > { %1051 = vmatmul.mubr.bf16.vlgmr.msra.gmra.mrb[0].mxu0 %v1116_v10  ;;  %1067 = vmatmul.mubr.bf16.vlgmr.msra.gmra.mrb[0].mxu1 %v1117_v11 }
  0x27   : > { %1054 = vmatprep.mubr.bf16.mxu0 %v1118_v12  ;;  %1070 = vmatprep.mubr.bf16.mxu1 %v1119_v13 }
  0x2e   : > { %1055 = vmatmul.mubr.bf16.gmra.mrb[4].mxu0 %v1120_v14  ;;  %1071 = vmatmul.mubr.bf16.gmra.mrb[4].mxu1 %v1121_v15 }
  0x2f   : > { %1058 = vmatprep.mubr.bf16.mxu0 %v1122_v16  ;;  %1074 = vmatprep.mubr.bf16.mxu1 %v1123_v17 }
  0x36   : > { %1059 = vmatmul.mubr.bf16.gmra.mrb[8].mxu0 %v1124_v18  ;;  %1075 = vmatmul.mubr.bf16.gmra.mrb[8].mxu1 %v1125_v19 }
  0x37   : > { %1062 = vmatprep.mubr.bf16.mxu0 %v1126_v20  ;;  %1078 = vmatprep.mubr.bf16.mxu1 %v1127_v21 }
  0x3e   : > { %1063 = vmatmul.mubr.bf16.gmra.mrb[12].mxu0 %v1128_v22  ;;  %1079 = vmatmul.mubr.bf16.gmra.mrb[12].mxu1 %v1129_v23 }
  0xf9   : > { %v1052_v25 = vpop.f32.mrb[0].mxu0  ;;  %v1068_v26 = vpop.f32.mrb[0].mxu1 }
  0xfa   : > { %v417_v27 = vadd.f32 %v1052_v25, %v1219_v24  ;;  %v481_v28 = vadd.f32 %v1068_v26, %v1219_v24  ;;  %v408_v29 = vpop.f32.mrb[1].mxu0  ;;  %v472_v30 = vpop.f32.mrb[1].mxu1 }
  0xfb   : > { %v409_v31 = vadd.f32 %v1219_v24, %v408_v29  ;;  %v473_v32 = vadd.f32 %v1219_v24, %v472_v30  ;;  %v1053_v33 = vpop.f32.mrb[2].mxu0  ;;  %v1069_v34 = vpop.f32.mrb[2].mxu1 }
  0xfc   : > { %v537_v35 = vmul.f32 0.2, %v417_v27  ;;  %v553_v36 = vmul.f32 0.2, %v481_v28  ;;  %v420_v37 = vadd.f32 %v1053_v33, %v1219_v24  ;;  %v484_v38 = vadd.f32 %v1069_v34, %v1219_v24  ;;  %v411_v39 = vpop.f32.mrb[3].mxu0  ;;  %v475_v40 = vpop.f32.mrb[3].mxu1 }
  0xfd   : > { %v535_v41 = vmul.f32 0.2, %v409_v31  ;;  %v551_v42 = vmul.f32 0.2, %v473_v32  ;;  %v412_v43 = vadd.f32 %v1219_v24, %v411_v39  ;;  %v476_v44 = vadd.f32 %v1219_v24, %v475_v40 }
  0xfe   : > { %v538_v45 = vmul.f32 0.2, %v420_v37  ;;  %v554_v46 = vmul.f32 0.2, %v484_v38  ;;  %v569_v49 = vmax.f32 %v417_v27, %v537_v35  ;;  %v585_v50 = vmax.f32 %v481_v28, %v553_v36 }
  0xff   : > { %v536_v47 = vmul.f32 0.2, %v412_v43  ;;  %v552_v48 = vmul.f32 0.2, %v476_v44  ;;  %v567_v53 = vmax.f32 %v409_v31, %v535_v41  ;;  %v583_v54 = vmax.f32 %v473_v32, %v551_v42 }
 0x100   : > { %v570_v51 = vmax.f32 %v420_v37, %v538_v45  ;;  %v586_v52 = vmax.f32 %v484_v38, %v554_v46 }
 0x101   : > { %v568_v55 = vmax.f32 %v412_v43, %v536_v47  ;;  %v584_v56 = vmax.f32 %v476_v44, %v552_v48  ;;  %v1056_v57 = vpop.f32.mrb[4].mxu0  ;;  %v1072_v58 = vpop.f32.mrb[4].mxu1 }
 0x102   : > { %v923_v59 = vpack.c.bf16 %v570_v51, %v569_v49  ;;  %v963_v60 = vpack.c.bf16 %v586_v52, %v585_v50  ;;  %v433_v61 = vadd.f32 %v1056_v57, %v1219_v24  ;;  %v497_v62 = vadd.f32 %v1072_v58, %v1219_v24  ;;  %v424_v63 = vpop.f32.mrb[5].mxu0  ;;  %v488_v0 = vpop.f32.mrb[5].mxu1 }
 0x103   : > { %v918_v1 = vpack.c.bf16 %v568_v55, %v567_v53  ;;  %v958_v2 = vpack.c.bf16 %v584_v56, %v583_v54  ;;  %v425_v3 = vadd.f32 %v1219_v24, %v424_v63  ;;  %v489_v4 = vadd.f32 %v1219_v24, %v488_v0  ;;  %v1057_v5 = vpop.f32.mrb[6].mxu0  ;;  %v1073_v6 = vpop.f32.mrb[6].mxu1 }
 0x104   : > { %995 = vst [vmem:[%s1234_s13 + $0x8] sm:$0xff] %v923_v59   ;;  %1003 = vst [vmem:[%s1234_s13 + $0x48] sm:$0xff] %v963_v60   ;;  %v541_v7 = vmul.f32 0.2, %v433_v61  ;;  %v557_v8 = vmul.f32 0.2, %v497_v62  ;;  %v436_v9 = vadd.f32 %v1057_v5, %v1219_v24  ;;  %v500_v10 = vadd.f32 %v1073_v6, %v1219_v24 }
 0x105   : > { %v427_v11 = vpop.f32.mrb[7].mxu0  ;;  %v491_v12 = vpop.f32.mrb[7].mxu1  ;;  %919 = vst [vmem:[%s1234_s13] sm:$0xff] %v918_v1   ;;  %1002 = vst [vmem:[%s1234_s13 + $0x40] sm:$0xff] %v958_v2   ;;  %v539_v13 = vmul.f32 0.2, %v425_v3 }
 0x106   : > { %v555_v14 = vmul.f32 0.2, %v489_v4  ;;  %v428_v15 = vadd.f32 %v1219_v24, %v427_v11  ;;  %v492_v16 = vadd.f32 %v1219_v24, %v491_v12  ;;  %v542_v17 = vmul.f32 0.2, %v436_v9 }
 0x107   : > { %v558_v18 = vmul.f32 0.2, %v500_v10  ;;  %v573_v21 = vmax.f32 %v433_v61, %v541_v7  ;;  %v589_v22 = vmax.f32 %v497_v62, %v557_v8  ;;  %v571_v26 = vmax.f32 %v425_v3, %v539_v13 }
 0x108   : > { %v540_v19 = vmul.f32 0.2, %v428_v15  ;;  %v556_v20 = vmul.f32 0.2, %v492_v16  ;;  %v574_v23 = vmax.f32 %v436_v9, %v542_v17  ;;  %v587_v27 = vmax.f32 %v489_v4, %v555_v14 }
 0x109   : > { %v590_v25 = vmax.f32 %v500_v10, %v558_v18  ;;  %v1060_v30 = vpop.f32.mrb[8].mxu0  ;;  %v1076_v31 = vpop.f32.mrb[8].mxu1 }
 0x10a   : > { %v572_v28 = vmax.f32 %v428_v15, %v540_v19  ;;  %v588_v29 = vmax.f32 %v492_v16, %v556_v20  ;;  %v933_v32 = vpack.c.bf16 %v574_v23, %v573_v21  ;;  %v449_v34 = vadd.f32 %v1060_v30, %v1219_v24  ;;  %v440_v36 = vpop.f32.mrb[9].mxu0  ;;  %v504_v37 = vpop.f32.mrb[9].mxu1 }
 0x10b   : > { %v973_v33 = vpack.c.bf16 %v590_v25, %v589_v22  ;;  %v513_v35 = vadd.f32 %v1076_v31, %v1219_v24  ;;  %v441_v40 = vadd.f32 %v1219_v24, %v440_v36  ;;  %v505_v41 = vadd.f32 %v1219_v24, %v504_v37  ;;  %v1061_v42 = vpop.f32.mrb[10].mxu0  ;;  %v1077_v43 = vpop.f32.mrb[10].mxu1 }
 0x10c   : > { %v928_v38 = vpack.c.bf16 %v572_v28, %v571_v26  ;;  %v968_v39 = vpack.c.bf16 %v588_v29, %v587_v27  ;;  %997 = vst [vmem:[%s1234_s13 + $0x18] sm:$0xff] %v933_v32   ;;  %v545_v44 = vmul.f32 0.2, %v449_v34  ;;  %v452_v46 = vadd.f32 %v1061_v42, %v1219_v24  ;;  %v443_v48 = vpop.f32.mrb[11].mxu0  ;;  %v507_v49 = vpop.f32.mrb[11].mxu1 }
 0x10d   : > { %1005 = vst [vmem:[%s1234_s13 + $0x58] sm:$0xff] %v973_v33   ;;  %v561_v45 = vmul.f32 0.2, %v513_v35  ;;  %v516_v47 = vadd.f32 %v1077_v43, %v1219_v24  ;;  %v543_v50 = vmul.f32 0.2, %v441_v40  ;;  %v444_v52 = vadd.f32 %v1219_v24, %v443_v48 }
 0x10e   : > { %996 = vst [vmem:[%s1234_s13 + $0x10] sm:$0xff] %v928_v38   ;;  %1004 = vst [vmem:[%s1234_s13 + $0x50] sm:$0xff] %v968_v39   ;;  %v559_v51 = vmul.f32 0.2, %v505_v41  ;;  %v508_v53 = vadd.f32 %v1219_v24, %v507_v49  ;;  %v546_v54 = vmul.f32 0.2, %v452_v46  ;;  %v577_v58 = vmax.f32 %v449_v34, %v545_v44 }
 0x10f   : > { %v562_v55 = vmul.f32 0.2, %v516_v47  ;;  %v544_v56 = vmul.f32 0.2, %v444_v52  ;;  %v593_v59 = vmax.f32 %v513_v35, %v561_v45  ;;  %v575_v62 = vmax.f32 %v441_v40, %v543_v50 }
 0x110   : > { %v560_v57 = vmul.f32 0.2, %v508_v53  ;;  %v578_v60 = vmax.f32 %v452_v46, %v546_v54  ;;  %v591_v63 = vmax.f32 %v505_v41, %v559_v51 }
 0x111   : > { %v594_v61 = vmax.f32 %v516_v47, %v562_v55  ;;  %v576_v0 = vmax.f32 %v444_v52, %v544_v56  ;;  %v1064_v2 = vpop.f32.mrb[12].mxu0  ;;  %v1080_v3 = vpop.f32.mrb[12].mxu1 }
 0x112   : > { %v592_v1 = vmax.f32 %v508_v53, %v560_v57  ;;  %v943_v4 = vpack.c.bf16 %v578_v60, %v577_v58  ;;  %v465_v6 = vadd.f32 %v1064_v2, %v1219_v24  ;;  %v529_v7 = vadd.f32 %v1080_v3, %v1219_v24  ;;  %v456_v8 = vpop.f32.mrb[13].mxu0  ;;  %v520_v9 = vpop.f32.mrb[13].mxu1 }
 0x113   : > { %v983_v5 = vpack.c.bf16 %v594_v61, %v593_v59  ;;  %v938_v10 = vpack.c.bf16 %v576_v0, %v575_v62  ;;  %v457_v12 = vadd.f32 %v1219_v24, %v456_v8  ;;  %v521_v13 = vadd.f32 %v1219_v24, %v520_v9  ;;  %v1065_v14 = vpop.f32.mrb[14].mxu0  ;;  %v1081_v15 = vpop.f32.mrb[14].mxu1 }
 0x114   : > { %v978_v11 = vpack.c.bf16 %v592_v1, %v591_v63  ;;  %999 = vst [vmem:[%s1234_s13 + $0x28] sm:$0xff] %v943_v4   ;;  %v549_v16 = vmul.f32 0.2, %v465_v6  ;;  %v565_v17 = vmul.f32 0.2, %v529_v7  ;;  %v468_v18 = vadd.f32 %v1065_v14, %v1219_v24  ;;  %v459_v20 = vpop.f32.mrb[15].mxu0 }
 0x115   : > { %1007 = vst [vmem:[%s1234_s13 + $0x68] sm:$0xff] %v983_v5   ;;  %v532_v19 = vadd.f32 %v1081_v15, %v1219_v24  ;;  %v523_v21 = vpop.f32.mrb[15].mxu1  ;;  %998 = vst [vmem:[%s1234_s13 + $0x20] sm:$0xff] %v938_v10   ;;  %v547_v22 = vmul.f32 0.2, %v457_v12  ;;  %v460_v25 = vadd.f32 %v1219_v24, %v459_v20 }
 0x116   : > { %1006 = vst [vmem:[%s1234_s13 + $0x60] sm:$0xff] %v978_v11   ;;  %v563_v23 = vmul.f32 0.2, %v521_v13  ;;  %v524_v26 = vadd.f32 %v1219_v24, %v523_v21  ;;  %v550_v27 = vmul.f32 0.2, %v468_v18  ;;  %v581_v31 = vmax.f32 %v465_v6, %v549_v16 }
 0x117   : > { %v566_v28 = vmul.f32 0.2, %v532_v19  ;;  %v548_v29 = vmul.f32 0.2, %v460_v25  ;;  %v597_v32 = vmax.f32 %v529_v7, %v565_v17  ;;  %v579_v35 = vmax.f32 %v457_v12, %v547_v22 }
 0x118   : > { %v564_v30 = vmul.f32 0.2, %v524_v26  ;;  %v582_v33 = vmax.f32 %v468_v18, %v550_v27  ;;  %v595_v36 = vmax.f32 %v521_v13, %v563_v23 }
 0x119   : > { %v598_v34 = vmax.f32 %v532_v19, %v566_v28  ;;  %v580_v37 = vmax.f32 %v460_v25, %v548_v29 }
 0x11a   : > { %v596_v38 = vmax.f32 %v524_v26, %v564_v30  ;;  %v953_v39 = vpack.c.bf16 %v582_v33, %v581_v31 }
 0x11b   : > { %v993_v40 = vpack.c.bf16 %v598_v34, %v597_v32  ;;  %v948_v41 = vpack.c.bf16 %v580_v37, %v579_v35 }
 0x11c   : > { %v988_v24 = vpack.c.bf16 %v596_v38, %v595_v36  ;;  %1001 = vst [vmem:[%s1234_s13 + $0x38] sm:$0xff] %v953_v39  }
 0x11d   : > { %1009 = vst [vmem:[%s1234_s13 + $0x78] sm:$0xff] %v993_v40   ;;  %1000 = vst [vmem:[%s1234_s13 + $0x30] sm:$0xff] %v948_v41  }
 0x11e   : > { %1008 = vst [vmem:[%s1234_s13 + $0x70] sm:$0xff] %v988_v24  }
 0x11f PF: > { %s13_s12 = sadd.s32 1, %s1136_s12  }
 0x120   : > { %p10_p4 = scmp.ge.s32.totalorder %s13_s12, 4  }
 0x122   :  { %12 = sbr.rel (!%p10_p4) target bundleno = 1 (0x1), region = 62 }

// kernel: discriminator_forward.9
= control target key start
LH: loop header
LB: loop body
LE: loop exit
PB: predicated region body
PF: predicated region fallthrough
CT: control target
= control target key end

     0   :  { %s1677_s15 = smov 0   ;;  %s1956_s0 = inlined_call_operand.vmem [shape: bf16[128,1024], index: 0, kind: input, shape index: {}]   ;;  %s1957_s1 = inlined_call_operand.vmem [shape: bf16[1024,128], index: 1, kind: input, shape index: {}]   ;;  %s1958_s2 = inlined_call_operand.vmem [shape: f32[128,128], index: 2, kind: output, shape index: {0}]   ;;  %s1959_s3 = inlined_call_operand.vmem [shape: f32[1,128], index: 3, kind: output, shape index: {1}]   ;;  %s1960_s4 = inlined_call_operand.vmem [shape: f32[1,128], index: 4, kind: output, shape index: {2}]  }
   0x1 LB: > { %s1683_s16 = sadd.s32 4294967295, %s1649_s15   ;;  %p1303_p0 = scmp.ge.s32.totalorder %s1649_s15, 1  ;;  %s1649_s15 = sphi %s1677_s15, %s15_s15  }
   0x2   : > { %p159_p1 = scmp.lt.s32.totalorder %s1649_s15, 3 }
   0x4   : > { %p160_p2 = pnand %p1303_p0, %p159_p1 }
   0x5   : > { %s1304_s17 = sshll.u32 (!%p160_p2), %s1683_s16, 3  ;;  %p1309_p4 = scmp.ne.s32.totalorder (!%p160_p2), %s1683_s16, 0 }
   0x6   : > { %163 = sbr.rel (%p160_p2) target bundleno = 364 (0x16c), region = 28  ;;  %p187_p3 = scmp.lt.s32.totalorder (!%p160_p2), %s1304_s17, 15 }
   0xd   : > { %s1962_s17 = smov (!%p187_p3, %s1304_s17), 15  ;;  %203 = sbr.rel (%p1309_p4) target bundleno = 20 (0x14), region = 32 }
   0xe   : > { %s1409_s18 = sshll.u32 %s1962_s17, 5  ;;  %s1308_s19 = sshll.u32 %s1962_s17, 3  ;;  %v1651_v0 = vmov (!%p1309_p4), 0.0  }
   0xf   : > { %s1691_s22 = scalar_lea.vmem %s1956_s0, %s1409_s18  ;;  %s1696_s25 = scalar_lea.vmem %s1958_s2, %s1308_s19  ;;  %204 = vst [vmem:[#allocation2] sm:$0x1] (!%p1309_p4), %v1651_v0  ;;  %205 = vst [vmem:[#allocation3] sm:$0x1] (!%p1309_p4), %v1651_v0 }
  0x14 PF: > { %v1579_v1 = vld [vmem:[%s1957_s1 + $0x40] sm:$0xff]   ;;  %v1583_v5 = vld [vmem:[%s1957_s1 + $0x48] sm:$0xff]   ;;  %v1587_v9 = vld [vmem:[%s1957_s1 + $0x50] sm:$0xff]   ;;  %p1406_p5 = scmp.ne.s32.totalorder %s1683_s16, 1 }
  0x15   : > { %v1580_v2 = vld [vmem:[%s1957_s1 + $0xc0] sm:$0xff]   ;;  %1410 = vmatprep.subr.bf16.mxu0 %v1579_v1  ;;  %v1584_v6 = vld [vmem:[%s1957_s1 + $0xc8] sm:$0xff]   ;;  %v1588_v10 = vld [vmem:[%s1957_s1 + $0xd0] sm:$0xff]  }
  0x16   : > { %v1581_v3 = vld [vmem:[%s1957_s1] sm:$0xff]   ;;  %1450 = vmatprep.subr.bf16.mxu1 %v1580_v2  ;;  %v1585_v7 = vld [vmem:[%s1957_s1 + $0x8] sm:$0xff]   ;;  %v1589_v11 = vld [vmem:[%s1957_s1 + $0x10] sm:$0xff]  }
  0x17   : > { %v1582_v4 = vld [vmem:[%s1957_s1 + $0x80] sm:$0xff]   ;;  %1411 = vmatpush3.bf16.msra.mxu0 %v1581_v3  ;;  %v1586_v8 = vld [vmem:[%s1957_s1 + $0x88] sm:$0xff]   ;;  %v1590_v12 = vld [vmem:[%s1957_s1 + $0x90] sm:$0xff]  }
  0x18   : > { %1451 = vmatpush3.bf16.msra.mxu1 %v1582_v4  ;;  %1412 = vmatprep.subr.bf16.mxu0 %v1583_v5  ;;  %v1591_v13 = vld [vmem:[%s1957_s1 + $0x58] sm:$0xff]   ;;  %v1595_v17 = vld [vmem:[%s1957_s1 + $0x60] sm:$0xff]   ;;  %v1599_v21 = vld [vmem:[%s1957_s1 + $0x68] sm:$0xff]  }
  0x19   : > { %1452 = vmatprep.subr.bf16.mxu1 %v1584_v6  ;;  %v1592_v14 = vld [vmem:[%s1957_s1 + $0xd8] sm:$0xff]   ;;  %v1596_v18 = vld [vmem:[%s1957_s1 + $0xe0] sm:$0xff]   ;;  %v1600_v22 = vld [vmem:[%s1957_s1 + $0xe8] sm:$0xff]  }
  0x1a   : > { %v1593_v15 = vld [vmem:[%s1957_s1 + $0x18] sm:$0xff]   ;;  %v1597_v19 = vld [vmem:[%s1957_s1 + $0x20] sm:$0xff]   ;;  %v1601_v23 = vld [vmem:[%s1957_s1 + $0x28] sm:$0xff]  }
  0x1b   : > { %1413 = vmatpush3.bf16.msra.mxu0 %v1585_v7  ;;  %v1594_v16 = vld [vmem:[%s1957_s1 + $0x98] sm:$0xff]   ;;  %v1598_v20 = vld [vmem:[%s1957_s1 + $0xa0] sm:$0xff]   ;;  %v1602_v24 = vld [vmem:[%s1957_s1 + $0xa8] sm:$0xff]  }
  0x1c   : > { %1453 = vmatpush3.bf16.msra.mxu1 %v1586_v8  ;;  %1414 = vmatprep.subr.bf16.mxu0 %v1587_v9  ;;  %v1603_v25 = vld [vmem:[%s1957_s1 + $0x70] sm:$0xff]   ;;  %v1607_v29 = vld [vmem:[%s1957_s1 + $0x78] sm:$0xff]   ;;  %v206_v33 = vld [vmem:[%s1691_s22] sm:$0xff] }
  0x1d   : > { %1454 = vmatprep.subr.bf16.mxu1 %v1588_v10  ;;  %v1604_v26 = vld [vmem:[%s1957_s1 + $0xf0] sm:$0xff]   ;;  %v1608_v30 = vld [vmem:[%s1957_s1 + $0xf8] sm:$0xff]   ;;  %v210_v34 = vld [vmem:[%s1691_s22 + $0x20] sm:$0xff] }
  0x1e   : > { %v1605_v27 = vld [vmem:[%s1957_s1 + $0x30] sm:$0xff]   ;;  %v1609_v31 = vld [vmem:[%s1957_s1 + $0x38] sm:$0xff]   ;;  %v207_v35 = vld [vmem:[%s1691_s22 + $0x8] sm:$0xff]  ;;  %v1310_v36 = vcombine.low %v206_v33, %v210_v34  ;;  %v1311_v37 = vcombine.high %v206_v33, %v210_v34 }
  0x1f   : > { %1415 = vmatpush3.bf16.msra.mxu0 %v1589_v11  ;;  %v1606_v28 = vld [vmem:[%s1957_s1 + $0xb0] sm:$0xff]   ;;  %v1610_v32 = vld [vmem:[%s1957_s1 + $0xb8] sm:$0xff]   ;;  %v211_v38 = vld [vmem:[%s1691_s22 + $0x28] sm:$0xff] }
  0x20   : > { %1455 = vmatpush3.bf16.msra.mxu1 %v1590_v12  ;;  %1416 = vmatprep.subr.bf16.mxu0 %v1591_v13  ;;  %v1312_v39 = vcombine.low %v207_v35, %v211_v38  ;;  %v1313_v40 = vcombine.high %v207_v35, %v211_v38  ;;  %v1611_v41 = vld [vmem:[%s1957_s1 + $0x140] sm:$0xff]   ;;  %v1615_v45 = vld [vmem:[%s1957_s1 + $0x148] sm:$0xff]   ;;  %v1619_v57 = vld [vmem:[%s1957_s1 + $0x150] sm:$0xff]  }
  0x21   : > { %1456 = vmatprep.subr.bf16.mxu1 %v1592_v14  ;;  %942 = vmatprep.mubr.bf16.mxu0 %v1311_v37  ;;  %v1612_v42 = vld [vmem:[%s1957_s1 + $0x1c0] sm:$0xff]   ;;  %v1616_v46 = vld [vmem:[%s1957_s1 + $0x1c8] sm:$0xff]   ;;  %v1620_v58 = vld [vmem:[%s1957_s1 + $0x1d0] sm:$0xff]  }
  0x22   : > { %1007 = vmatprep.mubr.bf16.mxu1 %v1313_v40  ;;  %v1613_v43 = vld [vmem:[%s1957_s1 + $0x100] sm:$0xff]   ;;  %v1617_v47 = vld [vmem:[%s1957_s1 + $0x108] sm:$0xff]   ;;  %v1621_v59 = vld [vmem:[%s1957_s1 + $0x110] sm:$0xff]  }
  0x23   : > { %1417 = vmatpush3.bf16.msra.mxu0 %v1593_v15  ;;  %v1614_v44 = vld [vmem:[%s1957_s1 + $0x180] sm:$0xff]   ;;  %v1618_v48 = vld [vmem:[%s1957_s1 + $0x188] sm:$0xff]   ;;  %v1622_v60 = vld [vmem:[%s1957_s1 + $0x190] sm:$0xff]  }
  0x24   : > { %1457 = vmatpush3.bf16.msra.mxu1 %v1594_v16  ;;  %1418 = vmatprep.subr.bf16.mxu0 %v1595_v17  ;;  %v214_v49 = vld [vmem:[%s1691_s22 + $0x40] sm:$0xff]  ;;  %v215_v52 = vld [vmem:[%s1691_s22 + $0x48] sm:$0xff]  ;;  %v1623_v61 = vld [vmem:[%s1957_s1 + $0x158] sm:$0xff]  }
  0x25   : > { %1458 = vmatprep.subr.bf16.mxu1 %v1596_v18  ;;  %v218_v50 = vld [vmem:[%s1691_s22 + $0x60] sm:$0xff]  ;;  %v219_v53 = vld [vmem:[%s1691_s22 + $0x68] sm:$0xff]  ;;  %v1624_v62 = vld [vmem:[%s1957_s1 + $0x1d8] sm:$0xff]  }
  0x26   : > { %v1319_v51 = vcombine.high %v214_v49, %v218_v50  ;;  %v1318_v54 = vcombine.low %v214_v49, %v218_v50  ;;  %v1321_v55 = vcombine.high %v215_v52, %v219_v53  ;;  %v1320_v56 = vcombine.low %v215_v52, %v219_v53  ;;  %v1625_v63 = vld [vmem:[%s1957_s1 + $0x118] sm:$0xff]   ;;  %v222_v1 = vld [vmem:[%s1691_s22 + $0x80] sm:$0xff]  ;;  %v223_v3 = vld [vmem:[%s1691_s22 + $0x88] sm:$0xff] }
  0x27   : > { %1419 = vmatpush3.bf16.msra.mxu0 %v1597_v19  ;;  %v1626_v0 = vld [vmem:[%s1957_s1 + $0x198] sm:$0xff]   ;;  %v226_v2 = vld [vmem:[%s1691_s22 + $0xa0] sm:$0xff]  ;;  %v227_v4 = vld [vmem:[%s1691_s22 + $0xa8] sm:$0xff] }
  0x28   : > { %1459 = vmatpush3.bf16.msra.mxu1 %v1598_v20  ;;  %1420 = vmatprep.subr.bf16.mxu0 %v1599_v21  ;;  %v1327_v5 = vcombine.high %v222_v1, %v226_v2  ;;  %v1329_v6 = vcombine.high %v223_v3, %v227_v4  ;;  %v1326_v7 = vcombine.low %v222_v1, %v226_v2  ;;  %v1627_v9 = vld [vmem:[%s1957_s1 + $0x160] sm:$0xff]   ;;  %v1631_v13 = vld [vmem:[%s1957_s1 + $0x168] sm:$0xff]   ;;  %v208_v33 = vld [vmem:[%s1691_s22 + $0x10] sm:$0xff] }
  0x29   : > { %1460 = vmatprep.subr.bf16.mxu1 %v1600_v22  ;;  %v1328_v8 = vcombine.low %v223_v3, %v227_v4  ;;  %v1628_v10 = vld [vmem:[%s1957_s1 + $0x1e0] sm:$0xff]   ;;  %v1632_v14 = vld [vmem:[%s1957_s1 + $0x1e8] sm:$0xff]   ;;  %v212_v34 = vld [vmem:[%s1691_s22 + $0x30] sm:$0xff] }
  0x2a   : > { %v1629_v11 = vld [vmem:[%s1957_s1 + $0x120] sm:$0xff]   ;;  %v1633_v15 = vld [vmem:[%s1957_s1 + $0x128] sm:$0xff]   ;;  %v1314_v35 = vcombine.low %v208_v33, %v212_v34  ;;  %v209_v37 = vld [vmem:[%s1691_s22 + $0x18] sm:$0xff] }
  0x2b   : > { %1421 = vmatpush3.bf16.msra.mxu0 %v1601_v23  ;;  %v1630_v12 = vld [vmem:[%s1957_s1 + $0x1a0] sm:$0xff]   ;;  %v1634_v16 = vld [vmem:[%s1957_s1 + $0x1a8] sm:$0xff]   ;;  %v213_v38 = vld [vmem:[%s1691_s22 + $0x38] sm:$0xff] }
  0x2c   : > { %1461 = vmatpush3.bf16.msra.mxu1 %v1602_v24  ;;  %1422 = vmatprep.subr.bf16.mxu0 %v1603_v25  ;;  %v230_v17 = vld [vmem:[%s1691_s22 + $0xc0] sm:$0xff]  ;;  %v231_v19 = vld [vmem:[%s1691_s22 + $0xc8] sm:$0xff]  ;;  %v1635_v25 = vld [vmem:[%s1957_s1 + $0x170] sm:$0xff]   ;;  %v1316_v40 = vcombine.low %v209_v37, %v213_v38 }
  0x2d   : > { %1462 = vmatprep.subr.bf16.mxu1 %v1604_v26  ;;  %v234_v18 = vld [vmem:[%s1691_s22 + $0xe0] sm:$0xff]  ;;  %v235_v21 = vld [vmem:[%s1691_s22 + $0xe8] sm:$0xff]  ;;  %v1636_v26 = vld [vmem:[%s1957_s1 + $0x1f0] sm:$0xff]  }
  0x2e   : > { %v1335_v20 = vcombine.high %v230_v17, %v234_v18  ;;  %v1334_v22 = vcombine.low %v230_v17, %v234_v18  ;;  %v1337_v23 = vcombine.high %v231_v19, %v235_v21  ;;  %v1336_v24 = vcombine.low %v231_v19, %v235_v21  ;;  %v225_v49 = vld [vmem:[%s1691_s22 + $0x98] sm:$0xff] }
  0x2f   : > { %1423 = vmatpush3.bf16.msra.mxu0 %v1605_v27  ;;  %v1637_v27 = vld [vmem:[%s1957_s1 + $0x130] sm:$0xff]   ;;  %v229_v50 = vld [vmem:[%s1691_s22 + $0xb8] sm:$0xff] }
  0x30   : > { %1463 = vmatpush3.bf16.msra.mxu1 %v1606_v28  ;;  %1424 = vmatprep.subr.bf16.mxu0 %v1607_v29  ;;  %v1638_v28 = vld [vmem:[%s1957_s1 + $0x1b0] sm:$0xff]   ;;  %v1639_v29 = vld [vmem:[%s1957_s1 + $0x178] sm:$0xff]  }
  0x31   : > { %1464 = vmatprep.subr.bf16.mxu1 %v1608_v30  ;;  %v1640_v30 = vld [vmem:[%s1957_s1 + $0x1f8] sm:$0xff]  }
  0x33   : > { %1425 = vmatpush3.bf16.msra.mxu0 %v1609_v31  ;;  %v1641_v31 = vld [vmem:[%s1957_s1 + $0x138] sm:$0xff]  }
  0x34   : > { %1465 = vmatpush3.bf16.msra.mxu1 %v1610_v32  ;;  %1490 = vmatprep.subr.bf16.mxu0 %v1611_v41  ;;  %v1642_v32 = vld [vmem:[%s1957_s1 + $0x1b8] sm:$0xff]   ;;  %v1317_v41 = vcombine.high %v209_v37, %v213_v38 }
  0x35   : > { %1530 = vmatprep.subr.bf16.mxu1 %v1612_v42  ;;  %v220_v42 = vld [vmem:[%s1691_s22 + $0x70] sm:$0xff] }
  0x36   : > { %943 = vmatmul.mubr.bf16.vlgmr.msra.gmra.mrb[0].mxu0 %v1310_v36  ;;  %v1315_v36 = vcombine.high %v208_v33, %v212_v34 }
  0x37   : > { %1008 = vmatmul.mubr.bf16.vlgmr.msra.gmra.mrb[0].mxu1 %v1312_v39  ;;  %1491 = vmatpush3.bf16.msra.mxu0 %v1613_v43  ;;  %v216_v39 = vld [vmem:[%s1691_s22 + $0x50] sm:$0xff]  ;;  %v217_v43 = vld [vmem:[%s1691_s22 + $0x58] sm:$0xff] }
  0x38   : > { %1531 = vmatpush3.bf16.msra.mxu1 %v1614_v44  ;;  %1492 = vmatprep.subr.bf16.mxu0 %v1615_v45  ;;  %v221_v44 = vld [vmem:[%s1691_s22 + $0x78] sm:$0xff]  ;;  %v1323_v45 = vcombine.high %v216_v39, %v220_v42 }
  0x39   : > { %1532 = vmatprep.subr.bf16.mxu1 %v1616_v46  ;;  %950 = vmatprep.mubr.bf16.mxu0 %v1319_v51  ;;  %v1325_v46 = vcombine.high %v217_v43, %v221_v44  ;;  %v1322_v51 = vcombine.low %v216_v39, %v220_v42  ;;  %v1324_v52 = vcombine.low %v217_v43, %v221_v44 }
  0x3a   : > { %1015 = vmatprep.mubr.bf16.mxu1 %v1321_v55  ;;  %v232_v55 = vld [vmem:[%s1691_s22 + $0xd0] sm:$0xff] }
  0x3b   : > { %1493 = vmatpush3.bf16.msra.mxu0 %v1617_v47  ;;  %v224_v47 = vld [vmem:[%s1691_s22 + $0x90] sm:$0xff] }
  0x3c   : > { %1533 = vmatpush3.bf16.msra.mxu1 %v1618_v48  ;;  %1494 = vmatprep.subr.bf16.mxu0 %v1619_v57  ;;  %v228_v48 = vld [vmem:[%s1691_s22 + $0xb0] sm:$0xff]  ;;  %v233_v57 = vld [vmem:[%s1691_s22 + $0xd8] sm:$0xff] }
  0x3d   : > { %1534 = vmatprep.subr.bf16.mxu1 %v1620_v58  ;;  %v1331_v53 = vcombine.high %v224_v47, %v228_v48  ;;  %v237_v58 = vld [vmem:[%s1691_s22 + $0xf8] sm:$0xff] }
  0x3e   : > { %951 = vmatmul.mubr.bf16.gmra.mrb[4].mxu0 %v1318_v54  ;;  %v1333_v54 = vcombine.high %v225_v49, %v229_v50 }
  0x3f   : > { %1016 = vmatmul.mubr.bf16.gmra.mrb[4].mxu1 %v1320_v56  ;;  %1495 = vmatpush3.bf16.msra.mxu0 %v1621_v59  ;;  %v236_v56 = vld [vmem:[%s1691_s22 + $0xf0] sm:$0xff]  ;;  %v1330_v59 = vcombine.low %v224_v47, %v228_v48 }
  0x40   : > { %1535 = vmatpush3.bf16.msra.mxu1 %v1622_v60  ;;  %1496 = vmatprep.subr.bf16.mxu0 %v1623_v61  ;;  %v1332_v60 = vcombine.low %v225_v49, %v229_v50  ;;  %v1339_v61 = vcombine.high %v232_v55, %v236_v56 }
  0x41   : > { %1536 = vmatprep.subr.bf16.mxu1 %v1624_v62  ;;  %958 = vmatprep.mubr.bf16.mxu0 %v1327_v5  ;;  %v1341_v62 = vcombine.high %v233_v57, %v237_v58 }
  0x42   : > { %1023 = vmatprep.mubr.bf16.mxu1 %v1329_v6 }
  0x43   : > { %1497 = vmatpush3.bf16.msra.mxu0 %v1625_v63  ;;  %v1338_v63 = vcombine.low %v232_v55, %v236_v56 }
  0x44   : > { %1537 = vmatpush3.bf16.msra.mxu1 %v1626_v0  ;;  %1498 = vmatprep.subr.bf16.mxu0 %v1627_v9  ;;  %v1340_v0 = vcombine.low %v233_v57, %v237_v58 }
  0x45   : > { %1538 = vmatprep.subr.bf16.mxu1 %v1628_v10 }
  0x46   : > { %959 = vmatmul.mubr.bf16.gmra.mrb[8].mxu0 %v1326_v7 }
  0x47   : > { %1024 = vmatmul.mubr.bf16.gmra.mrb[8].mxu1 %v1328_v8  ;;  %1499 = vmatpush3.bf16.msra.mxu0 %v1629_v11 }
  0x48   : > { %1539 = vmatpush3.bf16.msra.mxu1 %v1630_v12  ;;  %1500 = vmatprep.subr.bf16.mxu0 %v1631_v13 }
  0x49   : > { %1540 = vmatprep.subr.bf16.mxu1 %v1632_v14  ;;  %966 = vmatprep.mubr.bf16.mxu0 %v1335_v20 }
  0x4a   : > { %1031 = vmatprep.mubr.bf16.mxu1 %v1337_v23 }
  0x4b   : > { %1501 = vmatpush3.bf16.msra.mxu0 %v1633_v15 }
  0x4c   : > { %1541 = vmatpush3.bf16.msra.mxu1 %v1634_v16  ;;  %1502 = vmatprep.subr.bf16.mxu0 %v1635_v25 }
  0x4d   : > { %1542 = vmatprep.subr.bf16.mxu1 %v1636_v26 }
  0x4e   : > { %967 = vmatmul.mubr.bf16.gmra.mrb[12].mxu0 %v1334_v22 }
  0x4f   : > { %1032 = vmatmul.mubr.bf16.gmra.mrb[12].mxu1 %v1336_v24  ;;  %1503 = vmatpush3.bf16.msra.mxu0 %v1637_v27 }
  0x50   : > { %1543 = vmatpush3.bf16.msra.mxu1 %v1638_v28  ;;  %1504 = vmatprep.subr.bf16.mxu0 %v1639_v29 }
  0x51   : > { %1544 = vmatprep.subr.bf16.mxu1 %v1640_v30  ;;  %1072 = vmatprep.mubr.bf16.mxu0 %v1315_v36 }
  0x52   : > { %1137 = vmatprep.mubr.bf16.mxu1 %v1317_v41 }
  0x53   : > { %1505 = vmatpush3.bf16.msra.mxu0 %v1641_v31 }
  0x54   : > { %1545 = vmatpush3.bf16.msra.mxu1 %v1642_v32 }
  0x56   : > { %1073 = vmatmul.mubr.bf16.vlgmr.msra.gmra.mrb[16].mxu0 %v1314_v35 }
  0x57   : > { %1138 = vmatmul.mubr.bf16.vlgmr.msra.gmra.mrb[16].mxu1 %v1316_v40  ;;  %1080 = vmatprep.mubr.bf16.mxu0 %v1323_v45 }
  0x58   : > { %1145 = vmatprep.mubr.bf16.mxu1 %v1325_v46 }
  0x5e   : > { %1081 = vmatmul.mubr.bf16.gmra.mrb[20].mxu0 %v1322_v51 }
  0x5f   : > { %1146 = vmatmul.mubr.bf16.gmra.mrb[20].mxu1 %v1324_v52  ;;  %1088 = vmatprep.mubr.bf16.mxu0 %v1331_v53 }
  0x60   : > { %1153 = vmatprep.mubr.bf16.mxu1 %v1333_v54 }
  0x66   : > { %1089 = vmatmul.mubr.bf16.gmra.mrb[24].mxu0 %v1330_v59 }
  0x67   : > { %1154 = vmatmul.mubr.bf16.gmra.mrb[24].mxu1 %v1332_v60  ;;  %1096 = vmatprep.mubr.bf16.mxu0 %v1339_v61 }
  0x68   : > { %1161 = vmatprep.mubr.bf16.mxu1 %v1341_v62 }
  0x6e   : > { %1097 = vmatmul.mubr.bf16.gmra.mrb[28].mxu0 %v1338_v63 }
  0x6f   : > { %1162 = vmatmul.mubr.bf16.gmra.mrb[28].mxu1 %v1340_v0 }
 0x109   : > { %v1426_v1 = vpop.f32.mrb[0].mxu0 }
 0x10a   : > { %v1466_v2 = vpop.f32.mrb[0].mxu1  ;;  %v1427_v3 = vpop.f32.mrb[1].mxu0 }
 0x10b   : > { %v1428_v4 = vadd.f32 %v1427_v3, %v1426_v1  ;;  %v1467_v5 = vpop.f32.mrb[1].mxu1  ;;  %v1429_v6 = vpop.f32.mrb[2].mxu0 }
 0x10c   : > { %v1468_v7 = vadd.f32 %v1467_v5, %v1466_v2  ;;  %v1469_v8 = vpop.f32.mrb[2].mxu1  ;;  %v1430_v9 = vpop.f32.mrb[3].mxu0 }
 0x10d   : > { %v1431_v10 = vadd.f32 %v1430_v9, %v1429_v6  ;;  %v1470_v11 = vpop.f32.mrb[3].mxu1 }
 0x10e   : > { %v1010_v12 = vadd.f32 %v1468_v7, %v1428_v4  ;;  %v1471_v13 = vadd.f32 %v1470_v11, %v1469_v8 }
 0x110   : > { %v1013_v14 = vadd.f32 %v1471_v13, %v1431_v10 }
 0x111   : > { %v1432_v15 = vpop.f32.mrb[4].mxu0 }
 0x112   : > { %v1472_v16 = vpop.f32.mrb[4].mxu1  ;;  %v1433_v17 = vpop.f32.mrb[5].mxu0 }
 0x113   : > { %v1434_v18 = vadd.f32 %v1433_v17, %v1432_v15  ;;  %v1473_v19 = vpop.f32.mrb[5].mxu1  ;;  %v1435_v20 = vpop.f32.mrb[6].mxu0 }
 0x114   : > { %v1474_v21 = vadd.f32 %v1473_v19, %v1472_v16  ;;  %v1475_v22 = vpop.f32.mrb[6].mxu1  ;;  %v1436_v23 = vpop.f32.mrb[7].mxu0 }
 0x115   : > { %v1437_v24 = vadd.f32 %v1436_v23, %v1435_v20  ;;  %v1476_v25 = vpop.f32.mrb[7].mxu1 }
 0x116   : > { %v1018_v26 = vadd.f32 %v1474_v21, %v1434_v18  ;;  %v1477_v27 = vadd.f32 %v1476_v25, %v1475_v22 }
 0x118   : > { %v1923_v28 = vadd.f32 %v1477_v27, %v1437_v24 }
 0x119   : > { %v1438_v29 = vpop.f32.mrb[8].mxu0 }
 0x11a   : > { %v1478_v30 = vpop.f32.mrb[8].mxu1  ;;  %v1439_v31 = vpop.f32.mrb[9].mxu0 }
 0x11b   : > { %v1479_v32 = vpop.f32.mrb[9].mxu1  ;;  %v1440_v33 = vadd.f32 %v1439_v31, %v1438_v29  ;;  %v1441_v35 = vpop.f32.mrb[10].mxu0 }
 0x11c   : > { %v1480_v34 = vadd.f32 %v1479_v32, %v1478_v30  ;;  %v1481_v36 = vpop.f32.mrb[10].mxu1  ;;  %v1442_v37 = vpop.f32.mrb[11].mxu0 }
 0x11d   : > { %v1482_v38 = vpop.f32.mrb[11].mxu1  ;;  %v1443_v40 = vadd.f32 %v1442_v37, %v1441_v35 }
 0x11e   : > { %v1925_v39 = vadd.f32 %v1480_v34, %v1440_v33  ;;  %v1483_v41 = vadd.f32 %v1482_v38, %v1481_v36 }
 0x120   : > { %v1927_v42 = vadd.f32 %v1483_v41, %v1443_v40 }
 0x121   : > { %v1444_v43 = vpop.f32.mrb[12].mxu0 }
 0x122   : > { %v1484_v44 = vpop.f32.mrb[12].mxu1  ;;  %v1445_v45 = vpop.f32.mrb[13].mxu0 }
 0x123   : > { %v1446_v46 = vadd.f32 %v1445_v45, %v1444_v43  ;;  %v1485_v47 = vpop.f32.mrb[13].mxu1  ;;  %v1447_v48 = vpop.f32.mrb[14].mxu0 }
 0x124   : > { %v1486_v49 = vadd.f32 %v1485_v47, %v1484_v44  ;;  %v1487_v50 = vpop.f32.mrb[14].mxu1  ;;  %v1448_v51 = vpop.f32.mrb[15].mxu0 }
 0x125   : > { %v1449_v52 = vadd.f32 %v1448_v51, %v1447_v48  ;;  %v1488_v53 = vpop.f32.mrb[15].mxu1 }
 0x126   : > { %v1929_v54 = vadd.f32 %v1486_v49, %v1446_v46  ;;  %v1489_v55 = vadd.f32 %v1488_v53, %v1487_v50 }
 0x128   : > { %v1931_v56 = vadd.f32 %v1489_v55, %v1449_v52 }
 0x129   : > { %v1506_v57 = vpop.f32.mrb[16].mxu0 }
 0x12a   : > { %v1546_v58 = vpop.f32.mrb[16].mxu1  ;;  %v1507_v59 = vpop.f32.mrb[17].mxu0 }
 0x12b   : > { %v1508_v60 = vadd.f32 %v1507_v59, %v1506_v57  ;;  %v1547_v61 = vpop.f32.mrb[17].mxu1  ;;  %v1509_v62 = vpop.f32.mrb[18].mxu0 }
 0x12c   : > { %v1548_v63 = vadd.f32 %v1547_v61, %v1546_v58  ;;  %v1549_v0 = vpop.f32.mrb[18].mxu1  ;;  %v1510_v1 = vpop.f32.mrb[19].mxu0 }
 0x12d   : > { %v1075_v2 = vadd.f32 %v1508_v60, %v1010_v12  ;;  %v1511_v3 = vadd.f32 %v1510_v1, %v1509_v62  ;;  %v1550_v4 = vpop.f32.mrb[19].mxu1 }
 0x12e   : > { %v1551_v5 = vadd.f32 %v1550_v4, %v1549_v0 }
 0x12f   : > { %v1140_v6 = vadd.f32 %v1548_v63, %v1075_v2  ;;  %v1078_v7 = vadd.f32 %v1511_v3, %v1013_v14 }
 0x131   : > { %1170 = vst [vmem:[%s1696_s25] sm:$0xff] %v1140_v6  ;;  %v1143_v8 = vadd.f32 %v1551_v5, %v1078_v7  ;;  %v1512_v9 = vpop.f32.mrb[20].mxu0  ;;  %v1195_v13 = vmul.f32 %v1140_v6, %v1140_v6 }
 0x132   : > { %v1552_v10 = vpop.f32.mrb[20].mxu1  ;;  %v1513_v11 = vpop.f32.mrb[21].mxu0 }
 0x133   : > { %1171 = vst [vmem:[%s1696_s25 + $0x8] sm:$0xff] %v1143_v8  ;;  %v1179_v15 = vadd.f32 %v1143_v8, %v1140_v6  ;;  %v1196_v16 = vmul.f32 %v1143_v8, %v1143_v8  ;;  %v1514_v17 = vadd.f32 %v1513_v11, %v1512_v9  ;;  %v1553_v18 = vpop.f32.mrb[21].mxu1  ;;  %v1515_v19 = vpop.f32.mrb[22].mxu0 }
 0x134   : > { %v1554_v20 = vadd.f32 %v1553_v18, %v1552_v10  ;;  %v1555_v12 = vpop.f32.mrb[22].mxu1  ;;  %v1516_v21 = vpop.f32.mrb[23].mxu0 }
 0x135   : > { %v1203_v22 = vadd.f32 %v1196_v16, %v1195_v13  ;;  %v1083_v23 = vadd.f32 %v1514_v17, %v1018_v26  ;;  %v1517_v14 = vadd.f32 %v1516_v21, %v1515_v19  ;;  %v1556_v24 = vpop.f32.mrb[23].mxu1 }
 0x136   : > { %v1557_v25 = vadd.f32 %v1556_v24, %v1555_v12 }
 0x137   : > { %v1148_v27 = vadd.f32 %v1554_v20, %v1083_v23  ;;  %v1086_v29 = vadd.f32 %v1517_v14, %v1923_v28 }
 0x139   : > { %1172 = vst [vmem:[%s1696_s25 + $0x10] sm:$0xff] %v1148_v27  ;;  %v1180_v30 = vadd.f32 %v1179_v15, %v1148_v27  ;;  %v1197_v31 = vmul.f32 %v1148_v27, %v1148_v27  ;;  %v1151_v32 = vadd.f32 %v1557_v25, %v1086_v29  ;;  %v1518_v33 = vpop.f32.mrb[24].mxu0  ;;  %v1178_v25 = vld [vmem:[#allocation2] sm:$0x1]  ;;  %v1194_v29 = vld [vmem:[#allocation3] sm:$0x1] }
 0x13a   : > { %v1558_v34 = vpop.f32.mrb[24].mxu1  ;;  %v1519_v35 = vpop.f32.mrb[25].mxu0 }
 0x13b   : > { %v1204_v36 = vadd.f32 %v1203_v22, %v1197_v31  ;;  %1173 = vst [vmem:[%s1696_s25 + $0x18] sm:$0xff] %v1151_v32  ;;  %v1181_v37 = vadd.f32 %v1180_v30, %v1151_v32  ;;  %v1198_v38 = vmul.f32 %v1151_v32, %v1151_v32  ;;  %v1520_v40 = vadd.f32 %v1519_v35, %v1518_v33  ;;  %v1559_v26 = vpop.f32.mrb[25].mxu1  ;;  %v1521_v41 = vpop.f32.mrb[26].mxu0 }
 0x13c   : > { %v1560_v43 = vadd.f32 %v1559_v26, %v1558_v34  ;;  %v1561_v44 = vpop.f32.mrb[26].mxu1  ;;  %v1522_v45 = vpop.f32.mrb[27].mxu0 }
 0x13d   : > { %v1205_v28 = vadd.f32 %v1204_v36, %v1198_v38  ;;  %v1091_v46 = vadd.f32 %v1520_v40, %v1925_v39  ;;  %v1523_v47 = vadd.f32 %v1522_v45, %v1521_v41  ;;  %v1562_v48 = vpop.f32.mrb[27].mxu1 }
 0x13e   : > { %v1563_v49 = vadd.f32 %v1562_v48, %v1561_v44 }
 0x13f   : > { %v1156_v50 = vadd.f32 %v1560_v43, %v1091_v46  ;;  %v1094_v51 = vadd.f32 %v1523_v47, %v1927_v42 }
 0x141   : > { %1174 = vst [vmem:[%s1696_s25 + $0x20] sm:$0xff] %v1156_v50  ;;  %v1182_v52 = vadd.f32 %v1181_v37, %v1156_v50  ;;  %v1199_v53 = vmul.f32 %v1156_v50, %v1156_v50  ;;  %v1159_v55 = vadd.f32 %v1563_v49, %v1094_v51  ;;  %v1524_v57 = vpop.f32.mrb[28].mxu0 }
 0x142   : > { %v1564_v58 = vpop.f32.mrb[28].mxu1  ;;  %v1525_v59 = vpop.f32.mrb[29].mxu0 }
 0x143   : > { %v1206_v60 = vadd.f32 %v1205_v28, %v1199_v53  ;;  %1175 = vst [vmem:[%s1696_s25 + $0x28] sm:$0xff] %v1159_v55  ;;  %v1183_v61 = vadd.f32 %v1182_v52, %v1159_v55  ;;  %v1200_v62 = vmul.f32 %v1159_v55, %v1159_v55  ;;  %v1526_v63 = vadd.f32 %v1525_v59, %v1524_v57  ;;  %v1565_v39 = vpop.f32.mrb[29].mxu1  ;;  %v1527_v0 = vpop.f32.mrb[30].mxu0 }
 0x144   : > { %v1566_v1 = vadd.f32 %v1565_v39, %v1564_v58  ;;  %v1567_v2 = vpop.f32.mrb[30].mxu1  ;;  %v1528_v3 = vpop.f32.mrb[31].mxu0 }
 0x145   : > { %v1207_v42 = vadd.f32 %v1206_v60, %v1200_v62  ;;  %v1099_v4 = vadd.f32 %v1526_v63, %v1929_v54  ;;  %v1529_v5 = vadd.f32 %v1528_v3, %v1527_v0  ;;  %v1568_v6 = vpop.f32.mrb[31].mxu1 }
 0x146   : > { %v1569_v7 = vadd.f32 %v1568_v6, %v1567_v2 }
 0x147   : > { %v1164_v8 = vadd.f32 %v1566_v1, %v1099_v4  ;;  %v1102_v9 = vadd.f32 %v1529_v5, %v1931_v56 }
 0x149   : > { %1176 = vst [vmem:[%s1696_s25 + $0x30] sm:$0xff] %v1164_v8  ;;  %v1184_v10 = vadd.f32 %v1183_v61, %v1164_v8  ;;  %v1201_v11 = vmul.f32 %v1164_v8, %v1164_v8  ;;  %v1167_v13 = vadd.f32 %v1569_v7, %v1102_v9 }
 0x14b   : > { %v1208_v15 = vadd.f32 %v1207_v42, %v1201_v11  ;;  %1177 = vst [vmem:[%s1696_s25 + $0x38] sm:$0xff] %v1167_v13  ;;  %v1185_v16 = vadd.f32 %v1184_v10, %v1167_v13  ;;  %v1202_v17 = vmul.f32 %v1167_v13, %v1167_v13 }
 0x14d   : > { %v1186_v18 = vrot.slane %v1185_v16, 4  ;;  %v1209_v19 = vadd.f32 %v1208_v15, %v1202_v17 }
 0x14f   : > { %v1187_v20 = vadd.f32 %v1186_v18, %v1185_v16  ;;  %v1210_v12 = vrot.slane %v1209_v19, 4 }
 0x151   : > { %v1188_v21 = vrot.slane %v1187_v20, 2  ;;  %v1211_v54 = vadd.f32 %v1210_v12, %v1209_v19 }
 0x153   : > { %v1189_v22 = vadd.f32 %v1188_v21, %v1187_v20  ;;  %v1212_v23 = vrot.slane %v1211_v54, 2 }
 0x155   : > { %v1190_v14 = vrot.slane %v1189_v22, 1  ;;  %v1213_v24 = vadd.f32 %v1212_v23, %v1211_v54 }
 0x157   : > { %v1191_v56 = vadd.f32 %v1190_v14, %v1189_v22  ;;  %v1214_v27 = vrot.slane %v1213_v24, 1  ;;  %1221 = sbr.rel (%p1406_p5) target bundleno = 364 (0x16c), region = 36 }
 0x159   : > { %v1192_v30 = vadd.f32 %v1191_v56, %v1178_v25  ;;  %v1215_v31 = vadd.f32 %v1214_v27, %v1213_v24 }
 0x15b   : > { %1193 = vst [vmem:[#allocation2] sm:$0x1] %v1192_v30  ;;  %v1216_v32 = vadd.f32 %v1215_v31, %v1194_v29 }
 0x15d   : > { %1217 = vst [vmem:[#allocation3] sm:$0x1] %v1216_v32 }
 0x162   : > { %v1222_v33 = vld [vmem:[#allocation2] sm:$0x1] }
 0x163   : > { %v1223_v35 = vmul.f32 0.0078125, %v1222_v33 }
 0x164   : > { %v1224_v34 = vld [vmem:[#allocation3] sm:$0x1] }
 0x165   : > { %v1225_v36 = vmul.f32 0.0078125, %v1224_v34  ;;  %1228 = vst [vmem:[%s1959_s3] sm:$0x1] %v1223_v35  ;;  %v1226_v37 = vmul.f32 %v1223_v35, %v1223_v35 }
 0x167   : > { %v1227_v38 = vsub.f32 %v1225_v36, %v1226_v37 }
 0x169   : > { %v1229_v40 = vmax.f32 %v1227_v38, 0.0 }
 0x16b   : > { %1230 = vst [vmem:[%s1960_s4] sm:$0x1] %v1229_v40 }
 0x16c PF: > { %s15_s15 = sadd.s32 1, %s1649_s15  }
 0x16d   : > { %p12_p6 = scmp.ge.s32.totalorder %s15_s15, 4  }
 0x16f   :  { %14 = sbr.rel (!%p12_p6) target bundleno = 1 (0x1), region = 82 }

// kernel: discriminator_forward.10
= control target key start
LH: loop header
LB: loop body
LE: loop exit
PB: predicated region body
PF: predicated region fallthrough
CT: control target
= control target key end

     0   :  { %s412_s12 = smov 0   ;;  %s439_s0 = inlined_call_operand.vmem [shape: f32[128,128], index: 0, kind: input, shape index: {}]   ;;  %s440_s1 = inlined_call_operand.vmem [shape: f32[1,128], index: 1, kind: input, shape index: {}]   ;;  %s441_s2 = inlined_call_operand.vmem [shape: f32[1,128], index: 2, kind: input, shape index: {}]   ;;  %s442_s3 = inlined_call_operand.vmem [shape: bf16[128,128], index: 3, kind: output, shape index: {}]  }
   0x1 LB: > { %s324_s13 = sadd.s32 4294967295, %s390_s12   ;;  %p328_p0 = scmp.ge.s32.totalorder %s390_s12, 1  ;;  %s390_s12 = sphi %s412_s12, %s13_s12  }
   0x2   : > { %p138_p1 = scmp.lt.s32.totalorder %s390_s12, 3 }
   0x4   : > { %p139_p2 = pnand %p328_p0, %p138_p1 }
   0x5   : > { %s329_s14 = sshll.u32 (!%p139_p2), %s324_s13, 3  ;;  %v333_v0 = vld [vmem:[%s440_s1] ss:$0 sm:$0xff] (!%p139_p2) }
   0x6   : > { %142 = sbr.rel (%p139_p2) target bundleno = 31 (0x1f), region = 32  ;;  %p163_p3 = scmp.lt.s32.totalorder (!%p139_p2), %s329_s14, 15  ;;  %v334_v1 = vld [vmem:[%s441_s2] ss:$0 sm:$0xff] (!%p139_p2) }
   0xd   : > { %s444_s14 = smov (!%p163_p3, %s329_s14), 15 }
   0xe   : > { %s330_s15 = sshll.u32 %s444_s14, 3  ;;  %s332_s23 = sshll.u32 %s444_s14, 2 }
   0xf   : > { %s166_s20 = scalar_lea.vmem %s439_s0, %s330_s15  ;;  %s172_s26 = scalar_lea.vmem %s442_s3, %s332_s23 }
  0x10   : > { %v174_v2 = vld [vmem:[%s166_s20] sm:$0xff]  ;;  %v175_v3 = vld [vmem:[%s166_s20 + $0x8] sm:$0xff]  ;;  %v176_v4 = vld [vmem:[%s166_s20 + $0x10] sm:$0xff] }
  0x11   : > { %v189_v5 = vmul.f32 %v333_v0, %v174_v2  ;;  %v190_v6 = vmul.f32 %v333_v0, %v175_v3  ;;  %v177_v7 = vld [vmem:[%s166_s20 + $0x18] sm:$0xff]  ;;  %v191_v8 = vmul.f32 %v333_v0, %v176_v4  ;;  %v178_v9 = vld [vmem:[%s166_s20 + $0x20] sm:$0xff]  ;;  %v179_v10 = vld [vmem:[%s166_s20 + $0x28] sm:$0xff] }
  0x12   : > { %v192_v11 = vmul.f32 %v333_v0, %v177_v7  ;;  %v193_v12 = vmul.f32 %v333_v0, %v178_v9  ;;  %v194_v13 = vmul.f32 %v333_v0, %v179_v10  ;;  %v180_v14 = vld [vmem:[%s166_s20 + $0x30] sm:$0xff]  ;;  %v181_v15 = vld [vmem:[%s166_s20 + $0x38] sm:$0xff] }
  0x13   : > { %v204_v16 = vadd.f32 %v334_v1, %v189_v5  ;;  %v205_v17 = vadd.f32 %v334_v1, %v190_v6  ;;  %v206_v18 = vadd.f32 %v334_v1, %v191_v8  ;;  %v195_v19 = vmul.f32 %v333_v0, %v180_v14 }
  0x14   : > { %v207_v20 = vadd.f32 %v334_v1, %v192_v11  ;;  %v208_v21 = vadd.f32 %v334_v1, %v193_v12  ;;  %v209_v22 = vadd.f32 %v334_v1, %v194_v13  ;;  %v196_v23 = vmul.f32 %v333_v0, %v181_v15 }
  0x15   : > { %v212_v24 = vmul.f32 0.2, %v204_v16  ;;  %v213_v25 = vmul.f32 0.2, %v205_v17  ;;  %v214_v26 = vmul.f32 0.2, %v206_v18  ;;  %v210_v27 = vadd.f32 %v334_v1, %v195_v19 }
  0x16   : > { %v215_v28 = vmul.f32 0.2, %v207_v20  ;;  %v216_v29 = vmul.f32 0.2, %v208_v21  ;;  %v217_v30 = vmul.f32 0.2, %v209_v22  ;;  %v211_v31 = vadd.f32 %v334_v1, %v196_v23 }
  0x17   : > { %v220_v32 = vmax.f32 %v204_v16, %v212_v24  ;;  %v221_v33 = vmax.f32 %v205_v17, %v213_v25  ;;  %v222_v34 = vmax.f32 %v206_v18, %v214_v26  ;;  %v218_v35 = vmul.f32 0.2, %v210_v27 }
  0x18   : > { %v223_v36 = vmax.f32 %v207_v20, %v215_v28  ;;  %v224_v37 = vmax.f32 %v208_v21, %v216_v29  ;;  %v225_v38 = vmax.f32 %v209_v22, %v217_v30  ;;  %v219_v39 = vmul.f32 0.2, %v211_v31 }
  0x19   : > { %v356_v40 = vpack.c.bf16 %v221_v33, %v220_v32  ;;  %v226_v41 = vmax.f32 %v210_v27, %v218_v35 }
  0x1a   : > { %v361_v42 = vpack.c.bf16 %v223_v36, %v222_v34  ;;  %v366_v43 = vpack.c.bf16 %v225_v38, %v224_v37  ;;  %v227_v44 = vmax.f32 %v211_v31, %v219_v39 }
  0x1b   : > { %357 = vst [vmem:[%s172_s26] sm:$0xff] %v356_v40  }
  0x1c   : > { %373 = vst [vmem:[%s172_s26 + $0x8] sm:$0xff] %v361_v42   ;;  %374 = vst [vmem:[%s172_s26 + $0x10] sm:$0xff] %v366_v43   ;;  %v371_v45 = vpack.c.bf16 %v227_v44, %v226_v41 }
  0x1e   : > { %375 = vst [vmem:[%s172_s26 + $0x18] sm:$0xff] %v371_v45  }
  0x1f PF: > { %s13_s12 = sadd.s32 1, %s390_s12  }
  0x20   : > { %p10_p4 = scmp.ge.s32.totalorder %s13_s12, 4  }
  0x22   :  { %12 = sbr.rel (!%p10_p4) target bundleno = 1 (0x1), region = 62 }

// kernel: discriminator_forward.11
= control target key start
LH: loop header
LB: loop body
LE: loop exit
PB: predicated region body
PF: predicated region fallthrough
CT: control target
= control target key end

     0   :  { %s4015_s1 = inlined_call_operand.vmem [shape: bf16[2048,256], index: 1, kind: input, shape index: {}]   ;;  %s4016_s0 = inlined_call_operand.vmem [shape: bf16[32,2048], index: 0, kind: input, shape index: {}]   ;;  %s4017_s2 = inlined_call_operand.vmem [shape: f32[32,256], index: 2, kind: output, shape index: {0}]   ;;  %s4018_s3 = inlined_call_operand.vmem [shape: f32[1,256], index: 3, kind: output, shape index: {1}]   ;;  %s4019_s4 = inlined_call_operand.vmem [shape: f32[1,256], index: 4, kind: output, shape index: {2}]  }
   0x1   :  { %v2644_v0 = vld [vmem:[%s4015_s1 + $0x4] ss:$8 sps:$4 sm:$0xff]   ;;  %v2648_v2 = vld [vmem:[%s4015_s1] ss:$8 sps:$4 sm:$0xff]   ;;  %v2650_v4 = vld [vmem:[%s4015_s1 + $0x14] ss:$8 sps:$4 sm:$0xff]  }
   0x2   :  { %v2646_v1 = vld [vmem:[%s4015_s1 + $0x404] ss:$8 sps:$4 sm:$0xff]   ;;  %1752 = vmatprep.subr.bf16.mxu1 %v2644_v0  ;;  %v2649_v3 = vld [vmem:[%s4015_s1 + $0x400] ss:$8 sps:$4 sm:$0xff]   ;;  %v2652_v5 = vld [vmem:[%s4015_s1 + $0x414] ss:$8 sps:$4 sm:$0xff]  }
   0x3   :  { %1964 = vmatprep.subr.bf16.mxu0 %v2646_v1  ;;  %1753 = vmatpush1.bf16.msra.mxu1 %v2648_v2  ;;  %v2654_v6 = vld [vmem:[%s4015_s1 + $0x10] ss:$8 sps:$4 sm:$0xff]   ;;  %v2656_v8 = vld [vmem:[%s4015_s1 + $0x24] ss:$8 sps:$4 sm:$0xff]   ;;  %v2660_v10 = vld [vmem:[%s4015_s1 + $0x20] ss:$8 sps:$4 sm:$0xff]  }
   0x4   :  { %1965 = vmatpush1.bf16.msra.mxu0 %v2649_v3  ;;  %1754 = vmatprep.subr.bf16.mxu1 %v2650_v4  ;;  %v2655_v7 = vld [vmem:[%s4015_s1 + $0x410] ss:$8 sps:$4 sm:$0xff]   ;;  %v2658_v9 = vld [vmem:[%s4015_s1 + $0x424] ss:$8 sps:$4 sm:$0xff]   ;;  %v2661_v11 = vld [vmem:[%s4015_s1 + $0x420] ss:$8 sps:$4 sm:$0xff]  }
   0x5   :  { %1966 = vmatprep.subr.bf16.mxu0 %v2652_v5  ;;  %v2662_v12 = vld [vmem:[%s4015_s1 + $0x34] ss:$8 sps:$4 sm:$0xff]   ;;  %v2666_v14 = vld [vmem:[%s4015_s1 + $0x30] ss:$8 sps:$4 sm:$0xff]   ;;  %v2668_v16 = vld [vmem:[%s4015_s1 + $0x44] ss:$8 sps:$4 sm:$0xff]  }
   0x6   :  { %v2664_v13 = vld [vmem:[%s4015_s1 + $0x434] ss:$8 sps:$4 sm:$0xff]   ;;  %v2667_v15 = vld [vmem:[%s4015_s1 + $0x430] ss:$8 sps:$4 sm:$0xff]   ;;  %v2670_v17 = vld [vmem:[%s4015_s1 + $0x444] ss:$8 sps:$4 sm:$0xff]  }
   0x7   :  { %1755 = vmatpush1.bf16.msra.mxu1 %v2654_v6  ;;  %v2672_v18 = vld [vmem:[%s4015_s1 + $0x40] ss:$8 sps:$4 sm:$0xff]   ;;  %v2674_v20 = vld [vmem:[%s4015_s1 + $0x54] ss:$8 sps:$4 sm:$0xff]   ;;  %v2678_v22 = vld [vmem:[%s4015_s1 + $0x50] ss:$8 sps:$4 sm:$0xff]  }
   0x8   :  { %1967 = vmatpush1.bf16.msra.mxu0 %v2655_v7  ;;  %1756 = vmatprep.subr.bf16.mxu1 %v2656_v8  ;;  %v2673_v19 = vld [vmem:[%s4015_s1 + $0x440] ss:$8 sps:$4 sm:$0xff]   ;;  %v2676_v21 = vld [vmem:[%s4015_s1 + $0x454] ss:$8 sps:$4 sm:$0xff]   ;;  %v2679_v23 = vld [vmem:[%s4015_s1 + $0x450] ss:$8 sps:$4 sm:$0xff]  }
   0x9   :  { %1968 = vmatprep.subr.bf16.mxu0 %v2658_v9  ;;  %v2680_v24 = vld [vmem:[%s4015_s1 + $0x64] ss:$8 sps:$4 sm:$0xff]   ;;  %v2684_v26 = vld [vmem:[%s4015_s1 + $0x60] ss:$8 sps:$4 sm:$0xff]   ;;  %v2686_v28 = vld [vmem:[%s4015_s1 + $0x74] ss:$8 sps:$4 sm:$0xff]  }
   0xa   :  { %v2682_v25 = vld [vmem:[%s4015_s1 + $0x464] ss:$8 sps:$4 sm:$0xff]   ;;  %v2685_v27 = vld [vmem:[%s4015_s1 + $0x460] ss:$8 sps:$4 sm:$0xff]   ;;  %v2688_v29 = vld [vmem:[%s4015_s1 + $0x474] ss:$8 sps:$4 sm:$0xff]  }
   0xb   :  { %1757 = vmatpush1.bf16.msra.mxu1 %v2660_v10  ;;  %v2690_v30 = vld [vmem:[%s4015_s1 + $0x70] ss:$8 sps:$4 sm:$0xff]   ;;  %v2692_v32 = vld [vmem:[%s4015_s1 + $0x84] ss:$8 sps:$4 sm:$0xff]   ;;  %v2696_v34 = vld [vmem:[%s4015_s1 + $0x80] ss:$8 sps:$4 sm:$0xff]  }
   0xc   :  { %1969 = vmatpush1.bf16.msra.mxu0 %v2661_v11  ;;  %1758 = vmatprep.subr.bf16.mxu1 %v2662_v12  ;;  %v2691_v31 = vld [vmem:[%s4015_s1 + $0x470] ss:$8 sps:$4 sm:$0xff]   ;;  %v2694_v33 = vld [vmem:[%s4015_s1 + $0x484] ss:$8 sps:$4 sm:$0xff]   ;;  %v2697_v35 = vld [vmem:[%s4015_s1 + $0x480] ss:$8 sps:$4 sm:$0xff]  }
   0xd   :  { %1970 = vmatprep.subr.bf16.mxu0 %v2664_v13  ;;  %v2698_v36 = vld [vmem:[%s4015_s1 + $0x94] ss:$8 sps:$4 sm:$0xff]   ;;  %v2702_v38 = vld [vmem:[%s4015_s1 + $0x90] ss:$8 sps:$4 sm:$0xff]   ;;  %v2704_v40 = vld [vmem:[%s4015_s1 + $0xa4] ss:$8 sps:$4 sm:$0xff]  }
   0xe   :  { %v2700_v37 = vld [vmem:[%s4015_s1 + $0x494] ss:$8 sps:$4 sm:$0xff]   ;;  %v2703_v39 = vld [vmem:[%s4015_s1 + $0x490] ss:$8 sps:$4 sm:$0xff]   ;;  %v2706_v41 = vld [vmem:[%s4015_s1 + $0x4a4] ss:$8 sps:$4 sm:$0xff]  }
   0xf   :  { %1759 = vmatpush1.bf16.msra.mxu1 %v2666_v14  ;;  %v2708_v42 = vld [vmem:[%s4015_s1 + $0xa0] ss:$8 sps:$4 sm:$0xff]   ;;  %v2710_v44 = vld [vmem:[%s4015_s1 + $0xb4] ss:$8 sps:$4 sm:$0xff]   ;;  %v2714_v46 = vld [vmem:[%s4015_s1 + $0xb0] ss:$8 sps:$4 sm:$0xff]  }
  0x10   :  { %1971 = vmatpush1.bf16.msra.mxu0 %v2667_v15  ;;  %1760 = vmatprep.subr.bf16.mxu1 %v2668_v16  ;;  %v2709_v43 = vld [vmem:[%s4015_s1 + $0x4a0] ss:$8 sps:$4 sm:$0xff]   ;;  %v2712_v45 = vld [vmem:[%s4015_s1 + $0x4b4] ss:$8 sps:$4 sm:$0xff]   ;;  %v2715_v47 = vld [vmem:[%s4015_s1 + $0x4b0] ss:$8 sps:$4 sm:$0xff]  }
  0x11   :  { %1972 = vmatprep.subr.bf16.mxu0 %v2670_v17  ;;  %v24_v48 = vld [vmem:[%s4016_s0] sm:$0xff]  ;;  %v2722_v58 = vld [vmem:[%s4015_s1 + $0xd4] ss:$8 sps:$4 sm:$0xff]   ;;  %v2726_v60 = vld [vmem:[%s4015_s1 + $0xd0] ss:$8 sps:$4 sm:$0xff]  }
  0x12   :  { %v32_v49 = vld [vmem:[%s4016_s0 + $0x40] sm:$0xff]  ;;  %v2724_v59 = vld [vmem:[%s4015_s1 + $0x4d4] ss:$8 sps:$4 sm:$0xff]   ;;  %v2727_v61 = vld [vmem:[%s4015_s1 + $0x4d0] ss:$8 sps:$4 sm:$0xff]  }
  0x13   :  { %1761 = vmatpush1.bf16.msra.mxu1 %v2672_v18  ;;  %v2716_v50 = vld [vmem:[%s4015_s1 + $0xc4] ss:$8 sps:$4 sm:$0xff]   ;;  %v2299_v52 = vcombine.high %v24_v48, %v32_v49  ;;  %v2720_v56 = vld [vmem:[%s4015_s1 + $0xc0] ss:$8 sps:$4 sm:$0xff]   ;;  %v2734_v2 = vld [vmem:[%s4015_s1 + $0xf4] ss:$8 sps:$4 sm:$0xff]   ;;  %v2298_v8 = vcombine.low %v24_v48, %v32_v49 }
  0x14   :  { %1973 = vmatpush1.bf16.msra.mxu0 %v2673_v19  ;;  %1762 = vmatprep.subr.bf16.mxu1 %v2674_v20  ;;  %v2718_v51 = vld [vmem:[%s4015_s1 + $0x4c4] ss:$8 sps:$4 sm:$0xff]   ;;  %v2721_v57 = vld [vmem:[%s4015_s1 + $0x4c0] ss:$8 sps:$4 sm:$0xff]   ;;  %v2736_v3 = vld [vmem:[%s4015_s1 + $0x4f4] ss:$8 sps:$4 sm:$0xff]  }
  0x15   :  { %1974 = vmatprep.subr.bf16.mxu0 %v2676_v21  ;;  %v28_v53 = vld [vmem:[%s4016_s0 + $0x20] sm:$0xff]  ;;  %1784 = vmatprep.mubr.bf16.mxu1 %v2299_v52  ;;  %v2738_v4 = vld [vmem:[%s4015_s1 + $0xf0] ss:$8 sps:$4 sm:$0xff]   ;;  %v2748_v12 = vld [vmem:[%s4015_s1 + $0x114] ss:$8 sps:$4 sm:$0xff]  }
  0x16   :  { %v36_v54 = vld [vmem:[%s4016_s0 + $0x60] sm:$0xff]  ;;  %v2739_v5 = vld [vmem:[%s4015_s1 + $0x4f0] ss:$8 sps:$4 sm:$0xff]   ;;  %v2751_v13 = vld [vmem:[%s4015_s1 + $0x514] ss:$8 sps:$4 sm:$0xff]  }
  0x17   :  { %1763 = vmatpush1.bf16.msra.mxu1 %v2678_v22  ;;  %v2307_v55 = vcombine.high %v28_v53, %v36_v54  ;;  %v2728_v62 = vld [vmem:[%s4015_s1 + $0xe4] ss:$8 sps:$4 sm:$0xff]   ;;  %v2732_v0 = vld [vmem:[%s4015_s1 + $0xe0] ss:$8 sps:$4 sm:$0xff]   ;;  %v2306_v10 = vcombine.low %v28_v53, %v36_v54  ;;  %v2746_v14 = vld [vmem:[%s4015_s1 + $0x110] ss:$8 sps:$4 sm:$0xff]  }
  0x18   :  { %1975 = vmatpush1.bf16.msra.mxu0 %v2679_v23  ;;  %1764 = vmatprep.subr.bf16.mxu1 %v2680_v24  ;;  %v2730_v63 = vld [vmem:[%s4015_s1 + $0x4e4] ss:$8 sps:$4 sm:$0xff]   ;;  %v2733_v1 = vld [vmem:[%s4015_s1 + $0x4e0] ss:$8 sps:$4 sm:$0xff]   ;;  %v2749_v15 = vld [vmem:[%s4015_s1 + $0x510] ss:$8 sps:$4 sm:$0xff]  }
  0x19   :  { %1976 = vmatprep.subr.bf16.mxu0 %v2682_v25  ;;  %1996 = vmatprep.mubr.bf16.mxu0 %v2307_v55  ;;  %v2742_v6 = vld [vmem:[%s4015_s1 + $0x104] ss:$8 sps:$4 sm:$0xff]   ;;  %v2740_v9 = vld [vmem:[%s4015_s1 + $0x100] ss:$8 sps:$4 sm:$0xff]   ;;  %v2760_v20 = vld [vmem:[%s4015_s1 + $0x134] ss:$8 sps:$4 sm:$0xff]  }
  0x1a   :  { %v2745_v7 = vld [vmem:[%s4015_s1 + $0x504] ss:$8 sps:$4 sm:$0xff]   ;;  %v2743_v11 = vld [vmem:[%s4015_s1 + $0x500] ss:$8 sps:$4 sm:$0xff]   ;;  %v2763_v21 = vld [vmem:[%s4015_s1 + $0x534] ss:$8 sps:$4 sm:$0xff]  }
  0x1b   :  { %1765 = vmatpush1.bf16.msra.mxu1 %v2684_v26  ;;  %v2754_v16 = vld [vmem:[%s4015_s1 + $0x124] ss:$8 sps:$4 sm:$0xff]   ;;  %v2752_v18 = vld [vmem:[%s4015_s1 + $0x120] ss:$8 sps:$4 sm:$0xff]   ;;  %v2758_v22 = vld [vmem:[%s4015_s1 + $0x130] ss:$8 sps:$4 sm:$0xff]  }
  0x1c   :  { %1977 = vmatpush1.bf16.msra.mxu0 %v2685_v27  ;;  %1766 = vmatprep.subr.bf16.mxu1 %v2686_v28  ;;  %v2757_v17 = vld [vmem:[%s4015_s1 + $0x524] ss:$8 sps:$4 sm:$0xff]   ;;  %v2755_v19 = vld [vmem:[%s4015_s1 + $0x520] ss:$8 sps:$4 sm:$0xff]   ;;  %v2761_v23 = vld [vmem:[%s4015_s1 + $0x530] ss:$8 sps:$4 sm:$0xff]  }
  0x1d   :  { %1978 = vmatprep.subr.bf16.mxu0 %v2688_v29  ;;  %v2766_v24 = vld [vmem:[%s4015_s1 + $0x144] ss:$8 sps:$4 sm:$0xff]   ;;  %v2764_v26 = vld [vmem:[%s4015_s1 + $0x140] ss:$8 sps:$4 sm:$0xff]   ;;  %v2772_v28 = vld [vmem:[%s4015_s1 + $0x154] ss:$8 sps:$4 sm:$0xff]  }
  0x1e   :  { %v2769_v25 = vld [vmem:[%s4015_s1 + $0x544] ss:$8 sps:$4 sm:$0xff]   ;;  %v2767_v27 = vld [vmem:[%s4015_s1 + $0x540] ss:$8 sps:$4 sm:$0xff]   ;;  %v2775_v29 = vld [vmem:[%s4015_s1 + $0x554] ss:$8 sps:$4 sm:$0xff]  }
  0x1f   :  { %1767 = vmatpush1.bf16.msra.mxu1 %v2690_v30  ;;  %v40_v30 = vld [vmem:[%s4016_s0 + $0x80] sm:$0xff]  ;;  %v3376_v49 = vld [vmem:[%s4016_s0 + $0x28] sm:$0xff]  ;;  %v2785_v52 = vld [vmem:[%s4015_s1 + $0x570] ss:$8 sps:$4 sm:$0xff]  }
  0x20   :  { %1979 = vmatpush1.bf16.msra.mxu0 %v2691_v31  ;;  %1768 = vmatprep.subr.bf16.mxu1 %v2692_v32  ;;  %v48_v31 = vld [vmem:[%s4016_s0 + $0xc0] sm:$0xff]  ;;  %v2770_v32 = vld [vmem:[%s4015_s1 + $0x150] ss:$8 sps:$4 sm:$0xff]  }
  0x21   :  { %1980 = vmatprep.subr.bf16.mxu0 %v2694_v33  ;;  %v2315_v33 = vcombine.high %v40_v30, %v48_v31  ;;  %v2790_v54 = vld [vmem:[%s4015_s1 + $0x184] ss:$8 sps:$4 sm:$0xff]  }
  0x22   :  { %v2793_v55 = vld [vmem:[%s4015_s1 + $0x584] ss:$8 sps:$4 sm:$0xff]  }
  0x23   :  { %1769 = vmatpush1.bf16.msra.mxu1 %v2696_v34  ;;  %v2773_v34 = vld [vmem:[%s4015_s1 + $0x550] ss:$8 sps:$4 sm:$0xff]  }
  0x24   :  { %1981 = vmatpush1.bf16.msra.mxu0 %v2697_v35  ;;  %1770 = vmatprep.subr.bf16.mxu1 %v2698_v36  ;;  %v44_v35 = vld [vmem:[%s4016_s0 + $0xa0] sm:$0xff] }
  0x25   :  { %1982 = vmatprep.subr.bf16.mxu0 %v2700_v37  ;;  %v52_v36 = vld [vmem:[%s4016_s0 + $0xe0] sm:$0xff]  ;;  %v2314_v37 = vcombine.low %v40_v30, %v48_v31  ;;  %v2844_v30 = vld [vmem:[%s4015_s1 + $0x214] ss:$8 sps:$4 sm:$0xff]  }
  0x26   :  { %v2847_v31 = vld [vmem:[%s4015_s1 + $0x614] ss:$8 sps:$4 sm:$0xff]  }
  0x27   :  { %1771 = vmatpush1.bf16.msra.mxu1 %v2702_v38  ;;  %v2778_v38 = vld [vmem:[%s4015_s1 + $0x164] ss:$8 sps:$4 sm:$0xff]  }
  0x28   :  { %1983 = vmatpush1.bf16.msra.mxu0 %v2703_v39  ;;  %1772 = vmatprep.subr.bf16.mxu1 %v2704_v40  ;;  %v2323_v39 = vcombine.high %v44_v35, %v52_v36  ;;  %v2322_v40 = vcombine.low %v44_v35, %v52_v36  ;;  %v2842_v36 = vld [vmem:[%s4015_s1 + $0x210] ss:$8 sps:$4 sm:$0xff]  }
  0x29   :  { %1984 = vmatprep.subr.bf16.mxu0 %v2706_v41  ;;  %v2781_v41 = vld [vmem:[%s4015_s1 + $0x564] ss:$8 sps:$4 sm:$0xff]  }
  0x2b   :  { %1773 = vmatpush1.bf16.msra.mxu1 %v2708_v42  ;;  %v2776_v42 = vld [vmem:[%s4015_s1 + $0x160] ss:$8 sps:$4 sm:$0xff]  }
  0x2c   :  { %1985 = vmatpush1.bf16.msra.mxu0 %v2709_v43  ;;  %1774 = vmatprep.subr.bf16.mxu1 %v2710_v44  ;;  %v2779_v43 = vld [vmem:[%s4015_s1 + $0x560] ss:$8 sps:$4 sm:$0xff]  }
  0x2d   :  { %1986 = vmatprep.subr.bf16.mxu0 %v2712_v45  ;;  %v3358_v44 = vld [vmem:[%s4016_s0 + $0x8] sm:$0xff] }
  0x2e   :  { %v3363_v45 = vld [vmem:[%s4016_s0 + $0x48] sm:$0xff] }
  0x2f   :  { %1775 = vmatpush1.bf16.msra.mxu1 %v2714_v46  ;;  %v2784_v46 = vld [vmem:[%s4015_s1 + $0x174] ss:$8 sps:$4 sm:$0xff]   ;;  %v2301_v48 = vcombine.high %v3358_v44, %v3363_v45 }
  0x30   :  { %1987 = vmatpush1.bf16.msra.mxu0 %v2715_v47  ;;  %1776 = vmatprep.subr.bf16.mxu1 %v2716_v50  ;;  %v2787_v47 = vld [vmem:[%s4015_s1 + $0x574] ss:$8 sps:$4 sm:$0xff]   ;;  %v3381_v50 = vld [vmem:[%s4016_s0 + $0x68] sm:$0xff] }
  0x31   :  { %1988 = vmatprep.subr.bf16.mxu0 %v2718_v51  ;;  %v2782_v51 = vld [vmem:[%s4015_s1 + $0x170] ss:$8 sps:$4 sm:$0xff]   ;;  %v2309_v53 = vcombine.high %v3376_v49, %v3381_v50 }
  0x33   :  { %1777 = vmatpush1.bf16.msra.mxu1 %v2720_v56  ;;  %v2788_v56 = vld [vmem:[%s4015_s1 + $0x180] ss:$8 sps:$4 sm:$0xff]  }
  0x34   :  { %1989 = vmatpush1.bf16.msra.mxu0 %v2721_v57  ;;  %1778 = vmatprep.subr.bf16.mxu1 %v2722_v58  ;;  %v2791_v57 = vld [vmem:[%s4015_s1 + $0x580] ss:$8 sps:$4 sm:$0xff]   ;;  %v2796_v58 = vld [vmem:[%s4015_s1 + $0x194] ss:$8 sps:$4 sm:$0xff]  }
  0x35   :  { %1990 = vmatprep.subr.bf16.mxu0 %v2724_v59  ;;  %v2799_v59 = vld [vmem:[%s4015_s1 + $0x594] ss:$8 sps:$4 sm:$0xff]  }
  0x37   :  { %1779 = vmatpush1.bf16.msra.mxu1 %v2726_v60  ;;  %v2794_v60 = vld [vmem:[%s4015_s1 + $0x190] ss:$8 sps:$4 sm:$0xff]  }
  0x38   :  { %1991 = vmatpush1.bf16.msra.mxu0 %v2727_v61  ;;  %1780 = vmatprep.subr.bf16.mxu1 %v2728_v62  ;;  %v2797_v61 = vld [vmem:[%s4015_s1 + $0x590] ss:$8 sps:$4 sm:$0xff]   ;;  %v2802_v62 = vld [vmem:[%s4015_s1 + $0x1a4] ss:$8 sps:$4 sm:$0xff]  }
  0x39   :  { %1992 = vmatprep.subr.bf16.mxu0 %v2730_v63  ;;  %v2805_v63 = vld [vmem:[%s4015_s1 + $0x5a4] ss:$8 sps:$4 sm:$0xff]  }
  0x3b   :  { %1781 = vmatpush1.bf16.msra.mxu1 %v2732_v0  ;;  %v2800_v0 = vld [vmem:[%s4015_s1 + $0x1a0] ss:$8 sps:$4 sm:$0xff]  }
  0x3c   :  { %1993 = vmatpush1.bf16.msra.mxu0 %v2733_v1  ;;  %1782 = vmatprep.subr.bf16.mxu1 %v2734_v2  ;;  %v2803_v1 = vld [vmem:[%s4015_s1 + $0x5a0] ss:$8 sps:$4 sm:$0xff]   ;;  %v2808_v2 = vld [vmem:[%s4015_s1 + $0x1b4] ss:$8 sps:$4 sm:$0xff]  }
  0x3d   :  { %1994 = vmatprep.subr.bf16.mxu0 %v2736_v3  ;;  %v2811_v3 = vld [vmem:[%s4015_s1 + $0x5b4] ss:$8 sps:$4 sm:$0xff]  }
  0x3f   :  { %1783 = vmatpush1.bf16.msra.mxu1 %v2738_v4  ;;  %v2806_v4 = vld [vmem:[%s4015_s1 + $0x1b0] ss:$8 sps:$4 sm:$0xff]  }
  0x40   :  { %1995 = vmatpush1.bf16.msra.mxu0 %v2739_v5  ;;  %1805 = vmatprep.subr.bf16.mxu1 %v2742_v6  ;;  %v2809_v5 = vld [vmem:[%s4015_s1 + $0x5b0] ss:$8 sps:$4 sm:$0xff]   ;;  %v2814_v6 = vld [vmem:[%s4015_s1 + $0x1c4] ss:$8 sps:$4 sm:$0xff]  }
  0x41   :  { %2017 = vmatprep.subr.bf16.mxu0 %v2745_v7  ;;  %v2817_v7 = vld [vmem:[%s4015_s1 + $0x5c4] ss:$8 sps:$4 sm:$0xff]  }
  0x42   :  { %1785 = vmatmul.mubr.bf16.vlgmr.msra.gmra.mrb[0].mxu1 %v2298_v8  ;;  %v2812_v8 = vld [vmem:[%s4015_s1 + $0x1c0] ss:$8 sps:$4 sm:$0xff]  }
  0x43   :  { %1997 = vmatmul.mubr.bf16.vlgmr.msra.gmra.mrb[0].mxu0 %v2306_v10  ;;  %1806 = vmatpush1.bf16.msra.mxu1 %v2740_v9  ;;  %v2815_v9 = vld [vmem:[%s4015_s1 + $0x5c0] ss:$8 sps:$4 sm:$0xff]   ;;  %v2820_v10 = vld [vmem:[%s4015_s1 + $0x1d4] ss:$8 sps:$4 sm:$0xff]  }
  0x44   :  { %2018 = vmatpush1.bf16.msra.mxu0 %v2743_v11  ;;  %1807 = vmatprep.subr.bf16.mxu1 %v2748_v12  ;;  %v2823_v11 = vld [vmem:[%s4015_s1 + $0x5d4] ss:$8 sps:$4 sm:$0xff]   ;;  %v2818_v12 = vld [vmem:[%s4015_s1 + $0x1d0] ss:$8 sps:$4 sm:$0xff]  }
  0x45   :  { %2019 = vmatprep.subr.bf16.mxu0 %v2751_v13  ;;  %1794 = vmatprep.mubr.bf16.mxu1 %v2315_v33  ;;  %v2821_v13 = vld [vmem:[%s4015_s1 + $0x5d0] ss:$8 sps:$4 sm:$0xff]   ;;  %v53_v33 = vld [vmem:[%s4016_s0 + $0xe8] sm:$0xff] }
  0x46   :  { %2006 = vmatprep.mubr.bf16.mxu0 %v2323_v39  ;;  %v2853_v39 = vld [vmem:[%s4015_s1 + $0x624] ss:$8 sps:$4 sm:$0xff]  }
  0x47   :  { %1808 = vmatpush1.bf16.msra.mxu1 %v2746_v14  ;;  %v2826_v14 = vld [vmem:[%s4015_s1 + $0x1e4] ss:$8 sps:$4 sm:$0xff]  }
  0x48   :  { %2020 = vmatpush1.bf16.msra.mxu0 %v2749_v15  ;;  %1809 = vmatprep.subr.bf16.mxu1 %v2754_v16  ;;  %v2829_v15 = vld [vmem:[%s4015_s1 + $0x5e4] ss:$8 sps:$4 sm:$0xff]   ;;  %v2824_v16 = vld [vmem:[%s4015_s1 + $0x1e0] ss:$8 sps:$4 sm:$0xff]  }
  0x49   :  { %2021 = vmatprep.subr.bf16.mxu0 %v2757_v17  ;;  %v2827_v17 = vld [vmem:[%s4015_s1 + $0x5e0] ss:$8 sps:$4 sm:$0xff]  }
  0x4a   :  { %1795 = vmatmul.mubr.bf16.gmra.mrb[4].mxu1 %v2314_v37  ;;  %v2845_v37 = vld [vmem:[%s4015_s1 + $0x610] ss:$8 sps:$4 sm:$0xff]  }
  0x4b   :  { %1810 = vmatpush1.bf16.msra.mxu1 %v2752_v18  ;;  %2007 = vmatmul.mubr.bf16.gmra.mrb[4].mxu0 %v2322_v40  ;;  %v2832_v18 = vld [vmem:[%s4015_s1 + $0x1f4] ss:$8 sps:$4 sm:$0xff]   ;;  %v2848_v40 = vld [vmem:[%s4015_s1 + $0x220] ss:$8 sps:$4 sm:$0xff]  }
  0x4c   :  { %2022 = vmatpush1.bf16.msra.mxu0 %v2755_v19  ;;  %1811 = vmatprep.subr.bf16.mxu1 %v2760_v20  ;;  %v2835_v19 = vld [vmem:[%s4015_s1 + $0x5f4] ss:$8 sps:$4 sm:$0xff]   ;;  %v2830_v20 = vld [vmem:[%s4015_s1 + $0x1f0] ss:$8 sps:$4 sm:$0xff]  }
  0x4d   :  { %2023 = vmatprep.subr.bf16.mxu0 %v2763_v21  ;;  %1837 = vmatprep.mubr.bf16.mxu1 %v2301_v48  ;;  %v2833_v21 = vld [vmem:[%s4015_s1 + $0x5f0] ss:$8 sps:$4 sm:$0xff]   ;;  %v2856_v48 = vld [vmem:[%s4015_s1 + $0x234] ss:$8 sps:$4 sm:$0xff]  }
  0x4e   :  { %2049 = vmatprep.mubr.bf16.mxu0 %v2309_v53  ;;  %v2857_v53 = vld [vmem:[%s4015_s1 + $0x630] ss:$8 sps:$4 sm:$0xff]  }
  0x4f   :  { %1812 = vmatpush1.bf16.msra.mxu1 %v2758_v22  ;;  %v2838_v22 = vld [vmem:[%s4015_s1 + $0x204] ss:$8 sps:$4 sm:$0xff]  }
  0x50   :  { %2024 = vmatpush1.bf16.msra.mxu0 %v2761_v23  ;;  %1813 = vmatprep.subr.bf16.mxu1 %v2766_v24  ;;  %v2841_v23 = vld [vmem:[%s4015_s1 + $0x604] ss:$8 sps:$4 sm:$0xff]   ;;  %v2836_v24 = vld [vmem:[%s4015_s1 + $0x200] ss:$8 sps:$4 sm:$0xff]  }
  0x51   :  { %2025 = vmatprep.subr.bf16.mxu0 %v2769_v25  ;;  %v2839_v25 = vld [vmem:[%s4015_s1 + $0x600] ss:$8 sps:$4 sm:$0xff]  }
  0x53   :  { %1814 = vmatpush1.bf16.msra.mxu1 %v2764_v26  ;;  %v41_v26 = vld [vmem:[%s4016_s0 + $0x88] sm:$0xff] }
  0x54   :  { %2026 = vmatpush1.bf16.msra.mxu0 %v2767_v27  ;;  %1815 = vmatprep.subr.bf16.mxu1 %v2772_v28  ;;  %v2300_v27 = vcombine.low %v3358_v44, %v3363_v45  ;;  %v2308_v28 = vcombine.low %v3376_v49, %v3381_v50  ;;  %v3547_v45 = vld [vmem:[%s4016_s0 + $0x50] sm:$0xff] }
  0x55   :  { %2027 = vmatprep.subr.bf16.mxu0 %v2775_v29  ;;  %v49_v29 = vld [vmem:[%s4016_s0 + $0xc8] sm:$0xff]  ;;  %v2859_v49 = vld [vmem:[%s4015_s1 + $0x634] ss:$8 sps:$4 sm:$0xff]  }
  0x57   :  { %1816 = vmatpush1.bf16.msra.mxu1 %v2770_v32  ;;  %v45_v32 = vld [vmem:[%s4016_s0 + $0xa8] sm:$0xff] }
  0x58   :  { %2028 = vmatpush1.bf16.msra.mxu0 %v2773_v34  ;;  %1817 = vmatprep.subr.bf16.mxu1 %v2778_v38  ;;  %v2317_v34 = vcombine.high %v41_v26, %v49_v29  ;;  %v2325_v35 = vcombine.high %v45_v32, %v53_v33  ;;  %v2850_v38 = vld [vmem:[%s4015_s1 + $0x224] ss:$8 sps:$4 sm:$0xff]   ;;  %v2324_v44 = vcombine.low %v45_v32, %v53_v33  ;;  %v2920_v32 = vld [vmem:[%s4015_s1 + $0x2e0] ss:$8 sps:$4 sm:$0xff]  }
  0x59   :  { %2029 = vmatprep.subr.bf16.mxu0 %v2781_v41  ;;  %v2851_v41 = vld [vmem:[%s4015_s1 + $0x620] ss:$8 sps:$4 sm:$0xff]  }
  0x5a   :  { %v2923_v33 = vld [vmem:[%s4015_s1 + $0x6e0] ss:$8 sps:$4 sm:$0xff]  }
  0x5b   :  { %1818 = vmatpush1.bf16.msra.mxu1 %v2776_v42  ;;  %v3542_v42 = vld [vmem:[%s4016_s0 + $0x10] sm:$0xff] }
  0x5c   :  { %2030 = vmatpush1.bf16.msra.mxu0 %v2779_v43  ;;  %1819 = vmatprep.subr.bf16.mxu1 %v2784_v46  ;;  %v2316_v43 = vcombine.low %v41_v26, %v49_v29  ;;  %v3552_v46 = vld [vmem:[%s4016_s0 + $0x30] sm:$0xff]  ;;  %v2303_v50 = vcombine.high %v3542_v42, %v3547_v45 }
  0x5d   :  { %2031 = vmatprep.subr.bf16.mxu0 %v2787_v47  ;;  %v3557_v47 = vld [vmem:[%s4016_s0 + $0x70] sm:$0xff] }
  0x5e   :  { %v2916_v26 = vld [vmem:[%s4015_s1 + $0x2d4] ss:$8 sps:$4 sm:$0xff]   ;;  %v2917_v29 = vld [vmem:[%s4015_s1 + $0x6d0] ss:$8 sps:$4 sm:$0xff]  }
  0x5f   :  { %1820 = vmatpush1.bf16.msra.mxu1 %v2782_v51  ;;  %v2311_v51 = vcombine.high %v3552_v46, %v3557_v47 }
  0x60   :  { %2032 = vmatpush1.bf16.msra.mxu0 %v2785_v52  ;;  %1821 = vmatprep.subr.bf16.mxu1 %v2790_v54  ;;  %v2854_v52 = vld [vmem:[%s4015_s1 + $0x230] ss:$8 sps:$4 sm:$0xff]   ;;  %v2862_v54 = vld [vmem:[%s4015_s1 + $0x244] ss:$8 sps:$4 sm:$0xff]  }
  0x61   :  { %2033 = vmatprep.subr.bf16.mxu0 %v2793_v55  ;;  %v2865_v55 = vld [vmem:[%s4015_s1 + $0x644] ss:$8 sps:$4 sm:$0xff]  }
  0x63   :  { %1822 = vmatpush1.bf16.msra.mxu1 %v2788_v56  ;;  %v2860_v56 = vld [vmem:[%s4015_s1 + $0x240] ss:$8 sps:$4 sm:$0xff]  }
  0x64   :  { %2034 = vmatpush1.bf16.msra.mxu0 %v2791_v57  ;;  %1823 = vmatprep.subr.bf16.mxu1 %v2796_v58  ;;  %v2863_v57 = vld [vmem:[%s4015_s1 + $0x640] ss:$8 sps:$4 sm:$0xff]   ;;  %v2868_v58 = vld [vmem:[%s4015_s1 + $0x254] ss:$8 sps:$4 sm:$0xff]  }
  0x65   :  { %2035 = vmatprep.subr.bf16.mxu0 %v2799_v59  ;;  %v2871_v59 = vld [vmem:[%s4015_s1 + $0x654] ss:$8 sps:$4 sm:$0xff]  }
  0x67   :  { %1824 = vmatpush1.bf16.msra.mxu1 %v2794_v60  ;;  %v2866_v60 = vld [vmem:[%s4015_s1 + $0x250] ss:$8 sps:$4 sm:$0xff]  }
  0x68   :  { %2036 = vmatpush1.bf16.msra.mxu0 %v2797_v61  ;;  %1825 = vmatprep.subr.bf16.mxu1 %v2802_v62  ;;  %v2869_v61 = vld [vmem:[%s4015_s1 + $0x650] ss:$8 sps:$4 sm:$0xff]   ;;  %v2874_v62 = vld [vmem:[%s4015_s1 + $0x264] ss:$8 sps:$4 sm:$0xff]  }
  0x69   :  { %2037 = vmatprep.subr.bf16.mxu0 %v2805_v63  ;;  %v2877_v63 = vld [vmem:[%s4015_s1 + $0x664] ss:$8 sps:$4 sm:$0xff]  }
  0x6b   :  { %1826 = vmatpush1.bf16.msra.mxu1 %v2800_v0  ;;  %v2872_v0 = vld [vmem:[%s4015_s1 + $0x260] ss:$8 sps:$4 sm:$0xff]  }
  0x6c   :  { %2038 = vmatpush1.bf16.msra.mxu0 %v2803_v1  ;;  %1827 = vmatprep.subr.bf16.mxu1 %v2808_v2  ;;  %v2875_v1 = vld [vmem:[%s4015_s1 + $0x660] ss:$8 sps:$4 sm:$0xff]   ;;  %v2880_v2 = vld [vmem:[%s4015_s1 + $0x274] ss:$8 sps:$4 sm:$0xff]  }
  0x6d   :  { %2039 = vmatprep.subr.bf16.mxu0 %v2811_v3  ;;  %v2883_v3 = vld [vmem:[%s4015_s1 + $0x674] ss:$8 sps:$4 sm:$0xff]  }
  0x6f   :  { %1828 = vmatpush1.bf16.msra.mxu1 %v2806_v4  ;;  %v2878_v4 = vld [vmem:[%s4015_s1 + $0x270] ss:$8 sps:$4 sm:$0xff]  }
  0x70   :  { %2040 = vmatpush1.bf16.msra.mxu0 %v2809_v5  ;;  %1829 = vmatprep.subr.bf16.mxu1 %v2814_v6  ;;  %v2881_v5 = vld [vmem:[%s4015_s1 + $0x670] ss:$8 sps:$4 sm:$0xff]   ;;  %v2886_v6 = vld [vmem:[%s4015_s1 + $0x284] ss:$8 sps:$4 sm:$0xff]  }
  0x71   :  { %2041 = vmatprep.subr.bf16.mxu0 %v2817_v7  ;;  %v2889_v7 = vld [vmem:[%s4015_s1 + $0x684] ss:$8 sps:$4 sm:$0xff]  }
  0x73   :  { %1830 = vmatpush1.bf16.msra.mxu1 %v2812_v8  ;;  %v2884_v8 = vld [vmem:[%s4015_s1 + $0x280] ss:$8 sps:$4 sm:$0xff]  }
  0x74   :  { %2042 = vmatpush1.bf16.msra.mxu0 %v2815_v9  ;;  %1831 = vmatprep.subr.bf16.mxu1 %v2820_v10  ;;  %v2887_v9 = vld [vmem:[%s4015_s1 + $0x680] ss:$8 sps:$4 sm:$0xff]   ;;  %v2892_v10 = vld [vmem:[%s4015_s1 + $0x294] ss:$8 sps:$4 sm:$0xff]  }
  0x75   :  { %2043 = vmatprep.subr.bf16.mxu0 %v2823_v11  ;;  %v2895_v11 = vld [vmem:[%s4015_s1 + $0x694] ss:$8 sps:$4 sm:$0xff]  }
  0x77   :  { %1832 = vmatpush1.bf16.msra.mxu1 %v2818_v12  ;;  %v2890_v12 = vld [vmem:[%s4015_s1 + $0x290] ss:$8 sps:$4 sm:$0xff]  }
  0x78   :  { %2044 = vmatpush1.bf16.msra.mxu0 %v2821_v13  ;;  %1833 = vmatprep.subr.bf16.mxu1 %v2826_v14  ;;  %v2893_v13 = vld [vmem:[%s4015_s1 + $0x690] ss:$8 sps:$4 sm:$0xff]   ;;  %v2898_v14 = vld [vmem:[%s4015_s1 + $0x2a4] ss:$8 sps:$4 sm:$0xff]  }
  0x79   :  { %2045 = vmatprep.subr.bf16.mxu0 %v2829_v15  ;;  %v2901_v15 = vld [vmem:[%s4015_s1 + $0x6a4] ss:$8 sps:$4 sm:$0xff]  }
  0x7b   :  { %1834 = vmatpush1.bf16.msra.mxu1 %v2824_v16  ;;  %v2896_v16 = vld [vmem:[%s4015_s1 + $0x2a0] ss:$8 sps:$4 sm:$0xff]  }
  0x7c   :  { %2046 = vmatpush1.bf16.msra.mxu0 %v2827_v17  ;;  %1835 = vmatprep.subr.bf16.mxu1 %v2832_v18  ;;  %v2899_v17 = vld [vmem:[%s4015_s1 + $0x6a0] ss:$8 sps:$4 sm:$0xff]   ;;  %v2904_v18 = vld [vmem:[%s4015_s1 + $0x2b4] ss:$8 sps:$4 sm:$0xff]  }
  0x7d   :  { %2047 = vmatprep.subr.bf16.mxu0 %v2835_v19  ;;  %v2907_v19 = vld [vmem:[%s4015_s1 + $0x6b4] ss:$8 sps:$4 sm:$0xff]  }
  0x7f   :  { %1836 = vmatpush1.bf16.msra.mxu1 %v2830_v20  ;;  %v2902_v20 = vld [vmem:[%s4015_s1 + $0x2b0] ss:$8 sps:$4 sm:$0xff]  }
  0x80   :  { %2048 = vmatpush1.bf16.msra.mxu0 %v2833_v21  ;;  %1858 = vmatprep.subr.bf16.mxu1 %v2838_v22  ;;  %v2905_v21 = vld [vmem:[%s4015_s1 + $0x6b0] ss:$8 sps:$4 sm:$0xff]   ;;  %v2910_v22 = vld [vmem:[%s4015_s1 + $0x2c4] ss:$8 sps:$4 sm:$0xff]  }
  0x81   :  { %2070 = vmatprep.subr.bf16.mxu0 %v2841_v23  ;;  %v2913_v23 = vld [vmem:[%s4015_s1 + $0x6c4] ss:$8 sps:$4 sm:$0xff]  }
  0x82   :  { %1838 = vmatmul.mubr.bf16.vlgmr.msra.gmra.mrb[0].mxu1 %v2300_v27  ;;  %v2919_v27 = vld [vmem:[%s4015_s1 + $0x6d4] ss:$8 sps:$4 sm:$0xff]  }
  0x83   :  { %2050 = vmatmul.mubr.bf16.vlgmr.msra.gmra.mrb[0].mxu0 %v2308_v28  ;;  %1859 = vmatpush1.bf16.msra.mxu1 %v2836_v24  ;;  %v2908_v24 = vld [vmem:[%s4015_s1 + $0x2c0] ss:$8 sps:$4 sm:$0xff]   ;;  %v2914_v28 = vld [vmem:[%s4015_s1 + $0x2d0] ss:$8 sps:$4 sm:$0xff]  }
  0x84   :  { %2071 = vmatpush1.bf16.msra.mxu0 %v2839_v25  ;;  %1860 = vmatprep.subr.bf16.mxu1 %v2844_v30  ;;  %v2911_v25 = vld [vmem:[%s4015_s1 + $0x6c0] ss:$8 sps:$4 sm:$0xff]   ;;  %v2922_v30 = vld [vmem:[%s4015_s1 + $0x2e4] ss:$8 sps:$4 sm:$0xff]  }
  0x85   :  { %2072 = vmatprep.subr.bf16.mxu0 %v2847_v31  ;;  %1847 = vmatprep.mubr.bf16.mxu1 %v2317_v34  ;;  %v2925_v31 = vld [vmem:[%s4015_s1 + $0x6e4] ss:$8 sps:$4 sm:$0xff]   ;;  %v2928_v34 = vld [vmem:[%s4015_s1 + $0x2f4] ss:$8 sps:$4 sm:$0xff]  }
  0x86   :  { %2059 = vmatprep.mubr.bf16.mxu0 %v2325_v35  ;;  %v2931_v35 = vld [vmem:[%s4015_s1 + $0x6f4] ss:$8 sps:$4 sm:$0xff]  }
  0x87   :  { %1861 = vmatpush1.bf16.msra.mxu1 %v2842_v36  ;;  %v2926_v36 = vld [vmem:[%s4015_s1 + $0x2f0] ss:$8 sps:$4 sm:$0xff]  }
  0x88   :  { %2073 = vmatpush1.bf16.msra.mxu0 %v2845_v37  ;;  %1862 = vmatprep.subr.bf16.mxu1 %v2850_v38  ;;  %v2929_v37 = vld [vmem:[%s4015_s1 + $0x6f0] ss:$8 sps:$4 sm:$0xff]   ;;  %v2934_v38 = vld [vmem:[%s4015_s1 + $0x304] ss:$8 sps:$4 sm:$0xff]  }
  0x89   :  { %2074 = vmatprep.subr.bf16.mxu0 %v2853_v39  ;;  %v2937_v39 = vld [vmem:[%s4015_s1 + $0x704] ss:$8 sps:$4 sm:$0xff]  }
  0x8a   :  { %1848 = vmatmul.mubr.bf16.gmra.mrb[4].mxu1 %v2316_v43  ;;  %v2310_v43 = vcombine.low %v3552_v46, %v3557_v47  ;;  %v2940_v46 = vld [vmem:[%s4015_s1 + $0x314] ss:$8 sps:$4 sm:$0xff]  }
  0x8b   :  { %2060 = vmatmul.mubr.bf16.gmra.mrb[4].mxu0 %v2324_v44  ;;  %1863 = vmatpush1.bf16.msra.mxu1 %v2848_v40  ;;  %v42_v40 = vld [vmem:[%s4016_s0 + $0x90] sm:$0xff] }
  0x8c   :  { %2075 = vmatpush1.bf16.msra.mxu0 %v2851_v41  ;;  %1864 = vmatprep.subr.bf16.mxu1 %v2856_v48  ;;  %v2302_v41 = vcombine.low %v3542_v42, %v3547_v45  ;;  %v50_v44 = vld [vmem:[%s4016_s0 + $0xd0] sm:$0xff]  ;;  %v2932_v42 = vld [vmem:[%s4015_s1 + $0x300] ss:$8 sps:$4 sm:$0xff]  }
  0x8d   :  { %2076 = vmatprep.subr.bf16.mxu0 %v2859_v49  ;;  %1890 = vmatprep.mubr.bf16.mxu1 %v2303_v50  ;;  %v46_v48 = vld [vmem:[%s4016_s0 + $0xb0] sm:$0xff]  ;;  %v2935_v45 = vld [vmem:[%s4015_s1 + $0x700] ss:$8 sps:$4 sm:$0xff]   ;;  %v2319_v50 = vcombine.high %v42_v40, %v50_v44 }
  0x8e   :  { %2102 = vmatprep.mubr.bf16.mxu0 %v2311_v51  ;;  %v54_v49 = vld [vmem:[%s4016_s0 + $0xf0] sm:$0xff] }
  0x8f   :  { %1865 = vmatpush1.bf16.msra.mxu1 %v2854_v52  ;;  %v2943_v47 = vld [vmem:[%s4015_s1 + $0x714] ss:$8 sps:$4 sm:$0xff]   ;;  %v2327_v51 = vcombine.high %v46_v48, %v54_v49  ;;  %v2938_v52 = vld [vmem:[%s4015_s1 + $0x310] ss:$8 sps:$4 sm:$0xff]  }
  0x90   :  { %2077 = vmatpush1.bf16.msra.mxu0 %v2857_v53  ;;  %1866 = vmatprep.subr.bf16.mxu1 %v2862_v54  ;;  %v2941_v53 = vld [vmem:[%s4015_s1 + $0x710] ss:$8 sps:$4 sm:$0xff]   ;;  %v2946_v54 = vld [vmem:[%s4015_s1 + $0x324] ss:$8 sps:$4 sm:$0xff]  }
  0x91   :  { %2078 = vmatprep.subr.bf16.mxu0 %v2865_v55  ;;  %v2949_v55 = vld [vmem:[%s4015_s1 + $0x724] ss:$8 sps:$4 sm:$0xff]  }
  0x93   :  { %1867 = vmatpush1.bf16.msra.mxu1 %v2860_v56  ;;  %v3768_v56 = vld [vmem:[%s4016_s0 + $0x18] sm:$0xff] }
  0x94   :  { %2079 = vmatpush1.bf16.msra.mxu0 %v2863_v57  ;;  %1868 = vmatprep.subr.bf16.mxu1 %v2868_v58  ;;  %v2318_v57 = vcombine.low %v42_v40, %v50_v44  ;;  %v2326_v58 = vcombine.low %v46_v48, %v54_v49  ;;  %v3004_v40 = vld [vmem:[%s4015_s1 + $0x3c0] ss:$8 sps:$4 sm:$0xff]   ;;  %v3015_v44 = vld [vmem:[%s4015_s1 + $0x7d4] ss:$8 sps:$4 sm:$0xff]   ;;  %v3010_v48 = vld [vmem:[%s4015_s1 + $0x3d0] ss:$8 sps:$4 sm:$0xff]  }
  0x95   :  { %2080 = vmatprep.subr.bf16.mxu0 %v2871_v59  ;;  %v3773_v59 = vld [vmem:[%s4016_s0 + $0x58] sm:$0xff] }
  0x96   :  { %v3013_v49 = vld [vmem:[%s4015_s1 + $0x7d0] ss:$8 sps:$4 sm:$0xff]  }
  0x97   :  { %1869 = vmatpush1.bf16.msra.mxu1 %v2866_v60  ;;  %v3778_v60 = vld [vmem:[%s4016_s0 + $0x38] sm:$0xff] }
  0x98   :  { %2081 = vmatpush1.bf16.msra.mxu0 %v2869_v61  ;;  %1870 = vmatprep.subr.bf16.mxu1 %v2874_v62  ;;  %v3783_v61 = vld [vmem:[%s4016_s0 + $0x78] sm:$0xff]  ;;  %v2944_v62 = vld [vmem:[%s4015_s1 + $0x320] ss:$8 sps:$4 sm:$0xff]  }
  0x99   :  { %2082 = vmatprep.subr.bf16.mxu0 %v2877_v63  ;;  %v2947_v63 = vld [vmem:[%s4015_s1 + $0x720] ss:$8 sps:$4 sm:$0xff]  }
  0x9b   :  { %1871 = vmatpush1.bf16.msra.mxu1 %v2872_v0  ;;  %v2952_v0 = vld [vmem:[%s4015_s1 + $0x334] ss:$8 sps:$4 sm:$0xff]  }
  0x9c   :  { %2083 = vmatpush1.bf16.msra.mxu0 %v2875_v1  ;;  %1872 = vmatprep.subr.bf16.mxu1 %v2880_v2  ;;  %v2955_v1 = vld [vmem:[%s4015_s1 + $0x734] ss:$8 sps:$4 sm:$0xff]   ;;  %v2305_v2 = vcombine.high %v3768_v56, %v3773_v59 }
  0x9d   :  { %2084 = vmatprep.subr.bf16.mxu0 %v2883_v3  ;;  %v2313_v3 = vcombine.high %v3778_v60, %v3783_v61 }
  0x9f   :  { %1873 = vmatpush1.bf16.msra.mxu1 %v2878_v4  ;;  %v2950_v4 = vld [vmem:[%s4015_s1 + $0x330] ss:$8 sps:$4 sm:$0xff]  }
  0xa0   :  { %2085 = vmatpush1.bf16.msra.mxu0 %v2881_v5  ;;  %1874 = vmatprep.subr.bf16.mxu1 %v2886_v6  ;;  %v2953_v5 = vld [vmem:[%s4015_s1 + $0x730] ss:$8 sps:$4 sm:$0xff]   ;;  %v2958_v6 = vld [vmem:[%s4015_s1 + $0x344] ss:$8 sps:$4 sm:$0xff]  }
  0xa1   :  { %2086 = vmatprep.subr.bf16.mxu0 %v2889_v7  ;;  %v2961_v7 = vld [vmem:[%s4015_s1 + $0x744] ss:$8 sps:$4 sm:$0xff]  }
  0xa3   :  { %1875 = vmatpush1.bf16.msra.mxu1 %v2884_v8  ;;  %v2956_v8 = vld [vmem:[%s4015_s1 + $0x340] ss:$8 sps:$4 sm:$0xff]  }
  0xa4   :  { %2087 = vmatpush1.bf16.msra.mxu0 %v2887_v9  ;;  %1876 = vmatprep.subr.bf16.mxu1 %v2892_v10  ;;  %v2959_v9 = vld [vmem:[%s4015_s1 + $0x740] ss:$8 sps:$4 sm:$0xff]   ;;  %v2964_v10 = vld [vmem:[%s4015_s1 + $0x354] ss:$8 sps:$4 sm:$0xff]  }
  0xa5   :  { %2088 = vmatprep.subr.bf16.mxu0 %v2895_v11  ;;  %v2967_v11 = vld [vmem:[%s4015_s1 + $0x754] ss:$8 sps:$4 sm:$0xff]  }
  0xa7   :  { %1877 = vmatpush1.bf16.msra.mxu1 %v2890_v12  ;;  %v2962_v12 = vld [vmem:[%s4015_s1 + $0x350] ss:$8 sps:$4 sm:$0xff]  }
  0xa8   :  { %2089 = vmatpush1.bf16.msra.mxu0 %v2893_v13  ;;  %1878 = vmatprep.subr.bf16.mxu1 %v2898_v14  ;;  %v2965_v13 = vld [vmem:[%s4015_s1 + $0x750] ss:$8 sps:$4 sm:$0xff]   ;;  %v2970_v14 = vld [vmem:[%s4015_s1 + $0x364] ss:$8 sps:$4 sm:$0xff]  }
  0xa9   :  { %2090 = vmatprep.subr.bf16.mxu0 %v2901_v15  ;;  %v2973_v15 = vld [vmem:[%s4015_s1 + $0x764] ss:$8 sps:$4 sm:$0xff]  }
  0xab   :  { %1879 = vmatpush1.bf16.msra.mxu1 %v2896_v16  ;;  %v2968_v16 = vld [vmem:[%s4015_s1 + $0x360] ss:$8 sps:$4 sm:$0xff]  }
  0xac   :  { %2091 = vmatpush1.bf16.msra.mxu0 %v2899_v17  ;;  %1880 = vmatprep.subr.bf16.mxu1 %v2904_v18  ;;  %v2971_v17 = vld [vmem:[%s4015_s1 + $0x760] ss:$8 sps:$4 sm:$0xff]   ;;  %v2976_v18 = vld [vmem:[%s4015_s1 + $0x374] ss:$8 sps:$4 sm:$0xff]  }
  0xad   :  { %2092 = vmatprep.subr.bf16.mxu0 %v2907_v19  ;;  %v2979_v19 = vld [vmem:[%s4015_s1 + $0x774] ss:$8 sps:$4 sm:$0xff]  }
  0xaf   :  { %1881 = vmatpush1.bf16.msra.mxu1 %v2902_v20  ;;  %v2974_v20 = vld [vmem:[%s4015_s1 + $0x370] ss:$8 sps:$4 sm:$0xff]  }
  0xb0   :  { %2093 = vmatpush1.bf16.msra.mxu0 %v2905_v21  ;;  %1882 = vmatprep.subr.bf16.mxu1 %v2910_v22  ;;  %v2977_v21 = vld [vmem:[%s4015_s1 + $0x770] ss:$8 sps:$4 sm:$0xff]   ;;  %v2982_v22 = vld [vmem:[%s4015_s1 + $0x384] ss:$8 sps:$4 sm:$0xff]  }
  0xb1   :  { %2094 = vmatprep.subr.bf16.mxu0 %v2913_v23  ;;  %v2985_v23 = vld [vmem:[%s4015_s1 + $0x784] ss:$8 sps:$4 sm:$0xff]  }
  0xb3   :  { %1883 = vmatpush1.bf16.msra.mxu1 %v2908_v24  ;;  %v2980_v24 = vld [vmem:[%s4015_s1 + $0x380] ss:$8 sps:$4 sm:$0xff]  }
  0xb4   :  { %2095 = vmatpush1.bf16.msra.mxu0 %v2911_v25  ;;  %1884 = vmatprep.subr.bf16.mxu1 %v2916_v26  ;;  %v2983_v25 = vld [vmem:[%s4015_s1 + $0x780] ss:$8 sps:$4 sm:$0xff]   ;;  %v2988_v26 = vld [vmem:[%s4015_s1 + $0x394] ss:$8 sps:$4 sm:$0xff]  }
  0xb5   :  { %2096 = vmatprep.subr.bf16.mxu0 %v2919_v27  ;;  %v2991_v27 = vld [vmem:[%s4015_s1 + $0x794] ss:$8 sps:$4 sm:$0xff]  }
  0xb7   :  { %1885 = vmatpush1.bf16.msra.mxu1 %v2914_v28  ;;  %v2986_v28 = vld [vmem:[%s4015_s1 + $0x390] ss:$8 sps:$4 sm:$0xff]  }
  0xb8   :  { %2097 = vmatpush1.bf16.msra.mxu0 %v2917_v29  ;;  %1886 = vmatprep.subr.bf16.mxu1 %v2922_v30  ;;  %v2989_v29 = vld [vmem:[%s4015_s1 + $0x790] ss:$8 sps:$4 sm:$0xff]   ;;  %v2994_v30 = vld [vmem:[%s4015_s1 + $0x3a4] ss:$8 sps:$4 sm:$0xff]  }
  0xb9   :  { %2098 = vmatprep.subr.bf16.mxu0 %v2925_v31  ;;  %v2997_v31 = vld [vmem:[%s4015_s1 + $0x7a4] ss:$8 sps:$4 sm:$0xff]  }
  0xbb   :  { %1887 = vmatpush1.bf16.msra.mxu1 %v2920_v32  ;;  %v2992_v32 = vld [vmem:[%s4015_s1 + $0x3a0] ss:$8 sps:$4 sm:$0xff]  }
  0xbc   :  { %2099 = vmatpush1.bf16.msra.mxu0 %v2923_v33  ;;  %1888 = vmatprep.subr.bf16.mxu1 %v2928_v34  ;;  %v2995_v33 = vld [vmem:[%s4015_s1 + $0x7a0] ss:$8 sps:$4 sm:$0xff]   ;;  %v3000_v34 = vld [vmem:[%s4015_s1 + $0x3b4] ss:$8 sps:$4 sm:$0xff]  }
  0xbd   :  { %2100 = vmatprep.subr.bf16.mxu0 %v2931_v35  ;;  %v3003_v35 = vld [vmem:[%s4015_s1 + $0x7b4] ss:$8 sps:$4 sm:$0xff]  }
  0xbf   :  { %1889 = vmatpush1.bf16.msra.mxu1 %v2926_v36  ;;  %v2998_v36 = vld [vmem:[%s4015_s1 + $0x3b0] ss:$8 sps:$4 sm:$0xff]  }
  0xc0   :  { %2101 = vmatpush1.bf16.msra.mxu0 %v2929_v37  ;;  %1911 = vmatprep.subr.bf16.mxu1 %v2934_v38  ;;  %v3001_v37 = vld [vmem:[%s4015_s1 + $0x7b0] ss:$8 sps:$4 sm:$0xff]   ;;  %v3006_v38 = vld [vmem:[%s4015_s1 + $0x3c4] ss:$8 sps:$4 sm:$0xff]  }
  0xc1   :  { %2123 = vmatprep.subr.bf16.mxu0 %v2937_v39  ;;  %v3009_v39 = vld [vmem:[%s4015_s1 + $0x7c4] ss:$8 sps:$4 sm:$0xff]  }
  0xc2   :  { %1891 = vmatmul.mubr.bf16.vlgmr.msra.gmra.mrb[0].mxu1 %v2302_v41  ;;  %v3007_v41 = vld [vmem:[%s4015_s1 + $0x7c0] ss:$8 sps:$4 sm:$0xff]  }
  0xc3   :  { %2103 = vmatmul.mubr.bf16.vlgmr.msra.gmra.mrb[0].mxu0 %v2310_v43  ;;  %1912 = vmatpush1.bf16.msra.mxu1 %v2932_v42  ;;  %v3012_v43 = vld [vmem:[%s4015_s1 + $0x3d4] ss:$8 sps:$4 sm:$0xff]   ;;  %v3018_v42 = vld [vmem:[%s4015_s1 + $0x3e4] ss:$8 sps:$4 sm:$0xff]  }
  0xc4   :  { %2124 = vmatpush1.bf16.msra.mxu0 %v2935_v45  ;;  %1913 = vmatprep.subr.bf16.mxu1 %v2940_v46  ;;  %v3021_v45 = vld [vmem:[%s4015_s1 + $0x7e4] ss:$8 sps:$4 sm:$0xff]   ;;  %v3016_v46 = vld [vmem:[%s4015_s1 + $0x3e0] ss:$8 sps:$4 sm:$0xff]  }
  0xc5   :  { %2125 = vmatprep.subr.bf16.mxu0 %v2943_v47  ;;  %1900 = vmatprep.mubr.bf16.mxu1 %v2319_v50  ;;  %v3019_v47 = vld [vmem:[%s4015_s1 + $0x7e0] ss:$8 sps:$4 sm:$0xff]   ;;  %v3024_v50 = vld [vmem:[%s4015_s1 + $0x3f4] ss:$8 sps:$4 sm:$0xff]  }
  0xc6   :  { %2112 = vmatprep.mubr.bf16.mxu0 %v2327_v51  ;;  %v3027_v51 = vld [vmem:[%s4015_s1 + $0x7f4] ss:$8 sps:$4 sm:$0xff]  }
  0xc7   :  { %1914 = vmatpush1.bf16.msra.mxu1 %v2938_v52  ;;  %v3022_v52 = vld [vmem:[%s4015_s1 + $0x3f0] ss:$8 sps:$4 sm:$0xff]  }
  0xc8   :  { %2126 = vmatpush1.bf16.msra.mxu0 %v2941_v53  ;;  %1915 = vmatprep.subr.bf16.mxu1 %v2946_v54  ;;  %v3025_v53 = vld [vmem:[%s4015_s1 + $0x7f0] ss:$8 sps:$4 sm:$0xff]  }
  0xc9   :  { %2127 = vmatprep.subr.bf16.mxu0 %v2949_v55  ;;  %v43_v54 = vld [vmem:[%s4016_s0 + $0x98] sm:$0xff] }
  0xca   :  { %1901 = vmatmul.mubr.bf16.gmra.mrb[4].mxu1 %v2318_v57  ;;  %v51_v55 = vld [vmem:[%s4016_s0 + $0xd8] sm:$0xff] }
  0xcb   :  { %2113 = vmatmul.mubr.bf16.gmra.mrb[4].mxu0 %v2326_v58  ;;  %1916 = vmatpush1.bf16.msra.mxu1 %v2944_v62  ;;  %v47_v57 = vld [vmem:[%s4016_s0 + $0xb8] sm:$0xff]  ;;  %v2304_v62 = vcombine.low %v3768_v56, %v3773_v59  ;;  %v3028_v56 = vmov 0.0  }
  0xcc   :  { %2128 = vmatpush1.bf16.msra.mxu0 %v2947_v63  ;;  %1917 = vmatprep.subr.bf16.mxu1 %v2952_v0  ;;  %v55_v58 = vld [vmem:[%s4016_s0 + $0xf8] sm:$0xff]  ;;  %v2312_v63 = vcombine.low %v3778_v60, %v3783_v61  ;;  %v2321_v0 = vcombine.high %v43_v54, %v51_v55 }
  0xcd   :  { %2129 = vmatprep.subr.bf16.mxu0 %v2955_v1  ;;  %1943 = vmatprep.mubr.bf16.mxu1 %v2305_v2  ;;  %v2329_v1 = vcombine.high %v47_v57, %v55_v58  ;;  %v2320_v2 = vcombine.low %v43_v54, %v51_v55 }
  0xce   :  { %2155 = vmatprep.mubr.bf16.mxu0 %v2313_v3  ;;  %v2328_v3 = vcombine.low %v47_v57, %v55_v58 }
  0xcf   :  { %1918 = vmatpush1.bf16.msra.mxu1 %v2950_v4  ;;  %v18_v4 = vlaneseq }
  0xd0   :  { %2130 = vmatpush1.bf16.msra.mxu0 %v2953_v5  ;;  %1919 = vmatprep.subr.bf16.mxu1 %v2958_v6 }
  0xd1   :  { %2131 = vmatprep.subr.bf16.mxu0 %v2961_v7  ;;  %vm3968_vm0 = vcmp.lt.s32.totalorder %v18_v4, 256 }
  0xd2   :  { %22 = vst.msk [vmem:[#allocation2] sm:$0x3] %vm3968_vm0, %v3028_v56  ;;  %23 = vst.msk [vmem:[#allocation3] sm:$0x3] %vm3968_vm0, %v3028_v56 }
  0xd3   :  { %1920 = vmatpush1.bf16.msra.mxu1 %v2956_v8 }
  0xd4   :  { %2132 = vmatpush1.bf16.msra.mxu0 %v2959_v9  ;;  %1921 = vmatprep.subr.bf16.mxu1 %v2964_v10 }
  0xd5   :  { %2133 = vmatprep.subr.bf16.mxu0 %v2967_v11 }
  0xd7   :  { %1922 = vmatpush1.bf16.msra.mxu1 %v2962_v12 }
  0xd8   :  { %2134 = vmatpush1.bf16.msra.mxu0 %v2965_v13  ;;  %1923 = vmatprep.subr.bf16.mxu1 %v2970_v14 }
  0xd9   :  { %2135 = vmatprep.subr.bf16.mxu0 %v2973_v15 }
  0xdb   :  { %1924 = vmatpush1.bf16.msra.mxu1 %v2968_v16 }
  0xdc   :  { %2136 = vmatpush1.bf16.msra.mxu0 %v2971_v17  ;;  %1925 = vmatprep.subr.bf16.mxu1 %v2976_v18 }
  0xdd   :  { %2137 = vmatprep.subr.bf16.mxu0 %v2979_v19 }
  0xdf   :  { %1926 = vmatpush1.bf16.msra.mxu1 %v2974_v20 }
  0xe0   :  { %2138 = vmatpush1.bf16.msra.mxu0 %v2977_v21  ;;  %1927 = vmatprep.subr.bf16.mxu1 %v2982_v22 }
  0xe1   :  { %2139 = vmatprep.subr.bf16.mxu0 %v2985_v23 }
  0xe3   :  { %1928 = vmatpush1.bf16.msra.mxu1 %v2980_v24 }
  0xe4   :  { %2140 = vmatpush1.bf16.msra.mxu0 %v2983_v25  ;;  %1929 = vmatprep.subr.bf16.mxu1 %v2988_v26 }
  0xe5   :  { %2141 = vmatprep.subr.bf16.mxu0 %v2991_v27 }
  0xe7   :  { %1930 = vmatpush1.bf16.msra.mxu1 %v2986_v28 }
  0xe8   :  { %2142 = vmatpush1.bf16.msra.mxu0 %v2989_v29  ;;  %1931 = vmatprep.subr.bf16.mxu1 %v2994_v30 }
  0xe9   :  { %2143 = vmatprep.subr.bf16.mxu0 %v2997_v31 }
  0xeb   :  { %1932 = vmatpush1.bf16.msra.mxu1 %v2992_v32 }
  0xec   :  { %2144 = vmatpush1.bf16.msra.mxu0 %v2995_v33  ;;  %1933 = vmatprep.subr.bf16.mxu1 %v3000_v34 }
  0xed   :  { %2145 = vmatprep.subr.bf16.mxu0 %v3003_v35 }
  0xef   :  { %1934 = vmatpush1.bf16.msra.mxu1 %v2998_v36 }
  0xf0   :  { %2146 = vmatpush1.bf16.msra.mxu0 %v3001_v37  ;;  %1935 = vmatprep.subr.bf16.mxu1 %v3006_v38 }
  0xf1   :  { %2147 = vmatprep.subr.bf16.mxu0 %v3009_v39 }
  0xf3   :  { %1936 = vmatpush1.bf16.msra.mxu1 %v3004_v40 }
  0xf4   :  { %2148 = vmatpush1.bf16.msra.mxu0 %v3007_v41  ;;  %1937 = vmatprep.subr.bf16.mxu1 %v3012_v43 }
  0xf5   :  { %2149 = vmatprep.subr.bf16.mxu0 %v3015_v44 }
  0xf7   :  { %1938 = vmatpush1.bf16.msra.mxu1 %v3010_v48 }
  0xf8   :  { %2150 = vmatpush1.bf16.msra.mxu0 %v3013_v49  ;;  %1939 = vmatprep.subr.bf16.mxu1 %v3018_v42 }
  0xf9   :  { %2151 = vmatprep.subr.bf16.mxu0 %v3021_v45 }
  0xfb   :  { %1940 = vmatpush1.bf16.msra.mxu1 %v3016_v46 }
  0xfc   :  { %2152 = vmatpush1.bf16.msra.mxu0 %v3019_v47  ;;  %1941 = vmatprep.subr.bf16.mxu1 %v3024_v50 }
  0xfd   :  { %2153 = vmatprep.subr.bf16.mxu0 %v3027_v51 }
  0xff   :  { %1942 = vmatpush1.bf16.msra.mxu1 %v3022_v52  ;;  %v3029_v52 = vmov 1966171168  }
 0x100   :  { %2154 = vmatpush1.bf16.msra.mxu0 %v3025_v53  ;;  %v2207_v53 = vunpack.c.l.s4 %v3029_v52 }
 0x102   :  { %1944 = vmatmul.mubr.bf16.vlgmr.msra.gmra.mrb[0].mxu1 %v2304_v62 }
 0x103   :  { %2156 = vmatmul.mubr.bf16.vlgmr.msra.gmra.mrb[0].mxu0 %v2312_v63  ;;  %1953 = vmatprep.mubr.bf16.mxu1 %v2321_v0 }
 0x104   :  { %2165 = vmatprep.mubr.bf16.mxu0 %v2329_v1 }
 0x10a   :  { %1954 = vmatmul.mubr.bf16.gmra.mrb[4].mxu1 %v2320_v2  ;;  %v2208_v2 = vunpack.c.0.s8 %v2207_v53 }
 0x10b   :  { %2166 = vmatmul.mubr.bf16.gmra.mrb[4].mxu0 %v2328_v3  ;;  %v2210_v3 = vshrl.u32 %v18_v4, 7 }
 0x1d5   :  { %v1945_v59 = vpop.f32.mrb[0].mxu1 }
 0x1d6   :  { %v2157_v60 = vpop.f32.mrb[0].mxu0  ;;  %v1947_v6 = vpop.f32.mrb[1].mxu1 }
 0x1d7   :  { %v2586_v61 = vadd.f32 %v2157_v60, %v1945_v59  ;;  %v2159_v7 = vpop.f32.mrb[1].mxu0  ;;  %v1949_v9 = vpop.f32.mrb[2].mxu1 }
 0x1d8   :  { %v2587_v8 = vadd.f32 %v2159_v7, %v1947_v6  ;;  %v2161_v10 = vpop.f32.mrb[2].mxu0  ;;  %v1951_v12 = vpop.f32.mrb[3].mxu1 }
 0x1d9   :  { %2176 = vst [vmem:[%s4017_s2] sm:$0xff] %v2586_v61  ;;  %v2588_v11 = vadd.f32 %v2161_v10, %v1949_v9  ;;  %v2163_v13 = vpop.f32.mrb[3].mxu0  ;;  %v2228_v15 = vmul.f32 %v2586_v61, %v2586_v61  ;;  %v2211_v10 = vsub.s32 %v2208_v2, %v2210_v3 }
 0x1da   :  { %2177 = vst [vmem:[%s4017_s2 + $0x8] sm:$0xff] %v2587_v8  ;;  %v2589_v14 = vadd.f32 %v2163_v13, %v1951_v12  ;;  %v2229_v18 = vmul.f32 %v2587_v8, %v2587_v8 }
 0x1db   :  { %2178 = vst [vmem:[%s4017_s2 + $0x10] sm:$0xff] %v2588_v11  ;;  %v2185_v16 = vadd.f32 %v2588_v11, %v2586_v61  ;;  %v2230_v17 = vmul.f32 %v2588_v11, %v2588_v11 }
 0x1dc   :  { %2179 = vst [vmem:[%s4017_s2 + $0x18] sm:$0xff] %v2589_v14  ;;  %v2194_v19 = vadd.f32 %v2589_v14, %v2587_v8  ;;  %v2231_v20 = vmul.f32 %v2589_v14, %v2589_v14 }
 0x1dd   :  { %v2236_v21 = vadd.f32 %v2230_v17, %v2228_v15  ;;  %v1955_v23 = vpop.f32.mrb[4].mxu1  ;;  %v2184_v17 = vld [vmem:[#allocation2] sm:$0x3] }
 0x1de   :  { %v2245_v22 = vadd.f32 %v2231_v20, %v2229_v18  ;;  %v2167_v24 = vpop.f32.mrb[4].mxu0  ;;  %v1957_v26 = vpop.f32.mrb[5].mxu1  ;;  %v2227_v20 = vld [vmem:[#allocation3] sm:$0x3] }
 0x1df   :  { %v2590_v25 = vadd.f32 %v2167_v24, %v1955_v23  ;;  %v2169_v27 = vpop.f32.mrb[5].mxu0  ;;  %v1959_v29 = vpop.f32.mrb[6].mxu1 }
 0x1e0   :  { %v2591_v28 = vadd.f32 %v2169_v27, %v1957_v26  ;;  %v2171_v30 = vpop.f32.mrb[6].mxu0  ;;  %v1961_v34 = vpop.f32.mrb[7].mxu1 }
 0x1e1   :  { %2180 = vst [vmem:[%s4017_s2 + $0x20] sm:$0xff] %v2590_v25  ;;  %v2186_v31 = vadd.f32 %v2590_v25, %v2185_v16  ;;  %v2232_v32 = vmul.f32 %v2590_v25, %v2590_v25  ;;  %v2592_v33 = vadd.f32 %v2171_v30, %v1959_v29  ;;  %v2173_v35 = vpop.f32.mrb[7].mxu0 }
 0x1e2   :  { %2181 = vst [vmem:[%s4017_s2 + $0x28] sm:$0xff] %v2591_v28  ;;  %v2195_v36 = vadd.f32 %v2591_v28, %v2194_v19  ;;  %v2233_v37 = vmul.f32 %v2591_v28, %v2591_v28  ;;  %v2593_v38 = vadd.f32 %v2173_v35, %v1961_v34 }
 0x1e3   :  { %v2237_v39 = vadd.f32 %v2236_v21, %v2232_v32  ;;  %2182 = vst [vmem:[%s4017_s2 + $0x30] sm:$0xff] %v2592_v33  ;;  %v2187_v40 = vadd.f32 %v2592_v33, %v2186_v31  ;;  %v2234_v41 = vmul.f32 %v2592_v33, %v2592_v33 }
 0x1e4   :  { %v2246_v43 = vadd.f32 %v2245_v22, %v2233_v37  ;;  %2183 = vst [vmem:[%s4017_s2 + $0x38] sm:$0xff] %v2593_v38  ;;  %v2196_v44 = vadd.f32 %v2593_v38, %v2195_v36  ;;  %v2235_v48 = vmul.f32 %v2593_v38, %v2593_v38 }
 0x1e5   :  { %v2188_v49 = vrot.slane %v2187_v40, 4  ;;  %v2238_v42 = vadd.f32 %v2237_v39, %v2234_v41 }
 0x1e6   :  { %v2197_v45 = vrot.slane %v2196_v44, 4  ;;  %v2247_v46 = vadd.f32 %v2246_v43, %v2235_v48 }
 0x1e7   :  { %v2189_v47 = vadd.f32 %v2188_v49, %v2187_v40  ;;  %v2239_v50 = vrot.slane %v2238_v42, 4 }
 0x1e8   :  { %v2198_v51 = vadd.f32 %v2197_v45, %v2196_v44  ;;  %v2248_v54 = vrot.slane %v2247_v46, 4 }
 0x1e9   :  { %v2190_v55 = vrot.slane %v2189_v47, 2  ;;  %v2240_v57 = vadd.f32 %v2239_v50, %v2238_v42 }
 0x1ea   :  { %v2199_v58 = vrot.slane %v2198_v51, 2  ;;  %v2249_v62 = vadd.f32 %v2248_v54, %v2247_v46 }
 0x1eb   :  { %v2191_v63 = vadd.f32 %v2190_v55, %v2189_v47  ;;  %v2241_v0 = vrot.slane %v2240_v57, 2 }
 0x1ec   :  { %v2200_v1 = vadd.f32 %v2199_v58, %v2198_v51  ;;  %v2250_v56 = vrot.slane %v2249_v62, 2 }
 0x1ed   :  { %v2192_v59 = vrot.slane %v2191_v63, 1  ;;  %v2242_v60 = vadd.f32 %v2241_v0, %v2240_v57 }
 0x1ee   :  { %v2201_v61 = vrot.slane %v2200_v1, 1  ;;  %v2251_v6 = vadd.f32 %v2250_v56, %v2249_v62 }
 0x1ef   :  { %v2193_v7 = vadd.f32 %v2192_v59, %v2191_v63  ;;  %v2243_v8 = vrot.slane %v2242_v60, 1 }
 0x1f0   :  { %v2202_v9 = vadd.f32 %v2201_v61, %v2200_v1  ;;  %v2252_v11 = vrot.slane %v2251_v6, 1 }
 0x1f1   :  { %v2244_v12 = vadd.f32 %v2243_v8, %v2242_v60 }
 0x1f2   :  { %v2205_v13 = vcombine.low %v2193_v7, %v2202_v9  ;;  %v2253_v14 = vadd.f32 %v2252_v11, %v2251_v6 }
 0x1f4   :  { %v2212_v15 = vrot.slane %v2205_v13, %v2211_v10  ;;  %v2256_v16 = vcombine.low %v2244_v12, %v2253_v14 }
 0x1f6   :  { %v2219_v18 = vrot.slane %v2212_v15, %v2211_v10  ;;  %v2263_v19 = vrot.slane %v2256_v16, %v2211_v10 }
 0x1f8   :  { %v2221_v4 = vadd.f32 %v2219_v18, %v2184_v17  ;;  %v2270_v21 = vrot.slane %v2263_v19, %v2211_v10 }
 0x1fa   :  { %2226 = vst.msk [vmem:[#allocation2] sm:$0x3] %vm3968_vm0, %v2221_v4  ;;  %v2272_v22 = vadd.f32 %v2270_v21, %v2227_v20 }
 0x1fc   :  { %2273 = vst.msk [vmem:[#allocation3] sm:$0x3] %vm3968_vm0, %v2272_v22 }
 0x201   :  { %v2277_v23 = vld [vmem:[#allocation2] sm:$0x3] }
 0x202   :  { %v2278_v24 = vmul.f32 0.03125, %v2277_v23 }
 0x203   :  { %v2279_v25 = vld [vmem:[#allocation3] sm:$0x3] }
 0x204   :  { %v2280_v26 = vmul.f32 0.03125, %v2279_v25  ;;  %v2281_v27 = vmul.f32 %v2278_v24, %v2278_v24  ;;  %2283 = vst.msk [vmem:[%s4018_s3] sm:$0x3] %vm3968_vm0, %v2278_v24 }
 0x206   :  { %v2282_v28 = vsub.f32 %v2280_v26, %v2281_v27 }
 0x208   :  { %v2284_v29 = vmax.f32 %v2282_v28, 0.0 }
 0x20a   :  { %2285 = vst.msk [vmem:[%s4019_s4] sm:$0x3] %vm3968_vm0, %v2284_v29 }

// kernel: discriminator_forward.12
= control target key start
LH: loop header
LB: loop body
LE: loop exit
PB: predicated region body
PF: predicated region fallthrough
CT: control target
= control target key end

     0   :  { %v24_v0 = vlaneseq  ;;  %s180_s1 = inlined_call_operand.vmem [shape: f32[1,256], index: 1, kind: input, shape index: {}]   ;;  %s181_s2 = inlined_call_operand.vmem [shape: f32[1,256], index: 2, kind: input, shape index: {}]   ;;  %s182_s0 = inlined_call_operand.vmem [shape: f32[32,256], index: 0, kind: input, shape index: {}]   ;;  %s183_s3 = inlined_call_operand.vmem [shape: bf16[32,256], index: 3, kind: output, shape index: {}]  }
   0x1   :  { %v22_v2 = vld [vmem:[%s180_s1] sm:$0x3]  ;;  %v15_v5 = vld [vmem:[%s182_s0 + $0x8] sm:$0xff]  ;;  %v16_v8 = vld [vmem:[%s182_s0 + $0x10] sm:$0xff] }
   0x2   :  { %v25_v1 = vshrl.u32 %v24_v0, 7  ;;  %v42_v3 = vld [vmem:[%s181_s2] sm:$0x3]  ;;  %v17_v9 = vld [vmem:[%s182_s0 + $0x18] sm:$0xff]  ;;  %v19_v15 = vld [vmem:[%s182_s0 + $0x28] sm:$0xff] }
   0x3   :  { %v14_v4 = vld [vmem:[%s182_s0] sm:$0xff]  ;;  %v20_v16 = vld [vmem:[%s182_s0 + $0x30] sm:$0xff]  ;;  %v21_v17 = vld [vmem:[%s182_s0 + $0x38] sm:$0xff] }
   0x4   :  { %v26_v6 = vsub.s32 0, %v25_v1  ;;  %v30_v7 = vsub.s32 1, %v25_v1  ;;  %v18_v10 = vld [vmem:[%s182_s0 + $0x20] sm:$0xff] }
   0x6   :  { %v27_v11 = vrot.slane %v22_v2, %v26_v6  ;;  %v31_v12 = vrot.slane %v22_v2, %v30_v7  ;;  %v47_v13 = vrot.slane %v42_v3, %v26_v6  ;;  %v51_v14 = vrot.slane %v42_v3, %v30_v7 }
   0x8   :  { %v34_v18 = vmul.f32 %v27_v11, %v14_v4  ;;  %v35_v19 = vmul.f32 %v31_v12, %v15_v5  ;;  %v36_v20 = vmul.f32 %v27_v11, %v16_v8  ;;  %v37_v21 = vmul.f32 %v31_v12, %v17_v9 }
   0x9   :  { %v38_v22 = vmul.f32 %v27_v11, %v18_v10  ;;  %v39_v23 = vmul.f32 %v31_v12, %v19_v15  ;;  %v40_v24 = vmul.f32 %v27_v11, %v20_v16  ;;  %v41_v25 = vmul.f32 %v31_v12, %v21_v17 }
   0xa   :  { %v54_v26 = vadd.f32 %v47_v13, %v34_v18  ;;  %v55_v27 = vadd.f32 %v51_v14, %v35_v19  ;;  %v56_v28 = vadd.f32 %v47_v13, %v36_v20  ;;  %v57_v29 = vadd.f32 %v51_v14, %v37_v21 }
   0xb   :  { %v58_v30 = vadd.f32 %v47_v13, %v38_v22  ;;  %v59_v31 = vadd.f32 %v51_v14, %v39_v23  ;;  %v60_v32 = vadd.f32 %v47_v13, %v40_v24  ;;  %v61_v33 = vadd.f32 %v51_v14, %v41_v25 }
   0xc   :  { %v62_v34 = vmul.f32 0.2, %v54_v26  ;;  %v63_v35 = vmul.f32 0.2, %v55_v27  ;;  %v64_v36 = vmul.f32 0.2, %v56_v28 }
   0xd   :  { %v65_v37 = vmul.f32 0.2, %v57_v29  ;;  %v66_v38 = vmul.f32 0.2, %v58_v30  ;;  %v67_v39 = vmul.f32 0.2, %v59_v31 }
   0xe   :  { %v70_v40 = vmax.f32 %v54_v26, %v62_v34  ;;  %v71_v41 = vmax.f32 %v55_v27, %v63_v35  ;;  %v72_v42 = vmax.f32 %v56_v28, %v64_v36  ;;  %v68_v43 = vmul.f32 0.2, %v60_v32 }
   0xf   :  { %v73_v44 = vmax.f32 %v57_v29, %v65_v37  ;;  %v74_v45 = vmax.f32 %v58_v30, %v66_v38  ;;  %v75_v46 = vmax.f32 %v59_v31, %v67_v39  ;;  %v69_v47 = vmul.f32 0.2, %v61_v33 }
  0x10   :  { %v114_v48 = vpack.c.bf16 %v71_v41, %v70_v40  ;;  %v76_v49 = vmax.f32 %v60_v32, %v68_v43 }
  0x11   :  { %v115_v50 = vpack.c.bf16 %v73_v44, %v72_v42  ;;  %v116_v51 = vpack.c.bf16 %v75_v46, %v74_v45  ;;  %v77_v52 = vmax.f32 %v61_v33, %v69_v47 }
  0x12   :  { %102 = vst [vmem:[%s183_s3] sm:$0xff] %v114_v48 }
  0x13   :  { %103 = vst [vmem:[%s183_s3 + $0x8] sm:$0xff] %v115_v50  ;;  %104 = vst [vmem:[%s183_s3 + $0x10] sm:$0xff] %v116_v51  ;;  %v117_v53 = vpack.c.bf16 %v77_v52, %v76_v49 }
  0x15   :  { %105 = vst [vmem:[%s183_s3 + $0x18] sm:$0xff] %v117_v53 }

// kernel: discriminator_forward.14
= control target key start
LH: loop header
LB: loop body
LE: loop exit
PB: predicated region body
PF: predicated region fallthrough
CT: control target
= control target key end

     0   :  { %v24_v0 = vlaneseq  ;;  %s200_s1 = inlined_call_operand.vmem [shape: f32[1,512], index: 1, kind: input, shape index: {}]   ;;  %s201_s2 = inlined_call_operand.vmem [shape: f32[1,512], index: 2, kind: input, shape index: {}]   ;;  %s202_s0 = inlined_call_operand.vmem [shape: f32[16,512], index: 0, kind: input, shape index: {}]   ;;  %s203_s3 = inlined_call_operand.vmem [shape: bf16[16,512], index: 3, kind: output, shape index: {}]  }
   0x1   :  { %v22_v2 = vld [vmem:[%s200_s1] sm:$0xf]  ;;  %v15_v5 = vld [vmem:[%s202_s0 + $0x8] sm:$0xff]  ;;  %v16_v10 = vld [vmem:[%s202_s0 + $0x10] sm:$0xff] }
   0x2   :  { %v25_v1 = vshrl.u32 %v24_v0, 7  ;;  %v52_v3 = vld [vmem:[%s201_s2] sm:$0xf]  ;;  %v19_v12 = vld [vmem:[%s202_s0 + $0x28] sm:$0xff]  ;;  %v17_v17 = vld [vmem:[%s202_s0 + $0x18] sm:$0xff] }
   0x3   :  { %v14_v4 = vld [vmem:[%s202_s0] sm:$0xff]  ;;  %v20_v18 = vld [vmem:[%s202_s0 + $0x30] sm:$0xff]  ;;  %v21_v19 = vld [vmem:[%s202_s0 + $0x38] sm:$0xff] }
   0x4   :  { %v26_v6 = vsub.s32 0, %v25_v1  ;;  %v30_v7 = vsub.s32 1, %v25_v1  ;;  %v34_v8 = vsub.s32 2, %v25_v1  ;;  %v38_v9 = vsub.s32 3, %v25_v1  ;;  %v18_v11 = vld [vmem:[%s202_s0 + $0x20] sm:$0xff] }
   0x6   :  { %v27_v13 = vrot.slane %v22_v2, %v26_v6  ;;  %v31_v14 = vrot.slane %v22_v2, %v30_v7  ;;  %v57_v15 = vrot.slane %v52_v3, %v26_v6  ;;  %v61_v16 = vrot.slane %v52_v3, %v30_v7 }
   0x7   :  { %v35_v20 = vrot.slane %v22_v2, %v34_v8  ;;  %v39_v21 = vrot.slane %v22_v2, %v38_v9  ;;  %v65_v22 = vrot.slane %v52_v3, %v34_v8  ;;  %v69_v23 = vrot.slane %v52_v3, %v38_v9 }
   0x8   :  { %v44_v24 = vmul.f32 %v27_v13, %v14_v4  ;;  %v45_v25 = vmul.f32 %v31_v14, %v15_v5  ;;  %v48_v26 = vmul.f32 %v27_v13, %v18_v11  ;;  %v49_v27 = vmul.f32 %v31_v14, %v19_v12 }
   0x9   :  { %v46_v28 = vmul.f32 %v35_v20, %v16_v10  ;;  %v47_v29 = vmul.f32 %v39_v21, %v17_v17  ;;  %v50_v30 = vmul.f32 %v35_v20, %v20_v18  ;;  %v51_v31 = vmul.f32 %v39_v21, %v21_v19 }
   0xa   :  { %v74_v32 = vadd.f32 %v57_v15, %v44_v24  ;;  %v75_v33 = vadd.f32 %v61_v16, %v45_v25  ;;  %v78_v34 = vadd.f32 %v57_v15, %v48_v26  ;;  %v79_v35 = vadd.f32 %v61_v16, %v49_v27 }
   0xb   :  { %v76_v36 = vadd.f32 %v65_v22, %v46_v28  ;;  %v77_v37 = vadd.f32 %v69_v23, %v47_v29  ;;  %v80_v38 = vadd.f32 %v65_v22, %v50_v30  ;;  %v81_v39 = vadd.f32 %v69_v23, %v51_v31 }
   0xc   :  { %v82_v40 = vmul.f32 0.2, %v74_v32  ;;  %v83_v41 = vmul.f32 0.2, %v75_v33  ;;  %v86_v42 = vmul.f32 0.2, %v78_v34 }
   0xd   :  { %v84_v43 = vmul.f32 0.2, %v76_v36  ;;  %v85_v44 = vmul.f32 0.2, %v77_v37  ;;  %v87_v45 = vmul.f32 0.2, %v79_v35 }
   0xe   :  { %v90_v46 = vmax.f32 %v74_v32, %v82_v40  ;;  %v91_v47 = vmax.f32 %v75_v33, %v83_v41  ;;  %v94_v48 = vmax.f32 %v78_v34, %v86_v42  ;;  %v88_v49 = vmul.f32 0.2, %v80_v38 }
   0xf   :  { %v92_v50 = vmax.f32 %v76_v36, %v84_v43  ;;  %v93_v51 = vmax.f32 %v77_v37, %v85_v44  ;;  %v95_v52 = vmax.f32 %v79_v35, %v87_v45  ;;  %v89_v53 = vmul.f32 0.2, %v81_v39 }
  0x10   :  { %v134_v54 = vpack.c.bf16 %v91_v47, %v90_v46  ;;  %v96_v55 = vmax.f32 %v80_v38, %v88_v49 }
  0x11   :  { %v135_v56 = vpack.c.bf16 %v93_v51, %v92_v50  ;;  %v136_v57 = vpack.c.bf16 %v95_v52, %v94_v48  ;;  %v97_v58 = vmax.f32 %v81_v39, %v89_v53 }
  0x12   :  { %122 = vst [vmem:[%s203_s3] sm:$0xff] %v134_v54 }
  0x13   :  { %123 = vst [vmem:[%s203_s3 + $0x8] sm:$0xff] %v135_v56  ;;  %124 = vst [vmem:[%s203_s3 + $0x10] sm:$0xff] %v136_v57  ;;  %v137_v59 = vpack.c.bf16 %v97_v58, %v96_v55 }
  0x15   :  { %125 = vst [vmem:[%s203_s3 + $0x18] sm:$0xff] %v137_v59 }

// kernel: discriminator_forward.13
= control target key start
LH: loop header
LB: loop body
LE: loop exit
PB: predicated region body
PF: predicated region fallthrough
CT: control target
= control target key end

     0   :  { %s13983_s1 = inlined_call_operand.vmem [shape: bf16[4096,512], index: 1, kind: input, shape index: {}]   ;;  %s13984_s0 = inlined_call_operand.vmem [shape: bf16[16,4096], index: 0, kind: input, shape index: {}]   ;;  %s13985_s2 = inlined_call_operand.vmem [shape: f32[16,512], index: 2, kind: output, shape index: {0}]   ;;  %s13986_s3 = inlined_call_operand.vmem [shape: f32[1,512], index: 3, kind: output, shape index: {1}]   ;;  %s13987_s4 = inlined_call_operand.vmem [shape: f32[1,512], index: 4, kind: output, shape index: {2}]  }
   0x1   :  { %v9078_v0 = vld [vmem:[%s13983_s1 + $0x4] ss:$16 sps:$4 sm:$0xff]   ;;  %v9080_v1 = vld [vmem:[%s13983_s1 + $0xc] ss:$16 sps:$4 sm:$0xff]   ;;  %v9082_v2 = vld [vmem:[%s13983_s1] ss:$16 sps:$4 sm:$0xff]  }
   0x2   :  { %6360 = vmatprep.subr.bf16.mxu0 %v9078_v0  ;;  %v9083_v3 = vld [vmem:[%s13983_s1 + $0x8] ss:$16 sps:$4 sm:$0xff]   ;;  %7048 = vmatprep.subr.bf16.mxu1 %v9080_v1  ;;  %v9084_v4 = vld [vmem:[%s13983_s1 + $0x24] ss:$16 sps:$4 sm:$0xff]   ;;  %v9086_v5 = vld [vmem:[%s13983_s1 + $0x2c] ss:$16 sps:$4 sm:$0xff]  }
   0x3   :  { %6361 = vmatpush1.bf16.msra.mxu0 %v9082_v2  ;;  %7049 = vmatpush1.bf16.msra.mxu1 %v9083_v3  ;;  %v9088_v6 = vld [vmem:[%s13983_s1 + $0x20] ss:$16 sps:$4 sm:$0xff]   ;;  %v9089_v7 = vld [vmem:[%s13983_s1 + $0x28] ss:$16 sps:$4 sm:$0xff]   ;;  %v9090_v8 = vld [vmem:[%s13983_s1 + $0x44] ss:$16 sps:$4 sm:$0xff]  }
   0x4   :  { %6362 = vmatprep.subr.bf16.mxu0 %v9084_v4  ;;  %7050 = vmatprep.subr.bf16.mxu1 %v9086_v5  ;;  %v9092_v9 = vld [vmem:[%s13983_s1 + $0x4c] ss:$16 sps:$4 sm:$0xff]   ;;  %v9094_v10 = vld [vmem:[%s13983_s1 + $0x40] ss:$16 sps:$4 sm:$0xff]   ;;  %v9095_v11 = vld [vmem:[%s13983_s1 + $0x48] ss:$16 sps:$4 sm:$0xff]  }
   0x5   :  { %v9096_v12 = vld [vmem:[%s13983_s1 + $0x64] ss:$16 sps:$4 sm:$0xff]   ;;  %v9098_v13 = vld [vmem:[%s13983_s1 + $0x6c] ss:$16 sps:$4 sm:$0xff]   ;;  %v9100_v14 = vld [vmem:[%s13983_s1 + $0x60] ss:$16 sps:$4 sm:$0xff]  }
   0x6   :  { %v9101_v15 = vld [vmem:[%s13983_s1 + $0x68] ss:$16 sps:$4 sm:$0xff]   ;;  %v9102_v16 = vld [vmem:[%s13983_s1 + $0x84] ss:$16 sps:$4 sm:$0xff]   ;;  %v9104_v17 = vld [vmem:[%s13983_s1 + $0x8c] ss:$16 sps:$4 sm:$0xff]  }
   0x7   :  { %6363 = vmatpush1.bf16.msra.mxu0 %v9088_v6  ;;  %7051 = vmatpush1.bf16.msra.mxu1 %v9089_v7  ;;  %v9106_v18 = vld [vmem:[%s13983_s1 + $0x80] ss:$16 sps:$4 sm:$0xff]   ;;  %v9107_v19 = vld [vmem:[%s13983_s1 + $0x88] ss:$16 sps:$4 sm:$0xff]   ;;  %v9108_v20 = vld [vmem:[%s13983_s1 + $0xa4] ss:$16 sps:$4 sm:$0xff]  }
   0x8   :  { %6364 = vmatprep.subr.bf16.mxu0 %v9090_v8  ;;  %7052 = vmatprep.subr.bf16.mxu1 %v9092_v9  ;;  %v9110_v21 = vld [vmem:[%s13983_s1 + $0xac] ss:$16 sps:$4 sm:$0xff]   ;;  %v9112_v22 = vld [vmem:[%s13983_s1 + $0xa0] ss:$16 sps:$4 sm:$0xff]   ;;  %v9113_v23 = vld [vmem:[%s13983_s1 + $0xa8] ss:$16 sps:$4 sm:$0xff]  }
   0x9   :  { %v9114_v24 = vld [vmem:[%s13983_s1 + $0xc4] ss:$16 sps:$4 sm:$0xff]   ;;  %v9116_v25 = vld [vmem:[%s13983_s1 + $0xcc] ss:$16 sps:$4 sm:$0xff]   ;;  %v9118_v26 = vld [vmem:[%s13983_s1 + $0xc0] ss:$16 sps:$4 sm:$0xff]  }
   0xa   :  { %v9119_v27 = vld [vmem:[%s13983_s1 + $0xc8] ss:$16 sps:$4 sm:$0xff]   ;;  %v9120_v28 = vld [vmem:[%s13983_s1 + $0xe4] ss:$16 sps:$4 sm:$0xff]   ;;  %v9122_v29 = vld [vmem:[%s13983_s1 + $0xec] ss:$16 sps:$4 sm:$0xff]  }
   0xb   :  { %6365 = vmatpush1.bf16.msra.mxu0 %v9094_v10  ;;  %7053 = vmatpush1.bf16.msra.mxu1 %v9095_v11  ;;  %v9124_v30 = vld [vmem:[%s13983_s1 + $0xe0] ss:$16 sps:$4 sm:$0xff]   ;;  %v9125_v31 = vld [vmem:[%s13983_s1 + $0xe8] ss:$16 sps:$4 sm:$0xff]   ;;  %v9126_v32 = vld [vmem:[%s13983_s1 + $0x104] ss:$16 sps:$4 sm:$0xff]  }
   0xc   :  { %6366 = vmatprep.subr.bf16.mxu0 %v9096_v12  ;;  %7054 = vmatprep.subr.bf16.mxu1 %v9098_v13  ;;  %v9128_v33 = vld [vmem:[%s13983_s1 + $0x10c] ss:$16 sps:$4 sm:$0xff]   ;;  %v9130_v34 = vld [vmem:[%s13983_s1 + $0x100] ss:$16 sps:$4 sm:$0xff]   ;;  %v9131_v35 = vld [vmem:[%s13983_s1 + $0x108] ss:$16 sps:$4 sm:$0xff]  }
   0xd   :  { %v9132_v36 = vld [vmem:[%s13983_s1 + $0x124] ss:$16 sps:$4 sm:$0xff]   ;;  %v9134_v37 = vld [vmem:[%s13983_s1 + $0x12c] ss:$16 sps:$4 sm:$0xff]   ;;  %v9136_v38 = vld [vmem:[%s13983_s1 + $0x120] ss:$16 sps:$4 sm:$0xff]  }
   0xe   :  { %v9137_v39 = vld [vmem:[%s13983_s1 + $0x128] ss:$16 sps:$4 sm:$0xff]   ;;  %v9138_v40 = vld [vmem:[%s13983_s1 + $0x144] ss:$16 sps:$4 sm:$0xff]   ;;  %v9140_v41 = vld [vmem:[%s13983_s1 + $0x14c] ss:$16 sps:$4 sm:$0xff]  }
   0xf   :  { %6367 = vmatpush1.bf16.msra.mxu0 %v9100_v14  ;;  %7055 = vmatpush1.bf16.msra.mxu1 %v9101_v15  ;;  %v9142_v42 = vld [vmem:[%s13983_s1 + $0x140] ss:$16 sps:$4 sm:$0xff]   ;;  %v9143_v43 = vld [vmem:[%s13983_s1 + $0x148] ss:$16 sps:$4 sm:$0xff]   ;;  %v9144_v44 = vld [vmem:[%s13983_s1 + $0x164] ss:$16 sps:$4 sm:$0xff]  }
  0x10   :  { %6368 = vmatprep.subr.bf16.mxu0 %v9102_v16  ;;  %7056 = vmatprep.subr.bf16.mxu1 %v9104_v17  ;;  %v9146_v45 = vld [vmem:[%s13983_s1 + $0x16c] ss:$16 sps:$4 sm:$0xff]   ;;  %v24_v46 = vld [vmem:[%s13984_s0] sm:$0xff]  ;;  %v9149_v49 = vld [vmem:[%s13983_s1 + $0x168] ss:$16 sps:$4 sm:$0xff]  }
  0x11   :  { %v40_v47 = vld [vmem:[%s13984_s0 + $0x80] sm:$0xff]  ;;  %v9152_v52 = vld [vmem:[%s13983_s1 + $0x18c] ss:$16 sps:$4 sm:$0xff]   ;;  %v9155_v54 = vld [vmem:[%s13983_s1 + $0x188] ss:$16 sps:$4 sm:$0xff]  }
  0x12   :  { %v9148_v48 = vld [vmem:[%s13983_s1 + $0x160] ss:$16 sps:$4 sm:$0xff]   ;;  %v7901_v50 = vcombine.high %v24_v46, %v40_v47  ;;  %v9150_v51 = vld [vmem:[%s13983_s1 + $0x184] ss:$16 sps:$4 sm:$0xff]   ;;  %v9158_v56 = vld [vmem:[%s13983_s1 + $0x1ac] ss:$16 sps:$4 sm:$0xff]   ;;  %v7900_v5 = vcombine.low %v24_v46, %v40_v47 }
  0x13   :  { %6369 = vmatpush1.bf16.msra.mxu0 %v9106_v18  ;;  %7057 = vmatpush1.bf16.msra.mxu1 %v9107_v19  ;;  %v9154_v53 = vld [vmem:[%s13983_s1 + $0x180] ss:$16 sps:$4 sm:$0xff]   ;;  %v9156_v55 = vld [vmem:[%s13983_s1 + $0x1a4] ss:$16 sps:$4 sm:$0xff]   ;;  %v9161_v58 = vld [vmem:[%s13983_s1 + $0x1a8] ss:$16 sps:$4 sm:$0xff]  }
  0x14   :  { %6370 = vmatprep.subr.bf16.mxu0 %v9108_v20  ;;  %7058 = vmatprep.subr.bf16.mxu1 %v9110_v21  ;;  %v9160_v57 = vld [vmem:[%s13983_s1 + $0x1a0] ss:$16 sps:$4 sm:$0xff]   ;;  %v9162_v59 = vld [vmem:[%s13983_s1 + $0x1c4] ss:$16 sps:$4 sm:$0xff]   ;;  %v9164_v60 = vld [vmem:[%s13983_s1 + $0x1cc] ss:$16 sps:$4 sm:$0xff]  }
  0x15   :  { %6392 = vmatprep.mubr.bf16.mxu0 %v7901_v50  ;;  %7080 = vmatprep.mubr.bf16.mxu1 %v7901_v50  ;;  %v9166_v61 = vld [vmem:[%s13983_s1 + $0x1c0] ss:$16 sps:$4 sm:$0xff]   ;;  %v9167_v62 = vld [vmem:[%s13983_s1 + $0x1c8] ss:$16 sps:$4 sm:$0xff]   ;;  %v9168_v63 = vld [vmem:[%s13983_s1 + $0x1e4] ss:$16 sps:$4 sm:$0xff]  }
  0x16   :  { %v9170_v0 = vld [vmem:[%s13983_s1 + $0x1ec] ss:$16 sps:$4 sm:$0xff]   ;;  %v9172_v1 = vld [vmem:[%s13983_s1 + $0x1e0] ss:$16 sps:$4 sm:$0xff]   ;;  %v9173_v2 = vld [vmem:[%s13983_s1 + $0x1e8] ss:$16 sps:$4 sm:$0xff]  }
  0x17   :  { %6371 = vmatpush1.bf16.msra.mxu0 %v9112_v22  ;;  %7059 = vmatpush1.bf16.msra.mxu1 %v9113_v23  ;;  %v9176_v3 = vld [vmem:[%s13983_s1 + $0x204] ss:$16 sps:$4 sm:$0xff]   ;;  %v9179_v4 = vld [vmem:[%s13983_s1 + $0x20c] ss:$16 sps:$4 sm:$0xff]   ;;  %v9174_v6 = vld [vmem:[%s13983_s1 + $0x200] ss:$16 sps:$4 sm:$0xff]  }
  0x18   :  { %6372 = vmatprep.subr.bf16.mxu0 %v9114_v24  ;;  %7060 = vmatprep.subr.bf16.mxu1 %v9116_v25  ;;  %v9177_v7 = vld [vmem:[%s13983_s1 + $0x208] ss:$16 sps:$4 sm:$0xff]   ;;  %v9182_v8 = vld [vmem:[%s13983_s1 + $0x224] ss:$16 sps:$4 sm:$0xff]   ;;  %v9185_v9 = vld [vmem:[%s13983_s1 + $0x22c] ss:$16 sps:$4 sm:$0xff]  }
  0x19   :  { %v9180_v10 = vld [vmem:[%s13983_s1 + $0x220] ss:$16 sps:$4 sm:$0xff]   ;;  %v9183_v11 = vld [vmem:[%s13983_s1 + $0x228] ss:$16 sps:$4 sm:$0xff]   ;;  %v9188_v12 = vld [vmem:[%s13983_s1 + $0x244] ss:$16 sps:$4 sm:$0xff]  }
  0x1a   :  { %v9191_v13 = vld [vmem:[%s13983_s1 + $0x24c] ss:$16 sps:$4 sm:$0xff]   ;;  %v9186_v14 = vld [vmem:[%s13983_s1 + $0x240] ss:$16 sps:$4 sm:$0xff]   ;;  %v9189_v15 = vld [vmem:[%s13983_s1 + $0x248] ss:$16 sps:$4 sm:$0xff]  }
  0x1b   :  { %6373 = vmatpush1.bf16.msra.mxu0 %v9118_v26  ;;  %7061 = vmatpush1.bf16.msra.mxu1 %v9119_v27  ;;  %v9194_v16 = vld [vmem:[%s13983_s1 + $0x264] ss:$16 sps:$4 sm:$0xff]   ;;  %v9197_v17 = vld [vmem:[%s13983_s1 + $0x26c] ss:$16 sps:$4 sm:$0xff]   ;;  %v9192_v18 = vld [vmem:[%s13983_s1 + $0x260] ss:$16 sps:$4 sm:$0xff]  }
  0x1c   :  { %6374 = vmatprep.subr.bf16.mxu0 %v9120_v28  ;;  %7062 = vmatprep.subr.bf16.mxu1 %v9122_v29  ;;  %v9195_v19 = vld [vmem:[%s13983_s1 + $0x268] ss:$16 sps:$4 sm:$0xff]   ;;  %v9200_v20 = vld [vmem:[%s13983_s1 + $0x284] ss:$16 sps:$4 sm:$0xff]   ;;  %v9203_v21 = vld [vmem:[%s13983_s1 + $0x28c] ss:$16 sps:$4 sm:$0xff]  }
  0x1d   :  { %v9198_v22 = vld [vmem:[%s13983_s1 + $0x280] ss:$16 sps:$4 sm:$0xff]   ;;  %v9201_v23 = vld [vmem:[%s13983_s1 + $0x288] ss:$16 sps:$4 sm:$0xff]   ;;  %v9206_v24 = vld [vmem:[%s13983_s1 + $0x2a4] ss:$16 sps:$4 sm:$0xff]  }
  0x1e   :  { %v9209_v25 = vld [vmem:[%s13983_s1 + $0x2ac] ss:$16 sps:$4 sm:$0xff]   ;;  %v9204_v26 = vld [vmem:[%s13983_s1 + $0x2a0] ss:$16 sps:$4 sm:$0xff]   ;;  %v9207_v27 = vld [vmem:[%s13983_s1 + $0x2a8] ss:$16 sps:$4 sm:$0xff]  }
  0x1f   :  { %6375 = vmatpush1.bf16.msra.mxu0 %v9124_v30  ;;  %7063 = vmatpush1.bf16.msra.mxu1 %v9125_v31  ;;  %v9212_v28 = vld [vmem:[%s13983_s1 + $0x2c4] ss:$16 sps:$4 sm:$0xff]   ;;  %v9215_v29 = vld [vmem:[%s13983_s1 + $0x2cc] ss:$16 sps:$4 sm:$0xff]   ;;  %v9231_v46 = vld [vmem:[%s13983_s1 + $0x328] ss:$16 sps:$4 sm:$0xff]  }
  0x20   :  { %6376 = vmatprep.subr.bf16.mxu0 %v9126_v32  ;;  %7064 = vmatprep.subr.bf16.mxu1 %v9128_v33  ;;  %v10920_v30 = vld [vmem:[%s13984_s0 + $0x8] sm:$0xff]  ;;  %v9210_v32 = vld [vmem:[%s13983_s1 + $0x2c0] ss:$16 sps:$4 sm:$0xff]   ;;  %v9236_v47 = vld [vmem:[%s13983_s1 + $0x344] ss:$16 sps:$4 sm:$0xff]  }
  0x21   :  { %v10925_v31 = vld [vmem:[%s13984_s0 + $0x88] sm:$0xff] }
  0x22   :  { %v9213_v33 = vld [vmem:[%s13983_s1 + $0x2c8] ss:$16 sps:$4 sm:$0xff]  }
  0x23   :  { %6377 = vmatpush1.bf16.msra.mxu0 %v9130_v34  ;;  %7065 = vmatpush1.bf16.msra.mxu1 %v9131_v35  ;;  %v7903_v34 = vcombine.high %v10920_v30, %v10925_v31  ;;  %v9218_v35 = vld [vmem:[%s13983_s1 + $0x2e4] ss:$16 sps:$4 sm:$0xff]   ;;  %v9237_v50 = vld [vmem:[%s13983_s1 + $0x348] ss:$16 sps:$4 sm:$0xff]  }
  0x24   :  { %6378 = vmatprep.subr.bf16.mxu0 %v9132_v36  ;;  %7066 = vmatprep.subr.bf16.mxu1 %v9134_v37  ;;  %v9221_v36 = vld [vmem:[%s13983_s1 + $0x2ec] ss:$16 sps:$4 sm:$0xff]   ;;  %v9216_v37 = vld [vmem:[%s13983_s1 + $0x2e0] ss:$16 sps:$4 sm:$0xff]  }
  0x27   :  { %6379 = vmatpush1.bf16.msra.mxu0 %v9136_v38  ;;  %7067 = vmatpush1.bf16.msra.mxu1 %v9137_v39  ;;  %v9219_v38 = vld [vmem:[%s13983_s1 + $0x2e8] ss:$16 sps:$4 sm:$0xff]   ;;  %v9224_v39 = vld [vmem:[%s13983_s1 + $0x304] ss:$16 sps:$4 sm:$0xff]  }
  0x28   :  { %6380 = vmatprep.subr.bf16.mxu0 %v9138_v40  ;;  %7068 = vmatprep.subr.bf16.mxu1 %v9140_v41  ;;  %v9227_v40 = vld [vmem:[%s13983_s1 + $0x30c] ss:$16 sps:$4 sm:$0xff]   ;;  %v9222_v41 = vld [vmem:[%s13983_s1 + $0x300] ss:$16 sps:$4 sm:$0xff]  }
  0x2b   :  { %6381 = vmatpush1.bf16.msra.mxu0 %v9142_v42  ;;  %7069 = vmatpush1.bf16.msra.mxu1 %v9143_v43  ;;  %v9225_v42 = vld [vmem:[%s13983_s1 + $0x308] ss:$16 sps:$4 sm:$0xff]   ;;  %v9230_v43 = vld [vmem:[%s13983_s1 + $0x324] ss:$16 sps:$4 sm:$0xff]  }
  0x2c   :  { %6382 = vmatprep.subr.bf16.mxu0 %v9144_v44  ;;  %7070 = vmatprep.subr.bf16.mxu1 %v9146_v45  ;;  %v9233_v44 = vld [vmem:[%s13983_s1 + $0x32c] ss:$16 sps:$4 sm:$0xff]   ;;  %v9228_v45 = vld [vmem:[%s13983_s1 + $0x320] ss:$16 sps:$4 sm:$0xff]  }
  0x2f   :  { %6383 = vmatpush1.bf16.msra.mxu0 %v9148_v48  ;;  %7071 = vmatpush1.bf16.msra.mxu1 %v9149_v49  ;;  %v9239_v48 = vld [vmem:[%s13983_s1 + $0x34c] ss:$16 sps:$4 sm:$0xff]   ;;  %v9234_v49 = vld [vmem:[%s13983_s1 + $0x340] ss:$16 sps:$4 sm:$0xff]  }
  0x30   :  { %6384 = vmatprep.subr.bf16.mxu0 %v9150_v51  ;;  %7072 = vmatprep.subr.bf16.mxu1 %v9152_v52  ;;  %v9242_v51 = vld [vmem:[%s13983_s1 + $0x364] ss:$16 sps:$4 sm:$0xff]   ;;  %v9245_v52 = vld [vmem:[%s13983_s1 + $0x36c] ss:$16 sps:$4 sm:$0xff]  }
  0x33   :  { %6385 = vmatpush1.bf16.msra.mxu0 %v9154_v53  ;;  %7073 = vmatpush1.bf16.msra.mxu1 %v9155_v54  ;;  %v9240_v53 = vld [vmem:[%s13983_s1 + $0x360] ss:$16 sps:$4 sm:$0xff]   ;;  %v9243_v54 = vld [vmem:[%s13983_s1 + $0x368] ss:$16 sps:$4 sm:$0xff]  }
  0x34   :  { %6386 = vmatprep.subr.bf16.mxu0 %v9156_v55  ;;  %7074 = vmatprep.subr.bf16.mxu1 %v9158_v56  ;;  %v9248_v55 = vld [vmem:[%s13983_s1 + $0x384] ss:$16 sps:$4 sm:$0xff]   ;;  %v9251_v56 = vld [vmem:[%s13983_s1 + $0x38c] ss:$16 sps:$4 sm:$0xff]  }
  0x37   :  { %6387 = vmatpush1.bf16.msra.mxu0 %v9160_v57  ;;  %7075 = vmatpush1.bf16.msra.mxu1 %v9161_v58  ;;  %v9246_v57 = vld [vmem:[%s13983_s1 + $0x380] ss:$16 sps:$4 sm:$0xff]   ;;  %v9249_v58 = vld [vmem:[%s13983_s1 + $0x388] ss:$16 sps:$4 sm:$0xff]  }
  0x38   :  { %6388 = vmatprep.subr.bf16.mxu0 %v9162_v59  ;;  %7076 = vmatprep.subr.bf16.mxu1 %v9164_v60  ;;  %v9254_v59 = vld [vmem:[%s13983_s1 + $0x3a4] ss:$16 sps:$4 sm:$0xff]   ;;  %v9257_v60 = vld [vmem:[%s13983_s1 + $0x3ac] ss:$16 sps:$4 sm:$0xff]  }
  0x3b   :  { %6389 = vmatpush1.bf16.msra.mxu0 %v9166_v61  ;;  %7077 = vmatpush1.bf16.msra.mxu1 %v9167_v62  ;;  %v9252_v61 = vld [vmem:[%s13983_s1 + $0x3a0] ss:$16 sps:$4 sm:$0xff]   ;;  %v9255_v62 = vld [vmem:[%s13983_s1 + $0x3a8] ss:$16 sps:$4 sm:$0xff]  }
  0x3c   :  { %6390 = vmatprep.subr.bf16.mxu0 %v9168_v63  ;;  %7078 = vmatprep.subr.bf16.mxu1 %v9170_v0  ;;  %v9260_v63 = vld [vmem:[%s13983_s1 + $0x3c4] ss:$16 sps:$4 sm:$0xff]   ;;  %v9263_v0 = vld [vmem:[%s13983_s1 + $0x3cc] ss:$16 sps:$4 sm:$0xff]  }
  0x3f   :  { %6391 = vmatpush1.bf16.msra.mxu0 %v9172_v1  ;;  %7079 = vmatpush1.bf16.msra.mxu1 %v9173_v2  ;;  %v9258_v1 = vld [vmem:[%s13983_s1 + $0x3c0] ss:$16 sps:$4 sm:$0xff]   ;;  %v9261_v2 = vld [vmem:[%s13983_s1 + $0x3c8] ss:$16 sps:$4 sm:$0xff]  }
  0x40   :  { %6403 = vmatprep.subr.bf16.mxu0 %v9176_v3  ;;  %7091 = vmatprep.subr.bf16.mxu1 %v9179_v4  ;;  %v9266_v3 = vld [vmem:[%s13983_s1 + $0x3e4] ss:$16 sps:$4 sm:$0xff]   ;;  %v9269_v4 = vld [vmem:[%s13983_s1 + $0x3ec] ss:$16 sps:$4 sm:$0xff]  }
  0x42   :  { %6393 = vmatmul.mubr.bf16.vlgmr.msra.gmra.mrb[0].mxu0 %v7900_v5  ;;  %7081 = vmatmul.mubr.bf16.vlgmr.msra.gmra.mrb[0].mxu1 %v7900_v5  ;;  %v9264_v5 = vld [vmem:[%s13983_s1 + $0x3e0] ss:$16 sps:$4 sm:$0xff]  }
  0x43   :  { %6404 = vmatpush1.bf16.msra.mxu0 %v9174_v6  ;;  %7092 = vmatpush1.bf16.msra.mxu1 %v9177_v7  ;;  %v9267_v6 = vld [vmem:[%s13983_s1 + $0x3e8] ss:$16 sps:$4 sm:$0xff]   ;;  %v9272_v7 = vld [vmem:[%s13983_s1 + $0x404] ss:$16 sps:$4 sm:$0xff]  }
  0x44   :  { %6405 = vmatprep.subr.bf16.mxu0 %v9182_v8  ;;  %7093 = vmatprep.subr.bf16.mxu1 %v9185_v9  ;;  %v9275_v8 = vld [vmem:[%s13983_s1 + $0x40c] ss:$16 sps:$4 sm:$0xff]   ;;  %v7902_v9 = vcombine.low %v10920_v30, %v10925_v31  ;;  %v9297_v30 = vld [vmem:[%s13983_s1 + $0x488] ss:$16 sps:$4 sm:$0xff]   ;;  %v9302_v31 = vld [vmem:[%s13983_s1 + $0x4a4] ss:$16 sps:$4 sm:$0xff]  }
  0x45   :  { %6435 = vmatprep.mubr.bf16.mxu0 %v7903_v34  ;;  %7123 = vmatprep.mubr.bf16.mxu1 %v7903_v34  ;;  %v9303_v34 = vld [vmem:[%s13983_s1 + $0x4a8] ss:$16 sps:$4 sm:$0xff]  }
  0x47   :  { %6406 = vmatpush1.bf16.msra.mxu0 %v9180_v10  ;;  %7094 = vmatpush1.bf16.msra.mxu1 %v9183_v11  ;;  %v9270_v10 = vld [vmem:[%s13983_s1 + $0x400] ss:$16 sps:$4 sm:$0xff]   ;;  %v9273_v11 = vld [vmem:[%s13983_s1 + $0x408] ss:$16 sps:$4 sm:$0xff]  }
  0x48   :  { %6407 = vmatprep.subr.bf16.mxu0 %v9188_v12  ;;  %7095 = vmatprep.subr.bf16.mxu1 %v9191_v13  ;;  %v9278_v12 = vld [vmem:[%s13983_s1 + $0x424] ss:$16 sps:$4 sm:$0xff]   ;;  %v9281_v13 = vld [vmem:[%s13983_s1 + $0x42c] ss:$16 sps:$4 sm:$0xff]  }
  0x4b   :  { %6408 = vmatpush1.bf16.msra.mxu0 %v9186_v14  ;;  %7096 = vmatpush1.bf16.msra.mxu1 %v9189_v15  ;;  %v11066_v14 = vld [vmem:[%s13984_s0 + $0x10] sm:$0xff] }
  0x4c   :  { %6409 = vmatprep.subr.bf16.mxu0 %v9194_v16  ;;  %7097 = vmatprep.subr.bf16.mxu1 %v9197_v17  ;;  %v11071_v15 = vld [vmem:[%s13984_s0 + $0x90] sm:$0xff] }
  0x4d   :  { %v7905_v16 = vcombine.high %v11066_v14, %v11071_v15  ;;  %v9276_v17 = vld [vmem:[%s13983_s1 + $0x420] ss:$16 sps:$4 sm:$0xff]  }
  0x4f   :  { %6410 = vmatpush1.bf16.msra.mxu0 %v9192_v18  ;;  %7098 = vmatpush1.bf16.msra.mxu1 %v9195_v19  ;;  %v9279_v18 = vld [vmem:[%s13983_s1 + $0x428] ss:$16 sps:$4 sm:$0xff]   ;;  %v9284_v19 = vld [vmem:[%s13983_s1 + $0x444] ss:$16 sps:$4 sm:$0xff]  }
  0x50   :  { %6411 = vmatprep.subr.bf16.mxu0 %v9200_v20  ;;  %7099 = vmatprep.subr.bf16.mxu1 %v9203_v21  ;;  %v9287_v20 = vld [vmem:[%s13983_s1 + $0x44c] ss:$16 sps:$4 sm:$0xff]   ;;  %v9282_v21 = vld [vmem:[%s13983_s1 + $0x440] ss:$16 sps:$4 sm:$0xff]  }
  0x53   :  { %6412 = vmatpush1.bf16.msra.mxu0 %v9198_v22  ;;  %7100 = vmatpush1.bf16.msra.mxu1 %v9201_v23  ;;  %v9285_v22 = vld [vmem:[%s13983_s1 + $0x448] ss:$16 sps:$4 sm:$0xff]   ;;  %v9290_v23 = vld [vmem:[%s13983_s1 + $0x464] ss:$16 sps:$4 sm:$0xff]  }
  0x54   :  { %6413 = vmatprep.subr.bf16.mxu0 %v9206_v24  ;;  %7101 = vmatprep.subr.bf16.mxu1 %v9209_v25  ;;  %v9293_v24 = vld [vmem:[%s13983_s1 + $0x46c] ss:$16 sps:$4 sm:$0xff]   ;;  %v9288_v25 = vld [vmem:[%s13983_s1 + $0x460] ss:$16 sps:$4 sm:$0xff]  }
  0x57   :  { %6414 = vmatpush1.bf16.msra.mxu0 %v9204_v26  ;;  %7102 = vmatpush1.bf16.msra.mxu1 %v9207_v27  ;;  %v9291_v26 = vld [vmem:[%s13983_s1 + $0x468] ss:$16 sps:$4 sm:$0xff]   ;;  %v9296_v27 = vld [vmem:[%s13983_s1 + $0x484] ss:$16 sps:$4 sm:$0xff]  }
  0x58   :  { %6415 = vmatprep.subr.bf16.mxu0 %v9212_v28  ;;  %7103 = vmatprep.subr.bf16.mxu1 %v9215_v29  ;;  %v9299_v28 = vld [vmem:[%s13983_s1 + $0x48c] ss:$16 sps:$4 sm:$0xff]   ;;  %v9294_v29 = vld [vmem:[%s13983_s1 + $0x480] ss:$16 sps:$4 sm:$0xff]  }
  0x5b   :  { %6416 = vmatpush1.bf16.msra.mxu0 %v9210_v32  ;;  %7104 = vmatpush1.bf16.msra.mxu1 %v9213_v33  ;;  %v9305_v32 = vld [vmem:[%s13983_s1 + $0x4ac] ss:$16 sps:$4 sm:$0xff]   ;;  %v9300_v33 = vld [vmem:[%s13983_s1 + $0x4a0] ss:$16 sps:$4 sm:$0xff]  }
  0x5c   :  { %6417 = vmatprep.subr.bf16.mxu0 %v9218_v35  ;;  %7105 = vmatprep.subr.bf16.mxu1 %v9221_v36  ;;  %v9308_v35 = vld [vmem:[%s13983_s1 + $0x4c4] ss:$16 sps:$4 sm:$0xff]   ;;  %v9311_v36 = vld [vmem:[%s13983_s1 + $0x4cc] ss:$16 sps:$4 sm:$0xff]  }
  0x5f   :  { %6418 = vmatpush1.bf16.msra.mxu0 %v9216_v37  ;;  %7106 = vmatpush1.bf16.msra.mxu1 %v9219_v38  ;;  %v9306_v37 = vld [vmem:[%s13983_s1 + $0x4c0] ss:$16 sps:$4 sm:$0xff]   ;;  %v9309_v38 = vld [vmem:[%s13983_s1 + $0x4c8] ss:$16 sps:$4 sm:$0xff]  }
  0x60   :  { %6419 = vmatprep.subr.bf16.mxu0 %v9224_v39  ;;  %7107 = vmatprep.subr.bf16.mxu1 %v9227_v40  ;;  %v9314_v39 = vld [vmem:[%s13983_s1 + $0x4e4] ss:$16 sps:$4 sm:$0xff]   ;;  %v9317_v40 = vld [vmem:[%s13983_s1 + $0x4ec] ss:$16 sps:$4 sm:$0xff]  }
  0x63   :  { %6420 = vmatpush1.bf16.msra.mxu0 %v9222_v41  ;;  %7108 = vmatpush1.bf16.msra.mxu1 %v9225_v42  ;;  %v9312_v41 = vld [vmem:[%s13983_s1 + $0x4e0] ss:$16 sps:$4 sm:$0xff]   ;;  %v9315_v42 = vld [vmem:[%s13983_s1 + $0x4e8] ss:$16 sps:$4 sm:$0xff]  }
  0x64   :  { %6421 = vmatprep.subr.bf16.mxu0 %v9230_v43  ;;  %7109 = vmatprep.subr.bf16.mxu1 %v9233_v44  ;;  %v9320_v43 = vld [vmem:[%s13983_s1 + $0x504] ss:$16 sps:$4 sm:$0xff]   ;;  %v9323_v44 = vld [vmem:[%s13983_s1 + $0x50c] ss:$16 sps:$4 sm:$0xff]  }
  0x67   :  { %6422 = vmatpush1.bf16.msra.mxu0 %v9228_v45  ;;  %7110 = vmatpush1.bf16.msra.mxu1 %v9231_v46  ;;  %v9318_v45 = vld [vmem:[%s13983_s1 + $0x500] ss:$16 sps:$4 sm:$0xff]   ;;  %v9321_v46 = vld [vmem:[%s13983_s1 + $0x508] ss:$16 sps:$4 sm:$0xff]  }
  0x68   :  { %6423 = vmatprep.subr.bf16.mxu0 %v9236_v47  ;;  %7111 = vmatprep.subr.bf16.mxu1 %v9239_v48  ;;  %v9326_v47 = vld [vmem:[%s13983_s1 + $0x524] ss:$16 sps:$4 sm:$0xff]   ;;  %v9329_v48 = vld [vmem:[%s13983_s1 + $0x52c] ss:$16 sps:$4 sm:$0xff]  }
  0x6b   :  { %6424 = vmatpush1.bf16.msra.mxu0 %v9234_v49  ;;  %7112 = vmatpush1.bf16.msra.mxu1 %v9237_v50  ;;  %v9324_v49 = vld [vmem:[%s13983_s1 + $0x520] ss:$16 sps:$4 sm:$0xff]   ;;  %v9327_v50 = vld [vmem:[%s13983_s1 + $0x528] ss:$16 sps:$4 sm:$0xff]  }
  0x6c   :  { %6425 = vmatprep.subr.bf16.mxu0 %v9242_v51  ;;  %7113 = vmatprep.subr.bf16.mxu1 %v9245_v52  ;;  %v9332_v51 = vld [vmem:[%s13983_s1 + $0x544] ss:$16 sps:$4 sm:$0xff]   ;;  %v9335_v52 = vld [vmem:[%s13983_s1 + $0x54c] ss:$16 sps:$4 sm:$0xff]  }
  0x6f   :  { %6426 = vmatpush1.bf16.msra.mxu0 %v9240_v53  ;;  %7114 = vmatpush1.bf16.msra.mxu1 %v9243_v54  ;;  %v9330_v53 = vld [vmem:[%s13983_s1 + $0x540] ss:$16 sps:$4 sm:$0xff]   ;;  %v9333_v54 = vld [vmem:[%s13983_s1 + $0x548] ss:$16 sps:$4 sm:$0xff]  }
  0x70   :  { %6427 = vmatprep.subr.bf16.mxu0 %v9248_v55  ;;  %7115 = vmatprep.subr.bf16.mxu1 %v9251_v56  ;;  %v9338_v55 = vld [vmem:[%s13983_s1 + $0x564] ss:$16 sps:$4 sm:$0xff]   ;;  %v9341_v56 = vld [vmem:[%s13983_s1 + $0x56c] ss:$16 sps:$4 sm:$0xff]  }
  0x73   :  { %6428 = vmatpush1.bf16.msra.mxu0 %v9246_v57  ;;  %7116 = vmatpush1.bf16.msra.mxu1 %v9249_v58  ;;  %v9336_v57 = vld [vmem:[%s13983_s1 + $0x560] ss:$16 sps:$4 sm:$0xff]   ;;  %v9339_v58 = vld [vmem:[%s13983_s1 + $0x568] ss:$16 sps:$4 sm:$0xff]  }
  0x74   :  { %6429 = vmatprep.subr.bf16.mxu0 %v9254_v59  ;;  %7117 = vmatprep.subr.bf16.mxu1 %v9257_v60  ;;  %v9344_v59 = vld [vmem:[%s13983_s1 + $0x584] ss:$16 sps:$4 sm:$0xff]   ;;  %v9347_v60 = vld [vmem:[%s13983_s1 + $0x58c] ss:$16 sps:$4 sm:$0xff]  }
  0x77   :  { %6430 = vmatpush1.bf16.msra.mxu0 %v9252_v61  ;;  %7118 = vmatpush1.bf16.msra.mxu1 %v9255_v62  ;;  %v9342_v61 = vld [vmem:[%s13983_s1 + $0x580] ss:$16 sps:$4 sm:$0xff]   ;;  %v9345_v62 = vld [vmem:[%s13983_s1 + $0x588] ss:$16 sps:$4 sm:$0xff]  }
  0x78   :  { %6431 = vmatprep.subr.bf16.mxu0 %v9260_v63  ;;  %7119 = vmatprep.subr.bf16.mxu1 %v9263_v0  ;;  %v9350_v63 = vld [vmem:[%s13983_s1 + $0x5a4] ss:$16 sps:$4 sm:$0xff]   ;;  %v9353_v0 = vld [vmem:[%s13983_s1 + $0x5ac] ss:$16 sps:$4 sm:$0xff]  }
  0x7b   :  { %6432 = vmatpush1.bf16.msra.mxu0 %v9258_v1  ;;  %7120 = vmatpush1.bf16.msra.mxu1 %v9261_v2  ;;  %v9348_v1 = vld [vmem:[%s13983_s1 + $0x5a0] ss:$16 sps:$4 sm:$0xff]   ;;  %v9351_v2 = vld [vmem:[%s13983_s1 + $0x5a8] ss:$16 sps:$4 sm:$0xff]  }
  0x7c   :  { %6433 = vmatprep.subr.bf16.mxu0 %v9266_v3  ;;  %7121 = vmatprep.subr.bf16.mxu1 %v9269_v4  ;;  %v9356_v3 = vld [vmem:[%s13983_s1 + $0x5c4] ss:$16 sps:$4 sm:$0xff]   ;;  %v9359_v4 = vld [vmem:[%s13983_s1 + $0x5cc] ss:$16 sps:$4 sm:$0xff]  }
  0x7f   :  { %6434 = vmatpush1.bf16.msra.mxu0 %v9264_v5  ;;  %7122 = vmatpush1.bf16.msra.mxu1 %v9267_v6  ;;  %v9354_v5 = vld [vmem:[%s13983_s1 + $0x5c0] ss:$16 sps:$4 sm:$0xff]   ;;  %v9357_v6 = vld [vmem:[%s13983_s1 + $0x5c8] ss:$16 sps:$4 sm:$0xff]  }
  0x80   :  { %6446 = vmatprep.subr.bf16.mxu0 %v9272_v7  ;;  %7134 = vmatprep.subr.bf16.mxu1 %v9275_v8  ;;  %v9362_v7 = vld [vmem:[%s13983_s1 + $0x5e4] ss:$16 sps:$4 sm:$0xff]   ;;  %v9365_v8 = vld [vmem:[%s13983_s1 + $0x5ec] ss:$16 sps:$4 sm:$0xff]  }
  0x82   :  { %6436 = vmatmul.mubr.bf16.vlgmr.msra.gmra.mrb[0].mxu0 %v7902_v9  ;;  %7124 = vmatmul.mubr.bf16.vlgmr.msra.gmra.mrb[0].mxu1 %v7902_v9  ;;  %v9360_v9 = vld [vmem:[%s13983_s1 + $0x5e0] ss:$16 sps:$4 sm:$0xff]  }
  0x83   :  { %6447 = vmatpush1.bf16.msra.mxu0 %v9270_v10  ;;  %7135 = vmatpush1.bf16.msra.mxu1 %v9273_v11  ;;  %v9363_v10 = vld [vmem:[%s13983_s1 + $0x5e8] ss:$16 sps:$4 sm:$0xff]   ;;  %v9368_v11 = vld [vmem:[%s13983_s1 + $0x604] ss:$16 sps:$4 sm:$0xff]  }
  0x84   :  { %6448 = vmatprep.subr.bf16.mxu0 %v9278_v12  ;;  %7136 = vmatprep.subr.bf16.mxu1 %v9281_v13  ;;  %v9371_v12 = vld [vmem:[%s13983_s1 + $0x60c] ss:$16 sps:$4 sm:$0xff]   ;;  %v9366_v13 = vld [vmem:[%s13983_s1 + $0x600] ss:$16 sps:$4 sm:$0xff]  }
  0x85   :  { %6478 = vmatprep.mubr.bf16.mxu0 %v7905_v16  ;;  %7166 = vmatprep.mubr.bf16.mxu1 %v7905_v16  ;;  %v9369_v16 = vld [vmem:[%s13983_s1 + $0x608] ss:$16 sps:$4 sm:$0xff]  }
  0x87   :  { %6449 = vmatpush1.bf16.msra.mxu0 %v9276_v17  ;;  %7137 = vmatpush1.bf16.msra.mxu1 %v9279_v18  ;;  %v7904_v17 = vcombine.low %v11066_v14, %v11071_v15  ;;  %v11266_v18 = vld [vmem:[%s13984_s0 + $0x18] sm:$0xff] }
  0x88   :  { %6450 = vmatprep.subr.bf16.mxu0 %v9284_v19  ;;  %7138 = vmatprep.subr.bf16.mxu1 %v9287_v20  ;;  %v11271_v19 = vld [vmem:[%s13984_s0 + $0x98] sm:$0xff]  ;;  %v9374_v20 = vld [vmem:[%s13983_s1 + $0x624] ss:$16 sps:$4 sm:$0xff]  }
  0x89   :  { %v9377_v14 = vld [vmem:[%s13983_s1 + $0x62c] ss:$16 sps:$4 sm:$0xff]   ;;  %v7907_v15 = vcombine.high %v11266_v18, %v11271_v19 }
  0x8b   :  { %6451 = vmatpush1.bf16.msra.mxu0 %v9282_v21  ;;  %7139 = vmatpush1.bf16.msra.mxu1 %v9285_v22  ;;  %v9372_v21 = vld [vmem:[%s13983_s1 + $0x620] ss:$16 sps:$4 sm:$0xff]   ;;  %v9375_v22 = vld [vmem:[%s13983_s1 + $0x628] ss:$16 sps:$4 sm:$0xff]  }
  0x8c   :  { %6452 = vmatprep.subr.bf16.mxu0 %v9290_v23  ;;  %7140 = vmatprep.subr.bf16.mxu1 %v9293_v24  ;;  %v9380_v23 = vld [vmem:[%s13983_s1 + $0x644] ss:$16 sps:$4 sm:$0xff]   ;;  %v9383_v24 = vld [vmem:[%s13983_s1 + $0x64c] ss:$16 sps:$4 sm:$0xff]  }
  0x8f   :  { %6453 = vmatpush1.bf16.msra.mxu0 %v9288_v25  ;;  %7141 = vmatpush1.bf16.msra.mxu1 %v9291_v26  ;;  %v9378_v25 = vld [vmem:[%s13983_s1 + $0x640] ss:$16 sps:$4 sm:$0xff]   ;;  %v9381_v26 = vld [vmem:[%s13983_s1 + $0x648] ss:$16 sps:$4 sm:$0xff]  }
  0x90   :  { %6454 = vmatprep.subr.bf16.mxu0 %v9296_v27  ;;  %7142 = vmatprep.subr.bf16.mxu1 %v9299_v28  ;;  %v9386_v27 = vld [vmem:[%s13983_s1 + $0x664] ss:$16 sps:$4 sm:$0xff]   ;;  %v9389_v28 = vld [vmem:[%s13983_s1 + $0x66c] ss:$16 sps:$4 sm:$0xff]  }
  0x93   :  { %6455 = vmatpush1.bf16.msra.mxu0 %v9294_v29  ;;  %7143 = vmatpush1.bf16.msra.mxu1 %v9297_v30  ;;  %v9384_v29 = vld [vmem:[%s13983_s1 + $0x660] ss:$16 sps:$4 sm:$0xff]   ;;  %v9387_v30 = vld [vmem:[%s13983_s1 + $0x668] ss:$16 sps:$4 sm:$0xff]  }
  0x94   :  { %6456 = vmatprep.subr.bf16.mxu0 %v9302_v31  ;;  %7144 = vmatprep.subr.bf16.mxu1 %v9305_v32  ;;  %v9392_v31 = vld [vmem:[%s13983_s1 + $0x684] ss:$16 sps:$4 sm:$0xff]   ;;  %v9395_v32 = vld [vmem:[%s13983_s1 + $0x68c] ss:$16 sps:$4 sm:$0xff]  }
  0x97   :  { %6457 = vmatpush1.bf16.msra.mxu0 %v9300_v33  ;;  %7145 = vmatpush1.bf16.msra.mxu1 %v9303_v34  ;;  %v9390_v33 = vld [vmem:[%s13983_s1 + $0x680] ss:$16 sps:$4 sm:$0xff]   ;;  %v9393_v34 = vld [vmem:[%s13983_s1 + $0x688] ss:$16 sps:$4 sm:$0xff]  }
  0x98   :  { %6458 = vmatprep.subr.bf16.mxu0 %v9308_v35  ;;  %7146 = vmatprep.subr.bf16.mxu1 %v9311_v36  ;;  %v9398_v35 = vld [vmem:[%s13983_s1 + $0x6a4] ss:$16 sps:$4 sm:$0xff]   ;;  %v9401_v36 = vld [vmem:[%s13983_s1 + $0x6ac] ss:$16 sps:$4 sm:$0xff]  }
  0x9b   :  { %6459 = vmatpush1.bf16.msra.mxu0 %v9306_v37  ;;  %7147 = vmatpush1.bf16.msra.mxu1 %v9309_v38  ;;  %v9396_v37 = vld [vmem:[%s13983_s1 + $0x6a0] ss:$16 sps:$4 sm:$0xff]   ;;  %v9399_v38 = vld [vmem:[%s13983_s1 + $0x6a8] ss:$16 sps:$4 sm:$0xff]  }
  0x9c   :  { %6460 = vmatprep.subr.bf16.mxu0 %v9314_v39  ;;  %7148 = vmatprep.subr.bf16.mxu1 %v9317_v40  ;;  %v9404_v39 = vld [vmem:[%s13983_s1 + $0x6c4] ss:$16 sps:$4 sm:$0xff]   ;;  %v9407_v40 = vld [vmem:[%s13983_s1 + $0x6cc] ss:$16 sps:$4 sm:$0xff]  }
  0x9f   :  { %6461 = vmatpush1.bf16.msra.mxu0 %v9312_v41  ;;  %7149 = vmatpush1.bf16.msra.mxu1 %v9315_v42  ;;  %v9402_v41 = vld [vmem:[%s13983_s1 + $0x6c0] ss:$16 sps:$4 sm:$0xff]   ;;  %v9405_v42 = vld [vmem:[%s13983_s1 + $0x6c8] ss:$16 sps:$4 sm:$0xff]  }
  0xa0   :  { %6462 = vmatprep.subr.bf16.mxu0 %v9320_v43  ;;  %7150 = vmatprep.subr.bf16.mxu1 %v9323_v44  ;;  %v9410_v43 = vld [vmem:[%s13983_s1 + $0x6e4] ss:$16 sps:$4 sm:$0xff]   ;;  %v9413_v44 = vld [vmem:[%s13983_s1 + $0x6ec] ss:$16 sps:$4 sm:$0xff]  }
  0xa3   :  { %6463 = vmatpush1.bf16.msra.mxu0 %v9318_v45  ;;  %7151 = vmatpush1.bf16.msra.mxu1 %v9321_v46  ;;  %v9408_v45 = vld [vmem:[%s13983_s1 + $0x6e0] ss:$16 sps:$4 sm:$0xff]   ;;  %v9411_v46 = vld [vmem:[%s13983_s1 + $0x6e8] ss:$16 sps:$4 sm:$0xff]  }
  0xa4   :  { %6464 = vmatprep.subr.bf16.mxu0 %v9326_v47  ;;  %7152 = vmatprep.subr.bf16.mxu1 %v9329_v48  ;;  %v9416_v47 = vld [vmem:[%s13983_s1 + $0x704] ss:$16 sps:$4 sm:$0xff]   ;;  %v9419_v48 = vld [vmem:[%s13983_s1 + $0x70c] ss:$16 sps:$4 sm:$0xff]  }
  0xa7   :  { %6465 = vmatpush1.bf16.msra.mxu0 %v9324_v49  ;;  %7153 = vmatpush1.bf16.msra.mxu1 %v9327_v50  ;;  %v9414_v49 = vld [vmem:[%s13983_s1 + $0x700] ss:$16 sps:$4 sm:$0xff]   ;;  %v9417_v50 = vld [vmem:[%s13983_s1 + $0x708] ss:$16 sps:$4 sm:$0xff]  }
  0xa8   :  { %6466 = vmatprep.subr.bf16.mxu0 %v9332_v51  ;;  %7154 = vmatprep.subr.bf16.mxu1 %v9335_v52  ;;  %v9422_v51 = vld [vmem:[%s13983_s1 + $0x724] ss:$16 sps:$4 sm:$0xff]   ;;  %v9425_v52 = vld [vmem:[%s13983_s1 + $0x72c] ss:$16 sps:$4 sm:$0xff]  }
  0xab   :  { %6467 = vmatpush1.bf16.msra.mxu0 %v9330_v53  ;;  %7155 = vmatpush1.bf16.msra.mxu1 %v9333_v54  ;;  %v9420_v53 = vld [vmem:[%s13983_s1 + $0x720] ss:$16 sps:$4 sm:$0xff]   ;;  %v9423_v54 = vld [vmem:[%s13983_s1 + $0x728] ss:$16 sps:$4 sm:$0xff]  }
  0xac   :  { %6468 = vmatprep.subr.bf16.mxu0 %v9338_v55  ;;  %7156 = vmatprep.subr.bf16.mxu1 %v9341_v56  ;;  %v9428_v55 = vld [vmem:[%s13983_s1 + $0x744] ss:$16 sps:$4 sm:$0xff]   ;;  %v9431_v56 = vld [vmem:[%s13983_s1 + $0x74c] ss:$16 sps:$4 sm:$0xff]  }
  0xaf   :  { %6469 = vmatpush1.bf16.msra.mxu0 %v9336_v57  ;;  %7157 = vmatpush1.bf16.msra.mxu1 %v9339_v58  ;;  %v9426_v57 = vld [vmem:[%s13983_s1 + $0x740] ss:$16 sps:$4 sm:$0xff]   ;;  %v9429_v58 = vld [vmem:[%s13983_s1 + $0x748] ss:$16 sps:$4 sm:$0xff]  }
  0xb0   :  { %6470 = vmatprep.subr.bf16.mxu0 %v9344_v59  ;;  %7158 = vmatprep.subr.bf16.mxu1 %v9347_v60  ;;  %v9434_v59 = vld [vmem:[%s13983_s1 + $0x764] ss:$16 sps:$4 sm:$0xff]   ;;  %v9437_v60 = vld [vmem:[%s13983_s1 + $0x76c] ss:$16 sps:$4 sm:$0xff]  }
  0xb3   :  { %6471 = vmatpush1.bf16.msra.mxu0 %v9342_v61  ;;  %7159 = vmatpush1.bf16.msra.mxu1 %v9345_v62  ;;  %v9432_v61 = vld [vmem:[%s13983_s1 + $0x760] ss:$16 sps:$4 sm:$0xff]   ;;  %v9435_v62 = vld [vmem:[%s13983_s1 + $0x768] ss:$16 sps:$4 sm:$0xff]  }
  0xb4   :  { %6472 = vmatprep.subr.bf16.mxu0 %v9350_v63  ;;  %7160 = vmatprep.subr.bf16.mxu1 %v9353_v0  ;;  %v9440_v63 = vld [vmem:[%s13983_s1 + $0x784] ss:$16 sps:$4 sm:$0xff]   ;;  %v9443_v0 = vld [vmem:[%s13983_s1 + $0x78c] ss:$16 sps:$4 sm:$0xff]  }
  0xb7   :  { %6473 = vmatpush1.bf16.msra.mxu0 %v9348_v1  ;;  %7161 = vmatpush1.bf16.msra.mxu1 %v9351_v2  ;;  %v9438_v1 = vld [vmem:[%s13983_s1 + $0x780] ss:$16 sps:$4 sm:$0xff]   ;;  %v9441_v2 = vld [vmem:[%s13983_s1 + $0x788] ss:$16 sps:$4 sm:$0xff]  }
  0xb8   :  { %6474 = vmatprep.subr.bf16.mxu0 %v9356_v3  ;;  %7162 = vmatprep.subr.bf16.mxu1 %v9359_v4  ;;  %v9446_v3 = vld [vmem:[%s13983_s1 + $0x7a4] ss:$16 sps:$4 sm:$0xff]   ;;  %v9449_v4 = vld [vmem:[%s13983_s1 + $0x7ac] ss:$16 sps:$4 sm:$0xff]  }
  0xbb   :  { %6475 = vmatpush1.bf16.msra.mxu0 %v9354_v5  ;;  %7163 = vmatpush1.bf16.msra.mxu1 %v9357_v6  ;;  %v9444_v5 = vld [vmem:[%s13983_s1 + $0x7a0] ss:$16 sps:$4 sm:$0xff]   ;;  %v9447_v6 = vld [vmem:[%s13983_s1 + $0x7a8] ss:$16 sps:$4 sm:$0xff]  }
  0xbc   :  { %6476 = vmatprep.subr.bf16.mxu0 %v9362_v7  ;;  %7164 = vmatprep.subr.bf16.mxu1 %v9365_v8  ;;  %v9452_v7 = vld [vmem:[%s13983_s1 + $0x7c4] ss:$16 sps:$4 sm:$0xff]   ;;  %v9455_v8 = vld [vmem:[%s13983_s1 + $0x7cc] ss:$16 sps:$4 sm:$0xff]  }
  0xbf   :  { %6477 = vmatpush1.bf16.msra.mxu0 %v9360_v9  ;;  %7165 = vmatpush1.bf16.msra.mxu1 %v9363_v10  ;;  %v9450_v9 = vld [vmem:[%s13983_s1 + $0x7c0] ss:$16 sps:$4 sm:$0xff]   ;;  %v9453_v10 = vld [vmem:[%s13983_s1 + $0x7c8] ss:$16 sps:$4 sm:$0xff]  }
  0xc0   :  { %6489 = vmatprep.subr.bf16.mxu0 %v9368_v11  ;;  %7177 = vmatprep.subr.bf16.mxu1 %v9371_v12  ;;  %v9458_v11 = vld [vmem:[%s13983_s1 + $0x7e4] ss:$16 sps:$4 sm:$0xff]   ;;  %v9461_v12 = vld [vmem:[%s13983_s1 + $0x7ec] ss:$16 sps:$4 sm:$0xff]  }
  0xc2   :  { %6479 = vmatmul.mubr.bf16.vlgmr.msra.gmra.mrb[0].mxu0 %v7904_v17  ;;  %7167 = vmatmul.mubr.bf16.vlgmr.msra.gmra.mrb[0].mxu1 %v7904_v17  ;;  %v9464_v17 = vld [vmem:[%s13983_s1 + $0x804] ss:$16 sps:$4 sm:$0xff]  }
  0xc3   :  { %6490 = vmatpush1.bf16.msra.mxu0 %v9366_v13  ;;  %7178 = vmatpush1.bf16.msra.mxu1 %v9369_v16  ;;  %v9456_v13 = vld [vmem:[%s13983_s1 + $0x7e0] ss:$16 sps:$4 sm:$0xff]   ;;  %v9459_v16 = vld [vmem:[%s13983_s1 + $0x7e8] ss:$16 sps:$4 sm:$0xff]  }
  0xc4   :  { %6491 = vmatprep.subr.bf16.mxu0 %v9374_v20  ;;  %7179 = vmatprep.subr.bf16.mxu1 %v9377_v14  ;;  %v9467_v20 = vld [vmem:[%s13983_s1 + $0x80c] ss:$16 sps:$4 sm:$0xff]   ;;  %v11464_v14 = vld [vmem:[%s13984_s0 + $0x20] sm:$0xff] }
  0xc5   :  { %6521 = vmatprep.mubr.bf16.mxu0 %v7907_v15  ;;  %7209 = vmatprep.mubr.bf16.mxu1 %v7907_v15  ;;  %v7906_v15 = vcombine.low %v11266_v18, %v11271_v19  ;;  %v9470_v18 = vld [vmem:[%s13983_s1 + $0x824] ss:$16 sps:$4 sm:$0xff]   ;;  %v9473_v19 = vld [vmem:[%s13983_s1 + $0x82c] ss:$16 sps:$4 sm:$0xff]  }
  0xc7   :  { %6492 = vmatpush1.bf16.msra.mxu0 %v9372_v21  ;;  %7180 = vmatpush1.bf16.msra.mxu1 %v9375_v22  ;;  %v11471_v21 = vld [vmem:[%s13984_s0 + $0xa0] sm:$0xff] }
  0xc8   :  { %6493 = vmatprep.subr.bf16.mxu0 %v9380_v23  ;;  %7181 = vmatprep.subr.bf16.mxu1 %v9383_v24  ;;  %v9462_v22 = vld [vmem:[%s13983_s1 + $0x800] ss:$16 sps:$4 sm:$0xff]   ;;  %v9465_v23 = vld [vmem:[%s13983_s1 + $0x808] ss:$16 sps:$4 sm:$0xff]   ;;  %v7909_v24 = vcombine.high %v11464_v14, %v11471_v21 }
  0xcb   :  { %6494 = vmatpush1.bf16.msra.mxu0 %v9378_v25  ;;  %7182 = vmatpush1.bf16.msra.mxu1 %v9381_v26  ;;  %v9468_v25 = vld [vmem:[%s13983_s1 + $0x820] ss:$16 sps:$4 sm:$0xff]   ;;  %v9471_v26 = vld [vmem:[%s13983_s1 + $0x828] ss:$16 sps:$4 sm:$0xff]  }
  0xcc   :  { %6495 = vmatprep.subr.bf16.mxu0 %v9386_v27  ;;  %7183 = vmatprep.subr.bf16.mxu1 %v9389_v28  ;;  %v9476_v27 = vld [vmem:[%s13983_s1 + $0x844] ss:$16 sps:$4 sm:$0xff]   ;;  %v9479_v28 = vld [vmem:[%s13983_s1 + $0x84c] ss:$16 sps:$4 sm:$0xff]  }
  0xcf   :  { %6496 = vmatpush1.bf16.msra.mxu0 %v9384_v29  ;;  %7184 = vmatpush1.bf16.msra.mxu1 %v9387_v30  ;;  %v9474_v29 = vld [vmem:[%s13983_s1 + $0x840] ss:$16 sps:$4 sm:$0xff]   ;;  %v9477_v30 = vld [vmem:[%s13983_s1 + $0x848] ss:$16 sps:$4 sm:$0xff]  }
  0xd0   :  { %6497 = vmatprep.subr.bf16.mxu0 %v9392_v31  ;;  %7185 = vmatprep.subr.bf16.mxu1 %v9395_v32  ;;  %v9482_v31 = vld [vmem:[%s13983_s1 + $0x864] ss:$16 sps:$4 sm:$0xff]   ;;  %v9485_v32 = vld [vmem:[%s13983_s1 + $0x86c] ss:$16 sps:$4 sm:$0xff]  }
  0xd3   :  { %6498 = vmatpush1.bf16.msra.mxu0 %v9390_v33  ;;  %7186 = vmatpush1.bf16.msra.mxu1 %v9393_v34  ;;  %v9480_v33 = vld [vmem:[%s13983_s1 + $0x860] ss:$16 sps:$4 sm:$0xff]   ;;  %v9483_v34 = vld [vmem:[%s13983_s1 + $0x868] ss:$16 sps:$4 sm:$0xff]  }
  0xd4   :  { %6499 = vmatprep.subr.bf16.mxu0 %v9398_v35  ;;  %7187 = vmatprep.subr.bf16.mxu1 %v9401_v36  ;;  %v9488_v35 = vld [vmem:[%s13983_s1 + $0x884] ss:$16 sps:$4 sm:$0xff]   ;;  %v9491_v36 = vld [vmem:[%s13983_s1 + $0x88c] ss:$16 sps:$4 sm:$0xff]  }
  0xd7   :  { %6500 = vmatpush1.bf16.msra.mxu0 %v9396_v37  ;;  %7188 = vmatpush1.bf16.msra.mxu1 %v9399_v38  ;;  %v9486_v37 = vld [vmem:[%s13983_s1 + $0x880] ss:$16 sps:$4 sm:$0xff]   ;;  %v9489_v38 = vld [vmem:[%s13983_s1 + $0x888] ss:$16 sps:$4 sm:$0xff]  }
  0xd8   :  { %6501 = vmatprep.subr.bf16.mxu0 %v9404_v39  ;;  %7189 = vmatprep.subr.bf16.mxu1 %v9407_v40  ;;  %v9494_v39 = vld [vmem:[%s13983_s1 + $0x8a4] ss:$16 sps:$4 sm:$0xff]   ;;  %v9497_v40 = vld [vmem:[%s13983_s1 + $0x8ac] ss:$16 sps:$4 sm:$0xff]  }
  0xdb   :  { %6502 = vmatpush1.bf16.msra.mxu0 %v9402_v41  ;;  %7190 = vmatpush1.bf16.msra.mxu1 %v9405_v42  ;;  %v9492_v41 = vld [vmem:[%s13983_s1 + $0x8a0] ss:$16 sps:$4 sm:$0xff]   ;;  %v9495_v42 = vld [vmem:[%s13983_s1 + $0x8a8] ss:$16 sps:$4 sm:$0xff]  }
  0xdc   :  { %6503 = vmatprep.subr.bf16.mxu0 %v9410_v43  ;;  %7191 = vmatprep.subr.bf16.mxu1 %v9413_v44  ;;  %v9500_v43 = vld [vmem:[%s13983_s1 + $0x8c4] ss:$16 sps:$4 sm:$0xff]   ;;  %v9503_v44 = vld [vmem:[%s13983_s1 + $0x8cc] ss:$16 sps:$4 sm:$0xff]  }
  0xdf   :  { %6504 = vmatpush1.bf16.msra.mxu0 %v9408_v45  ;;  %7192 = vmatpush1.bf16.msra.mxu1 %v9411_v46  ;;  %v9498_v45 = vld [vmem:[%s13983_s1 + $0x8c0] ss:$16 sps:$4 sm:$0xff]   ;;  %v9501_v46 = vld [vmem:[%s13983_s1 + $0x8c8] ss:$16 sps:$4 sm:$0xff]  }
  0xe0   :  { %6505 = vmatprep.subr.bf16.mxu0 %v9416_v47  ;;  %7193 = vmatprep.subr.bf16.mxu1 %v9419_v48  ;;  %v9506_v47 = vld [vmem:[%s13983_s1 + $0x8e4] ss:$16 sps:$4 sm:$0xff]   ;;  %v9509_v48 = vld [vmem:[%s13983_s1 + $0x8ec] ss:$16 sps:$4 sm:$0xff]  }
  0xe3   :  { %6506 = vmatpush1.bf16.msra.mxu0 %v9414_v49  ;;  %7194 = vmatpush1.bf16.msra.mxu1 %v9417_v50  ;;  %v9504_v49 = vld [vmem:[%s13983_s1 + $0x8e0] ss:$16 sps:$4 sm:$0xff]   ;;  %v9507_v50 = vld [vmem:[%s13983_s1 + $0x8e8] ss:$16 sps:$4 sm:$0xff]  }
  0xe4   :  { %6507 = vmatprep.subr.bf16.mxu0 %v9422_v51  ;;  %7195 = vmatprep.subr.bf16.mxu1 %v9425_v52  ;;  %v9512_v51 = vld [vmem:[%s13983_s1 + $0x904] ss:$16 sps:$4 sm:$0xff]   ;;  %v9515_v52 = vld [vmem:[%s13983_s1 + $0x90c] ss:$16 sps:$4 sm:$0xff]  }
  0xe7   :  { %6508 = vmatpush1.bf16.msra.mxu0 %v9420_v53  ;;  %7196 = vmatpush1.bf16.msra.mxu1 %v9423_v54  ;;  %v9510_v53 = vld [vmem:[%s13983_s1 + $0x900] ss:$16 sps:$4 sm:$0xff]   ;;  %v9513_v54 = vld [vmem:[%s13983_s1 + $0x908] ss:$16 sps:$4 sm:$0xff]  }
  0xe8   :  { %6509 = vmatprep.subr.bf16.mxu0 %v9428_v55  ;;  %7197 = vmatprep.subr.bf16.mxu1 %v9431_v56  ;;  %v9518_v55 = vld [vmem:[%s13983_s1 + $0x924] ss:$16 sps:$4 sm:$0xff]   ;;  %v9521_v56 = vld [vmem:[%s13983_s1 + $0x92c] ss:$16 sps:$4 sm:$0xff]  }
  0xeb   :  { %6510 = vmatpush1.bf16.msra.mxu0 %v9426_v57  ;;  %7198 = vmatpush1.bf16.msra.mxu1 %v9429_v58  ;;  %v9516_v57 = vld [vmem:[%s13983_s1 + $0x920] ss:$16 sps:$4 sm:$0xff]   ;;  %v9519_v58 = vld [vmem:[%s13983_s1 + $0x928] ss:$16 sps:$4 sm:$0xff]  }
  0xec   :  { %6511 = vmatprep.subr.bf16.mxu0 %v9434_v59  ;;  %7199 = vmatprep.subr.bf16.mxu1 %v9437_v60  ;;  %v9524_v59 = vld [vmem:[%s13983_s1 + $0x944] ss:$16 sps:$4 sm:$0xff]   ;;  %v9527_v60 = vld [vmem:[%s13983_s1 + $0x94c] ss:$16 sps:$4 sm:$0xff]  }
  0xef   :  { %6512 = vmatpush1.bf16.msra.mxu0 %v9432_v61  ;;  %7200 = vmatpush1.bf16.msra.mxu1 %v9435_v62  ;;  %v9522_v61 = vld [vmem:[%s13983_s1 + $0x940] ss:$16 sps:$4 sm:$0xff]   ;;  %v9525_v62 = vld [vmem:[%s13983_s1 + $0x948] ss:$16 sps:$4 sm:$0xff]  }
  0xf0   :  { %6513 = vmatprep.subr.bf16.mxu0 %v9440_v63  ;;  %7201 = vmatprep.subr.bf16.mxu1 %v9443_v0  ;;  %v9530_v63 = vld [vmem:[%s13983_s1 + $0x964] ss:$16 sps:$4 sm:$0xff]   ;;  %v9533_v0 = vld [vmem:[%s13983_s1 + $0x96c] ss:$16 sps:$4 sm:$0xff]  }
  0xf3   :  { %6514 = vmatpush1.bf16.msra.mxu0 %v9438_v1  ;;  %7202 = vmatpush1.bf16.msra.mxu1 %v9441_v2  ;;  %v9528_v1 = vld [vmem:[%s13983_s1 + $0x960] ss:$16 sps:$4 sm:$0xff]   ;;  %v9531_v2 = vld [vmem:[%s13983_s1 + $0x968] ss:$16 sps:$4 sm:$0xff]  }
  0xf4   :  { %6515 = vmatprep.subr.bf16.mxu0 %v9446_v3  ;;  %7203 = vmatprep.subr.bf16.mxu1 %v9449_v4  ;;  %v9536_v3 = vld [vmem:[%s13983_s1 + $0x984] ss:$16 sps:$4 sm:$0xff]   ;;  %v9539_v4 = vld [vmem:[%s13983_s1 + $0x98c] ss:$16 sps:$4 sm:$0xff]  }
  0xf7   :  { %6516 = vmatpush1.bf16.msra.mxu0 %v9444_v5  ;;  %7204 = vmatpush1.bf16.msra.mxu1 %v9447_v6  ;;  %v9534_v5 = vld [vmem:[%s13983_s1 + $0x980] ss:$16 sps:$4 sm:$0xff]   ;;  %v9537_v6 = vld [vmem:[%s13983_s1 + $0x988] ss:$16 sps:$4 sm:$0xff]  }
  0xf8   :  { %6517 = vmatprep.subr.bf16.mxu0 %v9452_v7  ;;  %7205 = vmatprep.subr.bf16.mxu1 %v9455_v8  ;;  %v9542_v7 = vld [vmem:[%s13983_s1 + $0x9a4] ss:$16 sps:$4 sm:$0xff]   ;;  %v9545_v8 = vld [vmem:[%s13983_s1 + $0x9ac] ss:$16 sps:$4 sm:$0xff]  }
  0xfb   :  { %6518 = vmatpush1.bf16.msra.mxu0 %v9450_v9  ;;  %7206 = vmatpush1.bf16.msra.mxu1 %v9453_v10  ;;  %v9540_v9 = vld [vmem:[%s13983_s1 + $0x9a0] ss:$16 sps:$4 sm:$0xff]   ;;  %v9543_v10 = vld [vmem:[%s13983_s1 + $0x9a8] ss:$16 sps:$4 sm:$0xff]  }
  0xfc   :  { %6519 = vmatprep.subr.bf16.mxu0 %v9458_v11  ;;  %7207 = vmatprep.subr.bf16.mxu1 %v9461_v12  ;;  %v9548_v11 = vld [vmem:[%s13983_s1 + $0x9c4] ss:$16 sps:$4 sm:$0xff]   ;;  %v9551_v12 = vld [vmem:[%s13983_s1 + $0x9cc] ss:$16 sps:$4 sm:$0xff]  }
  0xff   :  { %6520 = vmatpush1.bf16.msra.mxu0 %v9456_v13  ;;  %7208 = vmatpush1.bf16.msra.mxu1 %v9459_v16  ;;  %v9546_v13 = vld [vmem:[%s13983_s1 + $0x9c0] ss:$16 sps:$4 sm:$0xff]   ;;  %v9549_v16 = vld [vmem:[%s13983_s1 + $0x9c8] ss:$16 sps:$4 sm:$0xff]  }
 0x100   :  { %6532 = vmatprep.subr.bf16.mxu0 %v9464_v17  ;;  %7220 = vmatprep.subr.bf16.mxu1 %v9467_v20  ;;  %v9554_v17 = vld [vmem:[%s13983_s1 + $0x9e4] ss:$16 sps:$4 sm:$0xff]   ;;  %v9557_v20 = vld [vmem:[%s13983_s1 + $0x9ec] ss:$16 sps:$4 sm:$0xff]  }
 0x102   :  { %6522 = vmatmul.mubr.bf16.vlgmr.msra.gmra.mrb[0].mxu0 %v7906_v15  ;;  %7210 = vmatmul.mubr.bf16.vlgmr.msra.gmra.mrb[0].mxu1 %v7906_v15  ;;  %v9552_v15 = vld [vmem:[%s13983_s1 + $0x9e0] ss:$16 sps:$4 sm:$0xff]  }
 0x103   :  { %6533 = vmatpush1.bf16.msra.mxu0 %v9462_v22  ;;  %7221 = vmatpush1.bf16.msra.mxu1 %v9465_v23  ;;  %v9555_v22 = vld [vmem:[%s13983_s1 + $0x9e8] ss:$16 sps:$4 sm:$0xff]   ;;  %v9560_v23 = vld [vmem:[%s13983_s1 + $0xa04] ss:$16 sps:$4 sm:$0xff]  }
 0x104   :  { %6534 = vmatprep.subr.bf16.mxu0 %v9470_v18  ;;  %7222 = vmatprep.subr.bf16.mxu1 %v9473_v19  ;;  %v9563_v18 = vld [vmem:[%s13983_s1 + $0xa0c] ss:$16 sps:$4 sm:$0xff]  }
 0x105   :  { %6564 = vmatprep.mubr.bf16.mxu0 %v7909_v24  ;;  %7252 = vmatprep.mubr.bf16.mxu1 %v7909_v24  ;;  %v11670_v19 = vld [vmem:[%s13984_s0 + $0x28] sm:$0xff] }
 0x106   :  { %v11675_v24 = vld [vmem:[%s13984_s0 + $0xa8] sm:$0xff] }
 0x107   :  { %6535 = vmatpush1.bf16.msra.mxu0 %v9468_v25  ;;  %7223 = vmatpush1.bf16.msra.mxu1 %v9471_v26  ;;  %v7908_v25 = vcombine.low %v11464_v14, %v11471_v21  ;;  %v9558_v26 = vld [vmem:[%s13983_s1 + $0xa00] ss:$16 sps:$4 sm:$0xff]   ;;  %v9569_v14 = vld [vmem:[%s13983_s1 + $0xa2c] ss:$16 sps:$4 sm:$0xff]   ;;  %v7911_v21 = vcombine.high %v11670_v19, %v11675_v24 }
 0x108   :  { %6536 = vmatprep.subr.bf16.mxu0 %v9476_v27  ;;  %7224 = vmatprep.subr.bf16.mxu1 %v9479_v28  ;;  %v9561_v27 = vld [vmem:[%s13983_s1 + $0xa08] ss:$16 sps:$4 sm:$0xff]   ;;  %v9566_v28 = vld [vmem:[%s13983_s1 + $0xa24] ss:$16 sps:$4 sm:$0xff]  }
 0x10b   :  { %6537 = vmatpush1.bf16.msra.mxu0 %v9474_v29  ;;  %7225 = vmatpush1.bf16.msra.mxu1 %v9477_v30  ;;  %v9564_v29 = vld [vmem:[%s13983_s1 + $0xa20] ss:$16 sps:$4 sm:$0xff]   ;;  %v9567_v30 = vld [vmem:[%s13983_s1 + $0xa28] ss:$16 sps:$4 sm:$0xff]  }
 0x10c   :  { %6538 = vmatprep.subr.bf16.mxu0 %v9482_v31  ;;  %7226 = vmatprep.subr.bf16.mxu1 %v9485_v32  ;;  %v9572_v31 = vld [vmem:[%s13983_s1 + $0xa44] ss:$16 sps:$4 sm:$0xff]   ;;  %v9575_v32 = vld [vmem:[%s13983_s1 + $0xa4c] ss:$16 sps:$4 sm:$0xff]  }
 0x10f   :  { %6539 = vmatpush1.bf16.msra.mxu0 %v9480_v33  ;;  %7227 = vmatpush1.bf16.msra.mxu1 %v9483_v34  ;;  %v9570_v33 = vld [vmem:[%s13983_s1 + $0xa40] ss:$16 sps:$4 sm:$0xff]   ;;  %v9573_v34 = vld [vmem:[%s13983_s1 + $0xa48] ss:$16 sps:$4 sm:$0xff]  }
 0x110   :  { %6540 = vmatprep.subr.bf16.mxu0 %v9488_v35  ;;  %7228 = vmatprep.subr.bf16.mxu1 %v9491_v36  ;;  %v9578_v35 = vld [vmem:[%s13983_s1 + $0xa64] ss:$16 sps:$4 sm:$0xff]   ;;  %v9581_v36 = vld [vmem:[%s13983_s1 + $0xa6c] ss:$16 sps:$4 sm:$0xff]  }
 0x113   :  { %6541 = vmatpush1.bf16.msra.mxu0 %v9486_v37  ;;  %7229 = vmatpush1.bf16.msra.mxu1 %v9489_v38  ;;  %v9576_v37 = vld [vmem:[%s13983_s1 + $0xa60] ss:$16 sps:$4 sm:$0xff]   ;;  %v9579_v38 = vld [vmem:[%s13983_s1 + $0xa68] ss:$16 sps:$4 sm:$0xff]  }
 0x114   :  { %6542 = vmatprep.subr.bf16.mxu0 %v9494_v39  ;;  %7230 = vmatprep.subr.bf16.mxu1 %v9497_v40  ;;  %v9584_v39 = vld [vmem:[%s13983_s1 + $0xa84] ss:$16 sps:$4 sm:$0xff]   ;;  %v9587_v40 = vld [vmem:[%s13983_s1 + $0xa8c] ss:$16 sps:$4 sm:$0xff]  }
 0x117   :  { %6543 = vmatpush1.bf16.msra.mxu0 %v9492_v41  ;;  %7231 = vmatpush1.bf16.msra.mxu1 %v9495_v42  ;;  %v9582_v41 = vld [vmem:[%s13983_s1 + $0xa80] ss:$16 sps:$4 sm:$0xff]   ;;  %v9585_v42 = vld [vmem:[%s13983_s1 + $0xa88] ss:$16 sps:$4 sm:$0xff]  }
 0x118   :  { %6544 = vmatprep.subr.bf16.mxu0 %v9500_v43  ;;  %7232 = vmatprep.subr.bf16.mxu1 %v9503_v44  ;;  %v9590_v43 = vld [vmem:[%s13983_s1 + $0xaa4] ss:$16 sps:$4 sm:$0xff]   ;;  %v9593_v44 = vld [vmem:[%s13983_s1 + $0xaac] ss:$16 sps:$4 sm:$0xff]  }
 0x11b   :  { %6545 = vmatpush1.bf16.msra.mxu0 %v9498_v45  ;;  %7233 = vmatpush1.bf16.msra.mxu1 %v9501_v46  ;;  %v9588_v45 = vld [vmem:[%s13983_s1 + $0xaa0] ss:$16 sps:$4 sm:$0xff]   ;;  %v9591_v46 = vld [vmem:[%s13983_s1 + $0xaa8] ss:$16 sps:$4 sm:$0xff]  }
 0x11c   :  { %6546 = vmatprep.subr.bf16.mxu0 %v9506_v47  ;;  %7234 = vmatprep.subr.bf16.mxu1 %v9509_v48  ;;  %v9596_v47 = vld [vmem:[%s13983_s1 + $0xac4] ss:$16 sps:$4 sm:$0xff]   ;;  %v9599_v48 = vld [vmem:[%s13983_s1 + $0xacc] ss:$16 sps:$4 sm:$0xff]  }
 0x11f   :  { %6547 = vmatpush1.bf16.msra.mxu0 %v9504_v49  ;;  %7235 = vmatpush1.bf16.msra.mxu1 %v9507_v50  ;;  %v9594_v49 = vld [vmem:[%s13983_s1 + $0xac0] ss:$16 sps:$4 sm:$0xff]   ;;  %v9597_v50 = vld [vmem:[%s13983_s1 + $0xac8] ss:$16 sps:$4 sm:$0xff]  }
 0x120   :  { %6548 = vmatprep.subr.bf16.mxu0 %v9512_v51  ;;  %7236 = vmatprep.subr.bf16.mxu1 %v9515_v52  ;;  %v9602_v51 = vld [vmem:[%s13983_s1 + $0xae4] ss:$16 sps:$4 sm:$0xff]   ;;  %v9605_v52 = vld [vmem:[%s13983_s1 + $0xaec] ss:$16 sps:$4 sm:$0xff]  }
 0x123   :  { %6549 = vmatpush1.bf16.msra.mxu0 %v9510_v53  ;;  %7237 = vmatpush1.bf16.msra.mxu1 %v9513_v54  ;;  %v9600_v53 = vld [vmem:[%s13983_s1 + $0xae0] ss:$16 sps:$4 sm:$0xff]   ;;  %v9603_v54 = vld [vmem:[%s13983_s1 + $0xae8] ss:$16 sps:$4 sm:$0xff]  }
 0x124   :  { %6550 = vmatprep.subr.bf16.mxu0 %v9518_v55  ;;  %7238 = vmatprep.subr.bf16.mxu1 %v9521_v56  ;;  %v9608_v55 = vld [vmem:[%s13983_s1 + $0xb04] ss:$16 sps:$4 sm:$0xff]   ;;  %v9611_v56 = vld [vmem:[%s13983_s1 + $0xb0c] ss:$16 sps:$4 sm:$0xff]  }
 0x127   :  { %6551 = vmatpush1.bf16.msra.mxu0 %v9516_v57  ;;  %7239 = vmatpush1.bf16.msra.mxu1 %v9519_v58  ;;  %v9606_v57 = vld [vmem:[%s13983_s1 + $0xb00] ss:$16 sps:$4 sm:$0xff]   ;;  %v9609_v58 = vld [vmem:[%s13983_s1 + $0xb08] ss:$16 sps:$4 sm:$0xff]  }
 0x128   :  { %6552 = vmatprep.subr.bf16.mxu0 %v9524_v59  ;;  %7240 = vmatprep.subr.bf16.mxu1 %v9527_v60  ;;  %v9614_v59 = vld [vmem:[%s13983_s1 + $0xb24] ss:$16 sps:$4 sm:$0xff]   ;;  %v9617_v60 = vld [vmem:[%s13983_s1 + $0xb2c] ss:$16 sps:$4 sm:$0xff]  }
 0x12b   :  { %6553 = vmatpush1.bf16.msra.mxu0 %v9522_v61  ;;  %7241 = vmatpush1.bf16.msra.mxu1 %v9525_v62  ;;  %v9612_v61 = vld [vmem:[%s13983_s1 + $0xb20] ss:$16 sps:$4 sm:$0xff]   ;;  %v9615_v62 = vld [vmem:[%s13983_s1 + $0xb28] ss:$16 sps:$4 sm:$0xff]  }
 0x12c   :  { %6554 = vmatprep.subr.bf16.mxu0 %v9530_v63  ;;  %7242 = vmatprep.subr.bf16.mxu1 %v9533_v0  ;;  %v9620_v63 = vld [vmem:[%s13983_s1 + $0xb44] ss:$16 sps:$4 sm:$0xff]   ;;  %v9623_v0 = vld [vmem:[%s13983_s1 + $0xb4c] ss:$16 sps:$4 sm:$0xff]  }
 0x12f   :  { %6555 = vmatpush1.bf16.msra.mxu0 %v9528_v1  ;;  %7243 = vmatpush1.bf16.msra.mxu1 %v9531_v2  ;;  %v9618_v1 = vld [vmem:[%s13983_s1 + $0xb40] ss:$16 sps:$4 sm:$0xff]   ;;  %v9621_v2 = vld [vmem:[%s13983_s1 + $0xb48] ss:$16 sps:$4 sm:$0xff]  }
 0x130   :  { %6556 = vmatprep.subr.bf16.mxu0 %v9536_v3  ;;  %7244 = vmatprep.subr.bf16.mxu1 %v9539_v4  ;;  %v9626_v3 = vld [vmem:[%s13983_s1 + $0xb64] ss:$16 sps:$4 sm:$0xff]   ;;  %v9629_v4 = vld [vmem:[%s13983_s1 + $0xb6c] ss:$16 sps:$4 sm:$0xff]  }
 0x133   :  { %6557 = vmatpush1.bf16.msra.mxu0 %v9534_v5  ;;  %7245 = vmatpush1.bf16.msra.mxu1 %v9537_v6  ;;  %v9624_v5 = vld [vmem:[%s13983_s1 + $0xb60] ss:$16 sps:$4 sm:$0xff]   ;;  %v9627_v6 = vld [vmem:[%s13983_s1 + $0xb68] ss:$16 sps:$4 sm:$0xff]  }
 0x134   :  { %6558 = vmatprep.subr.bf16.mxu0 %v9542_v7  ;;  %7246 = vmatprep.subr.bf16.mxu1 %v9545_v8  ;;  %v9632_v7 = vld [vmem:[%s13983_s1 + $0xb84] ss:$16 sps:$4 sm:$0xff]   ;;  %v9635_v8 = vld [vmem:[%s13983_s1 + $0xb8c] ss:$16 sps:$4 sm:$0xff]  }
 0x137   :  { %6559 = vmatpush1.bf16.msra.mxu0 %v9540_v9  ;;  %7247 = vmatpush1.bf16.msra.mxu1 %v9543_v10  ;;  %v9630_v9 = vld [vmem:[%s13983_s1 + $0xb80] ss:$16 sps:$4 sm:$0xff]   ;;  %v9633_v10 = vld [vmem:[%s13983_s1 + $0xb88] ss:$16 sps:$4 sm:$0xff]  }
 0x138   :  { %6560 = vmatprep.subr.bf16.mxu0 %v9548_v11  ;;  %7248 = vmatprep.subr.bf16.mxu1 %v9551_v12  ;;  %v9638_v11 = vld [vmem:[%s13983_s1 + $0xba4] ss:$16 sps:$4 sm:$0xff]   ;;  %v9641_v12 = vld [vmem:[%s13983_s1 + $0xbac] ss:$16 sps:$4 sm:$0xff]  }
 0x13b   :  { %6561 = vmatpush1.bf16.msra.mxu0 %v9546_v13  ;;  %7249 = vmatpush1.bf16.msra.mxu1 %v9549_v16  ;;  %v9636_v13 = vld [vmem:[%s13983_s1 + $0xba0] ss:$16 sps:$4 sm:$0xff]   ;;  %v9639_v16 = vld [vmem:[%s13983_s1 + $0xba8] ss:$16 sps:$4 sm:$0xff]  }
 0x13c   :  { %6562 = vmatprep.subr.bf16.mxu0 %v9554_v17  ;;  %7250 = vmatprep.subr.bf16.mxu1 %v9557_v20  ;;  %v9644_v17 = vld [vmem:[%s13983_s1 + $0xbc4] ss:$16 sps:$4 sm:$0xff]   ;;  %v9647_v20 = vld [vmem:[%s13983_s1 + $0xbcc] ss:$16 sps:$4 sm:$0xff]  }
 0x13f   :  { %6563 = vmatpush1.bf16.msra.mxu0 %v9552_v15  ;;  %7251 = vmatpush1.bf16.msra.mxu1 %v9555_v22  ;;  %v9642_v15 = vld [vmem:[%s13983_s1 + $0xbc0] ss:$16 sps:$4 sm:$0xff]   ;;  %v9645_v22 = vld [vmem:[%s13983_s1 + $0xbc8] ss:$16 sps:$4 sm:$0xff]  }
 0x140   :  { %6575 = vmatprep.subr.bf16.mxu0 %v9560_v23  ;;  %7263 = vmatprep.subr.bf16.mxu1 %v9563_v18  ;;  %v9650_v23 = vld [vmem:[%s13983_s1 + $0xbe4] ss:$16 sps:$4 sm:$0xff]   ;;  %v9653_v18 = vld [vmem:[%s13983_s1 + $0xbec] ss:$16 sps:$4 sm:$0xff]  }
 0x142   :  { %6565 = vmatmul.mubr.bf16.vlgmr.msra.gmra.mrb[0].mxu0 %v7908_v25  ;;  %7253 = vmatmul.mubr.bf16.vlgmr.msra.gmra.mrb[0].mxu1 %v7908_v25  ;;  %v9648_v25 = vld [vmem:[%s13983_s1 + $0xbe0] ss:$16 sps:$4 sm:$0xff]  }
 0x143   :  { %6576 = vmatpush1.bf16.msra.mxu0 %v9558_v26  ;;  %7264 = vmatpush1.bf16.msra.mxu1 %v9561_v27  ;;  %v9651_v26 = vld [vmem:[%s13983_s1 + $0xbe8] ss:$16 sps:$4 sm:$0xff]   ;;  %v9656_v27 = vld [vmem:[%s13983_s1 + $0xc04] ss:$16 sps:$4 sm:$0xff]  }
 0x144   :  { %6577 = vmatprep.subr.bf16.mxu0 %v9566_v28  ;;  %7265 = vmatprep.subr.bf16.mxu1 %v9569_v14  ;;  %v9659_v28 = vld [vmem:[%s13983_s1 + $0xc0c] ss:$16 sps:$4 sm:$0xff]   ;;  %v11876_v14 = vld [vmem:[%s13984_s0 + $0x30] sm:$0xff] }
 0x145   :  { %6607 = vmatprep.mubr.bf16.mxu0 %v7911_v21  ;;  %7295 = vmatprep.mubr.bf16.mxu1 %v7911_v21  ;;  %v11881_v21 = vld [vmem:[%s13984_s0 + $0xb0] sm:$0xff] }
 0x147   :  { %6578 = vmatpush1.bf16.msra.mxu0 %v9564_v29  ;;  %7266 = vmatpush1.bf16.msra.mxu1 %v9567_v30  ;;  %v7910_v29 = vcombine.low %v11670_v19, %v11675_v24  ;;  %v9654_v30 = vld [vmem:[%s13983_s1 + $0xc00] ss:$16 sps:$4 sm:$0xff]   ;;  %v9665_v19 = vld [vmem:[%s13983_s1 + $0xc2c] ss:$16 sps:$4 sm:$0xff]   ;;  %v7913_v24 = vcombine.high %v11876_v14, %v11881_v21 }
 0x148   :  { %6579 = vmatprep.subr.bf16.mxu0 %v9572_v31  ;;  %7267 = vmatprep.subr.bf16.mxu1 %v9575_v32  ;;  %v9657_v31 = vld [vmem:[%s13983_s1 + $0xc08] ss:$16 sps:$4 sm:$0xff]   ;;  %v9662_v32 = vld [vmem:[%s13983_s1 + $0xc24] ss:$16 sps:$4 sm:$0xff]  }
 0x14b   :  { %6580 = vmatpush1.bf16.msra.mxu0 %v9570_v33  ;;  %7268 = vmatpush1.bf16.msra.mxu1 %v9573_v34  ;;  %v9660_v33 = vld [vmem:[%s13983_s1 + $0xc20] ss:$16 sps:$4 sm:$0xff]   ;;  %v9663_v34 = vld [vmem:[%s13983_s1 + $0xc28] ss:$16 sps:$4 sm:$0xff]  }
 0x14c   :  { %6581 = vmatprep.subr.bf16.mxu0 %v9578_v35  ;;  %7269 = vmatprep.subr.bf16.mxu1 %v9581_v36  ;;  %v9668_v35 = vld [vmem:[%s13983_s1 + $0xc44] ss:$16 sps:$4 sm:$0xff]   ;;  %v9671_v36 = vld [vmem:[%s13983_s1 + $0xc4c] ss:$16 sps:$4 sm:$0xff]  }
 0x14f   :  { %6582 = vmatpush1.bf16.msra.mxu0 %v9576_v37  ;;  %7270 = vmatpush1.bf16.msra.mxu1 %v9579_v38  ;;  %v9666_v37 = vld [vmem:[%s13983_s1 + $0xc40] ss:$16 sps:$4 sm:$0xff]   ;;  %v9669_v38 = vld [vmem:[%s13983_s1 + $0xc48] ss:$16 sps:$4 sm:$0xff]  }
 0x150   :  { %6583 = vmatprep.subr.bf16.mxu0 %v9584_v39  ;;  %7271 = vmatprep.subr.bf16.mxu1 %v9587_v40  ;;  %v9674_v39 = vld [vmem:[%s13983_s1 + $0xc64] ss:$16 sps:$4 sm:$0xff]   ;;  %v9677_v40 = vld [vmem:[%s13983_s1 + $0xc6c] ss:$16 sps:$4 sm:$0xff]  }
 0x153   :  { %6584 = vmatpush1.bf16.msra.mxu0 %v9582_v41  ;;  %7272 = vmatpush1.bf16.msra.mxu1 %v9585_v42  ;;  %v9672_v41 = vld [vmem:[%s13983_s1 + $0xc60] ss:$16 sps:$4 sm:$0xff]   ;;  %v9675_v42 = vld [vmem:[%s13983_s1 + $0xc68] ss:$16 sps:$4 sm:$0xff]  }
 0x154   :  { %6585 = vmatprep.subr.bf16.mxu0 %v9590_v43  ;;  %7273 = vmatprep.subr.bf16.mxu1 %v9593_v44  ;;  %v9680_v43 = vld [vmem:[%s13983_s1 + $0xc84] ss:$16 sps:$4 sm:$0xff]   ;;  %v9683_v44 = vld [vmem:[%s13983_s1 + $0xc8c] ss:$16 sps:$4 sm:$0xff]  }
 0x157   :  { %6586 = vmatpush1.bf16.msra.mxu0 %v9588_v45  ;;  %7274 = vmatpush1.bf16.msra.mxu1 %v9591_v46  ;;  %v9678_v45 = vld [vmem:[%s13983_s1 + $0xc80] ss:$16 sps:$4 sm:$0xff]   ;;  %v9681_v46 = vld [vmem:[%s13983_s1 + $0xc88] ss:$16 sps:$4 sm:$0xff]  }
 0x158   :  { %6587 = vmatprep.subr.bf16.mxu0 %v9596_v47  ;;  %7275 = vmatprep.subr.bf16.mxu1 %v9599_v48  ;;  %v9686_v47 = vld [vmem:[%s13983_s1 + $0xca4] ss:$16 sps:$4 sm:$0xff]   ;;  %v9689_v48 = vld [vmem:[%s13983_s1 + $0xcac] ss:$16 sps:$4 sm:$0xff]  }
 0x15b   :  { %6588 = vmatpush1.bf16.msra.mxu0 %v9594_v49  ;;  %7276 = vmatpush1.bf16.msra.mxu1 %v9597_v50  ;;  %v9684_v49 = vld [vmem:[%s13983_s1 + $0xca0] ss:$16 sps:$4 sm:$0xff]   ;;  %v9687_v50 = vld [vmem:[%s13983_s1 + $0xca8] ss:$16 sps:$4 sm:$0xff]  }
 0x15c   :  { %6589 = vmatprep.subr.bf16.mxu0 %v9602_v51  ;;  %7277 = vmatprep.subr.bf16.mxu1 %v9605_v52  ;;  %v9692_v51 = vld [vmem:[%s13983_s1 + $0xcc4] ss:$16 sps:$4 sm:$0xff]   ;;  %v9695_v52 = vld [vmem:[%s13983_s1 + $0xccc] ss:$16 sps:$4 sm:$0xff]  }
 0x15f   :  { %6590 = vmatpush1.bf16.msra.mxu0 %v9600_v53  ;;  %7278 = vmatpush1.bf16.msra.mxu1 %v9603_v54  ;;  %v9690_v53 = vld [vmem:[%s13983_s1 + $0xcc0] ss:$16 sps:$4 sm:$0xff]   ;;  %v9693_v54 = vld [vmem:[%s13983_s1 + $0xcc8] ss:$16 sps:$4 sm:$0xff]  }
 0x160   :  { %6591 = vmatprep.subr.bf16.mxu0 %v9608_v55  ;;  %7279 = vmatprep.subr.bf16.mxu1 %v9611_v56  ;;  %v9698_v55 = vld [vmem:[%s13983_s1 + $0xce4] ss:$16 sps:$4 sm:$0xff]   ;;  %v9701_v56 = vld [vmem:[%s13983_s1 + $0xcec] ss:$16 sps:$4 sm:$0xff]  }
 0x163   :  { %6592 = vmatpush1.bf16.msra.mxu0 %v9606_v57  ;;  %7280 = vmatpush1.bf16.msra.mxu1 %v9609_v58  ;;  %v9696_v57 = vld [vmem:[%s13983_s1 + $0xce0] ss:$16 sps:$4 sm:$0xff]   ;;  %v9699_v58 = vld [vmem:[%s13983_s1 + $0xce8] ss:$16 sps:$4 sm:$0xff]  }
 0x164   :  { %6593 = vmatprep.subr.bf16.mxu0 %v9614_v59  ;;  %7281 = vmatprep.subr.bf16.mxu1 %v9617_v60  ;;  %v9704_v59 = vld [vmem:[%s13983_s1 + $0xd04] ss:$16 sps:$4 sm:$0xff]   ;;  %v9707_v60 = vld [vmem:[%s13983_s1 + $0xd0c] ss:$16 sps:$4 sm:$0xff]  }
 0x167   :  { %6594 = vmatpush1.bf16.msra.mxu0 %v9612_v61  ;;  %7282 = vmatpush1.bf16.msra.mxu1 %v9615_v62  ;;  %v9702_v61 = vld [vmem:[%s13983_s1 + $0xd00] ss:$16 sps:$4 sm:$0xff]   ;;  %v9705_v62 = vld [vmem:[%s13983_s1 + $0xd08] ss:$16 sps:$4 sm:$0xff]  }
 0x168   :  { %6595 = vmatprep.subr.bf16.mxu0 %v9620_v63  ;;  %7283 = vmatprep.subr.bf16.mxu1 %v9623_v0  ;;  %v9710_v63 = vld [vmem:[%s13983_s1 + $0xd24] ss:$16 sps:$4 sm:$0xff]   ;;  %v9713_v0 = vld [vmem:[%s13983_s1 + $0xd2c] ss:$16 sps:$4 sm:$0xff]  }
 0x16b   :  { %6596 = vmatpush1.bf16.msra.mxu0 %v9618_v1  ;;  %7284 = vmatpush1.bf16.msra.mxu1 %v9621_v2  ;;  %v9708_v1 = vld [vmem:[%s13983_s1 + $0xd20] ss:$16 sps:$4 sm:$0xff]   ;;  %v9711_v2 = vld [vmem:[%s13983_s1 + $0xd28] ss:$16 sps:$4 sm:$0xff]  }
 0x16c   :  { %6597 = vmatprep.subr.bf16.mxu0 %v9626_v3  ;;  %7285 = vmatprep.subr.bf16.mxu1 %v9629_v4  ;;  %v9716_v3 = vld [vmem:[%s13983_s1 + $0xd44] ss:$16 sps:$4 sm:$0xff]   ;;  %v9719_v4 = vld [vmem:[%s13983_s1 + $0xd4c] ss:$16 sps:$4 sm:$0xff]  }
 0x16f   :  { %6598 = vmatpush1.bf16.msra.mxu0 %v9624_v5  ;;  %7286 = vmatpush1.bf16.msra.mxu1 %v9627_v6  ;;  %v9714_v5 = vld [vmem:[%s13983_s1 + $0xd40] ss:$16 sps:$4 sm:$0xff]   ;;  %v9717_v6 = vld [vmem:[%s13983_s1 + $0xd48] ss:$16 sps:$4 sm:$0xff]  }
 0x170   :  { %6599 = vmatprep.subr.bf16.mxu0 %v9632_v7  ;;  %7287 = vmatprep.subr.bf16.mxu1 %v9635_v8  ;;  %v9722_v7 = vld [vmem:[%s13983_s1 + $0xd64] ss:$16 sps:$4 sm:$0xff]   ;;  %v9725_v8 = vld [vmem:[%s13983_s1 + $0xd6c] ss:$16 sps:$4 sm:$0xff]  }
 0x173   :  { %6600 = vmatpush1.bf16.msra.mxu0 %v9630_v9  ;;  %7288 = vmatpush1.bf16.msra.mxu1 %v9633_v10  ;;  %v9720_v9 = vld [vmem:[%s13983_s1 + $0xd60] ss:$16 sps:$4 sm:$0xff]   ;;  %v9723_v10 = vld [vmem:[%s13983_s1 + $0xd68] ss:$16 sps:$4 sm:$0xff]  }
 0x174   :  { %6601 = vmatprep.subr.bf16.mxu0 %v9638_v11  ;;  %7289 = vmatprep.subr.bf16.mxu1 %v9641_v12  ;;  %v9728_v11 = vld [vmem:[%s13983_s1 + $0xd84] ss:$16 sps:$4 sm:$0xff]   ;;  %v9731_v12 = vld [vmem:[%s13983_s1 + $0xd8c] ss:$16 sps:$4 sm:$0xff]  }
 0x177   :  { %6602 = vmatpush1.bf16.msra.mxu0 %v9636_v13  ;;  %7290 = vmatpush1.bf16.msra.mxu1 %v9639_v16  ;;  %v9726_v13 = vld [vmem:[%s13983_s1 + $0xd80] ss:$16 sps:$4 sm:$0xff]   ;;  %v9729_v16 = vld [vmem:[%s13983_s1 + $0xd88] ss:$16 sps:$4 sm:$0xff]  }
 0x178   :  { %6603 = vmatprep.subr.bf16.mxu0 %v9644_v17  ;;  %7291 = vmatprep.subr.bf16.mxu1 %v9647_v20  ;;  %v9734_v17 = vld [vmem:[%s13983_s1 + $0xda4] ss:$16 sps:$4 sm:$0xff]   ;;  %v9737_v20 = vld [vmem:[%s13983_s1 + $0xdac] ss:$16 sps:$4 sm:$0xff]  }
 0x17b   :  { %6604 = vmatpush1.bf16.msra.mxu0 %v9642_v15  ;;  %7292 = vmatpush1.bf16.msra.mxu1 %v9645_v22  ;;  %v9732_v15 = vld [vmem:[%s13983_s1 + $0xda0] ss:$16 sps:$4 sm:$0xff]   ;;  %v9735_v22 = vld [vmem:[%s13983_s1 + $0xda8] ss:$16 sps:$4 sm:$0xff]  }
 0x17c   :  { %6605 = vmatprep.subr.bf16.mxu0 %v9650_v23  ;;  %7293 = vmatprep.subr.bf16.mxu1 %v9653_v18  ;;  %v9740_v23 = vld [vmem:[%s13983_s1 + $0xdc4] ss:$16 sps:$4 sm:$0xff]   ;;  %v9743_v18 = vld [vmem:[%s13983_s1 + $0xdcc] ss:$16 sps:$4 sm:$0xff]  }
 0x17f   :  { %6606 = vmatpush1.bf16.msra.mxu0 %v9648_v25  ;;  %7294 = vmatpush1.bf16.msra.mxu1 %v9651_v26  ;;  %v9738_v25 = vld [vmem:[%s13983_s1 + $0xdc0] ss:$16 sps:$4 sm:$0xff]   ;;  %v9741_v26 = vld [vmem:[%s13983_s1 + $0xdc8] ss:$16 sps:$4 sm:$0xff]  }
 0x180   :  { %6618 = vmatprep.subr.bf16.mxu0 %v9656_v27  ;;  %7306 = vmatprep.subr.bf16.mxu1 %v9659_v28  ;;  %v9746_v27 = vld [vmem:[%s13983_s1 + $0xde4] ss:$16 sps:$4 sm:$0xff]   ;;  %v9749_v28 = vld [vmem:[%s13983_s1 + $0xdec] ss:$16 sps:$4 sm:$0xff]  }
 0x182   :  { %6608 = vmatmul.mubr.bf16.vlgmr.msra.gmra.mrb[0].mxu0 %v7910_v29  ;;  %7296 = vmatmul.mubr.bf16.vlgmr.msra.gmra.mrb[0].mxu1 %v7910_v29  ;;  %v9744_v29 = vld [vmem:[%s13983_s1 + $0xde0] ss:$16 sps:$4 sm:$0xff]  }
 0x183   :  { %6619 = vmatpush1.bf16.msra.mxu0 %v9654_v30  ;;  %7307 = vmatpush1.bf16.msra.mxu1 %v9657_v31  ;;  %v9747_v30 = vld [vmem:[%s13983_s1 + $0xde8] ss:$16 sps:$4 sm:$0xff]   ;;  %v9752_v31 = vld [vmem:[%s13983_s1 + $0xe04] ss:$16 sps:$4 sm:$0xff]  }
 0x184   :  { %6620 = vmatprep.subr.bf16.mxu0 %v9662_v32  ;;  %7308 = vmatprep.subr.bf16.mxu1 %v9665_v19  ;;  %v9755_v32 = vld [vmem:[%s13983_s1 + $0xe0c] ss:$16 sps:$4 sm:$0xff]  }
 0x185   :  { %6650 = vmatprep.mubr.bf16.mxu0 %v7913_v24  ;;  %7338 = vmatprep.mubr.bf16.mxu1 %v7913_v24  ;;  %v12082_v19 = vld [vmem:[%s13984_s0 + $0x38] sm:$0xff] }
 0x186   :  { %v12087_v24 = vld [vmem:[%s13984_s0 + $0xb8] sm:$0xff] }
 0x187   :  { %6621 = vmatpush1.bf16.msra.mxu0 %v9660_v33  ;;  %7309 = vmatpush1.bf16.msra.mxu1 %v9663_v34  ;;  %v7912_v33 = vcombine.low %v11876_v14, %v11881_v21  ;;  %v9750_v34 = vld [vmem:[%s13983_s1 + $0xe00] ss:$16 sps:$4 sm:$0xff]   ;;  %v9761_v14 = vld [vmem:[%s13983_s1 + $0xe2c] ss:$16 sps:$4 sm:$0xff]   ;;  %v7915_v21 = vcombine.high %v12082_v19, %v12087_v24 }
 0x188   :  { %6622 = vmatprep.subr.bf16.mxu0 %v9668_v35  ;;  %7310 = vmatprep.subr.bf16.mxu1 %v9671_v36  ;;  %v9753_v35 = vld [vmem:[%s13983_s1 + $0xe08] ss:$16 sps:$4 sm:$0xff]   ;;  %v9758_v36 = vld [vmem:[%s13983_s1 + $0xe24] ss:$16 sps:$4 sm:$0xff]  }
 0x18b   :  { %6623 = vmatpush1.bf16.msra.mxu0 %v9666_v37  ;;  %7311 = vmatpush1.bf16.msra.mxu1 %v9669_v38  ;;  %v9756_v37 = vld [vmem:[%s13983_s1 + $0xe20] ss:$16 sps:$4 sm:$0xff]   ;;  %v9759_v38 = vld [vmem:[%s13983_s1 + $0xe28] ss:$16 sps:$4 sm:$0xff]  }
 0x18c   :  { %6624 = vmatprep.subr.bf16.mxu0 %v9674_v39  ;;  %7312 = vmatprep.subr.bf16.mxu1 %v9677_v40  ;;  %v9764_v39 = vld [vmem:[%s13983_s1 + $0xe44] ss:$16 sps:$4 sm:$0xff]   ;;  %v9767_v40 = vld [vmem:[%s13983_s1 + $0xe4c] ss:$16 sps:$4 sm:$0xff]  }
 0x18f   :  { %6625 = vmatpush1.bf16.msra.mxu0 %v9672_v41  ;;  %7313 = vmatpush1.bf16.msra.mxu1 %v9675_v42  ;;  %v9762_v41 = vld [vmem:[%s13983_s1 + $0xe40] ss:$16 sps:$4 sm:$0xff]   ;;  %v9765_v42 = vld [vmem:[%s13983_s1 + $0xe48] ss:$16 sps:$4 sm:$0xff]  }
 0x190   :  { %6626 = vmatprep.subr.bf16.mxu0 %v9680_v43  ;;  %7314 = vmatprep.subr.bf16.mxu1 %v9683_v44  ;;  %v9770_v43 = vld [vmem:[%s13983_s1 + $0xe64] ss:$16 sps:$4 sm:$0xff]   ;;  %v9773_v44 = vld [vmem:[%s13983_s1 + $0xe6c] ss:$16 sps:$4 sm:$0xff]  }
 0x193   :  { %6627 = vmatpush1.bf16.msra.mxu0 %v9678_v45  ;;  %7315 = vmatpush1.bf16.msra.mxu1 %v9681_v46  ;;  %v9768_v45 = vld [vmem:[%s13983_s1 + $0xe60] ss:$16 sps:$4 sm:$0xff]   ;;  %v9771_v46 = vld [vmem:[%s13983_s1 + $0xe68] ss:$16 sps:$4 sm:$0xff]  }
 0x194   :  { %6628 = vmatprep.subr.bf16.mxu0 %v9686_v47  ;;  %7316 = vmatprep.subr.bf16.mxu1 %v9689_v48  ;;  %v9776_v47 = vld [vmem:[%s13983_s1 + $0xe84] ss:$16 sps:$4 sm:$0xff]   ;;  %v9779_v48 = vld [vmem:[%s13983_s1 + $0xe8c] ss:$16 sps:$4 sm:$0xff]  }
 0x197   :  { %6629 = vmatpush1.bf16.msra.mxu0 %v9684_v49  ;;  %7317 = vmatpush1.bf16.msra.mxu1 %v9687_v50  ;;  %v9774_v49 = vld [vmem:[%s13983_s1 + $0xe80] ss:$16 sps:$4 sm:$0xff]   ;;  %v9777_v50 = vld [vmem:[%s13983_s1 + $0xe88] ss:$16 sps:$4 sm:$0xff]  }
 0x198   :  { %6630 = vmatprep.subr.bf16.mxu0 %v9692_v51  ;;  %7318 = vmatprep.subr.bf16.mxu1 %v9695_v52  ;;  %v9782_v51 = vld [vmem:[%s13983_s1 + $0xea4] ss:$16 sps:$4 sm:$0xff]   ;;  %v9785_v52 = vld [vmem:[%s13983_s1 + $0xeac] ss:$16 sps:$4 sm:$0xff]  }
 0x19b   :  { %6631 = vmatpush1.bf16.msra.mxu0 %v9690_v53  ;;  %7319 = vmatpush1.bf16.msra.mxu1 %v9693_v54  ;;  %v9780_v53 = vld [vmem:[%s13983_s1 + $0xea0] ss:$16 sps:$4 sm:$0xff]   ;;  %v9783_v54 = vld [vmem:[%s13983_s1 + $0xea8] ss:$16 sps:$4 sm:$0xff]  }
 0x19c   :  { %6632 = vmatprep.subr.bf16.mxu0 %v9698_v55  ;;  %7320 = vmatprep.subr.bf16.mxu1 %v9701_v56  ;;  %v9788_v55 = vld [vmem:[%s13983_s1 + $0xec4] ss:$16 sps:$4 sm:$0xff]   ;;  %v9791_v56 = vld [vmem:[%s13983_s1 + $0xecc] ss:$16 sps:$4 sm:$0xff]  }
 0x19f   :  { %6633 = vmatpush1.bf16.msra.mxu0 %v9696_v57  ;;  %7321 = vmatpush1.bf16.msra.mxu1 %v9699_v58  ;;  %v9786_v57 = vld [vmem:[%s13983_s1 + $0xec0] ss:$16 sps:$4 sm:$0xff]   ;;  %v9789_v58 = vld [vmem:[%s13983_s1 + $0xec8] ss:$16 sps:$4 sm:$0xff]  }
 0x1a0   :  { %6634 = vmatprep.subr.bf16.mxu0 %v9704_v59  ;;  %7322 = vmatprep.subr.bf16.mxu1 %v9707_v60  ;;  %v9794_v59 = vld [vmem:[%s13983_s1 + $0xee4] ss:$16 sps:$4 sm:$0xff]   ;;  %v9797_v60 = vld [vmem:[%s13983_s1 + $0xeec] ss:$16 sps:$4 sm:$0xff]  }
 0x1a3   :  { %6635 = vmatpush1.bf16.msra.mxu0 %v9702_v61  ;;  %7323 = vmatpush1.bf16.msra.mxu1 %v9705_v62  ;;  %v9792_v61 = vld [vmem:[%s13983_s1 + $0xee0] ss:$16 sps:$4 sm:$0xff]   ;;  %v9795_v62 = vld [vmem:[%s13983_s1 + $0xee8] ss:$16 sps:$4 sm:$0xff]  }
 0x1a4   :  { %6636 = vmatprep.subr.bf16.mxu0 %v9710_v63  ;;  %7324 = vmatprep.subr.bf16.mxu1 %v9713_v0  ;;  %v9800_v63 = vld [vmem:[%s13983_s1 + $0xf04] ss:$16 sps:$4 sm:$0xff]   ;;  %v9803_v0 = vld [vmem:[%s13983_s1 + $0xf0c] ss:$16 sps:$4 sm:$0xff]  }
 0x1a7   :  { %6637 = vmatpush1.bf16.msra.mxu0 %v9708_v1  ;;  %7325 = vmatpush1.bf16.msra.mxu1 %v9711_v2  ;;  %v9798_v1 = vld [vmem:[%s13983_s1 + $0xf00] ss:$16 sps:$4 sm:$0xff]   ;;  %v9801_v2 = vld [vmem:[%s13983_s1 + $0xf08] ss:$16 sps:$4 sm:$0xff]  }
 0x1a8   :  { %6638 = vmatprep.subr.bf16.mxu0 %v9716_v3  ;;  %7326 = vmatprep.subr.bf16.mxu1 %v9719_v4  ;;  %v9806_v3 = vld [vmem:[%s13983_s1 + $0xf24] ss:$16 sps:$4 sm:$0xff]   ;;  %v9809_v4 = vld [vmem:[%s13983_s1 + $0xf2c] ss:$16 sps:$4 sm:$0xff]  }
 0x1ab   :  { %6639 = vmatpush1.bf16.msra.mxu0 %v9714_v5  ;;  %7327 = vmatpush1.bf16.msra.mxu1 %v9717_v6  ;;  %v9804_v5 = vld [vmem:[%s13983_s1 + $0xf20] ss:$16 sps:$4 sm:$0xff]   ;;  %v9807_v6 = vld [vmem:[%s13983_s1 + $0xf28] ss:$16 sps:$4 sm:$0xff]  }
 0x1ac   :  { %6640 = vmatprep.subr.bf16.mxu0 %v9722_v7  ;;  %7328 = vmatprep.subr.bf16.mxu1 %v9725_v8  ;;  %v9812_v7 = vld [vmem:[%s13983_s1 + $0xf44] ss:$16 sps:$4 sm:$0xff]   ;;  %v9815_v8 = vld [vmem:[%s13983_s1 + $0xf4c] ss:$16 sps:$4 sm:$0xff]  }
 0x1af   :  { %6641 = vmatpush1.bf16.msra.mxu0 %v9720_v9  ;;  %7329 = vmatpush1.bf16.msra.mxu1 %v9723_v10  ;;  %v9810_v9 = vld [vmem:[%s13983_s1 + $0xf40] ss:$16 sps:$4 sm:$0xff]   ;;  %v9813_v10 = vld [vmem:[%s13983_s1 + $0xf48] ss:$16 sps:$4 sm:$0xff]  }
 0x1b0   :  { %6642 = vmatprep.subr.bf16.mxu0 %v9728_v11  ;;  %7330 = vmatprep.subr.bf16.mxu1 %v9731_v12  ;;  %v9818_v11 = vld [vmem:[%s13983_s1 + $0xf64] ss:$16 sps:$4 sm:$0xff]   ;;  %v9821_v12 = vld [vmem:[%s13983_s1 + $0xf6c] ss:$16 sps:$4 sm:$0xff]  }
 0x1b3   :  { %6643 = vmatpush1.bf16.msra.mxu0 %v9726_v13  ;;  %7331 = vmatpush1.bf16.msra.mxu1 %v9729_v16  ;;  %v9816_v13 = vld [vmem:[%s13983_s1 + $0xf60] ss:$16 sps:$4 sm:$0xff]   ;;  %v9819_v16 = vld [vmem:[%s13983_s1 + $0xf68] ss:$16 sps:$4 sm:$0xff]  }
 0x1b4   :  { %6644 = vmatprep.subr.bf16.mxu0 %v9734_v17  ;;  %7332 = vmatprep.subr.bf16.mxu1 %v9737_v20  ;;  %v9824_v17 = vld [vmem:[%s13983_s1 + $0xf84] ss:$16 sps:$4 sm:$0xff]   ;;  %v9827_v20 = vld [vmem:[%s13983_s1 + $0xf8c] ss:$16 sps:$4 sm:$0xff]  }
 0x1b7   :  { %6645 = vmatpush1.bf16.msra.mxu0 %v9732_v15  ;;  %7333 = vmatpush1.bf16.msra.mxu1 %v9735_v22  ;;  %v9822_v15 = vld [vmem:[%s13983_s1 + $0xf80] ss:$16 sps:$4 sm:$0xff]   ;;  %v9825_v22 = vld [vmem:[%s13983_s1 + $0xf88] ss:$16 sps:$4 sm:$0xff]  }
 0x1b8   :  { %6646 = vmatprep.subr.bf16.mxu0 %v9740_v23  ;;  %7334 = vmatprep.subr.bf16.mxu1 %v9743_v18  ;;  %v9830_v23 = vld [vmem:[%s13983_s1 + $0xfa4] ss:$16 sps:$4 sm:$0xff]   ;;  %v9833_v18 = vld [vmem:[%s13983_s1 + $0xfac] ss:$16 sps:$4 sm:$0xff]  }
 0x1bb   :  { %6647 = vmatpush1.bf16.msra.mxu0 %v9738_v25  ;;  %7335 = vmatpush1.bf16.msra.mxu1 %v9741_v26  ;;  %v9828_v25 = vld [vmem:[%s13983_s1 + $0xfa0] ss:$16 sps:$4 sm:$0xff]   ;;  %v9831_v26 = vld [vmem:[%s13983_s1 + $0xfa8] ss:$16 sps:$4 sm:$0xff]  }
 0x1bc   :  { %6648 = vmatprep.subr.bf16.mxu0 %v9746_v27  ;;  %7336 = vmatprep.subr.bf16.mxu1 %v9749_v28  ;;  %v9836_v27 = vld [vmem:[%s13983_s1 + $0xfc4] ss:$16 sps:$4 sm:$0xff]   ;;  %v9839_v28 = vld [vmem:[%s13983_s1 + $0xfcc] ss:$16 sps:$4 sm:$0xff]  }
 0x1bf   :  { %6649 = vmatpush1.bf16.msra.mxu0 %v9744_v29  ;;  %7337 = vmatpush1.bf16.msra.mxu1 %v9747_v30  ;;  %v9834_v29 = vld [vmem:[%s13983_s1 + $0xfc0] ss:$16 sps:$4 sm:$0xff]   ;;  %v9837_v30 = vld [vmem:[%s13983_s1 + $0xfc8] ss:$16 sps:$4 sm:$0xff]  }
 0x1c0   :  { %6661 = vmatprep.subr.bf16.mxu0 %v9752_v31  ;;  %7349 = vmatprep.subr.bf16.mxu1 %v9755_v32  ;;  %v9842_v31 = vld [vmem:[%s13983_s1 + $0xfe4] ss:$16 sps:$4 sm:$0xff]   ;;  %v9845_v32 = vld [vmem:[%s13983_s1 + $0xfec] ss:$16 sps:$4 sm:$0xff]  }
 0x1c2   :  { %6651 = vmatmul.mubr.bf16.vlgmr.msra.gmra.mrb[0].mxu0 %v7912_v33  ;;  %7339 = vmatmul.mubr.bf16.vlgmr.msra.gmra.mrb[0].mxu1 %v7912_v33  ;;  %v9840_v33 = vld [vmem:[%s13983_s1 + $0xfe0] ss:$16 sps:$4 sm:$0xff]  }
 0x1c3   :  { %6662 = vmatpush1.bf16.msra.mxu0 %v9750_v34  ;;  %7350 = vmatpush1.bf16.msra.mxu1 %v9753_v35  ;;  %v9843_v34 = vld [vmem:[%s13983_s1 + $0xfe8] ss:$16 sps:$4 sm:$0xff]   ;;  %v9848_v35 = vld [vmem:[%s13983_s1 + $0x1004] ss:$16 sps:$4 sm:$0xff]  }
 0x1c4   :  { %6663 = vmatprep.subr.bf16.mxu0 %v9758_v36  ;;  %7351 = vmatprep.subr.bf16.mxu1 %v9761_v14  ;;  %v9851_v36 = vld [vmem:[%s13983_s1 + $0x100c] ss:$16 sps:$4 sm:$0xff]   ;;  %v12288_v14 = vld [vmem:[%s13984_s0 + $0x40] sm:$0xff] }
 0x1c5   :  { %6693 = vmatprep.mubr.bf16.mxu0 %v7915_v21  ;;  %7381 = vmatprep.mubr.bf16.mxu1 %v7915_v21  ;;  %v12293_v21 = vld [vmem:[%s13984_s0 + $0xc0] sm:$0xff] }
 0x1c7   :  { %6664 = vmatpush1.bf16.msra.mxu0 %v9756_v37  ;;  %7352 = vmatpush1.bf16.msra.mxu1 %v9759_v38  ;;  %v7914_v37 = vcombine.low %v12082_v19, %v12087_v24  ;;  %v9846_v38 = vld [vmem:[%s13983_s1 + $0x1000] ss:$16 sps:$4 sm:$0xff]   ;;  %v9857_v19 = vld [vmem:[%s13983_s1 + $0x102c] ss:$16 sps:$4 sm:$0xff]   ;;  %v7917_v24 = vcombine.high %v12288_v14, %v12293_v21 }
 0x1c8   :  { %6665 = vmatprep.subr.bf16.mxu0 %v9764_v39  ;;  %7353 = vmatprep.subr.bf16.mxu1 %v9767_v40  ;;  %v9849_v39 = vld [vmem:[%s13983_s1 + $0x1008] ss:$16 sps:$4 sm:$0xff]   ;;  %v9854_v40 = vld [vmem:[%s13983_s1 + $0x1024] ss:$16 sps:$4 sm:$0xff]  }
 0x1cb   :  { %6666 = vmatpush1.bf16.msra.mxu0 %v9762_v41  ;;  %7354 = vmatpush1.bf16.msra.mxu1 %v9765_v42  ;;  %v9852_v41 = vld [vmem:[%s13983_s1 + $0x1020] ss:$16 sps:$4 sm:$0xff]   ;;  %v9855_v42 = vld [vmem:[%s13983_s1 + $0x1028] ss:$16 sps:$4 sm:$0xff]  }
 0x1cc   :  { %6667 = vmatprep.subr.bf16.mxu0 %v9770_v43  ;;  %7355 = vmatprep.subr.bf16.mxu1 %v9773_v44  ;;  %v9860_v43 = vld [vmem:[%s13983_s1 + $0x1044] ss:$16 sps:$4 sm:$0xff]   ;;  %v9863_v44 = vld [vmem:[%s13983_s1 + $0x104c] ss:$16 sps:$4 sm:$0xff]  }
 0x1cf   :  { %6668 = vmatpush1.bf16.msra.mxu0 %v9768_v45  ;;  %7356 = vmatpush1.bf16.msra.mxu1 %v9771_v46  ;;  %v9858_v45 = vld [vmem:[%s13983_s1 + $0x1040] ss:$16 sps:$4 sm:$0xff]   ;;  %v9861_v46 = vld [vmem:[%s13983_s1 + $0x1048] ss:$16 sps:$4 sm:$0xff]  }
 0x1d0   :  { %6669 = vmatprep.subr.bf16.mxu0 %v9776_v47  ;;  %7357 = vmatprep.subr.bf16.mxu1 %v9779_v48  ;;  %v9866_v47 = vld [vmem:[%s13983_s1 + $0x1064] ss:$16 sps:$4 sm:$0xff]   ;;  %v9869_v48 = vld [vmem:[%s13983_s1 + $0x106c] ss:$16 sps:$4 sm:$0xff]  }
 0x1d3   :  { %6670 = vmatpush1.bf16.msra.mxu0 %v9774_v49  ;;  %7358 = vmatpush1.bf16.msra.mxu1 %v9777_v50  ;;  %v9864_v49 = vld [vmem:[%s13983_s1 + $0x1060] ss:$16 sps:$4 sm:$0xff]   ;;  %v9867_v50 = vld [vmem:[%s13983_s1 + $0x1068] ss:$16 sps:$4 sm:$0xff]  }
 0x1d4   :  { %6671 = vmatprep.subr.bf16.mxu0 %v9782_v51  ;;  %7359 = vmatprep.subr.bf16.mxu1 %v9785_v52  ;;  %v9872_v51 = vld [vmem:[%s13983_s1 + $0x1084] ss:$16 sps:$4 sm:$0xff]   ;;  %v9875_v52 = vld [vmem:[%s13983_s1 + $0x108c] ss:$16 sps:$4 sm:$0xff]  }
 0x1d7   :  { %6672 = vmatpush1.bf16.msra.mxu0 %v9780_v53  ;;  %7360 = vmatpush1.bf16.msra.mxu1 %v9783_v54  ;;  %v9870_v53 = vld [vmem:[%s13983_s1 + $0x1080] ss:$16 sps:$4 sm:$0xff]   ;;  %v9873_v54 = vld [vmem:[%s13983_s1 + $0x1088] ss:$16 sps:$4 sm:$0xff]  }
 0x1d8   :  { %6673 = vmatprep.subr.bf16.mxu0 %v9788_v55  ;;  %7361 = vmatprep.subr.bf16.mxu1 %v9791_v56  ;;  %v9878_v55 = vld [vmem:[%s13983_s1 + $0x10a4] ss:$16 sps:$4 sm:$0xff]   ;;  %v9881_v56 = vld [vmem:[%s13983_s1 + $0x10ac] ss:$16 sps:$4 sm:$0xff]  }
 0x1db   :  { %6674 = vmatpush1.bf16.msra.mxu0 %v9786_v57  ;;  %7362 = vmatpush1.bf16.msra.mxu1 %v9789_v58  ;;  %v9876_v57 = vld [vmem:[%s13983_s1 + $0x10a0] ss:$16 sps:$4 sm:$0xff]   ;;  %v9879_v58 = vld [vmem:[%s13983_s1 + $0x10a8] ss:$16 sps:$4 sm:$0xff]  }
 0x1dc   :  { %6675 = vmatprep.subr.bf16.mxu0 %v9794_v59  ;;  %7363 = vmatprep.subr.bf16.mxu1 %v9797_v60  ;;  %v9884_v59 = vld [vmem:[%s13983_s1 + $0x10c4] ss:$16 sps:$4 sm:$0xff]   ;;  %v9887_v60 = vld [vmem:[%s13983_s1 + $0x10cc] ss:$16 sps:$4 sm:$0xff]  }
 0x1df   :  { %6676 = vmatpush1.bf16.msra.mxu0 %v9792_v61  ;;  %7364 = vmatpush1.bf16.msra.mxu1 %v9795_v62  ;;  %v9882_v61 = vld [vmem:[%s13983_s1 + $0x10c0] ss:$16 sps:$4 sm:$0xff]   ;;  %v9885_v62 = vld [vmem:[%s13983_s1 + $0x10c8] ss:$16 sps:$4 sm:$0xff]  }
 0x1e0   :  { %6677 = vmatprep.subr.bf16.mxu0 %v9800_v63  ;;  %7365 = vmatprep.subr.bf16.mxu1 %v9803_v0  ;;  %v9890_v63 = vld [vmem:[%s13983_s1 + $0x10e4] ss:$16 sps:$4 sm:$0xff]   ;;  %v9893_v0 = vld [vmem:[%s13983_s1 + $0x10ec] ss:$16 sps:$4 sm:$0xff]  }
 0x1e3   :  { %6678 = vmatpush1.bf16.msra.mxu0 %v9798_v1  ;;  %7366 = vmatpush1.bf16.msra.mxu1 %v9801_v2  ;;  %v9888_v1 = vld [vmem:[%s13983_s1 + $0x10e0] ss:$16 sps:$4 sm:$0xff]   ;;  %v9891_v2 = vld [vmem:[%s13983_s1 + $0x10e8] ss:$16 sps:$4 sm:$0xff]  }
 0x1e4   :  { %6679 = vmatprep.subr.bf16.mxu0 %v9806_v3  ;;  %7367 = vmatprep.subr.bf16.mxu1 %v9809_v4  ;;  %v9896_v3 = vld [vmem:[%s13983_s1 + $0x1104] ss:$16 sps:$4 sm:$0xff]   ;;  %v9899_v4 = vld [vmem:[%s13983_s1 + $0x110c] ss:$16 sps:$4 sm:$0xff]  }
 0x1e7   :  { %6680 = vmatpush1.bf16.msra.mxu0 %v9804_v5  ;;  %7368 = vmatpush1.bf16.msra.mxu1 %v9807_v6  ;;  %v9894_v5 = vld [vmem:[%s13983_s1 + $0x1100] ss:$16 sps:$4 sm:$0xff]   ;;  %v9897_v6 = vld [vmem:[%s13983_s1 + $0x1108] ss:$16 sps:$4 sm:$0xff]  }
 0x1e8   :  { %6681 = vmatprep.subr.bf16.mxu0 %v9812_v7  ;;  %7369 = vmatprep.subr.bf16.mxu1 %v9815_v8  ;;  %v9902_v7 = vld [vmem:[%s13983_s1 + $0x1124] ss:$16 sps:$4 sm:$0xff]   ;;  %v9905_v8 = vld [vmem:[%s13983_s1 + $0x112c] ss:$16 sps:$4 sm:$0xff]  }
 0x1eb   :  { %6682 = vmatpush1.bf16.msra.mxu0 %v9810_v9  ;;  %7370 = vmatpush1.bf16.msra.mxu1 %v9813_v10  ;;  %v9900_v9 = vld [vmem:[%s13983_s1 + $0x1120] ss:$16 sps:$4 sm:$0xff]   ;;  %v9903_v10 = vld [vmem:[%s13983_s1 + $0x1128] ss:$16 sps:$4 sm:$0xff]  }
 0x1ec   :  { %6683 = vmatprep.subr.bf16.mxu0 %v9818_v11  ;;  %7371 = vmatprep.subr.bf16.mxu1 %v9821_v12  ;;  %v9908_v11 = vld [vmem:[%s13983_s1 + $0x1144] ss:$16 sps:$4 sm:$0xff]   ;;  %v9911_v12 = vld [vmem:[%s13983_s1 + $0x114c] ss:$16 sps:$4 sm:$0xff]  }
 0x1ef   :  { %6684 = vmatpush1.bf16.msra.mxu0 %v9816_v13  ;;  %7372 = vmatpush1.bf16.msra.mxu1 %v9819_v16  ;;  %v9906_v13 = vld [vmem:[%s13983_s1 + $0x1140] ss:$16 sps:$4 sm:$0xff]   ;;  %v9909_v16 = vld [vmem:[%s13983_s1 + $0x1148] ss:$16 sps:$4 sm:$0xff]  }
 0x1f0   :  { %6685 = vmatprep.subr.bf16.mxu0 %v9824_v17  ;;  %7373 = vmatprep.subr.bf16.mxu1 %v9827_v20  ;;  %v9914_v17 = vld [vmem:[%s13983_s1 + $0x1164] ss:$16 sps:$4 sm:$0xff]   ;;  %v9917_v20 = vld [vmem:[%s13983_s1 + $0x116c] ss:$16 sps:$4 sm:$0xff]  }
 0x1f3   :  { %6686 = vmatpush1.bf16.msra.mxu0 %v9822_v15  ;;  %7374 = vmatpush1.bf16.msra.mxu1 %v9825_v22  ;;  %v9912_v15 = vld [vmem:[%s13983_s1 + $0x1160] ss:$16 sps:$4 sm:$0xff]   ;;  %v9915_v22 = vld [vmem:[%s13983_s1 + $0x1168] ss:$16 sps:$4 sm:$0xff]  }
 0x1f4   :  { %6687 = vmatprep.subr.bf16.mxu0 %v9830_v23  ;;  %7375 = vmatprep.subr.bf16.mxu1 %v9833_v18  ;;  %v9920_v23 = vld [vmem:[%s13983_s1 + $0x1184] ss:$16 sps:$4 sm:$0xff]   ;;  %v9923_v18 = vld [vmem:[%s13983_s1 + $0x118c] ss:$16 sps:$4 sm:$0xff]  }
 0x1f7   :  { %6688 = vmatpush1.bf16.msra.mxu0 %v9828_v25  ;;  %7376 = vmatpush1.bf16.msra.mxu1 %v9831_v26  ;;  %v9918_v25 = vld [vmem:[%s13983_s1 + $0x1180] ss:$16 sps:$4 sm:$0xff]   ;;  %v9921_v26 = vld [vmem:[%s13983_s1 + $0x1188] ss:$16 sps:$4 sm:$0xff]  }
 0x1f8   :  { %6689 = vmatprep.subr.bf16.mxu0 %v9836_v27  ;;  %7377 = vmatprep.subr.bf16.mxu1 %v9839_v28  ;;  %v9926_v27 = vld [vmem:[%s13983_s1 + $0x11a4] ss:$16 sps:$4 sm:$0xff]   ;;  %v9929_v28 = vld [vmem:[%s13983_s1 + $0x11ac] ss:$16 sps:$4 sm:$0xff]  }
 0x1fb   :  { %6690 = vmatpush1.bf16.msra.mxu0 %v9834_v29  ;;  %7378 = vmatpush1.bf16.msra.mxu1 %v9837_v30  ;;  %v9924_v29 = vld [vmem:[%s13983_s1 + $0x11a0] ss:$16 sps:$4 sm:$0xff]   ;;  %v9927_v30 = vld [vmem:[%s13983_s1 + $0x11a8] ss:$16 sps:$4 sm:$0xff]  }
 0x1fc   :  { %6691 = vmatprep.subr.bf16.mxu0 %v9842_v31  ;;  %7379 = vmatprep.subr.bf16.mxu1 %v9845_v32  ;;  %v9932_v31 = vld [vmem:[%s13983_s1 + $0x11c4] ss:$16 sps:$4 sm:$0xff]   ;;  %v9935_v32 = vld [vmem:[%s13983_s1 + $0x11cc] ss:$16 sps:$4 sm:$0xff]  }
 0x1ff   :  { %6692 = vmatpush1.bf16.msra.mxu0 %v9840_v33  ;;  %7380 = vmatpush1.bf16.msra.mxu1 %v9843_v34  ;;  %v9930_v33 = vld [vmem:[%s13983_s1 + $0x11c0] ss:$16 sps:$4 sm:$0xff]   ;;  %v9933_v34 = vld [vmem:[%s13983_s1 + $0x11c8] ss:$16 sps:$4 sm:$0xff]  }
 0x200   :  { %6704 = vmatprep.subr.bf16.mxu0 %v9848_v35  ;;  %7392 = vmatprep.subr.bf16.mxu1 %v9851_v36  ;;  %v9938_v35 = vld [vmem:[%s13983_s1 + $0x11e4] ss:$16 sps:$4 sm:$0xff]   ;;  %v9941_v36 = vld [vmem:[%s13983_s1 + $0x11ec] ss:$16 sps:$4 sm:$0xff]  }
 0x202   :  { %6694 = vmatmul.mubr.bf16.vlgmr.msra.gmra.mrb[0].mxu0 %v7914_v37  ;;  %7382 = vmatmul.mubr.bf16.vlgmr.msra.gmra.mrb[0].mxu1 %v7914_v37  ;;  %v9936_v37 = vld [vmem:[%s13983_s1 + $0x11e0] ss:$16 sps:$4 sm:$0xff]  }
 0x203   :  { %6705 = vmatpush1.bf16.msra.mxu0 %v9846_v38  ;;  %7393 = vmatpush1.bf16.msra.mxu1 %v9849_v39  ;;  %v9939_v38 = vld [vmem:[%s13983_s1 + $0x11e8] ss:$16 sps:$4 sm:$0xff]   ;;  %v9944_v39 = vld [vmem:[%s13983_s1 + $0x1204] ss:$16 sps:$4 sm:$0xff]  }
 0x204   :  { %6706 = vmatprep.subr.bf16.mxu0 %v9854_v40  ;;  %7394 = vmatprep.subr.bf16.mxu1 %v9857_v19  ;;  %v9947_v40 = vld [vmem:[%s13983_s1 + $0x120c] ss:$16 sps:$4 sm:$0xff]  }
 0x205   :  { %6736 = vmatprep.mubr.bf16.mxu0 %v7917_v24  ;;  %7424 = vmatprep.mubr.bf16.mxu1 %v7917_v24  ;;  %v12494_v19 = vld [vmem:[%s13984_s0 + $0x48] sm:$0xff] }
 0x206   :  { %v12499_v24 = vld [vmem:[%s13984_s0 + $0xc8] sm:$0xff] }
 0x207   :  { %6707 = vmatpush1.bf16.msra.mxu0 %v9852_v41  ;;  %7395 = vmatpush1.bf16.msra.mxu1 %v9855_v42  ;;  %v7916_v41 = vcombine.low %v12288_v14, %v12293_v21  ;;  %v9942_v42 = vld [vmem:[%s13983_s1 + $0x1200] ss:$16 sps:$4 sm:$0xff]   ;;  %v9953_v14 = vld [vmem:[%s13983_s1 + $0x122c] ss:$16 sps:$4 sm:$0xff]   ;;  %v7919_v21 = vcombine.high %v12494_v19, %v12499_v24 }
 0x208   :  { %6708 = vmatprep.subr.bf16.mxu0 %v9860_v43  ;;  %7396 = vmatprep.subr.bf16.mxu1 %v9863_v44  ;;  %v9945_v43 = vld [vmem:[%s13983_s1 + $0x1208] ss:$16 sps:$4 sm:$0xff]   ;;  %v9950_v44 = vld [vmem:[%s13983_s1 + $0x1224] ss:$16 sps:$4 sm:$0xff]  }
 0x20b   :  { %6709 = vmatpush1.bf16.msra.mxu0 %v9858_v45  ;;  %7397 = vmatpush1.bf16.msra.mxu1 %v9861_v46  ;;  %v9948_v45 = vld [vmem:[%s13983_s1 + $0x1220] ss:$16 sps:$4 sm:$0xff]   ;;  %v9951_v46 = vld [vmem:[%s13983_s1 + $0x1228] ss:$16 sps:$4 sm:$0xff]  }
 0x20c   :  { %6710 = vmatprep.subr.bf16.mxu0 %v9866_v47  ;;  %7398 = vmatprep.subr.bf16.mxu1 %v9869_v48  ;;  %v9956_v47 = vld [vmem:[%s13983_s1 + $0x1244] ss:$16 sps:$4 sm:$0xff]   ;;  %v9959_v48 = vld [vmem:[%s13983_s1 + $0x124c] ss:$16 sps:$4 sm:$0xff]  }
 0x20f   :  { %6711 = vmatpush1.bf16.msra.mxu0 %v9864_v49  ;;  %7399 = vmatpush1.bf16.msra.mxu1 %v9867_v50  ;;  %v9954_v49 = vld [vmem:[%s13983_s1 + $0x1240] ss:$16 sps:$4 sm:$0xff]   ;;  %v9957_v50 = vld [vmem:[%s13983_s1 + $0x1248] ss:$16 sps:$4 sm:$0xff]  }
 0x210   :  { %6712 = vmatprep.subr.bf16.mxu0 %v9872_v51  ;;  %7400 = vmatprep.subr.bf16.mxu1 %v9875_v52  ;;  %v9962_v51 = vld [vmem:[%s13983_s1 + $0x1264] ss:$16 sps:$4 sm:$0xff]   ;;  %v9965_v52 = vld [vmem:[%s13983_s1 + $0x126c] ss:$16 sps:$4 sm:$0xff]  }
 0x213   :  { %6713 = vmatpush1.bf16.msra.mxu0 %v9870_v53  ;;  %7401 = vmatpush1.bf16.msra.mxu1 %v9873_v54  ;;  %v9960_v53 = vld [vmem:[%s13983_s1 + $0x1260] ss:$16 sps:$4 sm:$0xff]   ;;  %v9963_v54 = vld [vmem:[%s13983_s1 + $0x1268] ss:$16 sps:$4 sm:$0xff]  }
 0x214   :  { %6714 = vmatprep.subr.bf16.mxu0 %v9878_v55  ;;  %7402 = vmatprep.subr.bf16.mxu1 %v9881_v56  ;;  %v9968_v55 = vld [vmem:[%s13983_s1 + $0x1284] ss:$16 sps:$4 sm:$0xff]   ;;  %v9971_v56 = vld [vmem:[%s13983_s1 + $0x128c] ss:$16 sps:$4 sm:$0xff]  }
 0x217   :  { %6715 = vmatpush1.bf16.msra.mxu0 %v9876_v57  ;;  %7403 = vmatpush1.bf16.msra.mxu1 %v9879_v58  ;;  %v9966_v57 = vld [vmem:[%s13983_s1 + $0x1280] ss:$16 sps:$4 sm:$0xff]   ;;  %v9969_v58 = vld [vmem:[%s13983_s1 + $0x1288] ss:$16 sps:$4 sm:$0xff]  }
 0x218   :  { %6716 = vmatprep.subr.bf16.mxu0 %v9884_v59  ;;  %7404 = vmatprep.subr.bf16.mxu1 %v9887_v60  ;;  %v9974_v59 = vld [vmem:[%s13983_s1 + $0x12a4] ss:$16 sps:$4 sm:$0xff]   ;;  %v9977_v60 = vld [vmem:[%s13983_s1 + $0x12ac] ss:$16 sps:$4 sm:$0xff]  }
 0x21b   :  { %6717 = vmatpush1.bf16.msra.mxu0 %v9882_v61  ;;  %7405 = vmatpush1.bf16.msra.mxu1 %v9885_v62  ;;  %v9972_v61 = vld [vmem:[%s13983_s1 + $0x12a0] ss:$16 sps:$4 sm:$0xff]   ;;  %v9975_v62 = vld [vmem:[%s13983_s1 + $0x12a8] ss:$16 sps:$4 sm:$0xff]  }
 0x21c   :  { %6718 = vmatprep.subr.bf16.mxu0 %v9890_v63  ;;  %7406 = vmatprep.subr.bf16.mxu1 %v9893_v0  ;;  %v9980_v63 = vld [vmem:[%s13983_s1 + $0x12c4] ss:$16 sps:$4 sm:$0xff]   ;;  %v9983_v0 = vld [vmem:[%s13983_s1 + $0x12cc] ss:$16 sps:$4 sm:$0xff]  }
 0x21f   :  { %6719 = vmatpush1.bf16.msra.mxu0 %v9888_v1  ;;  %7407 = vmatpush1.bf16.msra.mxu1 %v9891_v2  ;;  %v9978_v1 = vld [vmem:[%s13983_s1 + $0x12c0] ss:$16 sps:$4 sm:$0xff]   ;;  %v9981_v2 = vld [vmem:[%s13983_s1 + $0x12c8] ss:$16 sps:$4 sm:$0xff]  }
 0x220   :  { %6720 = vmatprep.subr.bf16.mxu0 %v9896_v3  ;;  %7408 = vmatprep.subr.bf16.mxu1 %v9899_v4  ;;  %v9986_v3 = vld [vmem:[%s13983_s1 + $0x12e4] ss:$16 sps:$4 sm:$0xff]   ;;  %v9989_v4 = vld [vmem:[%s13983_s1 + $0x12ec] ss:$16 sps:$4 sm:$0xff]  }
 0x223   :  { %6721 = vmatpush1.bf16.msra.mxu0 %v9894_v5  ;;  %7409 = vmatpush1.bf16.msra.mxu1 %v9897_v6  ;;  %v9984_v5 = vld [vmem:[%s13983_s1 + $0x12e0] ss:$16 sps:$4 sm:$0xff]   ;;  %v9987_v6 = vld [vmem:[%s13983_s1 + $0x12e8] ss:$16 sps:$4 sm:$0xff]  }
 0x224   :  { %6722 = vmatprep.subr.bf16.mxu0 %v9902_v7  ;;  %7410 = vmatprep.subr.bf16.mxu1 %v9905_v8  ;;  %v9992_v7 = vld [vmem:[%s13983_s1 + $0x1304] ss:$16 sps:$4 sm:$0xff]   ;;  %v9995_v8 = vld [vmem:[%s13983_s1 + $0x130c] ss:$16 sps:$4 sm:$0xff]  }
 0x227   :  { %6723 = vmatpush1.bf16.msra.mxu0 %v9900_v9  ;;  %7411 = vmatpush1.bf16.msra.mxu1 %v9903_v10  ;;  %v9990_v9 = vld [vmem:[%s13983_s1 + $0x1300] ss:$16 sps:$4 sm:$0xff]   ;;  %v9993_v10 = vld [vmem:[%s13983_s1 + $0x1308] ss:$16 sps:$4 sm:$0xff]  }
 0x228   :  { %6724 = vmatprep.subr.bf16.mxu0 %v9908_v11  ;;  %7412 = vmatprep.subr.bf16.mxu1 %v9911_v12  ;;  %v9998_v11 = vld [vmem:[%s13983_s1 + $0x1324] ss:$16 sps:$4 sm:$0xff]   ;;  %v10001_v12 = vld [vmem:[%s13983_s1 + $0x132c] ss:$16 sps:$4 sm:$0xff]  }
 0x22b   :  { %6725 = vmatpush1.bf16.msra.mxu0 %v9906_v13  ;;  %7413 = vmatpush1.bf16.msra.mxu1 %v9909_v16  ;;  %v9996_v13 = vld [vmem:[%s13983_s1 + $0x1320] ss:$16 sps:$4 sm:$0xff]   ;;  %v9999_v16 = vld [vmem:[%s13983_s1 + $0x1328] ss:$16 sps:$4 sm:$0xff]  }
 0x22c   :  { %6726 = vmatprep.subr.bf16.mxu0 %v9914_v17  ;;  %7414 = vmatprep.subr.bf16.mxu1 %v9917_v20  ;;  %v10004_v17 = vld [vmem:[%s13983_s1 + $0x1344] ss:$16 sps:$4 sm:$0xff]   ;;  %v10007_v20 = vld [vmem:[%s13983_s1 + $0x134c] ss:$16 sps:$4 sm:$0xff]  }
 0x22f   :  { %6727 = vmatpush1.bf16.msra.mxu0 %v9912_v15  ;;  %7415 = vmatpush1.bf16.msra.mxu1 %v9915_v22  ;;  %v10002_v15 = vld [vmem:[%s13983_s1 + $0x1340] ss:$16 sps:$4 sm:$0xff]   ;;  %v10005_v22 = vld [vmem:[%s13983_s1 + $0x1348] ss:$16 sps:$4 sm:$0xff]  }
 0x230   :  { %6728 = vmatprep.subr.bf16.mxu0 %v9920_v23  ;;  %7416 = vmatprep.subr.bf16.mxu1 %v9923_v18  ;;  %v10010_v23 = vld [vmem:[%s13983_s1 + $0x1364] ss:$16 sps:$4 sm:$0xff]   ;;  %v10013_v18 = vld [vmem:[%s13983_s1 + $0x136c] ss:$16 sps:$4 sm:$0xff]  }
 0x233   :  { %6729 = vmatpush1.bf16.msra.mxu0 %v9918_v25  ;;  %7417 = vmatpush1.bf16.msra.mxu1 %v9921_v26  ;;  %v10008_v25 = vld [vmem:[%s13983_s1 + $0x1360] ss:$16 sps:$4 sm:$0xff]   ;;  %v10011_v26 = vld [vmem:[%s13983_s1 + $0x1368] ss:$16 sps:$4 sm:$0xff]  }
 0x234   :  { %6730 = vmatprep.subr.bf16.mxu0 %v9926_v27  ;;  %7418 = vmatprep.subr.bf16.mxu1 %v9929_v28  ;;  %v10016_v27 = vld [vmem:[%s13983_s1 + $0x1384] ss:$16 sps:$4 sm:$0xff]   ;;  %v10019_v28 = vld [vmem:[%s13983_s1 + $0x138c] ss:$16 sps:$4 sm:$0xff]  }
 0x237   :  { %6731 = vmatpush1.bf16.msra.mxu0 %v9924_v29  ;;  %7419 = vmatpush1.bf16.msra.mxu1 %v9927_v30  ;;  %v10014_v29 = vld [vmem:[%s13983_s1 + $0x1380] ss:$16 sps:$4 sm:$0xff]   ;;  %v10017_v30 = vld [vmem:[%s13983_s1 + $0x1388] ss:$16 sps:$4 sm:$0xff]  }
 0x238   :  { %6732 = vmatprep.subr.bf16.mxu0 %v9932_v31  ;;  %7420 = vmatprep.subr.bf16.mxu1 %v9935_v32  ;;  %v10022_v31 = vld [vmem:[%s13983_s1 + $0x13a4] ss:$16 sps:$4 sm:$0xff]   ;;  %v10025_v32 = vld [vmem:[%s13983_s1 + $0x13ac] ss:$16 sps:$4 sm:$0xff]  }
 0x23b   :  { %6733 = vmatpush1.bf16.msra.mxu0 %v9930_v33  ;;  %7421 = vmatpush1.bf16.msra.mxu1 %v9933_v34  ;;  %v10020_v33 = vld [vmem:[%s13983_s1 + $0x13a0] ss:$16 sps:$4 sm:$0xff]   ;;  %v10023_v34 = vld [vmem:[%s13983_s1 + $0x13a8] ss:$16 sps:$4 sm:$0xff]  }
 0x23c   :  { %6734 = vmatprep.subr.bf16.mxu0 %v9938_v35  ;;  %7422 = vmatprep.subr.bf16.mxu1 %v9941_v36  ;;  %v10028_v35 = vld [vmem:[%s13983_s1 + $0x13c4] ss:$16 sps:$4 sm:$0xff]   ;;  %v10031_v36 = vld [vmem:[%s13983_s1 + $0x13cc] ss:$16 sps:$4 sm:$0xff]  }
 0x23f   :  { %6735 = vmatpush1.bf16.msra.mxu0 %v9936_v37  ;;  %7423 = vmatpush1.bf16.msra.mxu1 %v9939_v38  ;;  %v10026_v37 = vld [vmem:[%s13983_s1 + $0x13c0] ss:$16 sps:$4 sm:$0xff]   ;;  %v10029_v38 = vld [vmem:[%s13983_s1 + $0x13c8] ss:$16 sps:$4 sm:$0xff]  }
 0x240   :  { %6747 = vmatprep.subr.bf16.mxu0 %v9944_v39  ;;  %7435 = vmatprep.subr.bf16.mxu1 %v9947_v40  ;;  %v10034_v39 = vld [vmem:[%s13983_s1 + $0x13e4] ss:$16 sps:$4 sm:$0xff]   ;;  %v10037_v40 = vld [vmem:[%s13983_s1 + $0x13ec] ss:$16 sps:$4 sm:$0xff]  }
 0x242   :  { %6737 = vmatmul.mubr.bf16.vlgmr.msra.gmra.mrb[0].mxu0 %v7916_v41  ;;  %7425 = vmatmul.mubr.bf16.vlgmr.msra.gmra.mrb[0].mxu1 %v7916_v41  ;;  %v10032_v41 = vld [vmem:[%s13983_s1 + $0x13e0] ss:$16 sps:$4 sm:$0xff]  }
 0x243   :  { %6748 = vmatpush1.bf16.msra.mxu0 %v9942_v42  ;;  %7436 = vmatpush1.bf16.msra.mxu1 %v9945_v43  ;;  %v10035_v42 = vld [vmem:[%s13983_s1 + $0x13e8] ss:$16 sps:$4 sm:$0xff]   ;;  %v10040_v43 = vld [vmem:[%s13983_s1 + $0x1404] ss:$16 sps:$4 sm:$0xff]  }
 0x244   :  { %6749 = vmatprep.subr.bf16.mxu0 %v9950_v44  ;;  %7437 = vmatprep.subr.bf16.mxu1 %v9953_v14  ;;  %v10043_v44 = vld [vmem:[%s13983_s1 + $0x140c] ss:$16 sps:$4 sm:$0xff]   ;;  %v7918_v14 = vcombine.low %v12494_v19, %v12499_v24  ;;  %v10041_v19 = vld [vmem:[%s13983_s1 + $0x1408] ss:$16 sps:$4 sm:$0xff]   ;;  %v10046_v24 = vld [vmem:[%s13983_s1 + $0x1424] ss:$16 sps:$4 sm:$0xff]  }
 0x245   :  { %6779 = vmatprep.mubr.bf16.mxu0 %v7919_v21  ;;  %7467 = vmatprep.mubr.bf16.mxu1 %v7919_v21  ;;  %v12702_v21 = vld [vmem:[%s13984_s0 + $0x50] sm:$0xff] }
 0x247   :  { %6750 = vmatpush1.bf16.msra.mxu0 %v9948_v45  ;;  %7438 = vmatpush1.bf16.msra.mxu1 %v9951_v46  ;;  %v12707_v45 = vld [vmem:[%s13984_s0 + $0xd0] sm:$0xff] }
 0x248   :  { %6751 = vmatprep.subr.bf16.mxu0 %v9956_v47  ;;  %7439 = vmatprep.subr.bf16.mxu1 %v9959_v48  ;;  %v10038_v46 = vld [vmem:[%s13983_s1 + $0x1400] ss:$16 sps:$4 sm:$0xff]   ;;  %v10049_v47 = vld [vmem:[%s13983_s1 + $0x142c] ss:$16 sps:$4 sm:$0xff]   ;;  %v7921_v48 = vcombine.high %v12702_v21, %v12707_v45 }
 0x24b   :  { %6752 = vmatpush1.bf16.msra.mxu0 %v9954_v49  ;;  %7440 = vmatpush1.bf16.msra.mxu1 %v9957_v50  ;;  %v10044_v49 = vld [vmem:[%s13983_s1 + $0x1420] ss:$16 sps:$4 sm:$0xff]   ;;  %v10047_v50 = vld [vmem:[%s13983_s1 + $0x1428] ss:$16 sps:$4 sm:$0xff]  }
 0x24c   :  { %6753 = vmatprep.subr.bf16.mxu0 %v9962_v51  ;;  %7441 = vmatprep.subr.bf16.mxu1 %v9965_v52  ;;  %v10052_v51 = vld [vmem:[%s13983_s1 + $0x1444] ss:$16 sps:$4 sm:$0xff]   ;;  %v10055_v52 = vld [vmem:[%s13983_s1 + $0x144c] ss:$16 sps:$4 sm:$0xff]  }
 0x24f   :  { %6754 = vmatpush1.bf16.msra.mxu0 %v9960_v53  ;;  %7442 = vmatpush1.bf16.msra.mxu1 %v9963_v54  ;;  %v10050_v53 = vld [vmem:[%s13983_s1 + $0x1440] ss:$16 sps:$4 sm:$0xff]   ;;  %v10053_v54 = vld [vmem:[%s13983_s1 + $0x1448] ss:$16 sps:$4 sm:$0xff]  }
 0x250   :  { %6755 = vmatprep.subr.bf16.mxu0 %v9968_v55  ;;  %7443 = vmatprep.subr.bf16.mxu1 %v9971_v56  ;;  %v10058_v55 = vld [vmem:[%s13983_s1 + $0x1464] ss:$16 sps:$4 sm:$0xff]   ;;  %v10061_v56 = vld [vmem:[%s13983_s1 + $0x146c] ss:$16 sps:$4 sm:$0xff]  }
 0x253   :  { %6756 = vmatpush1.bf16.msra.mxu0 %v9966_v57  ;;  %7444 = vmatpush1.bf16.msra.mxu1 %v9969_v58  ;;  %v10056_v57 = vld [vmem:[%s13983_s1 + $0x1460] ss:$16 sps:$4 sm:$0xff]   ;;  %v10059_v58 = vld [vmem:[%s13983_s1 + $0x1468] ss:$16 sps:$4 sm:$0xff]  }
 0x254   :  { %6757 = vmatprep.subr.bf16.mxu0 %v9974_v59  ;;  %7445 = vmatprep.subr.bf16.mxu1 %v9977_v60  ;;  %v10064_v59 = vld [vmem:[%s13983_s1 + $0x1484] ss:$16 sps:$4 sm:$0xff]   ;;  %v10067_v60 = vld [vmem:[%s13983_s1 + $0x148c] ss:$16 sps:$4 sm:$0xff]  }
 0x257   :  { %6758 = vmatpush1.bf16.msra.mxu0 %v9972_v61  ;;  %7446 = vmatpush1.bf16.msra.mxu1 %v9975_v62  ;;  %v10062_v61 = vld [vmem:[%s13983_s1 + $0x1480] ss:$16 sps:$4 sm:$0xff]   ;;  %v10065_v62 = vld [vmem:[%s13983_s1 + $0x1488] ss:$16 sps:$4 sm:$0xff]  }
 0x258   :  { %6759 = vmatprep.subr.bf16.mxu0 %v9980_v63  ;;  %7447 = vmatprep.subr.bf16.mxu1 %v9983_v0  ;;  %v10070_v63 = vld [vmem:[%s13983_s1 + $0x14a4] ss:$16 sps:$4 sm:$0xff]   ;;  %v10073_v0 = vld [vmem:[%s13983_s1 + $0x14ac] ss:$16 sps:$4 sm:$0xff]  }
 0x25b   :  { %6760 = vmatpush1.bf16.msra.mxu0 %v9978_v1  ;;  %7448 = vmatpush1.bf16.msra.mxu1 %v9981_v2  ;;  %v10068_v1 = vld [vmem:[%s13983_s1 + $0x14a0] ss:$16 sps:$4 sm:$0xff]   ;;  %v10071_v2 = vld [vmem:[%s13983_s1 + $0x14a8] ss:$16 sps:$4 sm:$0xff]  }
 0x25c   :  { %6761 = vmatprep.subr.bf16.mxu0 %v9986_v3  ;;  %7449 = vmatprep.subr.bf16.mxu1 %v9989_v4  ;;  %v10076_v3 = vld [vmem:[%s13983_s1 + $0x14c4] ss:$16 sps:$4 sm:$0xff]   ;;  %v10079_v4 = vld [vmem:[%s13983_s1 + $0x14cc] ss:$16 sps:$4 sm:$0xff]  }
 0x25f   :  { %6762 = vmatpush1.bf16.msra.mxu0 %v9984_v5  ;;  %7450 = vmatpush1.bf16.msra.mxu1 %v9987_v6  ;;  %v10074_v5 = vld [vmem:[%s13983_s1 + $0x14c0] ss:$16 sps:$4 sm:$0xff]   ;;  %v10077_v6 = vld [vmem:[%s13983_s1 + $0x14c8] ss:$16 sps:$4 sm:$0xff]  }
 0x260   :  { %6763 = vmatprep.subr.bf16.mxu0 %v9992_v7  ;;  %7451 = vmatprep.subr.bf16.mxu1 %v9995_v8  ;;  %v10082_v7 = vld [vmem:[%s13983_s1 + $0x14e4] ss:$16 sps:$4 sm:$0xff]   ;;  %v10085_v8 = vld [vmem:[%s13983_s1 + $0x14ec] ss:$16 sps:$4 sm:$0xff]  }
 0x263   :  { %6764 = vmatpush1.bf16.msra.mxu0 %v9990_v9  ;;  %7452 = vmatpush1.bf16.msra.mxu1 %v9993_v10  ;;  %v10080_v9 = vld [vmem:[%s13983_s1 + $0x14e0] ss:$16 sps:$4 sm:$0xff]   ;;  %v10083_v10 = vld [vmem:[%s13983_s1 + $0x14e8] ss:$16 sps:$4 sm:$0xff]  }
 0x264   :  { %6765 = vmatprep.subr.bf16.mxu0 %v9998_v11  ;;  %7453 = vmatprep.subr.bf16.mxu1 %v10001_v12  ;;  %v10088_v11 = vld [vmem:[%s13983_s1 + $0x1504] ss:$16 sps:$4 sm:$0xff]   ;;  %v10091_v12 = vld [vmem:[%s13983_s1 + $0x150c] ss:$16 sps:$4 sm:$0xff]  }
 0x267   :  { %6766 = vmatpush1.bf16.msra.mxu0 %v9996_v13  ;;  %7454 = vmatpush1.bf16.msra.mxu1 %v9999_v16  ;;  %v10086_v13 = vld [vmem:[%s13983_s1 + $0x1500] ss:$16 sps:$4 sm:$0xff]   ;;  %v10089_v16 = vld [vmem:[%s13983_s1 + $0x1508] ss:$16 sps:$4 sm:$0xff]  }
 0x268   :  { %6767 = vmatprep.subr.bf16.mxu0 %v10004_v17  ;;  %7455 = vmatprep.subr.bf16.mxu1 %v10007_v20  ;;  %v10094_v17 = vld [vmem:[%s13983_s1 + $0x1524] ss:$16 sps:$4 sm:$0xff]   ;;  %v10097_v20 = vld [vmem:[%s13983_s1 + $0x152c] ss:$16 sps:$4 sm:$0xff]  }
 0x26b   :  { %6768 = vmatpush1.bf16.msra.mxu0 %v10002_v15  ;;  %7456 = vmatpush1.bf16.msra.mxu1 %v10005_v22  ;;  %v10092_v15 = vld [vmem:[%s13983_s1 + $0x1520] ss:$16 sps:$4 sm:$0xff]   ;;  %v10095_v22 = vld [vmem:[%s13983_s1 + $0x1528] ss:$16 sps:$4 sm:$0xff]  }
 0x26c   :  { %6769 = vmatprep.subr.bf16.mxu0 %v10010_v23  ;;  %7457 = vmatprep.subr.bf16.mxu1 %v10013_v18  ;;  %v10100_v23 = vld [vmem:[%s13983_s1 + $0x1544] ss:$16 sps:$4 sm:$0xff]   ;;  %v10103_v18 = vld [vmem:[%s13983_s1 + $0x154c] ss:$16 sps:$4 sm:$0xff]  }
 0x26f   :  { %6770 = vmatpush1.bf16.msra.mxu0 %v10008_v25  ;;  %7458 = vmatpush1.bf16.msra.mxu1 %v10011_v26  ;;  %v10098_v25 = vld [vmem:[%s13983_s1 + $0x1540] ss:$16 sps:$4 sm:$0xff]   ;;  %v10101_v26 = vld [vmem:[%s13983_s1 + $0x1548] ss:$16 sps:$4 sm:$0xff]  }
 0x270   :  { %6771 = vmatprep.subr.bf16.mxu0 %v10016_v27  ;;  %7459 = vmatprep.subr.bf16.mxu1 %v10019_v28  ;;  %v10106_v27 = vld [vmem:[%s13983_s1 + $0x1564] ss:$16 sps:$4 sm:$0xff]   ;;  %v10109_v28 = vld [vmem:[%s13983_s1 + $0x156c] ss:$16 sps:$4 sm:$0xff]  }
 0x273   :  { %6772 = vmatpush1.bf16.msra.mxu0 %v10014_v29  ;;  %7460 = vmatpush1.bf16.msra.mxu1 %v10017_v30  ;;  %v10104_v29 = vld [vmem:[%s13983_s1 + $0x1560] ss:$16 sps:$4 sm:$0xff]   ;;  %v10107_v30 = vld [vmem:[%s13983_s1 + $0x1568] ss:$16 sps:$4 sm:$0xff]  }
 0x274   :  { %6773 = vmatprep.subr.bf16.mxu0 %v10022_v31  ;;  %7461 = vmatprep.subr.bf16.mxu1 %v10025_v32  ;;  %v10112_v31 = vld [vmem:[%s13983_s1 + $0x1584] ss:$16 sps:$4 sm:$0xff]   ;;  %v10115_v32 = vld [vmem:[%s13983_s1 + $0x158c] ss:$16 sps:$4 sm:$0xff]  }
 0x277   :  { %6774 = vmatpush1.bf16.msra.mxu0 %v10020_v33  ;;  %7462 = vmatpush1.bf16.msra.mxu1 %v10023_v34  ;;  %v10110_v33 = vld [vmem:[%s13983_s1 + $0x1580] ss:$16 sps:$4 sm:$0xff]   ;;  %v10113_v34 = vld [vmem:[%s13983_s1 + $0x1588] ss:$16 sps:$4 sm:$0xff]  }
 0x278   :  { %6775 = vmatprep.subr.bf16.mxu0 %v10028_v35  ;;  %7463 = vmatprep.subr.bf16.mxu1 %v10031_v36  ;;  %v10118_v35 = vld [vmem:[%s13983_s1 + $0x15a4] ss:$16 sps:$4 sm:$0xff]   ;;  %v10121_v36 = vld [vmem:[%s13983_s1 + $0x15ac] ss:$16 sps:$4 sm:$0xff]  }
 0x27b   :  { %6776 = vmatpush1.bf16.msra.mxu0 %v10026_v37  ;;  %7464 = vmatpush1.bf16.msra.mxu1 %v10029_v38  ;;  %v10116_v37 = vld [vmem:[%s13983_s1 + $0x15a0] ss:$16 sps:$4 sm:$0xff]   ;;  %v10119_v38 = vld [vmem:[%s13983_s1 + $0x15a8] ss:$16 sps:$4 sm:$0xff]  }
 0x27c   :  { %6777 = vmatprep.subr.bf16.mxu0 %v10034_v39  ;;  %7465 = vmatprep.subr.bf16.mxu1 %v10037_v40  ;;  %v10124_v39 = vld [vmem:[%s13983_s1 + $0x15c4] ss:$16 sps:$4 sm:$0xff]   ;;  %v10127_v40 = vld [vmem:[%s13983_s1 + $0x15cc] ss:$16 sps:$4 sm:$0xff]  }
 0x27f   :  { %6778 = vmatpush1.bf16.msra.mxu0 %v10032_v41  ;;  %7466 = vmatpush1.bf16.msra.mxu1 %v10035_v42  ;;  %v10122_v41 = vld [vmem:[%s13983_s1 + $0x15c0] ss:$16 sps:$4 sm:$0xff]   ;;  %v10125_v42 = vld [vmem:[%s13983_s1 + $0x15c8] ss:$16 sps:$4 sm:$0xff]  }
 0x280   :  { %6790 = vmatprep.subr.bf16.mxu0 %v10040_v43  ;;  %7478 = vmatprep.subr.bf16.mxu1 %v10043_v44  ;;  %v10130_v43 = vld [vmem:[%s13983_s1 + $0x15e4] ss:$16 sps:$4 sm:$0xff]   ;;  %v10133_v44 = vld [vmem:[%s13983_s1 + $0x15ec] ss:$16 sps:$4 sm:$0xff]  }
 0x282   :  { %6780 = vmatmul.mubr.bf16.vlgmr.msra.gmra.mrb[0].mxu0 %v7918_v14  ;;  %7468 = vmatmul.mubr.bf16.vlgmr.msra.gmra.mrb[0].mxu1 %v7918_v14  ;;  %v10128_v14 = vld [vmem:[%s13983_s1 + $0x15e0] ss:$16 sps:$4 sm:$0xff]  }
 0x283   :  { %6791 = vmatpush1.bf16.msra.mxu0 %v10038_v46  ;;  %7479 = vmatpush1.bf16.msra.mxu1 %v10041_v19  ;;  %v10131_v46 = vld [vmem:[%s13983_s1 + $0x15e8] ss:$16 sps:$4 sm:$0xff]   ;;  %v10136_v19 = vld [vmem:[%s13983_s1 + $0x1604] ss:$16 sps:$4 sm:$0xff]  }
 0x284   :  { %6792 = vmatprep.subr.bf16.mxu0 %v10046_v24  ;;  %7480 = vmatprep.subr.bf16.mxu1 %v10049_v47  ;;  %v10139_v24 = vld [vmem:[%s13983_s1 + $0x160c] ss:$16 sps:$4 sm:$0xff]   ;;  %v7920_v47 = vcombine.low %v12702_v21, %v12707_v45  ;;  %v10137_v21 = vld [vmem:[%s13983_s1 + $0x1608] ss:$16 sps:$4 sm:$0xff]   ;;  %v10142_v45 = vld [vmem:[%s13983_s1 + $0x1624] ss:$16 sps:$4 sm:$0xff]  }
 0x285   :  { %6822 = vmatprep.mubr.bf16.mxu0 %v7921_v48  ;;  %7510 = vmatprep.mubr.bf16.mxu1 %v7921_v48  ;;  %v12908_v48 = vld [vmem:[%s13984_s0 + $0x58] sm:$0xff] }
 0x287   :  { %6793 = vmatpush1.bf16.msra.mxu0 %v10044_v49  ;;  %7481 = vmatpush1.bf16.msra.mxu1 %v10047_v50  ;;  %v12913_v49 = vld [vmem:[%s13984_s0 + $0xd8] sm:$0xff]  ;;  %v10134_v50 = vld [vmem:[%s13983_s1 + $0x1600] ss:$16 sps:$4 sm:$0xff]  }
 0x288   :  { %6794 = vmatprep.subr.bf16.mxu0 %v10052_v51  ;;  %7482 = vmatprep.subr.bf16.mxu1 %v10055_v52  ;;  %v10145_v51 = vld [vmem:[%s13983_s1 + $0x162c] ss:$16 sps:$4 sm:$0xff]   ;;  %v7923_v52 = vcombine.high %v12908_v48, %v12913_v49 }
 0x28b   :  { %6795 = vmatpush1.bf16.msra.mxu0 %v10050_v53  ;;  %7483 = vmatpush1.bf16.msra.mxu1 %v10053_v54  ;;  %v10140_v53 = vld [vmem:[%s13983_s1 + $0x1620] ss:$16 sps:$4 sm:$0xff]   ;;  %v10143_v54 = vld [vmem:[%s13983_s1 + $0x1628] ss:$16 sps:$4 sm:$0xff]  }
 0x28c   :  { %6796 = vmatprep.subr.bf16.mxu0 %v10058_v55  ;;  %7484 = vmatprep.subr.bf16.mxu1 %v10061_v56  ;;  %v10148_v55 = vld [vmem:[%s13983_s1 + $0x1644] ss:$16 sps:$4 sm:$0xff]   ;;  %v10151_v56 = vld [vmem:[%s13983_s1 + $0x164c] ss:$16 sps:$4 sm:$0xff]  }
 0x28f   :  { %6797 = vmatpush1.bf16.msra.mxu0 %v10056_v57  ;;  %7485 = vmatpush1.bf16.msra.mxu1 %v10059_v58  ;;  %v10146_v57 = vld [vmem:[%s13983_s1 + $0x1640] ss:$16 sps:$4 sm:$0xff]   ;;  %v10149_v58 = vld [vmem:[%s13983_s1 + $0x1648] ss:$16 sps:$4 sm:$0xff]  }
 0x290   :  { %6798 = vmatprep.subr.bf16.mxu0 %v10064_v59  ;;  %7486 = vmatprep.subr.bf16.mxu1 %v10067_v60  ;;  %v10154_v59 = vld [vmem:[%s13983_s1 + $0x1664] ss:$16 sps:$4 sm:$0xff]   ;;  %v10157_v60 = vld [vmem:[%s13983_s1 + $0x166c] ss:$16 sps:$4 sm:$0xff]  }
 0x293   :  { %6799 = vmatpush1.bf16.msra.mxu0 %v10062_v61  ;;  %7487 = vmatpush1.bf16.msra.mxu1 %v10065_v62  ;;  %v10152_v61 = vld [vmem:[%s13983_s1 + $0x1660] ss:$16 sps:$4 sm:$0xff]   ;;  %v10155_v62 = vld [vmem:[%s13983_s1 + $0x1668] ss:$16 sps:$4 sm:$0xff]  }
 0x294   :  { %6800 = vmatprep.subr.bf16.mxu0 %v10070_v63  ;;  %7488 = vmatprep.subr.bf16.mxu1 %v10073_v0  ;;  %v10160_v63 = vld [vmem:[%s13983_s1 + $0x1684] ss:$16 sps:$4 sm:$0xff]   ;;  %v10163_v0 = vld [vmem:[%s13983_s1 + $0x168c] ss:$16 sps:$4 sm:$0xff]  }
 0x297   :  { %6801 = vmatpush1.bf16.msra.mxu0 %v10068_v1  ;;  %7489 = vmatpush1.bf16.msra.mxu1 %v10071_v2  ;;  %v10158_v1 = vld [vmem:[%s13983_s1 + $0x1680] ss:$16 sps:$4 sm:$0xff]   ;;  %v10161_v2 = vld [vmem:[%s13983_s1 + $0x1688] ss:$16 sps:$4 sm:$0xff]  }
 0x298   :  { %6802 = vmatprep.subr.bf16.mxu0 %v10076_v3  ;;  %7490 = vmatprep.subr.bf16.mxu1 %v10079_v4  ;;  %v10166_v3 = vld [vmem:[%s13983_s1 + $0x16a4] ss:$16 sps:$4 sm:$0xff]   ;;  %v10169_v4 = vld [vmem:[%s13983_s1 + $0x16ac] ss:$16 sps:$4 sm:$0xff]  }
 0x29b   :  { %6803 = vmatpush1.bf16.msra.mxu0 %v10074_v5  ;;  %7491 = vmatpush1.bf16.msra.mxu1 %v10077_v6  ;;  %v10164_v5 = vld [vmem:[%s13983_s1 + $0x16a0] ss:$16 sps:$4 sm:$0xff]   ;;  %v10167_v6 = vld [vmem:[%s13983_s1 + $0x16a8] ss:$16 sps:$4 sm:$0xff]  }
 0x29c   :  { %6804 = vmatprep.subr.bf16.mxu0 %v10082_v7  ;;  %7492 = vmatprep.subr.bf16.mxu1 %v10085_v8  ;;  %v10172_v7 = vld [vmem:[%s13983_s1 + $0x16c4] ss:$16 sps:$4 sm:$0xff]   ;;  %v10175_v8 = vld [vmem:[%s13983_s1 + $0x16cc] ss:$16 sps:$4 sm:$0xff]  }
 0x29f   :  { %6805 = vmatpush1.bf16.msra.mxu0 %v10080_v9  ;;  %7493 = vmatpush1.bf16.msra.mxu1 %v10083_v10  ;;  %v10170_v9 = vld [vmem:[%s13983_s1 + $0x16c0] ss:$16 sps:$4 sm:$0xff]   ;;  %v10173_v10 = vld [vmem:[%s13983_s1 + $0x16c8] ss:$16 sps:$4 sm:$0xff]  }
 0x2a0   :  { %6806 = vmatprep.subr.bf16.mxu0 %v10088_v11  ;;  %7494 = vmatprep.subr.bf16.mxu1 %v10091_v12  ;;  %v10178_v11 = vld [vmem:[%s13983_s1 + $0x16e4] ss:$16 sps:$4 sm:$0xff]   ;;  %v10181_v12 = vld [vmem:[%s13983_s1 + $0x16ec] ss:$16 sps:$4 sm:$0xff]  }
 0x2a3   :  { %6807 = vmatpush1.bf16.msra.mxu0 %v10086_v13  ;;  %7495 = vmatpush1.bf16.msra.mxu1 %v10089_v16  ;;  %v10176_v13 = vld [vmem:[%s13983_s1 + $0x16e0] ss:$16 sps:$4 sm:$0xff]   ;;  %v10179_v16 = vld [vmem:[%s13983_s1 + $0x16e8] ss:$16 sps:$4 sm:$0xff]  }
 0x2a4   :  { %6808 = vmatprep.subr.bf16.mxu0 %v10094_v17  ;;  %7496 = vmatprep.subr.bf16.mxu1 %v10097_v20  ;;  %v10184_v17 = vld [vmem:[%s13983_s1 + $0x1704] ss:$16 sps:$4 sm:$0xff]   ;;  %v10187_v20 = vld [vmem:[%s13983_s1 + $0x170c] ss:$16 sps:$4 sm:$0xff]  }
 0x2a7   :  { %6809 = vmatpush1.bf16.msra.mxu0 %v10092_v15  ;;  %7497 = vmatpush1.bf16.msra.mxu1 %v10095_v22  ;;  %v10182_v15 = vld [vmem:[%s13983_s1 + $0x1700] ss:$16 sps:$4 sm:$0xff]   ;;  %v10185_v22 = vld [vmem:[%s13983_s1 + $0x1708] ss:$16 sps:$4 sm:$0xff]  }
 0x2a8   :  { %6810 = vmatprep.subr.bf16.mxu0 %v10100_v23  ;;  %7498 = vmatprep.subr.bf16.mxu1 %v10103_v18  ;;  %v10190_v23 = vld [vmem:[%s13983_s1 + $0x1724] ss:$16 sps:$4 sm:$0xff]   ;;  %v10193_v18 = vld [vmem:[%s13983_s1 + $0x172c] ss:$16 sps:$4 sm:$0xff]  }
 0x2ab   :  { %6811 = vmatpush1.bf16.msra.mxu0 %v10098_v25  ;;  %7499 = vmatpush1.bf16.msra.mxu1 %v10101_v26  ;;  %v10188_v25 = vld [vmem:[%s13983_s1 + $0x1720] ss:$16 sps:$4 sm:$0xff]   ;;  %v10191_v26 = vld [vmem:[%s13983_s1 + $0x1728] ss:$16 sps:$4 sm:$0xff]  }
 0x2ac   :  { %6812 = vmatprep.subr.bf16.mxu0 %v10106_v27  ;;  %7500 = vmatprep.subr.bf16.mxu1 %v10109_v28  ;;  %v10196_v27 = vld [vmem:[%s13983_s1 + $0x1744] ss:$16 sps:$4 sm:$0xff]   ;;  %v10199_v28 = vld [vmem:[%s13983_s1 + $0x174c] ss:$16 sps:$4 sm:$0xff]  }
 0x2af   :  { %6813 = vmatpush1.bf16.msra.mxu0 %v10104_v29  ;;  %7501 = vmatpush1.bf16.msra.mxu1 %v10107_v30  ;;  %v10194_v29 = vld [vmem:[%s13983_s1 + $0x1740] ss:$16 sps:$4 sm:$0xff]   ;;  %v10197_v30 = vld [vmem:[%s13983_s1 + $0x1748] ss:$16 sps:$4 sm:$0xff]  }
 0x2b0   :  { %6814 = vmatprep.subr.bf16.mxu0 %v10112_v31  ;;  %7502 = vmatprep.subr.bf16.mxu1 %v10115_v32  ;;  %v10202_v31 = vld [vmem:[%s13983_s1 + $0x1764] ss:$16 sps:$4 sm:$0xff]   ;;  %v10205_v32 = vld [vmem:[%s13983_s1 + $0x176c] ss:$16 sps:$4 sm:$0xff]  }
 0x2b3   :  { %6815 = vmatpush1.bf16.msra.mxu0 %v10110_v33  ;;  %7503 = vmatpush1.bf16.msra.mxu1 %v10113_v34  ;;  %v10200_v33 = vld [vmem:[%s13983_s1 + $0x1760] ss:$16 sps:$4 sm:$0xff]   ;;  %v10203_v34 = vld [vmem:[%s13983_s1 + $0x1768] ss:$16 sps:$4 sm:$0xff]  }
 0x2b4   :  { %6816 = vmatprep.subr.bf16.mxu0 %v10118_v35  ;;  %7504 = vmatprep.subr.bf16.mxu1 %v10121_v36  ;;  %v10208_v35 = vld [vmem:[%s13983_s1 + $0x1784] ss:$16 sps:$4 sm:$0xff]   ;;  %v10211_v36 = vld [vmem:[%s13983_s1 + $0x178c] ss:$16 sps:$4 sm:$0xff]  }
 0x2b7   :  { %6817 = vmatpush1.bf16.msra.mxu0 %v10116_v37  ;;  %7505 = vmatpush1.bf16.msra.mxu1 %v10119_v38  ;;  %v10206_v37 = vld [vmem:[%s13983_s1 + $0x1780] ss:$16 sps:$4 sm:$0xff]   ;;  %v10209_v38 = vld [vmem:[%s13983_s1 + $0x1788] ss:$16 sps:$4 sm:$0xff]  }
 0x2b8   :  { %6818 = vmatprep.subr.bf16.mxu0 %v10124_v39  ;;  %7506 = vmatprep.subr.bf16.mxu1 %v10127_v40  ;;  %v10214_v39 = vld [vmem:[%s13983_s1 + $0x17a4] ss:$16 sps:$4 sm:$0xff]   ;;  %v10217_v40 = vld [vmem:[%s13983_s1 + $0x17ac] ss:$16 sps:$4 sm:$0xff]  }
 0x2bb   :  { %6819 = vmatpush1.bf16.msra.mxu0 %v10122_v41  ;;  %7507 = vmatpush1.bf16.msra.mxu1 %v10125_v42  ;;  %v10212_v41 = vld [vmem:[%s13983_s1 + $0x17a0] ss:$16 sps:$4 sm:$0xff]   ;;  %v10215_v42 = vld [vmem:[%s13983_s1 + $0x17a8] ss:$16 sps:$4 sm:$0xff]  }
 0x2bc   :  { %6820 = vmatprep.subr.bf16.mxu0 %v10130_v43  ;;  %7508 = vmatprep.subr.bf16.mxu1 %v10133_v44  ;;  %v10220_v43 = vld [vmem:[%s13983_s1 + $0x17c4] ss:$16 sps:$4 sm:$0xff]   ;;  %v10223_v44 = vld [vmem:[%s13983_s1 + $0x17cc] ss:$16 sps:$4 sm:$0xff]  }
 0x2bf   :  { %6821 = vmatpush1.bf16.msra.mxu0 %v10128_v14  ;;  %7509 = vmatpush1.bf16.msra.mxu1 %v10131_v46  ;;  %v10218_v14 = vld [vmem:[%s13983_s1 + $0x17c0] ss:$16 sps:$4 sm:$0xff]   ;;  %v10221_v46 = vld [vmem:[%s13983_s1 + $0x17c8] ss:$16 sps:$4 sm:$0xff]  }
 0x2c0   :  { %6833 = vmatprep.subr.bf16.mxu0 %v10136_v19  ;;  %7521 = vmatprep.subr.bf16.mxu1 %v10139_v24  ;;  %v10226_v19 = vld [vmem:[%s13983_s1 + $0x17e4] ss:$16 sps:$4 sm:$0xff]   ;;  %v10229_v24 = vld [vmem:[%s13983_s1 + $0x17ec] ss:$16 sps:$4 sm:$0xff]  }
 0x2c2   :  { %6823 = vmatmul.mubr.bf16.vlgmr.msra.gmra.mrb[0].mxu0 %v7920_v47  ;;  %7511 = vmatmul.mubr.bf16.vlgmr.msra.gmra.mrb[0].mxu1 %v7920_v47  ;;  %v10224_v47 = vld [vmem:[%s13983_s1 + $0x17e0] ss:$16 sps:$4 sm:$0xff]  }
 0x2c3   :  { %6834 = vmatpush1.bf16.msra.mxu0 %v10134_v50  ;;  %7522 = vmatpush1.bf16.msra.mxu1 %v10137_v21  ;;  %v10227_v50 = vld [vmem:[%s13983_s1 + $0x17e8] ss:$16 sps:$4 sm:$0xff]   ;;  %v10232_v21 = vld [vmem:[%s13983_s1 + $0x1804] ss:$16 sps:$4 sm:$0xff]  }
 0x2c4   :  { %6835 = vmatprep.subr.bf16.mxu0 %v10142_v45  ;;  %7523 = vmatprep.subr.bf16.mxu1 %v10145_v51  ;;  %v10235_v45 = vld [vmem:[%s13983_s1 + $0x180c] ss:$16 sps:$4 sm:$0xff]   ;;  %v7922_v51 = vcombine.low %v12908_v48, %v12913_v49  ;;  %v10233_v48 = vld [vmem:[%s13983_s1 + $0x1808] ss:$16 sps:$4 sm:$0xff]   ;;  %v10238_v49 = vld [vmem:[%s13983_s1 + $0x1824] ss:$16 sps:$4 sm:$0xff]  }
 0x2c5   :  { %6865 = vmatprep.mubr.bf16.mxu0 %v7923_v52  ;;  %7553 = vmatprep.mubr.bf16.mxu1 %v7923_v52  ;;  %v13114_v52 = vld [vmem:[%s13984_s0 + $0x60] sm:$0xff] }
 0x2c7   :  { %6836 = vmatpush1.bf16.msra.mxu0 %v10140_v53  ;;  %7524 = vmatpush1.bf16.msra.mxu1 %v10143_v54  ;;  %v13119_v53 = vld [vmem:[%s13984_s0 + $0xe0] sm:$0xff] }
 0x2c8   :  { %6837 = vmatprep.subr.bf16.mxu0 %v10148_v55  ;;  %7525 = vmatprep.subr.bf16.mxu1 %v10151_v56  ;;  %v10230_v54 = vld [vmem:[%s13983_s1 + $0x1800] ss:$16 sps:$4 sm:$0xff]   ;;  %v10241_v55 = vld [vmem:[%s13983_s1 + $0x182c] ss:$16 sps:$4 sm:$0xff]   ;;  %v7925_v56 = vcombine.high %v13114_v52, %v13119_v53 }
 0x2cb   :  { %6838 = vmatpush1.bf16.msra.mxu0 %v10146_v57  ;;  %7526 = vmatpush1.bf16.msra.mxu1 %v10149_v58  ;;  %v10236_v57 = vld [vmem:[%s13983_s1 + $0x1820] ss:$16 sps:$4 sm:$0xff]   ;;  %v10239_v58 = vld [vmem:[%s13983_s1 + $0x1828] ss:$16 sps:$4 sm:$0xff]  }
 0x2cc   :  { %6839 = vmatprep.subr.bf16.mxu0 %v10154_v59  ;;  %7527 = vmatprep.subr.bf16.mxu1 %v10157_v60  ;;  %v10244_v59 = vld [vmem:[%s13983_s1 + $0x1844] ss:$16 sps:$4 sm:$0xff]   ;;  %v10247_v60 = vld [vmem:[%s13983_s1 + $0x184c] ss:$16 sps:$4 sm:$0xff]  }
 0x2cf   :  { %6840 = vmatpush1.bf16.msra.mxu0 %v10152_v61  ;;  %7528 = vmatpush1.bf16.msra.mxu1 %v10155_v62  ;;  %v10242_v61 = vld [vmem:[%s13983_s1 + $0x1840] ss:$16 sps:$4 sm:$0xff]   ;;  %v10245_v62 = vld [vmem:[%s13983_s1 + $0x1848] ss:$16 sps:$4 sm:$0xff]  }
 0x2d0   :  { %6841 = vmatprep.subr.bf16.mxu0 %v10160_v63  ;;  %7529 = vmatprep.subr.bf16.mxu1 %v10163_v0  ;;  %v10250_v63 = vld [vmem:[%s13983_s1 + $0x1864] ss:$16 sps:$4 sm:$0xff]   ;;  %v10253_v0 = vld [vmem:[%s13983_s1 + $0x186c] ss:$16 sps:$4 sm:$0xff]  }
 0x2d3   :  { %6842 = vmatpush1.bf16.msra.mxu0 %v10158_v1  ;;  %7530 = vmatpush1.bf16.msra.mxu1 %v10161_v2  ;;  %v10248_v1 = vld [vmem:[%s13983_s1 + $0x1860] ss:$16 sps:$4 sm:$0xff]   ;;  %v10251_v2 = vld [vmem:[%s13983_s1 + $0x1868] ss:$16 sps:$4 sm:$0xff]  }
 0x2d4   :  { %6843 = vmatprep.subr.bf16.mxu0 %v10166_v3  ;;  %7531 = vmatprep.subr.bf16.mxu1 %v10169_v4  ;;  %v10256_v3 = vld [vmem:[%s13983_s1 + $0x1884] ss:$16 sps:$4 sm:$0xff]   ;;  %v10259_v4 = vld [vmem:[%s13983_s1 + $0x188c] ss:$16 sps:$4 sm:$0xff]  }
 0x2d7   :  { %6844 = vmatpush1.bf16.msra.mxu0 %v10164_v5  ;;  %7532 = vmatpush1.bf16.msra.mxu1 %v10167_v6  ;;  %v10254_v5 = vld [vmem:[%s13983_s1 + $0x1880] ss:$16 sps:$4 sm:$0xff]   ;;  %v10257_v6 = vld [vmem:[%s13983_s1 + $0x1888] ss:$16 sps:$4 sm:$0xff]  }
 0x2d8   :  { %6845 = vmatprep.subr.bf16.mxu0 %v10172_v7  ;;  %7533 = vmatprep.subr.bf16.mxu1 %v10175_v8  ;;  %v10262_v7 = vld [vmem:[%s13983_s1 + $0x18a4] ss:$16 sps:$4 sm:$0xff]   ;;  %v10265_v8 = vld [vmem:[%s13983_s1 + $0x18ac] ss:$16 sps:$4 sm:$0xff]  }
 0x2db   :  { %6846 = vmatpush1.bf16.msra.mxu0 %v10170_v9  ;;  %7534 = vmatpush1.bf16.msra.mxu1 %v10173_v10  ;;  %v10260_v9 = vld [vmem:[%s13983_s1 + $0x18a0] ss:$16 sps:$4 sm:$0xff]   ;;  %v10263_v10 = vld [vmem:[%s13983_s1 + $0x18a8] ss:$16 sps:$4 sm:$0xff]  }
 0x2dc   :  { %6847 = vmatprep.subr.bf16.mxu0 %v10178_v11  ;;  %7535 = vmatprep.subr.bf16.mxu1 %v10181_v12  ;;  %v10268_v11 = vld [vmem:[%s13983_s1 + $0x18c4] ss:$16 sps:$4 sm:$0xff]   ;;  %v10271_v12 = vld [vmem:[%s13983_s1 + $0x18cc] ss:$16 sps:$4 sm:$0xff]  }
 0x2df   :  { %6848 = vmatpush1.bf16.msra.mxu0 %v10176_v13  ;;  %7536 = vmatpush1.bf16.msra.mxu1 %v10179_v16  ;;  %v10266_v13 = vld [vmem:[%s13983_s1 + $0x18c0] ss:$16 sps:$4 sm:$0xff]   ;;  %v10269_v16 = vld [vmem:[%s13983_s1 + $0x18c8] ss:$16 sps:$4 sm:$0xff]  }
 0x2e0   :  { %6849 = vmatprep.subr.bf16.mxu0 %v10184_v17  ;;  %7537 = vmatprep.subr.bf16.mxu1 %v10187_v20  ;;  %v10274_v17 = vld [vmem:[%s13983_s1 + $0x18e4] ss:$16 sps:$4 sm:$0xff]   ;;  %v10277_v20 = vld [vmem:[%s13983_s1 + $0x18ec] ss:$16 sps:$4 sm:$0xff]  }
 0x2e3   :  { %6850 = vmatpush1.bf16.msra.mxu0 %v10182_v15  ;;  %7538 = vmatpush1.bf16.msra.mxu1 %v10185_v22  ;;  %v10272_v15 = vld [vmem:[%s13983_s1 + $0x18e0] ss:$16 sps:$4 sm:$0xff]   ;;  %v10275_v22 = vld [vmem:[%s13983_s1 + $0x18e8] ss:$16 sps:$4 sm:$0xff]  }
 0x2e4   :  { %6851 = vmatprep.subr.bf16.mxu0 %v10190_v23  ;;  %7539 = vmatprep.subr.bf16.mxu1 %v10193_v18  ;;  %v10280_v23 = vld [vmem:[%s13983_s1 + $0x1904] ss:$16 sps:$4 sm:$0xff]   ;;  %v10283_v18 = vld [vmem:[%s13983_s1 + $0x190c] ss:$16 sps:$4 sm:$0xff]  }
 0x2e7   :  { %6852 = vmatpush1.bf16.msra.mxu0 %v10188_v25  ;;  %7540 = vmatpush1.bf16.msra.mxu1 %v10191_v26  ;;  %v10278_v25 = vld [vmem:[%s13983_s1 + $0x1900] ss:$16 sps:$4 sm:$0xff]   ;;  %v10281_v26 = vld [vmem:[%s13983_s1 + $0x1908] ss:$16 sps:$4 sm:$0xff]  }
 0x2e8   :  { %6853 = vmatprep.subr.bf16.mxu0 %v10196_v27  ;;  %7541 = vmatprep.subr.bf16.mxu1 %v10199_v28  ;;  %v10286_v27 = vld [vmem:[%s13983_s1 + $0x1924] ss:$16 sps:$4 sm:$0xff]   ;;  %v10289_v28 = vld [vmem:[%s13983_s1 + $0x192c] ss:$16 sps:$4 sm:$0xff]  }
 0x2eb   :  { %6854 = vmatpush1.bf16.msra.mxu0 %v10194_v29  ;;  %7542 = vmatpush1.bf16.msra.mxu1 %v10197_v30  ;;  %v10284_v29 = vld [vmem:[%s13983_s1 + $0x1920] ss:$16 sps:$4 sm:$0xff]   ;;  %v10287_v30 = vld [vmem:[%s13983_s1 + $0x1928] ss:$16 sps:$4 sm:$0xff]  }
 0x2ec   :  { %6855 = vmatprep.subr.bf16.mxu0 %v10202_v31  ;;  %7543 = vmatprep.subr.bf16.mxu1 %v10205_v32  ;;  %v10292_v31 = vld [vmem:[%s13983_s1 + $0x1944] ss:$16 sps:$4 sm:$0xff]   ;;  %v10295_v32 = vld [vmem:[%s13983_s1 + $0x194c] ss:$16 sps:$4 sm:$0xff]  }
 0x2ef   :  { %6856 = vmatpush1.bf16.msra.mxu0 %v10200_v33  ;;  %7544 = vmatpush1.bf16.msra.mxu1 %v10203_v34  ;;  %v10290_v33 = vld [vmem:[%s13983_s1 + $0x1940] ss:$16 sps:$4 sm:$0xff]   ;;  %v10293_v34 = vld [vmem:[%s13983_s1 + $0x1948] ss:$16 sps:$4 sm:$0xff]  }
 0x2f0   :  { %6857 = vmatprep.subr.bf16.mxu0 %v10208_v35  ;;  %7545 = vmatprep.subr.bf16.mxu1 %v10211_v36  ;;  %v10298_v35 = vld [vmem:[%s13983_s1 + $0x1964] ss:$16 sps:$4 sm:$0xff]   ;;  %v10301_v36 = vld [vmem:[%s13983_s1 + $0x196c] ss:$16 sps:$4 sm:$0xff]  }
 0x2f3   :  { %6858 = vmatpush1.bf16.msra.mxu0 %v10206_v37  ;;  %7546 = vmatpush1.bf16.msra.mxu1 %v10209_v38  ;;  %v10296_v37 = vld [vmem:[%s13983_s1 + $0x1960] ss:$16 sps:$4 sm:$0xff]   ;;  %v10299_v38 = vld [vmem:[%s13983_s1 + $0x1968] ss:$16 sps:$4 sm:$0xff]  }
 0x2f4   :  { %6859 = vmatprep.subr.bf16.mxu0 %v10214_v39  ;;  %7547 = vmatprep.subr.bf16.mxu1 %v10217_v40  ;;  %v10304_v39 = vld [vmem:[%s13983_s1 + $0x1984] ss:$16 sps:$4 sm:$0xff]   ;;  %v10307_v40 = vld [vmem:[%s13983_s1 + $0x198c] ss:$16 sps:$4 sm:$0xff]  }
 0x2f7   :  { %6860 = vmatpush1.bf16.msra.mxu0 %v10212_v41  ;;  %7548 = vmatpush1.bf16.msra.mxu1 %v10215_v42  ;;  %v10302_v41 = vld [vmem:[%s13983_s1 + $0x1980] ss:$16 sps:$4 sm:$0xff]   ;;  %v10305_v42 = vld [vmem:[%s13983_s1 + $0x1988] ss:$16 sps:$4 sm:$0xff]  }
 0x2f8   :  { %6861 = vmatprep.subr.bf16.mxu0 %v10220_v43  ;;  %7549 = vmatprep.subr.bf16.mxu1 %v10223_v44  ;;  %v10310_v43 = vld [vmem:[%s13983_s1 + $0x19a4] ss:$16 sps:$4 sm:$0xff]   ;;  %v10313_v44 = vld [vmem:[%s13983_s1 + $0x19ac] ss:$16 sps:$4 sm:$0xff]  }
 0x2fb   :  { %6862 = vmatpush1.bf16.msra.mxu0 %v10218_v14  ;;  %7550 = vmatpush1.bf16.msra.mxu1 %v10221_v46  ;;  %v10308_v14 = vld [vmem:[%s13983_s1 + $0x19a0] ss:$16 sps:$4 sm:$0xff]   ;;  %v10311_v46 = vld [vmem:[%s13983_s1 + $0x19a8] ss:$16 sps:$4 sm:$0xff]  }
 0x2fc   :  { %6863 = vmatprep.subr.bf16.mxu0 %v10226_v19  ;;  %7551 = vmatprep.subr.bf16.mxu1 %v10229_v24  ;;  %v10316_v19 = vld [vmem:[%s13983_s1 + $0x19c4] ss:$16 sps:$4 sm:$0xff]   ;;  %v10319_v24 = vld [vmem:[%s13983_s1 + $0x19cc] ss:$16 sps:$4 sm:$0xff]  }
 0x2ff   :  { %6864 = vmatpush1.bf16.msra.mxu0 %v10224_v47  ;;  %7552 = vmatpush1.bf16.msra.mxu1 %v10227_v50  ;;  %v10314_v47 = vld [vmem:[%s13983_s1 + $0x19c0] ss:$16 sps:$4 sm:$0xff]   ;;  %v10317_v50 = vld [vmem:[%s13983_s1 + $0x19c8] ss:$16 sps:$4 sm:$0xff]  }
 0x300   :  { %6876 = vmatprep.subr.bf16.mxu0 %v10232_v21  ;;  %7564 = vmatprep.subr.bf16.mxu1 %v10235_v45  ;;  %v10322_v21 = vld [vmem:[%s13983_s1 + $0x19e4] ss:$16 sps:$4 sm:$0xff]   ;;  %v10325_v45 = vld [vmem:[%s13983_s1 + $0x19ec] ss:$16 sps:$4 sm:$0xff]  }
 0x302   :  { %6866 = vmatmul.mubr.bf16.vlgmr.msra.gmra.mrb[0].mxu0 %v7922_v51  ;;  %7554 = vmatmul.mubr.bf16.vlgmr.msra.gmra.mrb[0].mxu1 %v7922_v51  ;;  %v10320_v51 = vld [vmem:[%s13983_s1 + $0x19e0] ss:$16 sps:$4 sm:$0xff]  }
 0x303   :  { %6877 = vmatpush1.bf16.msra.mxu0 %v10230_v54  ;;  %7565 = vmatpush1.bf16.msra.mxu1 %v10233_v48  ;;  %v10323_v54 = vld [vmem:[%s13983_s1 + $0x19e8] ss:$16 sps:$4 sm:$0xff]   ;;  %v10328_v48 = vld [vmem:[%s13983_s1 + $0x1a04] ss:$16 sps:$4 sm:$0xff]  }
 0x304   :  { %6878 = vmatprep.subr.bf16.mxu0 %v10238_v49  ;;  %7566 = vmatprep.subr.bf16.mxu1 %v10241_v55  ;;  %v10331_v49 = vld [vmem:[%s13983_s1 + $0x1a0c] ss:$16 sps:$4 sm:$0xff]   ;;  %v7924_v55 = vcombine.low %v13114_v52, %v13119_v53  ;;  %v10329_v52 = vld [vmem:[%s13983_s1 + $0x1a08] ss:$16 sps:$4 sm:$0xff]   ;;  %v10334_v53 = vld [vmem:[%s13983_s1 + $0x1a24] ss:$16 sps:$4 sm:$0xff]  }
 0x305   :  { %6908 = vmatprep.mubr.bf16.mxu0 %v7925_v56  ;;  %7596 = vmatprep.mubr.bf16.mxu1 %v7925_v56  ;;  %v13320_v56 = vld [vmem:[%s13984_s0 + $0x68] sm:$0xff] }
 0x307   :  { %6879 = vmatpush1.bf16.msra.mxu0 %v10236_v57  ;;  %7567 = vmatpush1.bf16.msra.mxu1 %v10239_v58  ;;  %v13325_v57 = vld [vmem:[%s13984_s0 + $0xe8] sm:$0xff]  ;;  %v10326_v58 = vld [vmem:[%s13983_s1 + $0x1a00] ss:$16 sps:$4 sm:$0xff]  }
 0x308   :  { %6880 = vmatprep.subr.bf16.mxu0 %v10244_v59  ;;  %7568 = vmatprep.subr.bf16.mxu1 %v10247_v60  ;;  %v10337_v59 = vld [vmem:[%s13983_s1 + $0x1a2c] ss:$16 sps:$4 sm:$0xff]   ;;  %v7927_v60 = vcombine.high %v13320_v56, %v13325_v57 }
 0x30b   :  { %6881 = vmatpush1.bf16.msra.mxu0 %v10242_v61  ;;  %7569 = vmatpush1.bf16.msra.mxu1 %v10245_v62  ;;  %v10332_v61 = vld [vmem:[%s13983_s1 + $0x1a20] ss:$16 sps:$4 sm:$0xff]   ;;  %v10335_v62 = vld [vmem:[%s13983_s1 + $0x1a28] ss:$16 sps:$4 sm:$0xff]  }
 0x30c   :  { %6882 = vmatprep.subr.bf16.mxu0 %v10250_v63  ;;  %7570 = vmatprep.subr.bf16.mxu1 %v10253_v0  ;;  %v10340_v63 = vld [vmem:[%s13983_s1 + $0x1a44] ss:$16 sps:$4 sm:$0xff]   ;;  %v10343_v0 = vld [vmem:[%s13983_s1 + $0x1a4c] ss:$16 sps:$4 sm:$0xff]  }
 0x30f   :  { %6883 = vmatpush1.bf16.msra.mxu0 %v10248_v1  ;;  %7571 = vmatpush1.bf16.msra.mxu1 %v10251_v2  ;;  %v10338_v1 = vld [vmem:[%s13983_s1 + $0x1a40] ss:$16 sps:$4 sm:$0xff]   ;;  %v10341_v2 = vld [vmem:[%s13983_s1 + $0x1a48] ss:$16 sps:$4 sm:$0xff]  }
 0x310   :  { %6884 = vmatprep.subr.bf16.mxu0 %v10256_v3  ;;  %7572 = vmatprep.subr.bf16.mxu1 %v10259_v4  ;;  %v10346_v3 = vld [vmem:[%s13983_s1 + $0x1a64] ss:$16 sps:$4 sm:$0xff]   ;;  %v10349_v4 = vld [vmem:[%s13983_s1 + $0x1a6c] ss:$16 sps:$4 sm:$0xff]  }
 0x313   :  { %6885 = vmatpush1.bf16.msra.mxu0 %v10254_v5  ;;  %7573 = vmatpush1.bf16.msra.mxu1 %v10257_v6  ;;  %v10344_v5 = vld [vmem:[%s13983_s1 + $0x1a60] ss:$16 sps:$4 sm:$0xff]   ;;  %v10347_v6 = vld [vmem:[%s13983_s1 + $0x1a68] ss:$16 sps:$4 sm:$0xff]  }
 0x314   :  { %6886 = vmatprep.subr.bf16.mxu0 %v10262_v7  ;;  %7574 = vmatprep.subr.bf16.mxu1 %v10265_v8  ;;  %v10352_v7 = vld [vmem:[%s13983_s1 + $0x1a84] ss:$16 sps:$4 sm:$0xff]   ;;  %v10355_v8 = vld [vmem:[%s13983_s1 + $0x1a8c] ss:$16 sps:$4 sm:$0xff]  }
 0x317   :  { %6887 = vmatpush1.bf16.msra.mxu0 %v10260_v9  ;;  %7575 = vmatpush1.bf16.msra.mxu1 %v10263_v10  ;;  %v10350_v9 = vld [vmem:[%s13983_s1 + $0x1a80] ss:$16 sps:$4 sm:$0xff]   ;;  %v10353_v10 = vld [vmem:[%s13983_s1 + $0x1a88] ss:$16 sps:$4 sm:$0xff]  }
 0x318   :  { %6888 = vmatprep.subr.bf16.mxu0 %v10268_v11  ;;  %7576 = vmatprep.subr.bf16.mxu1 %v10271_v12  ;;  %v10358_v11 = vld [vmem:[%s13983_s1 + $0x1aa4] ss:$16 sps:$4 sm:$0xff]   ;;  %v10361_v12 = vld [vmem:[%s13983_s1 + $0x1aac] ss:$16 sps:$4 sm:$0xff]  }
 0x31b   :  { %6889 = vmatpush1.bf16.msra.mxu0 %v10266_v13  ;;  %7577 = vmatpush1.bf16.msra.mxu1 %v10269_v16  ;;  %v10356_v13 = vld [vmem:[%s13983_s1 + $0x1aa0] ss:$16 sps:$4 sm:$0xff]   ;;  %v10359_v16 = vld [vmem:[%s13983_s1 + $0x1aa8] ss:$16 sps:$4 sm:$0xff]  }
 0x31c   :  { %6890 = vmatprep.subr.bf16.mxu0 %v10274_v17  ;;  %7578 = vmatprep.subr.bf16.mxu1 %v10277_v20  ;;  %v10364_v17 = vld [vmem:[%s13983_s1 + $0x1ac4] ss:$16 sps:$4 sm:$0xff]   ;;  %v10367_v20 = vld [vmem:[%s13983_s1 + $0x1acc] ss:$16 sps:$4 sm:$0xff]  }
 0x31f   :  { %6891 = vmatpush1.bf16.msra.mxu0 %v10272_v15  ;;  %7579 = vmatpush1.bf16.msra.mxu1 %v10275_v22  ;;  %v10362_v15 = vld [vmem:[%s13983_s1 + $0x1ac0] ss:$16 sps:$4 sm:$0xff]   ;;  %v10365_v22 = vld [vmem:[%s13983_s1 + $0x1ac8] ss:$16 sps:$4 sm:$0xff]  }
 0x320   :  { %6892 = vmatprep.subr.bf16.mxu0 %v10280_v23  ;;  %7580 = vmatprep.subr.bf16.mxu1 %v10283_v18  ;;  %v10370_v23 = vld [vmem:[%s13983_s1 + $0x1ae4] ss:$16 sps:$4 sm:$0xff]   ;;  %v10373_v18 = vld [vmem:[%s13983_s1 + $0x1aec] ss:$16 sps:$4 sm:$0xff]  }
 0x323   :  { %6893 = vmatpush1.bf16.msra.mxu0 %v10278_v25  ;;  %7581 = vmatpush1.bf16.msra.mxu1 %v10281_v26  ;;  %v10368_v25 = vld [vmem:[%s13983_s1 + $0x1ae0] ss:$16 sps:$4 sm:$0xff]   ;;  %v10371_v26 = vld [vmem:[%s13983_s1 + $0x1ae8] ss:$16 sps:$4 sm:$0xff]  }
 0x324   :  { %6894 = vmatprep.subr.bf16.mxu0 %v10286_v27  ;;  %7582 = vmatprep.subr.bf16.mxu1 %v10289_v28  ;;  %v10376_v27 = vld [vmem:[%s13983_s1 + $0x1b04] ss:$16 sps:$4 sm:$0xff]   ;;  %v10379_v28 = vld [vmem:[%s13983_s1 + $0x1b0c] ss:$16 sps:$4 sm:$0xff]  }
 0x327   :  { %6895 = vmatpush1.bf16.msra.mxu0 %v10284_v29  ;;  %7583 = vmatpush1.bf16.msra.mxu1 %v10287_v30  ;;  %v10374_v29 = vld [vmem:[%s13983_s1 + $0x1b00] ss:$16 sps:$4 sm:$0xff]   ;;  %v10377_v30 = vld [vmem:[%s13983_s1 + $0x1b08] ss:$16 sps:$4 sm:$0xff]  }
 0x328   :  { %6896 = vmatprep.subr.bf16.mxu0 %v10292_v31  ;;  %7584 = vmatprep.subr.bf16.mxu1 %v10295_v32  ;;  %v10382_v31 = vld [vmem:[%s13983_s1 + $0x1b24] ss:$16 sps:$4 sm:$0xff]   ;;  %v10385_v32 = vld [vmem:[%s13983_s1 + $0x1b2c] ss:$16 sps:$4 sm:$0xff]  }
 0x32b   :  { %6897 = vmatpush1.bf16.msra.mxu0 %v10290_v33  ;;  %7585 = vmatpush1.bf16.msra.mxu1 %v10293_v34  ;;  %v10380_v33 = vld [vmem:[%s13983_s1 + $0x1b20] ss:$16 sps:$4 sm:$0xff]   ;;  %v10383_v34 = vld [vmem:[%s13983_s1 + $0x1b28] ss:$16 sps:$4 sm:$0xff]  }
 0x32c   :  { %6898 = vmatprep.subr.bf16.mxu0 %v10298_v35  ;;  %7586 = vmatprep.subr.bf16.mxu1 %v10301_v36  ;;  %v10388_v35 = vld [vmem:[%s13983_s1 + $0x1b44] ss:$16 sps:$4 sm:$0xff]   ;;  %v10391_v36 = vld [vmem:[%s13983_s1 + $0x1b4c] ss:$16 sps:$4 sm:$0xff]  }
 0x32f   :  { %6899 = vmatpush1.bf16.msra.mxu0 %v10296_v37  ;;  %7587 = vmatpush1.bf16.msra.mxu1 %v10299_v38  ;;  %v10386_v37 = vld [vmem:[%s13983_s1 + $0x1b40] ss:$16 sps:$4 sm:$0xff]   ;;  %v10389_v38 = vld [vmem:[%s13983_s1 + $0x1b48] ss:$16 sps:$4 sm:$0xff]  }
 0x330   :  { %6900 = vmatprep.subr.bf16.mxu0 %v10304_v39  ;;  %7588 = vmatprep.subr.bf16.mxu1 %v10307_v40  ;;  %v10394_v39 = vld [vmem:[%s13983_s1 + $0x1b64] ss:$16 sps:$4 sm:$0xff]   ;;  %v10397_v40 = vld [vmem:[%s13983_s1 + $0x1b6c] ss:$16 sps:$4 sm:$0xff]  }
 0x333   :  { %6901 = vmatpush1.bf16.msra.mxu0 %v10302_v41  ;;  %7589 = vmatpush1.bf16.msra.mxu1 %v10305_v42  ;;  %v10392_v41 = vld [vmem:[%s13983_s1 + $0x1b60] ss:$16 sps:$4 sm:$0xff]   ;;  %v10395_v42 = vld [vmem:[%s13983_s1 + $0x1b68] ss:$16 sps:$4 sm:$0xff]  }
 0x334   :  { %6902 = vmatprep.subr.bf16.mxu0 %v10310_v43  ;;  %7590 = vmatprep.subr.bf16.mxu1 %v10313_v44  ;;  %v10400_v43 = vld [vmem:[%s13983_s1 + $0x1b84] ss:$16 sps:$4 sm:$0xff]   ;;  %v10403_v44 = vld [vmem:[%s13983_s1 + $0x1b8c] ss:$16 sps:$4 sm:$0xff]  }
 0x337   :  { %6903 = vmatpush1.bf16.msra.mxu0 %v10308_v14  ;;  %7591 = vmatpush1.bf16.msra.mxu1 %v10311_v46  ;;  %v10398_v14 = vld [vmem:[%s13983_s1 + $0x1b80] ss:$16 sps:$4 sm:$0xff]   ;;  %v10401_v46 = vld [vmem:[%s13983_s1 + $0x1b88] ss:$16 sps:$4 sm:$0xff]  }
 0x338   :  { %6904 = vmatprep.subr.bf16.mxu0 %v10316_v19  ;;  %7592 = vmatprep.subr.bf16.mxu1 %v10319_v24  ;;  %v10406_v19 = vld [vmem:[%s13983_s1 + $0x1ba4] ss:$16 sps:$4 sm:$0xff]   ;;  %v10409_v24 = vld [vmem:[%s13983_s1 + $0x1bac] ss:$16 sps:$4 sm:$0xff]  }
 0x33b   :  { %6905 = vmatpush1.bf16.msra.mxu0 %v10314_v47  ;;  %7593 = vmatpush1.bf16.msra.mxu1 %v10317_v50  ;;  %v10404_v47 = vld [vmem:[%s13983_s1 + $0x1ba0] ss:$16 sps:$4 sm:$0xff]   ;;  %v10407_v50 = vld [vmem:[%s13983_s1 + $0x1ba8] ss:$16 sps:$4 sm:$0xff]  }
 0x33c   :  { %6906 = vmatprep.subr.bf16.mxu0 %v10322_v21  ;;  %7594 = vmatprep.subr.bf16.mxu1 %v10325_v45  ;;  %v10412_v21 = vld [vmem:[%s13983_s1 + $0x1bc4] ss:$16 sps:$4 sm:$0xff]   ;;  %v10415_v45 = vld [vmem:[%s13983_s1 + $0x1bcc] ss:$16 sps:$4 sm:$0xff]  }
 0x33f   :  { %6907 = vmatpush1.bf16.msra.mxu0 %v10320_v51  ;;  %7595 = vmatpush1.bf16.msra.mxu1 %v10323_v54  ;;  %v10410_v51 = vld [vmem:[%s13983_s1 + $0x1bc0] ss:$16 sps:$4 sm:$0xff]   ;;  %v10413_v54 = vld [vmem:[%s13983_s1 + $0x1bc8] ss:$16 sps:$4 sm:$0xff]  }
 0x340   :  { %6919 = vmatprep.subr.bf16.mxu0 %v10328_v48  ;;  %7607 = vmatprep.subr.bf16.mxu1 %v10331_v49  ;;  %v10418_v48 = vld [vmem:[%s13983_s1 + $0x1be4] ss:$16 sps:$4 sm:$0xff]   ;;  %v10421_v49 = vld [vmem:[%s13983_s1 + $0x1bec] ss:$16 sps:$4 sm:$0xff]  }
 0x342   :  { %6909 = vmatmul.mubr.bf16.vlgmr.msra.gmra.mrb[0].mxu0 %v7924_v55  ;;  %7597 = vmatmul.mubr.bf16.vlgmr.msra.gmra.mrb[0].mxu1 %v7924_v55  ;;  %v10416_v55 = vld [vmem:[%s13983_s1 + $0x1be0] ss:$16 sps:$4 sm:$0xff]  }
 0x343   :  { %6920 = vmatpush1.bf16.msra.mxu0 %v10326_v58  ;;  %7608 = vmatpush1.bf16.msra.mxu1 %v10329_v52  ;;  %v10419_v58 = vld [vmem:[%s13983_s1 + $0x1be8] ss:$16 sps:$4 sm:$0xff]   ;;  %v10424_v52 = vld [vmem:[%s13983_s1 + $0x1c04] ss:$16 sps:$4 sm:$0xff]  }
 0x344   :  { %6921 = vmatprep.subr.bf16.mxu0 %v10334_v53  ;;  %7609 = vmatprep.subr.bf16.mxu1 %v10337_v59  ;;  %v10427_v53 = vld [vmem:[%s13983_s1 + $0x1c0c] ss:$16 sps:$4 sm:$0xff]   ;;  %v7926_v59 = vcombine.low %v13320_v56, %v13325_v57  ;;  %v10425_v56 = vld [vmem:[%s13983_s1 + $0x1c08] ss:$16 sps:$4 sm:$0xff]   ;;  %v10430_v57 = vld [vmem:[%s13983_s1 + $0x1c24] ss:$16 sps:$4 sm:$0xff]  }
 0x345   :  { %6951 = vmatprep.mubr.bf16.mxu0 %v7927_v60  ;;  %7639 = vmatprep.mubr.bf16.mxu1 %v7927_v60  ;;  %v13526_v60 = vld [vmem:[%s13984_s0 + $0x70] sm:$0xff] }
 0x347   :  { %6922 = vmatpush1.bf16.msra.mxu0 %v10332_v61  ;;  %7610 = vmatpush1.bf16.msra.mxu1 %v10335_v62  ;;  %v13531_v61 = vld [vmem:[%s13984_s0 + $0xf0] sm:$0xff] }
 0x348   :  { %6923 = vmatprep.subr.bf16.mxu0 %v10340_v63  ;;  %7611 = vmatprep.subr.bf16.mxu1 %v10343_v0  ;;  %v10422_v62 = vld [vmem:[%s13983_s1 + $0x1c00] ss:$16 sps:$4 sm:$0xff]   ;;  %v10433_v63 = vld [vmem:[%s13983_s1 + $0x1c2c] ss:$16 sps:$4 sm:$0xff]   ;;  %v7929_v0 = vcombine.high %v13526_v60, %v13531_v61 }
 0x34b   :  { %6924 = vmatpush1.bf16.msra.mxu0 %v10338_v1  ;;  %7612 = vmatpush1.bf16.msra.mxu1 %v10341_v2  ;;  %v10428_v1 = vld [vmem:[%s13983_s1 + $0x1c20] ss:$16 sps:$4 sm:$0xff]   ;;  %v10431_v2 = vld [vmem:[%s13983_s1 + $0x1c28] ss:$16 sps:$4 sm:$0xff]  }
 0x34c   :  { %6925 = vmatprep.subr.bf16.mxu0 %v10346_v3  ;;  %7613 = vmatprep.subr.bf16.mxu1 %v10349_v4  ;;  %v10436_v3 = vld [vmem:[%s13983_s1 + $0x1c44] ss:$16 sps:$4 sm:$0xff]   ;;  %v10439_v4 = vld [vmem:[%s13983_s1 + $0x1c4c] ss:$16 sps:$4 sm:$0xff]  }
 0x34f   :  { %6926 = vmatpush1.bf16.msra.mxu0 %v10344_v5  ;;  %7614 = vmatpush1.bf16.msra.mxu1 %v10347_v6  ;;  %v10434_v5 = vld [vmem:[%s13983_s1 + $0x1c40] ss:$16 sps:$4 sm:$0xff]   ;;  %v10437_v6 = vld [vmem:[%s13983_s1 + $0x1c48] ss:$16 sps:$4 sm:$0xff]  }
 0x350   :  { %6927 = vmatprep.subr.bf16.mxu0 %v10352_v7  ;;  %7615 = vmatprep.subr.bf16.mxu1 %v10355_v8  ;;  %v10442_v7 = vld [vmem:[%s13983_s1 + $0x1c64] ss:$16 sps:$4 sm:$0xff]   ;;  %v10445_v8 = vld [vmem:[%s13983_s1 + $0x1c6c] ss:$16 sps:$4 sm:$0xff]  }
 0x353   :  { %6928 = vmatpush1.bf16.msra.mxu0 %v10350_v9  ;;  %7616 = vmatpush1.bf16.msra.mxu1 %v10353_v10  ;;  %v10440_v9 = vld [vmem:[%s13983_s1 + $0x1c60] ss:$16 sps:$4 sm:$0xff]   ;;  %v10443_v10 = vld [vmem:[%s13983_s1 + $0x1c68] ss:$16 sps:$4 sm:$0xff]  }
 0x354   :  { %6929 = vmatprep.subr.bf16.mxu0 %v10358_v11  ;;  %7617 = vmatprep.subr.bf16.mxu1 %v10361_v12  ;;  %v10448_v11 = vld [vmem:[%s13983_s1 + $0x1c84] ss:$16 sps:$4 sm:$0xff]   ;;  %v10451_v12 = vld [vmem:[%s13983_s1 + $0x1c8c] ss:$16 sps:$4 sm:$0xff]  }
 0x357   :  { %6930 = vmatpush1.bf16.msra.mxu0 %v10356_v13  ;;  %7618 = vmatpush1.bf16.msra.mxu1 %v10359_v16  ;;  %v10446_v13 = vld [vmem:[%s13983_s1 + $0x1c80] ss:$16 sps:$4 sm:$0xff]   ;;  %v10449_v16 = vld [vmem:[%s13983_s1 + $0x1c88] ss:$16 sps:$4 sm:$0xff]  }
 0x358   :  { %6931 = vmatprep.subr.bf16.mxu0 %v10364_v17  ;;  %7619 = vmatprep.subr.bf16.mxu1 %v10367_v20  ;;  %v10454_v17 = vld [vmem:[%s13983_s1 + $0x1ca4] ss:$16 sps:$4 sm:$0xff]   ;;  %v10457_v20 = vld [vmem:[%s13983_s1 + $0x1cac] ss:$16 sps:$4 sm:$0xff]  }
 0x35b   :  { %6932 = vmatpush1.bf16.msra.mxu0 %v10362_v15  ;;  %7620 = vmatpush1.bf16.msra.mxu1 %v10365_v22  ;;  %v10452_v15 = vld [vmem:[%s13983_s1 + $0x1ca0] ss:$16 sps:$4 sm:$0xff]   ;;  %v10455_v22 = vld [vmem:[%s13983_s1 + $0x1ca8] ss:$16 sps:$4 sm:$0xff]  }
 0x35c   :  { %6933 = vmatprep.subr.bf16.mxu0 %v10370_v23  ;;  %7621 = vmatprep.subr.bf16.mxu1 %v10373_v18  ;;  %v10460_v23 = vld [vmem:[%s13983_s1 + $0x1cc4] ss:$16 sps:$4 sm:$0xff]   ;;  %v10463_v18 = vld [vmem:[%s13983_s1 + $0x1ccc] ss:$16 sps:$4 sm:$0xff]  }
 0x35f   :  { %6934 = vmatpush1.bf16.msra.mxu0 %v10368_v25  ;;  %7622 = vmatpush1.bf16.msra.mxu1 %v10371_v26  ;;  %v10458_v25 = vld [vmem:[%s13983_s1 + $0x1cc0] ss:$16 sps:$4 sm:$0xff]   ;;  %v10461_v26 = vld [vmem:[%s13983_s1 + $0x1cc8] ss:$16 sps:$4 sm:$0xff]  }
 0x360   :  { %6935 = vmatprep.subr.bf16.mxu0 %v10376_v27  ;;  %7623 = vmatprep.subr.bf16.mxu1 %v10379_v28  ;;  %v10466_v27 = vld [vmem:[%s13983_s1 + $0x1ce4] ss:$16 sps:$4 sm:$0xff]   ;;  %v10469_v28 = vld [vmem:[%s13983_s1 + $0x1cec] ss:$16 sps:$4 sm:$0xff]  }
 0x363   :  { %6936 = vmatpush1.bf16.msra.mxu0 %v10374_v29  ;;  %7624 = vmatpush1.bf16.msra.mxu1 %v10377_v30  ;;  %v10464_v29 = vld [vmem:[%s13983_s1 + $0x1ce0] ss:$16 sps:$4 sm:$0xff]   ;;  %v10467_v30 = vld [vmem:[%s13983_s1 + $0x1ce8] ss:$16 sps:$4 sm:$0xff]  }
 0x364   :  { %6937 = vmatprep.subr.bf16.mxu0 %v10382_v31  ;;  %7625 = vmatprep.subr.bf16.mxu1 %v10385_v32  ;;  %v10472_v31 = vld [vmem:[%s13983_s1 + $0x1d04] ss:$16 sps:$4 sm:$0xff]   ;;  %v10475_v32 = vld [vmem:[%s13983_s1 + $0x1d0c] ss:$16 sps:$4 sm:$0xff]  }
 0x367   :  { %6938 = vmatpush1.bf16.msra.mxu0 %v10380_v33  ;;  %7626 = vmatpush1.bf16.msra.mxu1 %v10383_v34  ;;  %v10470_v33 = vld [vmem:[%s13983_s1 + $0x1d00] ss:$16 sps:$4 sm:$0xff]   ;;  %v10473_v34 = vld [vmem:[%s13983_s1 + $0x1d08] ss:$16 sps:$4 sm:$0xff]  }
 0x368   :  { %6939 = vmatprep.subr.bf16.mxu0 %v10388_v35  ;;  %7627 = vmatprep.subr.bf16.mxu1 %v10391_v36  ;;  %v10478_v35 = vld [vmem:[%s13983_s1 + $0x1d24] ss:$16 sps:$4 sm:$0xff]   ;;  %v10481_v36 = vld [vmem:[%s13983_s1 + $0x1d2c] ss:$16 sps:$4 sm:$0xff]  }
 0x36b   :  { %6940 = vmatpush1.bf16.msra.mxu0 %v10386_v37  ;;  %7628 = vmatpush1.bf16.msra.mxu1 %v10389_v38  ;;  %v10476_v37 = vld [vmem:[%s13983_s1 + $0x1d20] ss:$16 sps:$4 sm:$0xff]   ;;  %v10479_v38 = vld [vmem:[%s13983_s1 + $0x1d28] ss:$16 sps:$4 sm:$0xff]  }
 0x36c   :  { %6941 = vmatprep.subr.bf16.mxu0 %v10394_v39  ;;  %7629 = vmatprep.subr.bf16.mxu1 %v10397_v40  ;;  %v10484_v39 = vld [vmem:[%s13983_s1 + $0x1d44] ss:$16 sps:$4 sm:$0xff]   ;;  %v10487_v40 = vld [vmem:[%s13983_s1 + $0x1d4c] ss:$16 sps:$4 sm:$0xff]  }
 0x36f   :  { %6942 = vmatpush1.bf16.msra.mxu0 %v10392_v41  ;;  %7630 = vmatpush1.bf16.msra.mxu1 %v10395_v42  ;;  %v10482_v41 = vld [vmem:[%s13983_s1 + $0x1d40] ss:$16 sps:$4 sm:$0xff]   ;;  %v10485_v42 = vld [vmem:[%s13983_s1 + $0x1d48] ss:$16 sps:$4 sm:$0xff]  }
 0x370   :  { %6943 = vmatprep.subr.bf16.mxu0 %v10400_v43  ;;  %7631 = vmatprep.subr.bf16.mxu1 %v10403_v44  ;;  %v10490_v43 = vld [vmem:[%s13983_s1 + $0x1d64] ss:$16 sps:$4 sm:$0xff]   ;;  %v10493_v44 = vld [vmem:[%s13983_s1 + $0x1d6c] ss:$16 sps:$4 sm:$0xff]  }
 0x373   :  { %6944 = vmatpush1.bf16.msra.mxu0 %v10398_v14  ;;  %7632 = vmatpush1.bf16.msra.mxu1 %v10401_v46  ;;  %v10488_v14 = vld [vmem:[%s13983_s1 + $0x1d60] ss:$16 sps:$4 sm:$0xff]   ;;  %v10491_v46 = vld [vmem:[%s13983_s1 + $0x1d68] ss:$16 sps:$4 sm:$0xff]  }
 0x374   :  { %6945 = vmatprep.subr.bf16.mxu0 %v10406_v19  ;;  %7633 = vmatprep.subr.bf16.mxu1 %v10409_v24  ;;  %v10496_v19 = vld [vmem:[%s13983_s1 + $0x1d84] ss:$16 sps:$4 sm:$0xff]   ;;  %v10499_v24 = vld [vmem:[%s13983_s1 + $0x1d8c] ss:$16 sps:$4 sm:$0xff]  }
 0x377   :  { %6946 = vmatpush1.bf16.msra.mxu0 %v10404_v47  ;;  %7634 = vmatpush1.bf16.msra.mxu1 %v10407_v50  ;;  %v10494_v47 = vld [vmem:[%s13983_s1 + $0x1d80] ss:$16 sps:$4 sm:$0xff]   ;;  %v10497_v50 = vld [vmem:[%s13983_s1 + $0x1d88] ss:$16 sps:$4 sm:$0xff]  }
 0x378   :  { %6947 = vmatprep.subr.bf16.mxu0 %v10412_v21  ;;  %7635 = vmatprep.subr.bf16.mxu1 %v10415_v45  ;;  %v10502_v21 = vld [vmem:[%s13983_s1 + $0x1da4] ss:$16 sps:$4 sm:$0xff]   ;;  %v10505_v45 = vld [vmem:[%s13983_s1 + $0x1dac] ss:$16 sps:$4 sm:$0xff]  }
 0x37b   :  { %6948 = vmatpush1.bf16.msra.mxu0 %v10410_v51  ;;  %7636 = vmatpush1.bf16.msra.mxu1 %v10413_v54  ;;  %v10500_v51 = vld [vmem:[%s13983_s1 + $0x1da0] ss:$16 sps:$4 sm:$0xff]   ;;  %v10503_v54 = vld [vmem:[%s13983_s1 + $0x1da8] ss:$16 sps:$4 sm:$0xff]  }
 0x37c   :  { %6949 = vmatprep.subr.bf16.mxu0 %v10418_v48  ;;  %7637 = vmatprep.subr.bf16.mxu1 %v10421_v49  ;;  %v10508_v48 = vld [vmem:[%s13983_s1 + $0x1dc4] ss:$16 sps:$4 sm:$0xff]   ;;  %v10511_v49 = vld [vmem:[%s13983_s1 + $0x1dcc] ss:$16 sps:$4 sm:$0xff]  }
 0x37f   :  { %6950 = vmatpush1.bf16.msra.mxu0 %v10416_v55  ;;  %7638 = vmatpush1.bf16.msra.mxu1 %v10419_v58  ;;  %v10506_v55 = vld [vmem:[%s13983_s1 + $0x1dc0] ss:$16 sps:$4 sm:$0xff]   ;;  %v10509_v58 = vld [vmem:[%s13983_s1 + $0x1dc8] ss:$16 sps:$4 sm:$0xff]  }
 0x380   :  { %6962 = vmatprep.subr.bf16.mxu0 %v10424_v52  ;;  %7650 = vmatprep.subr.bf16.mxu1 %v10427_v53  ;;  %v10514_v52 = vld [vmem:[%s13983_s1 + $0x1de4] ss:$16 sps:$4 sm:$0xff]   ;;  %v10517_v53 = vld [vmem:[%s13983_s1 + $0x1dec] ss:$16 sps:$4 sm:$0xff]  }
 0x382   :  { %6952 = vmatmul.mubr.bf16.vlgmr.msra.gmra.mrb[0].mxu0 %v7926_v59  ;;  %7640 = vmatmul.mubr.bf16.vlgmr.msra.gmra.mrb[0].mxu1 %v7926_v59  ;;  %v10512_v59 = vld [vmem:[%s13983_s1 + $0x1de0] ss:$16 sps:$4 sm:$0xff]  }
 0x383   :  { %6963 = vmatpush1.bf16.msra.mxu0 %v10422_v62  ;;  %7651 = vmatpush1.bf16.msra.mxu1 %v10425_v56  ;;  %v10515_v62 = vld [vmem:[%s13983_s1 + $0x1de8] ss:$16 sps:$4 sm:$0xff]   ;;  %v10520_v56 = vld [vmem:[%s13983_s1 + $0x1e04] ss:$16 sps:$4 sm:$0xff]  }
 0x384   :  { %6964 = vmatprep.subr.bf16.mxu0 %v10430_v57  ;;  %7652 = vmatprep.subr.bf16.mxu1 %v10433_v63  ;;  %v10523_v57 = vld [vmem:[%s13983_s1 + $0x1e0c] ss:$16 sps:$4 sm:$0xff]   ;;  %v7928_v63 = vcombine.low %v13526_v60, %v13531_v61  ;;  %v10521_v60 = vld [vmem:[%s13983_s1 + $0x1e08] ss:$16 sps:$4 sm:$0xff]   ;;  %v10526_v61 = vld [vmem:[%s13983_s1 + $0x1e24] ss:$16 sps:$4 sm:$0xff]  }
 0x385   :  { %6994 = vmatprep.mubr.bf16.mxu0 %v7929_v0  ;;  %7682 = vmatprep.mubr.bf16.mxu1 %v7929_v0  ;;  %v13732_v0 = vld [vmem:[%s13984_s0 + $0x78] sm:$0xff] }
 0x387   :  { %6965 = vmatpush1.bf16.msra.mxu0 %v10428_v1  ;;  %7653 = vmatpush1.bf16.msra.mxu1 %v10431_v2  ;;  %v13737_v1 = vld [vmem:[%s13984_s0 + $0xf8] sm:$0xff]  ;;  %v10518_v2 = vld [vmem:[%s13983_s1 + $0x1e00] ss:$16 sps:$4 sm:$0xff]  }
 0x388   :  { %6966 = vmatprep.subr.bf16.mxu0 %v10436_v3  ;;  %7654 = vmatprep.subr.bf16.mxu1 %v10439_v4  ;;  %v10529_v3 = vld [vmem:[%s13983_s1 + $0x1e2c] ss:$16 sps:$4 sm:$0xff]   ;;  %v7931_v4 = vcombine.high %v13732_v0, %v13737_v1 }
 0x38b   :  { %6967 = vmatpush1.bf16.msra.mxu0 %v10434_v5  ;;  %7655 = vmatpush1.bf16.msra.mxu1 %v10437_v6  ;;  %v10524_v5 = vld [vmem:[%s13983_s1 + $0x1e20] ss:$16 sps:$4 sm:$0xff]   ;;  %v10527_v6 = vld [vmem:[%s13983_s1 + $0x1e28] ss:$16 sps:$4 sm:$0xff]  }
 0x38c   :  { %6968 = vmatprep.subr.bf16.mxu0 %v10442_v7  ;;  %7656 = vmatprep.subr.bf16.mxu1 %v10445_v8  ;;  %v10532_v7 = vld [vmem:[%s13983_s1 + $0x1e44] ss:$16 sps:$4 sm:$0xff]   ;;  %v10535_v8 = vld [vmem:[%s13983_s1 + $0x1e4c] ss:$16 sps:$4 sm:$0xff]  }
 0x38f   :  { %6969 = vmatpush1.bf16.msra.mxu0 %v10440_v9  ;;  %7657 = vmatpush1.bf16.msra.mxu1 %v10443_v10  ;;  %v10530_v9 = vld [vmem:[%s13983_s1 + $0x1e40] ss:$16 sps:$4 sm:$0xff]   ;;  %v10533_v10 = vld [vmem:[%s13983_s1 + $0x1e48] ss:$16 sps:$4 sm:$0xff]  }
 0x390   :  { %6970 = vmatprep.subr.bf16.mxu0 %v10448_v11  ;;  %7658 = vmatprep.subr.bf16.mxu1 %v10451_v12  ;;  %v10538_v11 = vld [vmem:[%s13983_s1 + $0x1e64] ss:$16 sps:$4 sm:$0xff]   ;;  %v10541_v12 = vld [vmem:[%s13983_s1 + $0x1e6c] ss:$16 sps:$4 sm:$0xff]  }
 0x393   :  { %6971 = vmatpush1.bf16.msra.mxu0 %v10446_v13  ;;  %7659 = vmatpush1.bf16.msra.mxu1 %v10449_v16  ;;  %v10536_v13 = vld [vmem:[%s13983_s1 + $0x1e60] ss:$16 sps:$4 sm:$0xff]   ;;  %v10539_v16 = vld [vmem:[%s13983_s1 + $0x1e68] ss:$16 sps:$4 sm:$0xff]  }
 0x394   :  { %6972 = vmatprep.subr.bf16.mxu0 %v10454_v17  ;;  %7660 = vmatprep.subr.bf16.mxu1 %v10457_v20  ;;  %v10544_v17 = vld [vmem:[%s13983_s1 + $0x1e84] ss:$16 sps:$4 sm:$0xff]   ;;  %v10547_v20 = vld [vmem:[%s13983_s1 + $0x1e8c] ss:$16 sps:$4 sm:$0xff]  }
 0x397   :  { %6973 = vmatpush1.bf16.msra.mxu0 %v10452_v15  ;;  %7661 = vmatpush1.bf16.msra.mxu1 %v10455_v22  ;;  %v10542_v15 = vld [vmem:[%s13983_s1 + $0x1e80] ss:$16 sps:$4 sm:$0xff]   ;;  %v10545_v22 = vld [vmem:[%s13983_s1 + $0x1e88] ss:$16 sps:$4 sm:$0xff]  }
 0x398   :  { %6974 = vmatprep.subr.bf16.mxu0 %v10460_v23  ;;  %7662 = vmatprep.subr.bf16.mxu1 %v10463_v18  ;;  %v10550_v23 = vld [vmem:[%s13983_s1 + $0x1ea4] ss:$16 sps:$4 sm:$0xff]   ;;  %v10553_v18 = vld [vmem:[%s13983_s1 + $0x1eac] ss:$16 sps:$4 sm:$0xff]  }
 0x39b   :  { %6975 = vmatpush1.bf16.msra.mxu0 %v10458_v25  ;;  %7663 = vmatpush1.bf16.msra.mxu1 %v10461_v26  ;;  %v10548_v25 = vld [vmem:[%s13983_s1 + $0x1ea0] ss:$16 sps:$4 sm:$0xff]   ;;  %v10551_v26 = vld [vmem:[%s13983_s1 + $0x1ea8] ss:$16 sps:$4 sm:$0xff]  }
 0x39c   :  { %6976 = vmatprep.subr.bf16.mxu0 %v10466_v27  ;;  %7664 = vmatprep.subr.bf16.mxu1 %v10469_v28  ;;  %v10556_v27 = vld [vmem:[%s13983_s1 + $0x1ec4] ss:$16 sps:$4 sm:$0xff]   ;;  %v10559_v28 = vld [vmem:[%s13983_s1 + $0x1ecc] ss:$16 sps:$4 sm:$0xff]  }
 0x39f   :  { %6977 = vmatpush1.bf16.msra.mxu0 %v10464_v29  ;;  %7665 = vmatpush1.bf16.msra.mxu1 %v10467_v30  ;;  %v10554_v29 = vld [vmem:[%s13983_s1 + $0x1ec0] ss:$16 sps:$4 sm:$0xff]   ;;  %v10557_v30 = vld [vmem:[%s13983_s1 + $0x1ec8] ss:$16 sps:$4 sm:$0xff]  }
 0x3a0   :  { %6978 = vmatprep.subr.bf16.mxu0 %v10472_v31  ;;  %7666 = vmatprep.subr.bf16.mxu1 %v10475_v32  ;;  %v10562_v31 = vld [vmem:[%s13983_s1 + $0x1ee4] ss:$16 sps:$4 sm:$0xff]   ;;  %v10565_v32 = vld [vmem:[%s13983_s1 + $0x1eec] ss:$16 sps:$4 sm:$0xff]  }
 0x3a3   :  { %6979 = vmatpush1.bf16.msra.mxu0 %v10470_v33  ;;  %7667 = vmatpush1.bf16.msra.mxu1 %v10473_v34  ;;  %v10560_v33 = vld [vmem:[%s13983_s1 + $0x1ee0] ss:$16 sps:$4 sm:$0xff]   ;;  %v10563_v34 = vld [vmem:[%s13983_s1 + $0x1ee8] ss:$16 sps:$4 sm:$0xff]  }
 0x3a4   :  { %6980 = vmatprep.subr.bf16.mxu0 %v10478_v35  ;;  %7668 = vmatprep.subr.bf16.mxu1 %v10481_v36  ;;  %v10568_v35 = vld [vmem:[%s13983_s1 + $0x1f04] ss:$16 sps:$4 sm:$0xff]   ;;  %v10571_v36 = vld [vmem:[%s13983_s1 + $0x1f0c] ss:$16 sps:$4 sm:$0xff]  }
 0x3a7   :  { %6981 = vmatpush1.bf16.msra.mxu0 %v10476_v37  ;;  %7669 = vmatpush1.bf16.msra.mxu1 %v10479_v38  ;;  %v10566_v37 = vld [vmem:[%s13983_s1 + $0x1f00] ss:$16 sps:$4 sm:$0xff]   ;;  %v10569_v38 = vld [vmem:[%s13983_s1 + $0x1f08] ss:$16 sps:$4 sm:$0xff]  }
 0x3a8   :  { %6982 = vmatprep.subr.bf16.mxu0 %v10484_v39  ;;  %7670 = vmatprep.subr.bf16.mxu1 %v10487_v40  ;;  %v10574_v39 = vld [vmem:[%s13983_s1 + $0x1f24] ss:$16 sps:$4 sm:$0xff]   ;;  %v10577_v40 = vld [vmem:[%s13983_s1 + $0x1f2c] ss:$16 sps:$4 sm:$0xff]  }
 0x3ab   :  { %6983 = vmatpush1.bf16.msra.mxu0 %v10482_v41  ;;  %7671 = vmatpush1.bf16.msra.mxu1 %v10485_v42  ;;  %v10572_v41 = vld [vmem:[%s13983_s1 + $0x1f20] ss:$16 sps:$4 sm:$0xff]   ;;  %v10575_v42 = vld [vmem:[%s13983_s1 + $0x1f28] ss:$16 sps:$4 sm:$0xff]  }
 0x3ac   :  { %6984 = vmatprep.subr.bf16.mxu0 %v10490_v43  ;;  %7672 = vmatprep.subr.bf16.mxu1 %v10493_v44  ;;  %v10580_v43 = vld [vmem:[%s13983_s1 + $0x1f44] ss:$16 sps:$4 sm:$0xff]   ;;  %v10583_v44 = vld [vmem:[%s13983_s1 + $0x1f4c] ss:$16 sps:$4 sm:$0xff]  }
 0x3af   :  { %6985 = vmatpush1.bf16.msra.mxu0 %v10488_v14  ;;  %7673 = vmatpush1.bf16.msra.mxu1 %v10491_v46  ;;  %v10578_v14 = vld [vmem:[%s13983_s1 + $0x1f40] ss:$16 sps:$4 sm:$0xff]   ;;  %v10581_v46 = vld [vmem:[%s13983_s1 + $0x1f48] ss:$16 sps:$4 sm:$0xff]  }
 0x3b0   :  { %6986 = vmatprep.subr.bf16.mxu0 %v10496_v19  ;;  %7674 = vmatprep.subr.bf16.mxu1 %v10499_v24  ;;  %v10586_v19 = vld [vmem:[%s13983_s1 + $0x1f64] ss:$16 sps:$4 sm:$0xff]   ;;  %v10589_v24 = vld [vmem:[%s13983_s1 + $0x1f6c] ss:$16 sps:$4 sm:$0xff]  }
 0x3b3   :  { %6987 = vmatpush1.bf16.msra.mxu0 %v10494_v47  ;;  %7675 = vmatpush1.bf16.msra.mxu1 %v10497_v50  ;;  %v10584_v47 = vld [vmem:[%s13983_s1 + $0x1f60] ss:$16 sps:$4 sm:$0xff]   ;;  %v10587_v50 = vld [vmem:[%s13983_s1 + $0x1f68] ss:$16 sps:$4 sm:$0xff]  }
 0x3b4   :  { %6988 = vmatprep.subr.bf16.mxu0 %v10502_v21  ;;  %7676 = vmatprep.subr.bf16.mxu1 %v10505_v45  ;;  %v10592_v21 = vld [vmem:[%s13983_s1 + $0x1f84] ss:$16 sps:$4 sm:$0xff]   ;;  %v10595_v45 = vld [vmem:[%s13983_s1 + $0x1f8c] ss:$16 sps:$4 sm:$0xff]  }
 0x3b7   :  { %6989 = vmatpush1.bf16.msra.mxu0 %v10500_v51  ;;  %7677 = vmatpush1.bf16.msra.mxu1 %v10503_v54  ;;  %v10590_v51 = vld [vmem:[%s13983_s1 + $0x1f80] ss:$16 sps:$4 sm:$0xff]   ;;  %v10593_v54 = vld [vmem:[%s13983_s1 + $0x1f88] ss:$16 sps:$4 sm:$0xff]  }
 0x3b8   :  { %6990 = vmatprep.subr.bf16.mxu0 %v10508_v48  ;;  %7678 = vmatprep.subr.bf16.mxu1 %v10511_v49  ;;  %v10598_v48 = vld [vmem:[%s13983_s1 + $0x1fa4] ss:$16 sps:$4 sm:$0xff]   ;;  %v10601_v49 = vld [vmem:[%s13983_s1 + $0x1fac] ss:$16 sps:$4 sm:$0xff]  }
 0x3bb   :  { %6991 = vmatpush1.bf16.msra.mxu0 %v10506_v55  ;;  %7679 = vmatpush1.bf16.msra.mxu1 %v10509_v58  ;;  %v10596_v55 = vld [vmem:[%s13983_s1 + $0x1fa0] ss:$16 sps:$4 sm:$0xff]   ;;  %v10599_v58 = vld [vmem:[%s13983_s1 + $0x1fa8] ss:$16 sps:$4 sm:$0xff]  }
 0x3bc   :  { %6992 = vmatprep.subr.bf16.mxu0 %v10514_v52  ;;  %7680 = vmatprep.subr.bf16.mxu1 %v10517_v53  ;;  %v10604_v52 = vld [vmem:[%s13983_s1 + $0x1fc4] ss:$16 sps:$4 sm:$0xff]   ;;  %v10607_v53 = vld [vmem:[%s13983_s1 + $0x1fcc] ss:$16 sps:$4 sm:$0xff]  }
 0x3bf   :  { %6993 = vmatpush1.bf16.msra.mxu0 %v10512_v59  ;;  %7681 = vmatpush1.bf16.msra.mxu1 %v10515_v62  ;;  %v10602_v59 = vld [vmem:[%s13983_s1 + $0x1fc0] ss:$16 sps:$4 sm:$0xff]   ;;  %v10605_v62 = vld [vmem:[%s13983_s1 + $0x1fc8] ss:$16 sps:$4 sm:$0xff]  }
 0x3c0   :  { %7005 = vmatprep.subr.bf16.mxu0 %v10520_v56  ;;  %7693 = vmatprep.subr.bf16.mxu1 %v10523_v57  ;;  %v10610_v56 = vld [vmem:[%s13983_s1 + $0x1fe4] ss:$16 sps:$4 sm:$0xff]   ;;  %v10613_v57 = vld [vmem:[%s13983_s1 + $0x1fec] ss:$16 sps:$4 sm:$0xff]  }
 0x3c2   :  { %6995 = vmatmul.mubr.bf16.vlgmr.msra.gmra.mrb[0].mxu0 %v7928_v63  ;;  %7683 = vmatmul.mubr.bf16.vlgmr.msra.gmra.mrb[0].mxu1 %v7928_v63  ;;  %v10608_v63 = vld [vmem:[%s13983_s1 + $0x1fe0] ss:$16 sps:$4 sm:$0xff]  }
 0x3c3   :  { %7006 = vmatpush1.bf16.msra.mxu0 %v10518_v2  ;;  %7694 = vmatpush1.bf16.msra.mxu1 %v10521_v60  ;;  %v10611_v2 = vld [vmem:[%s13983_s1 + $0x1fe8] ss:$16 sps:$4 sm:$0xff]   ;;  %v7930_v60 = vcombine.low %v13732_v0, %v13737_v1 }
 0x3c4   :  { %7007 = vmatprep.subr.bf16.mxu0 %v10526_v61  ;;  %7695 = vmatprep.subr.bf16.mxu1 %v10529_v3  ;;  %v18_v61 = vlaneseq }
 0x3c5   :  { %7037 = vmatprep.mubr.bf16.mxu0 %v7931_v4  ;;  %7725 = vmatprep.mubr.bf16.mxu1 %v7931_v4  ;;  %v10614_v4 = vmov 0.0  }
 0x3c6   :  { %vm13929_vm0 = vcmp.lt.s32.totalorder %v18_v61, 512  ;;  %v7783_v0 = vshrl.u32 %v18_v61, 7 }
 0x3c7   :  { %7008 = vmatpush1.bf16.msra.mxu0 %v10524_v5  ;;  %7696 = vmatpush1.bf16.msra.mxu1 %v10527_v6  ;;  %22 = vst.msk [vmem:[#allocation2] sm:$0xf] %vm13929_vm0, %v10614_v4  ;;  %23 = vst.msk [vmem:[#allocation3] sm:$0xf] %vm13929_vm0, %v10614_v4  ;;  %v10615_v5 = vmov 1966171168  }
 0x3c8   :  { %7009 = vmatprep.subr.bf16.mxu0 %v10532_v7  ;;  %7697 = vmatprep.subr.bf16.mxu1 %v10535_v8  ;;  %v7780_v6 = vunpack.c.l.s4 %v10615_v5 }
 0x3ca   :  { %v7781_v7 = vunpack.c.0.s8 %v7780_v6 }
 0x3cb   :  { %7010 = vmatpush1.bf16.msra.mxu0 %v10530_v9  ;;  %7698 = vmatpush1.bf16.msra.mxu1 %v10533_v10 }
 0x3cc   :  { %7011 = vmatprep.subr.bf16.mxu0 %v10538_v11  ;;  %7699 = vmatprep.subr.bf16.mxu1 %v10541_v12  ;;  %v13943_v11 = vsub.s32 %v7781_v7, %v7783_v0 }
 0x3cf   :  { %7012 = vmatpush1.bf16.msra.mxu0 %v10536_v13  ;;  %7700 = vmatpush1.bf16.msra.mxu1 %v10539_v16 }
 0x3d0   :  { %7013 = vmatprep.subr.bf16.mxu0 %v10544_v17  ;;  %7701 = vmatprep.subr.bf16.mxu1 %v10547_v20 }
 0x3d3   :  { %7014 = vmatpush1.bf16.msra.mxu0 %v10542_v15  ;;  %7702 = vmatpush1.bf16.msra.mxu1 %v10545_v22 }
 0x3d4   :  { %7015 = vmatprep.subr.bf16.mxu0 %v10550_v23  ;;  %7703 = vmatprep.subr.bf16.mxu1 %v10553_v18 }
 0x3d7   :  { %7016 = vmatpush1.bf16.msra.mxu0 %v10548_v25  ;;  %7704 = vmatpush1.bf16.msra.mxu1 %v10551_v26 }
 0x3d8   :  { %7017 = vmatprep.subr.bf16.mxu0 %v10556_v27  ;;  %7705 = vmatprep.subr.bf16.mxu1 %v10559_v28 }
 0x3db   :  { %7018 = vmatpush1.bf16.msra.mxu0 %v10554_v29  ;;  %7706 = vmatpush1.bf16.msra.mxu1 %v10557_v30 }
 0x3dc   :  { %7019 = vmatprep.subr.bf16.mxu0 %v10562_v31  ;;  %7707 = vmatprep.subr.bf16.mxu1 %v10565_v32 }
 0x3df   :  { %7020 = vmatpush1.bf16.msra.mxu0 %v10560_v33  ;;  %7708 = vmatpush1.bf16.msra.mxu1 %v10563_v34 }
 0x3e0   :  { %7021 = vmatprep.subr.bf16.mxu0 %v10568_v35  ;;  %7709 = vmatprep.subr.bf16.mxu1 %v10571_v36 }
 0x3e3   :  { %7022 = vmatpush1.bf16.msra.mxu0 %v10566_v37  ;;  %7710 = vmatpush1.bf16.msra.mxu1 %v10569_v38 }
 0x3e4   :  { %7023 = vmatprep.subr.bf16.mxu0 %v10574_v39  ;;  %7711 = vmatprep.subr.bf16.mxu1 %v10577_v40 }
 0x3e7   :  { %7024 = vmatpush1.bf16.msra.mxu0 %v10572_v41  ;;  %7712 = vmatpush1.bf16.msra.mxu1 %v10575_v42 }
 0x3e8   :  { %7025 = vmatprep.subr.bf16.mxu0 %v10580_v43  ;;  %7713 = vmatprep.subr.bf16.mxu1 %v10583_v44 }
 0x3eb   :  { %7026 = vmatpush1.bf16.msra.mxu0 %v10578_v14  ;;  %7714 = vmatpush1.bf16.msra.mxu1 %v10581_v46 }
 0x3ec   :  { %7027 = vmatprep.subr.bf16.mxu0 %v10586_v19  ;;  %7715 = vmatprep.subr.bf16.mxu1 %v10589_v24 }
 0x3ef   :  { %7028 = vmatpush1.bf16.msra.mxu0 %v10584_v47  ;;  %7716 = vmatpush1.bf16.msra.mxu1 %v10587_v50 }
 0x3f0   :  { %7029 = vmatprep.subr.bf16.mxu0 %v10592_v21  ;;  %7717 = vmatprep.subr.bf16.mxu1 %v10595_v45 }
 0x3f3   :  { %7030 = vmatpush1.bf16.msra.mxu0 %v10590_v51  ;;  %7718 = vmatpush1.bf16.msra.mxu1 %v10593_v54 }
 0x3f4   :  { %7031 = vmatprep.subr.bf16.mxu0 %v10598_v48  ;;  %7719 = vmatprep.subr.bf16.mxu1 %v10601_v49 }
 0x3f7   :  { %7032 = vmatpush1.bf16.msra.mxu0 %v10596_v55  ;;  %7720 = vmatpush1.bf16.msra.mxu1 %v10599_v58 }
 0x3f8   :  { %7033 = vmatprep.subr.bf16.mxu0 %v10604_v52  ;;  %7721 = vmatprep.subr.bf16.mxu1 %v10607_v53 }
 0x3fb   :  { %7034 = vmatpush1.bf16.msra.mxu0 %v10602_v59  ;;  %7722 = vmatpush1.bf16.msra.mxu1 %v10605_v62 }
 0x3fc   :  { %7035 = vmatprep.subr.bf16.mxu0 %v10610_v56  ;;  %7723 = vmatprep.subr.bf16.mxu1 %v10613_v57 }
 0x3ff   :  { %7036 = vmatpush1.bf16.msra.mxu0 %v10608_v63  ;;  %7724 = vmatpush1.bf16.msra.mxu1 %v10611_v2 }
 0x402   :  { %7038 = vmatmul.mubr.bf16.vlgmr.msra.gmra.mrb[0].mxu0 %v7930_v60  ;;  %7726 = vmatmul.mubr.bf16.vlgmr.msra.gmra.mrb[0].mxu1 %v7930_v60 }
 0x4d5   :  { %v7039_v1 = vpop.f32.mrb[0].mxu0  ;;  %v7727_v8 = vpop.f32.mrb[0].mxu1 }
 0x4d6   :  { %7736 = vst [vmem:[%s13985_s2] sm:$0xff] %v7039_v1  ;;  %7738 = vst [vmem:[%s13985_s2 + $0x10] sm:$0xff] %v7727_v8  ;;  %v7041_v9 = vpop.f32.mrb[1].mxu0  ;;  %v7729_v10 = vpop.f32.mrb[1].mxu1  ;;  %v7809_v12 = vmul.f32 %v7039_v1, %v7039_v1  ;;  %v7811_v13 = vmul.f32 %v7727_v8, %v7727_v8 }
 0x4d7   :  { %7737 = vst [vmem:[%s13985_s2 + $0x8] sm:$0xff] %v7041_v9  ;;  %v7810_v16 = vmul.f32 %v7041_v9, %v7041_v9  ;;  %7739 = vst [vmem:[%s13985_s2 + $0x18] sm:$0xff] %v7729_v10  ;;  %v7812_v17 = vmul.f32 %v7729_v10, %v7729_v10  ;;  %v7043_v20 = vpop.f32.mrb[2].mxu0  ;;  %v7731_v15 = vpop.f32.mrb[2].mxu1 }
 0x4d8   :  { %7740 = vst [vmem:[%s13985_s2 + $0x20] sm:$0xff] %v7043_v20  ;;  %v7745_v22 = vadd.f32 %v7043_v20, %v7039_v1  ;;  %v7813_v23 = vmul.f32 %v7043_v20, %v7043_v20  ;;  %7742 = vst [vmem:[%s13985_s2 + $0x30] sm:$0xff] %v7731_v15  ;;  %v7759_v18 = vadd.f32 %v7731_v15, %v7727_v8  ;;  %v7045_v26 = vpop.f32.mrb[3].mxu0  ;;  %v7733_v27 = vpop.f32.mrb[3].mxu1 }
 0x4d9   :  { %v7815_v25 = vmul.f32 %v7731_v15, %v7731_v15  ;;  %7741 = vst [vmem:[%s13985_s2 + $0x28] sm:$0xff] %v7045_v26  ;;  %v7752_v28 = vadd.f32 %v7045_v26, %v7041_v9  ;;  %v7814_v29 = vmul.f32 %v7045_v26, %v7045_v26  ;;  %7743 = vst [vmem:[%s13985_s2 + $0x38] sm:$0xff] %v7733_v27 }
 0x4da   :  { %v7766_v30 = vadd.f32 %v7733_v27, %v7729_v10  ;;  %v7816_v31 = vmul.f32 %v7733_v27, %v7733_v27  ;;  %v7746_v32 = vrot.slane %v7745_v22, 4  ;;  %v7817_v33 = vadd.f32 %v7813_v23, %v7809_v12 }
 0x4db   :  { %v7760_v34 = vrot.slane %v7759_v18, 4  ;;  %v7831_v35 = vadd.f32 %v7815_v25, %v7811_v13  ;;  %v7753_v36 = vrot.slane %v7752_v28, 4  ;;  %v7824_v37 = vadd.f32 %v7814_v29, %v7810_v16 }
 0x4dc   :  { %v7767_v38 = vrot.slane %v7766_v30, 4  ;;  %v7838_v39 = vadd.f32 %v7816_v31, %v7812_v17  ;;  %v7747_v40 = vadd.f32 %v7746_v32, %v7745_v22  ;;  %v7818_v41 = vrot.slane %v7817_v33, 4  ;;  %v7744_v31 = vld [vmem:[#allocation2] sm:$0xf] }
 0x4dd   :  { %v7761_v42 = vadd.f32 %v7760_v34, %v7759_v18  ;;  %v7832_v43 = vrot.slane %v7831_v35, 4  ;;  %v7754_v44 = vadd.f32 %v7753_v36, %v7752_v28  ;;  %v7825_v14 = vrot.slane %v7824_v37, 4  ;;  %v7808_v34 = vld [vmem:[#allocation3] sm:$0xf] }
 0x4de   :  { %v7768_v46 = vadd.f32 %v7767_v38, %v7766_v30  ;;  %v7839_v19 = vrot.slane %v7838_v39, 4  ;;  %v7748_v24 = vrot.slane %v7747_v40, 2  ;;  %v7819_v47 = vadd.f32 %v7818_v41, %v7817_v33 }
 0x4df   :  { %v7762_v50 = vrot.slane %v7761_v42, 2  ;;  %v7833_v21 = vadd.f32 %v7832_v43, %v7831_v35  ;;  %v7755_v45 = vrot.slane %v7754_v44, 2  ;;  %v7826_v51 = vadd.f32 %v7825_v14, %v7824_v37 }
 0x4e0   :  { %v7769_v54 = vrot.slane %v7768_v46, 2  ;;  %v7840_v48 = vadd.f32 %v7839_v19, %v7838_v39  ;;  %v7749_v49 = vadd.f32 %v7748_v24, %v7747_v40  ;;  %v7820_v55 = vrot.slane %v7819_v47, 2 }
 0x4e1   :  { %v7763_v58 = vadd.f32 %v7762_v50, %v7761_v42  ;;  %v7834_v52 = vrot.slane %v7833_v21, 2  ;;  %v7756_v53 = vadd.f32 %v7755_v45, %v7754_v44  ;;  %v7827_v59 = vrot.slane %v7826_v51, 2 }
 0x4e2   :  { %v7770_v62 = vadd.f32 %v7769_v54, %v7768_v46  ;;  %v7841_v56 = vrot.slane %v7840_v48, 2  ;;  %v7750_v57 = vrot.slane %v7749_v49, 1  ;;  %v7821_v63 = vadd.f32 %v7820_v55, %v7819_v47 }
 0x4e3   :  { %v7764_v2 = vrot.slane %v7763_v58, 1  ;;  %v7835_v60 = vadd.f32 %v7834_v52, %v7833_v21  ;;  %v7757_v61 = vrot.slane %v7756_v53, 1  ;;  %v7828_v4 = vadd.f32 %v7827_v59, %v7826_v51 }
 0x4e4   :  { %v7771_v5 = vrot.slane %v7770_v62, 1  ;;  %v7842_v6 = vadd.f32 %v7841_v56, %v7840_v48  ;;  %v7751_v7 = vadd.f32 %v7750_v57, %v7749_v49  ;;  %v7822_v0 = vrot.slane %v7821_v63, 1 }
 0x4e5   :  { %v7765_v1 = vadd.f32 %v7764_v2, %v7763_v58  ;;  %v7836_v8 = vrot.slane %v7835_v60, 1  ;;  %v7758_v9 = vadd.f32 %v7757_v61, %v7756_v53  ;;  %v7829_v10 = vrot.slane %v7828_v4, 1 }
 0x4e6   :  { %v7772_v12 = vadd.f32 %v7771_v5, %v7770_v62  ;;  %v7843_v13 = vrot.slane %v7842_v6, 1  ;;  %v7823_v16 = vadd.f32 %v7822_v0, %v7821_v63 }
 0x4e7   :  { %v7837_v17 = vadd.f32 %v7836_v8, %v7835_v60  ;;  %v7777_v20 = vcombine.low %v7751_v7, %v7758_v9  ;;  %v7830_v15 = vadd.f32 %v7829_v10, %v7828_v4 }
 0x4e8   :  { %v7778_v22 = vcombine.low %v7765_v1, %v7772_v12  ;;  %v7844_v23 = vadd.f32 %v7843_v13, %v7842_v6 }
 0x4e9   :  { %v7785_v18 = vrot.slane %v7777_v20, %v13943_v11  ;;  %v7849_v25 = vcombine.low %v7823_v16, %v7830_v15 }
 0x4ea   :  { %v7792_v26 = vrot.slane %v7778_v22, %v13943_v11  ;;  %v7850_v27 = vcombine.low %v7837_v17, %v7844_v23 }
 0x4eb   :  { %v7857_v28 = vrot.slane %v7849_v25, %v13943_v11 }
 0x4ec   :  { %v7793_v29 = vcombine.low %v7785_v18, %v7792_v26  ;;  %v7864_v30 = vrot.slane %v7850_v27, %v13943_v11 }
 0x4ee   :  { %v7800_v32 = vrot.slane %v7793_v29, %v13943_v11  ;;  %v7865_v33 = vcombine.low %v7857_v28, %v7864_v30 }
 0x4f0   :  { %v7802_v35 = vadd.f32 %v7800_v32, %v7744_v31  ;;  %v7872_v36 = vrot.slane %v7865_v33, %v13943_v11 }
 0x4f2   :  { %7807 = vst.msk [vmem:[#allocation2] sm:$0xf] %vm13929_vm0, %v7802_v35  ;;  %v7874_v37 = vadd.f32 %v7872_v36, %v7808_v34 }
 0x4f4   :  { %7875 = vst.msk [vmem:[#allocation3] sm:$0xf] %vm13929_vm0, %v7874_v37 }
 0x4f9   :  { %v7879_v38 = vld [vmem:[#allocation2] sm:$0xf] }
 0x4fa   :  { %v7880_v39 = vmul.f32 0.125, %v7879_v38 }
 0x4fb   :  { %v7881_v40 = vld [vmem:[#allocation3] sm:$0xf] }
 0x4fc   :  { %v7882_v41 = vmul.f32 0.125, %v7881_v40  ;;  %v7883_v42 = vmul.f32 %v7880_v39, %v7880_v39  ;;  %7885 = vst.msk [vmem:[%s13986_s3] sm:$0xf] %vm13929_vm0, %v7880_v39 }
 0x4fe   :  { %v7884_v43 = vsub.f32 %v7882_v41, %v7883_v42 }
 0x500   :  { %v7886_v11 = vmax.f32 %v7884_v43, 0.0 }
 0x502   :  { %7887 = vst.msk [vmem:[%s13987_s4] sm:$0xf] %vm13929_vm0, %v7886_v11 }

// kernel: discriminator_forward.15
= control target key start
LH: loop header
LB: loop body
LE: loop exit
PB: predicated region body
PF: predicated region fallthrough
CT: control target
= control target key end

     0   :  { %s9418_s1 = inlined_call_operand.vmem [shape: bf16[8192,128], index: 1, kind: input, shape index: {}]   ;;  %s9419_s0 = inlined_call_operand.vmem [shape: bf16[16,8192], index: 0, kind: input, shape index: {}]   ;;  %s9420_s2 = inlined_call_operand.vmem [shape: f32[1,128], index: 2, kind: input, shape index: {}]   ;;  %s9421_s3 = inlined_call_operand.vmem [shape: f32[16,128], index: 3, kind: output, shape index: {}]  }
   0x1   :  { %v7101_v0 = vld [vmem:[%s9418_s1 + $0x40] sm:$0xff]   ;;  %v7105_v4 = vld [vmem:[%s9418_s1 + $0x48] sm:$0xff]   ;;  %v7109_v8 = vld [vmem:[%s9418_s1 + $0x50] sm:$0xff]  }
   0x2   :  { %v7102_v1 = vld [vmem:[%s9418_s1 + $0xc0] sm:$0xff]   ;;  %6397 = vmatprep.subr.bf16.mxu0 %v7101_v0  ;;  %v7106_v5 = vld [vmem:[%s9418_s1 + $0xc8] sm:$0xff]   ;;  %v7110_v9 = vld [vmem:[%s9418_s1 + $0xd0] sm:$0xff]  }
   0x3   :  { %v7103_v2 = vld [vmem:[%s9418_s1] sm:$0xff]   ;;  %6419 = vmatprep.subr.bf16.mxu1 %v7102_v1  ;;  %v7107_v6 = vld [vmem:[%s9418_s1 + $0x8] sm:$0xff]   ;;  %v7111_v10 = vld [vmem:[%s9418_s1 + $0x10] sm:$0xff]  }
   0x4   :  { %v7104_v3 = vld [vmem:[%s9418_s1 + $0x80] sm:$0xff]   ;;  %6398 = vmatpush3.bf16.msra.mxu0 %v7103_v2  ;;  %v7108_v7 = vld [vmem:[%s9418_s1 + $0x88] sm:$0xff]   ;;  %v7112_v11 = vld [vmem:[%s9418_s1 + $0x90] sm:$0xff]  }
   0x5   :  { %6420 = vmatpush3.bf16.msra.mxu1 %v7104_v3  ;;  %6399 = vmatprep.subr.bf16.mxu0 %v7105_v4  ;;  %v7113_v12 = vld [vmem:[%s9418_s1 + $0x58] sm:$0xff]   ;;  %v7117_v16 = vld [vmem:[%s9418_s1 + $0x60] sm:$0xff]   ;;  %v7121_v20 = vld [vmem:[%s9418_s1 + $0x68] sm:$0xff]  }
   0x6   :  { %6421 = vmatprep.subr.bf16.mxu1 %v7106_v5  ;;  %v7114_v13 = vld [vmem:[%s9418_s1 + $0xd8] sm:$0xff]   ;;  %v7118_v17 = vld [vmem:[%s9418_s1 + $0xe0] sm:$0xff]   ;;  %v7122_v21 = vld [vmem:[%s9418_s1 + $0xe8] sm:$0xff]  }
   0x7   :  { %v7115_v14 = vld [vmem:[%s9418_s1 + $0x18] sm:$0xff]   ;;  %v7119_v18 = vld [vmem:[%s9418_s1 + $0x20] sm:$0xff]   ;;  %v7123_v22 = vld [vmem:[%s9418_s1 + $0x28] sm:$0xff]  }
   0x8   :  { %6400 = vmatpush3.bf16.msra.mxu0 %v7107_v6  ;;  %v7116_v15 = vld [vmem:[%s9418_s1 + $0x98] sm:$0xff]   ;;  %v7120_v19 = vld [vmem:[%s9418_s1 + $0xa0] sm:$0xff]   ;;  %v7124_v23 = vld [vmem:[%s9418_s1 + $0xa8] sm:$0xff]  }
   0x9   :  { %6422 = vmatpush3.bf16.msra.mxu1 %v7108_v7  ;;  %6401 = vmatprep.subr.bf16.mxu0 %v7109_v8  ;;  %v7125_v24 = vld [vmem:[%s9418_s1 + $0x70] sm:$0xff]   ;;  %v7129_v28 = vld [vmem:[%s9418_s1 + $0x78] sm:$0xff]   ;;  %v15_v32 = vld [vmem:[%s9419_s0] sm:$0xff] }
   0xa   :  { %6423 = vmatprep.subr.bf16.mxu1 %v7110_v9  ;;  %v7126_v25 = vld [vmem:[%s9418_s1 + $0xf0] sm:$0xff]   ;;  %v7130_v29 = vld [vmem:[%s9418_s1 + $0xf8] sm:$0xff]   ;;  %v47_v33 = vld [vmem:[%s9419_s0 + $0x100] sm:$0xff] }
   0xb   :  { %v7127_v26 = vld [vmem:[%s9418_s1 + $0x30] sm:$0xff]   ;;  %v7131_v30 = vld [vmem:[%s9418_s1 + $0x38] sm:$0xff]   ;;  %v16_v34 = vld [vmem:[%s9419_s0 + $0x8] sm:$0xff]  ;;  %v5821_v35 = vcombine.low %v15_v32, %v47_v33  ;;  %v5822_v36 = vcombine.high %v15_v32, %v47_v33 }
   0xc   :  { %6402 = vmatpush3.bf16.msra.mxu0 %v7111_v10  ;;  %v7128_v27 = vld [vmem:[%s9418_s1 + $0xb0] sm:$0xff]   ;;  %v7132_v31 = vld [vmem:[%s9418_s1 + $0xb8] sm:$0xff]   ;;  %v48_v37 = vld [vmem:[%s9419_s0 + $0x108] sm:$0xff] }
   0xd   :  { %6424 = vmatpush3.bf16.msra.mxu1 %v7112_v11  ;;  %6403 = vmatprep.subr.bf16.mxu0 %v7113_v12  ;;  %v5823_v38 = vcombine.low %v16_v34, %v48_v37  ;;  %v5824_v39 = vcombine.high %v16_v34, %v48_v37  ;;  %v7133_v40 = vld [vmem:[%s9418_s1 + $0x140] sm:$0xff]   ;;  %v7137_v44 = vld [vmem:[%s9418_s1 + $0x148] sm:$0xff]   ;;  %v7141_v48 = vld [vmem:[%s9418_s1 + $0x150] sm:$0xff]  }
   0xe   :  { %6425 = vmatprep.subr.bf16.mxu1 %v7114_v13  ;;  %4534 = vmatprep.mubr.bf16.mxu0 %v5822_v36  ;;  %v7134_v41 = vld [vmem:[%s9418_s1 + $0x1c0] sm:$0xff]   ;;  %v7138_v45 = vld [vmem:[%s9418_s1 + $0x1c8] sm:$0xff]   ;;  %v7142_v49 = vld [vmem:[%s9418_s1 + $0x1d0] sm:$0xff]  }
   0xf   :  { %4575 = vmatprep.mubr.bf16.mxu1 %v5824_v39  ;;  %v7135_v42 = vld [vmem:[%s9418_s1 + $0x100] sm:$0xff]   ;;  %v7139_v46 = vld [vmem:[%s9418_s1 + $0x108] sm:$0xff]   ;;  %v7143_v50 = vld [vmem:[%s9418_s1 + $0x110] sm:$0xff]  }
  0x10   :  { %6404 = vmatpush3.bf16.msra.mxu0 %v7115_v14  ;;  %v7136_v43 = vld [vmem:[%s9418_s1 + $0x180] sm:$0xff]   ;;  %v7140_v47 = vld [vmem:[%s9418_s1 + $0x188] sm:$0xff]   ;;  %v7144_v51 = vld [vmem:[%s9418_s1 + $0x190] sm:$0xff]  }
  0x11   :  { %6426 = vmatpush3.bf16.msra.mxu1 %v7116_v15  ;;  %6405 = vmatprep.subr.bf16.mxu0 %v7117_v16  ;;  %v7145_v52 = vld [vmem:[%s9418_s1 + $0x158] sm:$0xff]   ;;  %v7149_v56 = vld [vmem:[%s9418_s1 + $0x160] sm:$0xff]   ;;  %v7153_v60 = vld [vmem:[%s9418_s1 + $0x168] sm:$0xff]  }
  0x12   :  { %6427 = vmatprep.subr.bf16.mxu1 %v7118_v17  ;;  %v7146_v53 = vld [vmem:[%s9418_s1 + $0x1d8] sm:$0xff]   ;;  %v7150_v57 = vld [vmem:[%s9418_s1 + $0x1e0] sm:$0xff]   ;;  %v7154_v61 = vld [vmem:[%s9418_s1 + $0x1e8] sm:$0xff]  }
  0x13   :  { %v7147_v54 = vld [vmem:[%s9418_s1 + $0x118] sm:$0xff]   ;;  %v7151_v58 = vld [vmem:[%s9418_s1 + $0x120] sm:$0xff]   ;;  %v7155_v62 = vld [vmem:[%s9418_s1 + $0x128] sm:$0xff]  }
  0x14   :  { %6406 = vmatpush3.bf16.msra.mxu0 %v7119_v18  ;;  %v7148_v55 = vld [vmem:[%s9418_s1 + $0x198] sm:$0xff]   ;;  %v7152_v59 = vld [vmem:[%s9418_s1 + $0x1a0] sm:$0xff]   ;;  %v7156_v63 = vld [vmem:[%s9418_s1 + $0x1a8] sm:$0xff]  }
  0x15   :  { %6428 = vmatpush3.bf16.msra.mxu1 %v7120_v19  ;;  %6407 = vmatprep.subr.bf16.mxu0 %v7121_v20  ;;  %v7157_v0 = vld [vmem:[%s9418_s1 + $0x170] sm:$0xff]   ;;  %v7161_v4 = vld [vmem:[%s9418_s1 + $0x178] sm:$0xff]   ;;  %v7165_v16 = vld [vmem:[%s9418_s1 + $0x240] sm:$0xff]  }
  0x16   :  { %6429 = vmatprep.subr.bf16.mxu1 %v7122_v21  ;;  %v7158_v1 = vld [vmem:[%s9418_s1 + $0x1f0] sm:$0xff]   ;;  %v7162_v5 = vld [vmem:[%s9418_s1 + $0x1f8] sm:$0xff]   ;;  %v7166_v17 = vld [vmem:[%s9418_s1 + $0x2c0] sm:$0xff]  }
  0x17   :  { %v7159_v2 = vld [vmem:[%s9418_s1 + $0x130] sm:$0xff]   ;;  %v7163_v6 = vld [vmem:[%s9418_s1 + $0x138] sm:$0xff]   ;;  %v7167_v18 = vld [vmem:[%s9418_s1 + $0x200] sm:$0xff]  }
  0x18   :  { %6408 = vmatpush3.bf16.msra.mxu0 %v7123_v22  ;;  %v7160_v3 = vld [vmem:[%s9418_s1 + $0x1b0] sm:$0xff]   ;;  %v7164_v7 = vld [vmem:[%s9418_s1 + $0x1b8] sm:$0xff]   ;;  %v7168_v19 = vld [vmem:[%s9418_s1 + $0x280] sm:$0xff]  }
  0x19   :  { %6430 = vmatpush3.bf16.msra.mxu1 %v7124_v23  ;;  %6409 = vmatprep.subr.bf16.mxu0 %v7125_v24  ;;  %v17_v8 = vld [vmem:[%s9419_s0 + $0x10] sm:$0xff]  ;;  %v18_v12 = vld [vmem:[%s9419_s0 + $0x18] sm:$0xff]  ;;  %v7169_v20 = vld [vmem:[%s9418_s1 + $0x248] sm:$0xff]  }
  0x1a   :  { %6431 = vmatprep.subr.bf16.mxu1 %v7126_v25  ;;  %v49_v9 = vld [vmem:[%s9419_s0 + $0x110] sm:$0xff]  ;;  %v50_v13 = vld [vmem:[%s9419_s0 + $0x118] sm:$0xff]  ;;  %v7170_v21 = vld [vmem:[%s9418_s1 + $0x2c8] sm:$0xff]  }
  0x1b   :  { %v5825_v10 = vcombine.low %v17_v8, %v49_v9  ;;  %v5826_v11 = vcombine.high %v17_v8, %v49_v9  ;;  %v5827_v14 = vcombine.low %v18_v12, %v50_v13  ;;  %v5828_v15 = vcombine.high %v18_v12, %v50_v13  ;;  %v7171_v22 = vld [vmem:[%s9418_s1 + $0x208] sm:$0xff]   ;;  %v7173_v24 = vld [vmem:[%s9418_s1 + $0x250] sm:$0xff]   ;;  %v7181_v32 = vld [vmem:[%s9418_s1 + $0x260] sm:$0xff]  }
  0x1c   :  { %6410 = vmatpush3.bf16.msra.mxu0 %v7127_v26  ;;  %v7172_v23 = vld [vmem:[%s9418_s1 + $0x288] sm:$0xff]   ;;  %v7174_v25 = vld [vmem:[%s9418_s1 + $0x2d0] sm:$0xff]   ;;  %v7182_v33 = vld [vmem:[%s9418_s1 + $0x2e0] sm:$0xff]  }
  0x1d   :  { %6432 = vmatpush3.bf16.msra.mxu1 %v7128_v27  ;;  %6411 = vmatprep.subr.bf16.mxu0 %v7129_v28  ;;  %v7175_v26 = vld [vmem:[%s9418_s1 + $0x210] sm:$0xff]   ;;  %v7177_v28 = vld [vmem:[%s9418_s1 + $0x258] sm:$0xff]   ;;  %v7183_v34 = vld [vmem:[%s9418_s1 + $0x220] sm:$0xff]  }
  0x1e   :  { %6433 = vmatprep.subr.bf16.mxu1 %v7130_v29  ;;  %v7176_v27 = vld [vmem:[%s9418_s1 + $0x290] sm:$0xff]   ;;  %v7178_v29 = vld [vmem:[%s9418_s1 + $0x2d8] sm:$0xff]   ;;  %v7185_v36 = vld [vmem:[%s9418_s1 + $0x268] sm:$0xff]  }
  0x1f   :  { %v7186_v37 = vld [vmem:[%s9418_s1 + $0x2e8] sm:$0xff]   ;;  %v7213_v8 = vld [vmem:[%s9418_s1 + $0x360] sm:$0xff]  }
  0x20   :  { %6412 = vmatpush3.bf16.msra.mxu0 %v7131_v30  ;;  %v7179_v30 = vld [vmem:[%s9418_s1 + $0x218] sm:$0xff]   ;;  %v7188_v39 = vld [vmem:[%s9418_s1 + $0x2a8] sm:$0xff]   ;;  %v7214_v9 = vld [vmem:[%s9418_s1 + $0x3e0] sm:$0xff]  }
  0x21   :  { %6434 = vmatpush3.bf16.msra.mxu1 %v7132_v31  ;;  %6441 = vmatprep.subr.bf16.mxu0 %v7133_v40  ;;  %v7180_v31 = vld [vmem:[%s9418_s1 + $0x298] sm:$0xff]   ;;  %v7189_v40 = vld [vmem:[%s9418_s1 + $0x270] sm:$0xff]   ;;  %v7217_v12 = vld [vmem:[%s9418_s1 + $0x368] sm:$0xff]  }
  0x22   :  { %6463 = vmatprep.subr.bf16.mxu1 %v7134_v41  ;;  %v7190_v41 = vld [vmem:[%s9418_s1 + $0x2f0] sm:$0xff]   ;;  %v7218_v13 = vld [vmem:[%s9418_s1 + $0x3e8] sm:$0xff]  }
  0x23   :  { %4535 = vmatmul.mubr.bf16.vlgmr.msra.gmra.mrb[0].mxu0 %v5821_v35  ;;  %v7184_v35 = vld [vmem:[%s9418_s1 + $0x2a0] sm:$0xff]  }
  0x24   :  { %4576 = vmatmul.mubr.bf16.vlgmr.msra.gmra.mrb[0].mxu1 %v5823_v38  ;;  %6442 = vmatpush3.bf16.msra.mxu0 %v7135_v42  ;;  %v7187_v38 = vld [vmem:[%s9418_s1 + $0x228] sm:$0xff]   ;;  %v7191_v42 = vld [vmem:[%s9418_s1 + $0x230] sm:$0xff]  }
  0x25   :  { %6464 = vmatpush3.bf16.msra.mxu1 %v7136_v43  ;;  %6443 = vmatprep.subr.bf16.mxu0 %v7137_v44  ;;  %v7192_v43 = vld [vmem:[%s9418_s1 + $0x2b0] sm:$0xff]   ;;  %v7193_v44 = vld [vmem:[%s9418_s1 + $0x278] sm:$0xff]  }
  0x26   :  { %6465 = vmatprep.subr.bf16.mxu1 %v7138_v45  ;;  %4616 = vmatprep.mubr.bf16.mxu0 %v5826_v11  ;;  %v7194_v45 = vld [vmem:[%s9418_s1 + $0x2f8] sm:$0xff]   ;;  %v7216_v11 = vld [vmem:[%s9418_s1 + $0x3a0] sm:$0xff]  }
  0x27   :  { %4657 = vmatprep.mubr.bf16.mxu1 %v5828_v15  ;;  %v7220_v15 = vld [vmem:[%s9418_s1 + $0x3a8] sm:$0xff]  }
  0x28   :  { %6444 = vmatpush3.bf16.msra.mxu0 %v7139_v46  ;;  %v7195_v46 = vld [vmem:[%s9418_s1 + $0x238] sm:$0xff]  }
  0x29   :  { %6466 = vmatpush3.bf16.msra.mxu1 %v7140_v47  ;;  %6445 = vmatprep.subr.bf16.mxu0 %v7141_v48  ;;  %v7196_v47 = vld [vmem:[%s9418_s1 + $0x2b8] sm:$0xff]   ;;  %v19_v48 = vld [vmem:[%s9419_s0 + $0x20] sm:$0xff] }
  0x2a   :  { %6467 = vmatprep.subr.bf16.mxu1 %v7142_v49  ;;  %v51_v49 = vld [vmem:[%s9419_s0 + $0x120] sm:$0xff] }
  0x2c   :  { %6446 = vmatpush3.bf16.msra.mxu0 %v7143_v50  ;;  %v20_v50 = vld [vmem:[%s9419_s0 + $0x28] sm:$0xff] }
  0x2d   :  { %6468 = vmatpush3.bf16.msra.mxu1 %v7144_v51  ;;  %6447 = vmatprep.subr.bf16.mxu0 %v7145_v52  ;;  %v52_v51 = vld [vmem:[%s9419_s0 + $0x128] sm:$0xff]  ;;  %v5829_v52 = vcombine.low %v19_v48, %v51_v49 }
  0x2e   :  { %6469 = vmatprep.subr.bf16.mxu1 %v7146_v53  ;;  %v5830_v53 = vcombine.high %v19_v48, %v51_v49  ;;  %v7245_v48 = vld [vmem:[%s9418_s1 + $0x460] sm:$0xff]  }
  0x2f   :  { %v7246_v49 = vld [vmem:[%s9418_s1 + $0x4e0] sm:$0xff]  }
  0x30   :  { %6448 = vmatpush3.bf16.msra.mxu0 %v7147_v54  ;;  %v5831_v54 = vcombine.low %v20_v50, %v52_v51 }
  0x31   :  { %6470 = vmatpush3.bf16.msra.mxu1 %v7148_v55  ;;  %6449 = vmatprep.subr.bf16.mxu0 %v7149_v56  ;;  %v5832_v55 = vcombine.high %v20_v50, %v52_v51  ;;  %v7197_v56 = vld [vmem:[%s9418_s1 + $0x340] sm:$0xff]  }
  0x32   :  { %6471 = vmatprep.subr.bf16.mxu1 %v7150_v57  ;;  %v7198_v57 = vld [vmem:[%s9418_s1 + $0x3c0] sm:$0xff]  }
  0x33   :  { %v7247_v50 = vld [vmem:[%s9418_s1 + $0x420] sm:$0xff]  }
  0x34   :  { %6450 = vmatpush3.bf16.msra.mxu0 %v7151_v58  ;;  %v7199_v58 = vld [vmem:[%s9418_s1 + $0x300] sm:$0xff]  }
  0x35   :  { %6472 = vmatpush3.bf16.msra.mxu1 %v7152_v59  ;;  %6451 = vmatprep.subr.bf16.mxu0 %v7153_v60  ;;  %v7200_v59 = vld [vmem:[%s9418_s1 + $0x380] sm:$0xff]   ;;  %v7201_v60 = vld [vmem:[%s9418_s1 + $0x348] sm:$0xff]  }
  0x36   :  { %6473 = vmatprep.subr.bf16.mxu1 %v7154_v61  ;;  %v7202_v61 = vld [vmem:[%s9418_s1 + $0x3c8] sm:$0xff]   ;;  %v7248_v51 = vld [vmem:[%s9418_s1 + $0x4a0] sm:$0xff]  }
  0x38   :  { %6452 = vmatpush3.bf16.msra.mxu0 %v7155_v62  ;;  %v7203_v62 = vld [vmem:[%s9418_s1 + $0x308] sm:$0xff]  }
  0x39   :  { %6474 = vmatpush3.bf16.msra.mxu1 %v7156_v63  ;;  %6453 = vmatprep.subr.bf16.mxu0 %v7157_v0  ;;  %v7204_v63 = vld [vmem:[%s9418_s1 + $0x388] sm:$0xff]   ;;  %v7205_v0 = vld [vmem:[%s9418_s1 + $0x350] sm:$0xff]  }
  0x3a   :  { %6475 = vmatprep.subr.bf16.mxu1 %v7158_v1  ;;  %v7206_v1 = vld [vmem:[%s9418_s1 + $0x3d0] sm:$0xff]  }
  0x3c   :  { %6454 = vmatpush3.bf16.msra.mxu0 %v7159_v2  ;;  %v7207_v2 = vld [vmem:[%s9418_s1 + $0x310] sm:$0xff]  }
  0x3d   :  { %6476 = vmatpush3.bf16.msra.mxu1 %v7160_v3  ;;  %6455 = vmatprep.subr.bf16.mxu0 %v7161_v4  ;;  %v7208_v3 = vld [vmem:[%s9418_s1 + $0x390] sm:$0xff]   ;;  %v7209_v4 = vld [vmem:[%s9418_s1 + $0x358] sm:$0xff]  }
  0x3e   :  { %6477 = vmatprep.subr.bf16.mxu1 %v7162_v5  ;;  %v7210_v5 = vld [vmem:[%s9418_s1 + $0x3d8] sm:$0xff]  }
  0x40   :  { %6456 = vmatpush3.bf16.msra.mxu0 %v7163_v6  ;;  %v7211_v6 = vld [vmem:[%s9418_s1 + $0x318] sm:$0xff]  }
  0x41   :  { %6478 = vmatpush3.bf16.msra.mxu1 %v7164_v7  ;;  %6485 = vmatprep.subr.bf16.mxu0 %v7165_v16  ;;  %v7212_v7 = vld [vmem:[%s9418_s1 + $0x398] sm:$0xff]   ;;  %v7221_v16 = vld [vmem:[%s9418_s1 + $0x370] sm:$0xff]  }
  0x42   :  { %6507 = vmatprep.subr.bf16.mxu1 %v7166_v17  ;;  %v7222_v17 = vld [vmem:[%s9418_s1 + $0x3f0] sm:$0xff]  }
  0x43   :  { %4617 = vmatmul.mubr.bf16.vlgmr.msra.gmra.mrb[4].mxu0 %v5825_v10  ;;  %v7215_v10 = vld [vmem:[%s9418_s1 + $0x320] sm:$0xff]  }
  0x44   :  { %4658 = vmatmul.mubr.bf16.vlgmr.msra.gmra.mrb[4].mxu1 %v5827_v14  ;;  %6486 = vmatpush3.bf16.msra.mxu0 %v7167_v18  ;;  %v7219_v14 = vld [vmem:[%s9418_s1 + $0x328] sm:$0xff]   ;;  %v7223_v18 = vld [vmem:[%s9418_s1 + $0x330] sm:$0xff]  }
  0x45   :  { %6508 = vmatpush3.bf16.msra.mxu1 %v7168_v19  ;;  %6487 = vmatprep.subr.bf16.mxu0 %v7169_v20  ;;  %v7224_v19 = vld [vmem:[%s9418_s1 + $0x3b0] sm:$0xff]   ;;  %v7225_v20 = vld [vmem:[%s9418_s1 + $0x378] sm:$0xff]  }
  0x46   :  { %6509 = vmatprep.subr.bf16.mxu1 %v7170_v21  ;;  %4698 = vmatprep.mubr.bf16.mxu0 %v5830_v53  ;;  %v7226_v21 = vld [vmem:[%s9418_s1 + $0x3f8] sm:$0xff]   ;;  %v7250_v53 = vld [vmem:[%s9418_s1 + $0x4e8] sm:$0xff]  }
  0x47   :  { %4739 = vmatprep.mubr.bf16.mxu1 %v5832_v55  ;;  %v7252_v55 = vld [vmem:[%s9418_s1 + $0x4a8] sm:$0xff]  }
  0x48   :  { %6488 = vmatpush3.bf16.msra.mxu0 %v7171_v22  ;;  %v7227_v22 = vld [vmem:[%s9418_s1 + $0x338] sm:$0xff]  }
  0x49   :  { %6510 = vmatpush3.bf16.msra.mxu1 %v7172_v23  ;;  %6489 = vmatprep.subr.bf16.mxu0 %v7173_v24  ;;  %v7228_v23 = vld [vmem:[%s9418_s1 + $0x3b8] sm:$0xff]   ;;  %v21_v24 = vld [vmem:[%s9419_s0 + $0x30] sm:$0xff] }
  0x4a   :  { %6511 = vmatprep.subr.bf16.mxu1 %v7174_v25  ;;  %v53_v25 = vld [vmem:[%s9419_s0 + $0x130] sm:$0xff] }
  0x4c   :  { %6490 = vmatpush3.bf16.msra.mxu0 %v7175_v26  ;;  %v22_v26 = vld [vmem:[%s9419_s0 + $0x38] sm:$0xff] }
  0x4d   :  { %6512 = vmatpush3.bf16.msra.mxu1 %v7176_v27  ;;  %6491 = vmatprep.subr.bf16.mxu0 %v7177_v28  ;;  %v5833_v27 = vcombine.low %v21_v24, %v53_v25  ;;  %v5834_v28 = vcombine.high %v21_v24, %v53_v25  ;;  %v7277_v24 = vld [vmem:[%s9418_s1 + $0x560] sm:$0xff]  }
  0x4e   :  { %6513 = vmatprep.subr.bf16.mxu1 %v7178_v29  ;;  %v54_v29 = vld [vmem:[%s9419_s0 + $0x138] sm:$0xff]  ;;  %v7278_v25 = vld [vmem:[%s9418_s1 + $0x5e0] sm:$0xff]  }
  0x50   :  { %6492 = vmatpush3.bf16.msra.mxu0 %v7179_v30  ;;  %v5835_v30 = vcombine.low %v22_v26, %v54_v29 }
  0x51   :  { %6514 = vmatpush3.bf16.msra.mxu1 %v7180_v31  ;;  %6493 = vmatprep.subr.bf16.mxu0 %v7181_v32  ;;  %v5836_v31 = vcombine.high %v22_v26, %v54_v29  ;;  %v7229_v32 = vld [vmem:[%s9418_s1 + $0x440] sm:$0xff]   ;;  %v7282_v29 = vld [vmem:[%s9418_s1 + $0x5e8] sm:$0xff]  }
  0x52   :  { %6515 = vmatprep.subr.bf16.mxu1 %v7182_v33  ;;  %v7230_v33 = vld [vmem:[%s9418_s1 + $0x4c0] sm:$0xff]  }
  0x53   :  { %v7279_v26 = vld [vmem:[%s9418_s1 + $0x520] sm:$0xff]  }
  0x54   :  { %6494 = vmatpush3.bf16.msra.mxu0 %v7183_v34  ;;  %v7231_v34 = vld [vmem:[%s9418_s1 + $0x400] sm:$0xff]  }
  0x55   :  { %6516 = vmatpush3.bf16.msra.mxu1 %v7184_v35  ;;  %6495 = vmatprep.subr.bf16.mxu0 %v7185_v36  ;;  %v7232_v35 = vld [vmem:[%s9418_s1 + $0x480] sm:$0xff]   ;;  %v7233_v36 = vld [vmem:[%s9418_s1 + $0x448] sm:$0xff]  }
  0x56   :  { %6517 = vmatprep.subr.bf16.mxu1 %v7186_v37  ;;  %v7234_v37 = vld [vmem:[%s9418_s1 + $0x4c8] sm:$0xff]  }
  0x58   :  { %6496 = vmatpush3.bf16.msra.mxu0 %v7187_v38  ;;  %v7235_v38 = vld [vmem:[%s9418_s1 + $0x408] sm:$0xff]  }
  0x59   :  { %6518 = vmatpush3.bf16.msra.mxu1 %v7188_v39  ;;  %6497 = vmatprep.subr.bf16.mxu0 %v7189_v40  ;;  %v7236_v39 = vld [vmem:[%s9418_s1 + $0x488] sm:$0xff]   ;;  %v7237_v40 = vld [vmem:[%s9418_s1 + $0x450] sm:$0xff]  }
  0x5a   :  { %6519 = vmatprep.subr.bf16.mxu1 %v7190_v41  ;;  %v7238_v41 = vld [vmem:[%s9418_s1 + $0x4d0] sm:$0xff]  }
  0x5c   :  { %6498 = vmatpush3.bf16.msra.mxu0 %v7191_v42  ;;  %v7239_v42 = vld [vmem:[%s9418_s1 + $0x410] sm:$0xff]  }
  0x5d   :  { %6520 = vmatpush3.bf16.msra.mxu1 %v7192_v43  ;;  %6499 = vmatprep.subr.bf16.mxu0 %v7193_v44  ;;  %v7240_v43 = vld [vmem:[%s9418_s1 + $0x490] sm:$0xff]   ;;  %v7241_v44 = vld [vmem:[%s9418_s1 + $0x458] sm:$0xff]  }
  0x5e   :  { %6521 = vmatprep.subr.bf16.mxu1 %v7194_v45  ;;  %v7242_v45 = vld [vmem:[%s9418_s1 + $0x4d8] sm:$0xff]  }
  0x60   :  { %6500 = vmatpush3.bf16.msra.mxu0 %v7195_v46  ;;  %v7243_v46 = vld [vmem:[%s9418_s1 + $0x418] sm:$0xff]  }
  0x61   :  { %6522 = vmatpush3.bf16.msra.mxu1 %v7196_v47  ;;  %6529 = vmatprep.subr.bf16.mxu0 %v7197_v56  ;;  %v7244_v47 = vld [vmem:[%s9418_s1 + $0x498] sm:$0xff]   ;;  %v7253_v56 = vld [vmem:[%s9418_s1 + $0x470] sm:$0xff]  }
  0x62   :  { %6551 = vmatprep.subr.bf16.mxu1 %v7198_v57  ;;  %v7254_v57 = vld [vmem:[%s9418_s1 + $0x4f0] sm:$0xff]  }
  0x63   :  { %4699 = vmatmul.mubr.bf16.vlgmr.msra.gmra.mrb[8].mxu0 %v5829_v52  ;;  %v7249_v52 = vld [vmem:[%s9418_s1 + $0x468] sm:$0xff]  }
  0x64   :  { %4740 = vmatmul.mubr.bf16.vlgmr.msra.gmra.mrb[8].mxu1 %v5831_v54  ;;  %6530 = vmatpush3.bf16.msra.mxu0 %v7199_v58  ;;  %v7251_v54 = vld [vmem:[%s9418_s1 + $0x428] sm:$0xff]   ;;  %v7255_v58 = vld [vmem:[%s9418_s1 + $0x430] sm:$0xff]  }
  0x65   :  { %6552 = vmatpush3.bf16.msra.mxu1 %v7200_v59  ;;  %6531 = vmatprep.subr.bf16.mxu0 %v7201_v60  ;;  %v7256_v59 = vld [vmem:[%s9418_s1 + $0x4b0] sm:$0xff]   ;;  %v7257_v60 = vld [vmem:[%s9418_s1 + $0x478] sm:$0xff]  }
  0x66   :  { %6553 = vmatprep.subr.bf16.mxu1 %v7202_v61  ;;  %4780 = vmatprep.mubr.bf16.mxu0 %v5834_v28  ;;  %v7258_v61 = vld [vmem:[%s9418_s1 + $0x4f8] sm:$0xff]   ;;  %v7281_v28 = vld [vmem:[%s9418_s1 + $0x568] sm:$0xff]  }
  0x67   :  { %4821 = vmatprep.mubr.bf16.mxu1 %v5836_v31  ;;  %v7284_v31 = vld [vmem:[%s9418_s1 + $0x5a8] sm:$0xff]  }
  0x68   :  { %6532 = vmatpush3.bf16.msra.mxu0 %v7203_v62  ;;  %v7259_v62 = vld [vmem:[%s9418_s1 + $0x438] sm:$0xff]  }
  0x69   :  { %6554 = vmatpush3.bf16.msra.mxu1 %v7204_v63  ;;  %6533 = vmatprep.subr.bf16.mxu0 %v7205_v0  ;;  %v7260_v63 = vld [vmem:[%s9418_s1 + $0x4b8] sm:$0xff]   ;;  %v23_v0 = vld [vmem:[%s9419_s0 + $0x40] sm:$0xff] }
  0x6a   :  { %6555 = vmatprep.subr.bf16.mxu1 %v7206_v1  ;;  %v55_v1 = vld [vmem:[%s9419_s0 + $0x140] sm:$0xff] }
  0x6c   :  { %6534 = vmatpush3.bf16.msra.mxu0 %v7207_v2  ;;  %v5837_v2 = vcombine.low %v23_v0, %v55_v1 }
  0x6d   :  { %6556 = vmatpush3.bf16.msra.mxu1 %v7208_v3  ;;  %6535 = vmatprep.subr.bf16.mxu0 %v7209_v4  ;;  %v5838_v3 = vcombine.high %v23_v0, %v55_v1  ;;  %v24_v4 = vld [vmem:[%s9419_s0 + $0x48] sm:$0xff]  ;;  %v7309_v0 = vld [vmem:[%s9418_s1 + $0x660] sm:$0xff]  }
  0x6e   :  { %6557 = vmatprep.subr.bf16.mxu1 %v7210_v5  ;;  %v56_v5 = vld [vmem:[%s9419_s0 + $0x148] sm:$0xff]  ;;  %v7310_v1 = vld [vmem:[%s9418_s1 + $0x6e0] sm:$0xff]  }
  0x70   :  { %6536 = vmatpush3.bf16.msra.mxu0 %v7211_v6  ;;  %v5839_v6 = vcombine.low %v24_v4, %v56_v5 }
  0x71   :  { %6558 = vmatpush3.bf16.msra.mxu1 %v7212_v7  ;;  %6537 = vmatprep.subr.bf16.mxu0 %v7213_v8  ;;  %v5840_v7 = vcombine.high %v24_v4, %v56_v5  ;;  %v7261_v8 = vld [vmem:[%s9418_s1 + $0x540] sm:$0xff]   ;;  %v7313_v4 = vld [vmem:[%s9418_s1 + $0x668] sm:$0xff]  }
  0x72   :  { %6559 = vmatprep.subr.bf16.mxu1 %v7214_v9  ;;  %v7262_v9 = vld [vmem:[%s9418_s1 + $0x5c0] sm:$0xff]   ;;  %v7314_v5 = vld [vmem:[%s9418_s1 + $0x6e8] sm:$0xff]  }
  0x74   :  { %6538 = vmatpush3.bf16.msra.mxu0 %v7215_v10  ;;  %v7263_v10 = vld [vmem:[%s9418_s1 + $0x500] sm:$0xff]  }
  0x75   :  { %6560 = vmatpush3.bf16.msra.mxu1 %v7216_v11  ;;  %6539 = vmatprep.subr.bf16.mxu0 %v7217_v12  ;;  %v7264_v11 = vld [vmem:[%s9418_s1 + $0x580] sm:$0xff]   ;;  %v7265_v12 = vld [vmem:[%s9418_s1 + $0x548] sm:$0xff]  }
  0x76   :  { %6561 = vmatprep.subr.bf16.mxu1 %v7218_v13  ;;  %v7266_v13 = vld [vmem:[%s9418_s1 + $0x5c8] sm:$0xff]  }
  0x78   :  { %6540 = vmatpush3.bf16.msra.mxu0 %v7219_v14  ;;  %v7267_v14 = vld [vmem:[%s9418_s1 + $0x508] sm:$0xff]  }
  0x79   :  { %6562 = vmatpush3.bf16.msra.mxu1 %v7220_v15  ;;  %6541 = vmatprep.subr.bf16.mxu0 %v7221_v16  ;;  %v7268_v15 = vld [vmem:[%s9418_s1 + $0x588] sm:$0xff]   ;;  %v7269_v16 = vld [vmem:[%s9418_s1 + $0x550] sm:$0xff]  }
  0x7a   :  { %6563 = vmatprep.subr.bf16.mxu1 %v7222_v17  ;;  %v7270_v17 = vld [vmem:[%s9418_s1 + $0x5d0] sm:$0xff]  }
  0x7c   :  { %6542 = vmatpush3.bf16.msra.mxu0 %v7223_v18  ;;  %v7271_v18 = vld [vmem:[%s9418_s1 + $0x510] sm:$0xff]  }
  0x7d   :  { %6564 = vmatpush3.bf16.msra.mxu1 %v7224_v19  ;;  %6543 = vmatprep.subr.bf16.mxu0 %v7225_v20  ;;  %v7272_v19 = vld [vmem:[%s9418_s1 + $0x590] sm:$0xff]   ;;  %v7273_v20 = vld [vmem:[%s9418_s1 + $0x558] sm:$0xff]  }
  0x7e   :  { %6565 = vmatprep.subr.bf16.mxu1 %v7226_v21  ;;  %v7274_v21 = vld [vmem:[%s9418_s1 + $0x5d8] sm:$0xff]  }
  0x80   :  { %6544 = vmatpush3.bf16.msra.mxu0 %v7227_v22  ;;  %v7275_v22 = vld [vmem:[%s9418_s1 + $0x518] sm:$0xff]  }
  0x81   :  { %6566 = vmatpush3.bf16.msra.mxu1 %v7228_v23  ;;  %6573 = vmatprep.subr.bf16.mxu0 %v7229_v32  ;;  %v7276_v23 = vld [vmem:[%s9418_s1 + $0x598] sm:$0xff]   ;;  %v7285_v32 = vld [vmem:[%s9418_s1 + $0x570] sm:$0xff]  }
  0x82   :  { %6595 = vmatprep.subr.bf16.mxu1 %v7230_v33  ;;  %v7286_v33 = vld [vmem:[%s9418_s1 + $0x5f0] sm:$0xff]  }
  0x83   :  { %4781 = vmatmul.mubr.bf16.vlgmr.msra.gmra.mrb[12].mxu0 %v5833_v27  ;;  %v7280_v27 = vld [vmem:[%s9418_s1 + $0x5a0] sm:$0xff]  }
  0x84   :  { %4822 = vmatmul.mubr.bf16.vlgmr.msra.gmra.mrb[12].mxu1 %v5835_v30  ;;  %6574 = vmatpush3.bf16.msra.mxu0 %v7231_v34  ;;  %v7283_v30 = vld [vmem:[%s9418_s1 + $0x528] sm:$0xff]   ;;  %v7287_v34 = vld [vmem:[%s9418_s1 + $0x530] sm:$0xff]  }
  0x85   :  { %6596 = vmatpush3.bf16.msra.mxu1 %v7232_v35  ;;  %6575 = vmatprep.subr.bf16.mxu0 %v7233_v36  ;;  %v7288_v35 = vld [vmem:[%s9418_s1 + $0x5b0] sm:$0xff]   ;;  %v7289_v36 = vld [vmem:[%s9418_s1 + $0x578] sm:$0xff]  }
  0x86   :  { %6597 = vmatprep.subr.bf16.mxu1 %v7234_v37  ;;  %4862 = vmatprep.mubr.bf16.mxu0 %v5838_v3  ;;  %v7290_v37 = vld [vmem:[%s9418_s1 + $0x5f8] sm:$0xff]   ;;  %v7312_v3 = vld [vmem:[%s9418_s1 + $0x6a0] sm:$0xff]  }
  0x87   :  { %4903 = vmatprep.mubr.bf16.mxu1 %v5840_v7  ;;  %v7316_v7 = vld [vmem:[%s9418_s1 + $0x6a8] sm:$0xff]  }
  0x88   :  { %6576 = vmatpush3.bf16.msra.mxu0 %v7235_v38  ;;  %v7291_v38 = vld [vmem:[%s9418_s1 + $0x538] sm:$0xff]  }
  0x89   :  { %6598 = vmatpush3.bf16.msra.mxu1 %v7236_v39  ;;  %6577 = vmatprep.subr.bf16.mxu0 %v7237_v40  ;;  %v7292_v39 = vld [vmem:[%s9418_s1 + $0x5b8] sm:$0xff]   ;;  %v25_v40 = vld [vmem:[%s9419_s0 + $0x50] sm:$0xff] }
  0x8a   :  { %6599 = vmatprep.subr.bf16.mxu1 %v7238_v41  ;;  %v57_v41 = vld [vmem:[%s9419_s0 + $0x150] sm:$0xff] }
  0x8c   :  { %6578 = vmatpush3.bf16.msra.mxu0 %v7239_v42  ;;  %v26_v42 = vld [vmem:[%s9419_s0 + $0x58] sm:$0xff] }
  0x8d   :  { %6600 = vmatpush3.bf16.msra.mxu1 %v7240_v43  ;;  %6579 = vmatprep.subr.bf16.mxu0 %v7241_v44  ;;  %v58_v43 = vld [vmem:[%s9419_s0 + $0x158] sm:$0xff]  ;;  %v5841_v44 = vcombine.low %v25_v40, %v57_v41 }
  0x8e   :  { %6601 = vmatprep.subr.bf16.mxu1 %v7242_v45  ;;  %v5842_v45 = vcombine.high %v25_v40, %v57_v41  ;;  %v7340_v41 = vld [vmem:[%s9418_s1 + $0x798] sm:$0xff]  }
  0x90   :  { %6580 = vmatpush3.bf16.msra.mxu0 %v7243_v46  ;;  %v5843_v46 = vcombine.low %v26_v42, %v58_v43 }
  0x91   :  { %6602 = vmatpush3.bf16.msra.mxu1 %v7244_v47  ;;  %6581 = vmatprep.subr.bf16.mxu0 %v7245_v48  ;;  %v5844_v47 = vcombine.high %v26_v42, %v58_v43  ;;  %v7293_v48 = vld [vmem:[%s9418_s1 + $0x640] sm:$0xff]  }
  0x92   :  { %6603 = vmatprep.subr.bf16.mxu1 %v7246_v49  ;;  %v7294_v49 = vld [vmem:[%s9418_s1 + $0x6c0] sm:$0xff]  }
  0x93   :  { %v7341_v43 = vld [vmem:[%s9418_s1 + $0x760] sm:$0xff]  }
  0x94   :  { %6582 = vmatpush3.bf16.msra.mxu0 %v7247_v50  ;;  %v7295_v50 = vld [vmem:[%s9418_s1 + $0x600] sm:$0xff]  }
  0x95   :  { %6604 = vmatpush3.bf16.msra.mxu1 %v7248_v51  ;;  %6583 = vmatprep.subr.bf16.mxu0 %v7249_v52  ;;  %v7296_v51 = vld [vmem:[%s9418_s1 + $0x680] sm:$0xff]   ;;  %v7297_v52 = vld [vmem:[%s9418_s1 + $0x648] sm:$0xff]  }
  0x96   :  { %6605 = vmatprep.subr.bf16.mxu1 %v7250_v53  ;;  %v7298_v53 = vld [vmem:[%s9418_s1 + $0x6c8] sm:$0xff]  }
  0x98   :  { %6584 = vmatpush3.bf16.msra.mxu0 %v7251_v54  ;;  %v7299_v54 = vld [vmem:[%s9418_s1 + $0x608] sm:$0xff]  }
  0x99   :  { %6606 = vmatpush3.bf16.msra.mxu1 %v7252_v55  ;;  %6585 = vmatprep.subr.bf16.mxu0 %v7253_v56  ;;  %v7300_v55 = vld [vmem:[%s9418_s1 + $0x688] sm:$0xff]   ;;  %v7301_v56 = vld [vmem:[%s9418_s1 + $0x650] sm:$0xff]  }
  0x9a   :  { %6607 = vmatprep.subr.bf16.mxu1 %v7254_v57  ;;  %v7302_v57 = vld [vmem:[%s9418_s1 + $0x6d0] sm:$0xff]  }
  0x9c   :  { %6586 = vmatpush3.bf16.msra.mxu0 %v7255_v58  ;;  %v7303_v58 = vld [vmem:[%s9418_s1 + $0x610] sm:$0xff]  }
  0x9d   :  { %6608 = vmatpush3.bf16.msra.mxu1 %v7256_v59  ;;  %6587 = vmatprep.subr.bf16.mxu0 %v7257_v60  ;;  %v7304_v59 = vld [vmem:[%s9418_s1 + $0x690] sm:$0xff]   ;;  %v7305_v60 = vld [vmem:[%s9418_s1 + $0x658] sm:$0xff]  }
  0x9e   :  { %6609 = vmatprep.subr.bf16.mxu1 %v7258_v61  ;;  %v7306_v61 = vld [vmem:[%s9418_s1 + $0x6d8] sm:$0xff]  }
  0xa0   :  { %6588 = vmatpush3.bf16.msra.mxu0 %v7259_v62  ;;  %v7307_v62 = vld [vmem:[%s9418_s1 + $0x618] sm:$0xff]  }
  0xa1   :  { %6610 = vmatpush3.bf16.msra.mxu1 %v7260_v63  ;;  %6617 = vmatprep.subr.bf16.mxu0 %v7261_v8  ;;  %v7308_v63 = vld [vmem:[%s9418_s1 + $0x698] sm:$0xff]   ;;  %v7317_v8 = vld [vmem:[%s9418_s1 + $0x670] sm:$0xff]  }
  0xa2   :  { %6639 = vmatprep.subr.bf16.mxu1 %v7262_v9  ;;  %v7318_v9 = vld [vmem:[%s9418_s1 + $0x6f0] sm:$0xff]  }
  0xa3   :  { %4863 = vmatmul.mubr.bf16.vlgmr.msra.gmra.mrb[16].mxu0 %v5837_v2  ;;  %v7311_v2 = vld [vmem:[%s9418_s1 + $0x620] sm:$0xff]  }
  0xa4   :  { %4904 = vmatmul.mubr.bf16.vlgmr.msra.gmra.mrb[16].mxu1 %v5839_v6  ;;  %6618 = vmatpush3.bf16.msra.mxu0 %v7263_v10  ;;  %v7315_v6 = vld [vmem:[%s9418_s1 + $0x628] sm:$0xff]   ;;  %v7319_v10 = vld [vmem:[%s9418_s1 + $0x630] sm:$0xff]  }
  0xa5   :  { %6640 = vmatpush3.bf16.msra.mxu1 %v7264_v11  ;;  %6619 = vmatprep.subr.bf16.mxu0 %v7265_v12  ;;  %v7320_v11 = vld [vmem:[%s9418_s1 + $0x6b0] sm:$0xff]   ;;  %v7321_v12 = vld [vmem:[%s9418_s1 + $0x678] sm:$0xff]  }
  0xa6   :  { %6641 = vmatprep.subr.bf16.mxu1 %v7266_v13  ;;  %4944 = vmatprep.mubr.bf16.mxu0 %v5842_v45  ;;  %v7322_v13 = vld [vmem:[%s9418_s1 + $0x6f8] sm:$0xff]  }
  0xa7   :  { %4985 = vmatprep.mubr.bf16.mxu1 %v5844_v47 }
  0xa8   :  { %6620 = vmatpush3.bf16.msra.mxu0 %v7267_v14  ;;  %v7323_v14 = vld [vmem:[%s9418_s1 + $0x638] sm:$0xff]  }
  0xa9   :  { %6642 = vmatpush3.bf16.msra.mxu1 %v7268_v15  ;;  %6621 = vmatprep.subr.bf16.mxu0 %v7269_v16  ;;  %v7324_v15 = vld [vmem:[%s9418_s1 + $0x6b8] sm:$0xff]   ;;  %v27_v16 = vld [vmem:[%s9419_s0 + $0x60] sm:$0xff] }
  0xaa   :  { %6643 = vmatprep.subr.bf16.mxu1 %v7270_v17  ;;  %v59_v17 = vld [vmem:[%s9419_s0 + $0x160] sm:$0xff] }
  0xac   :  { %6622 = vmatpush3.bf16.msra.mxu0 %v7271_v18  ;;  %v28_v18 = vld [vmem:[%s9419_s0 + $0x68] sm:$0xff] }
  0xad   :  { %6644 = vmatpush3.bf16.msra.mxu1 %v7272_v19  ;;  %6623 = vmatprep.subr.bf16.mxu0 %v7273_v20  ;;  %v5845_v19 = vcombine.low %v27_v16, %v59_v17  ;;  %v5846_v20 = vcombine.high %v27_v16, %v59_v17  ;;  %v7357_v17 = vld [vmem:[%s9418_s1 + $0x840] sm:$0xff]  }
  0xae   :  { %6645 = vmatprep.subr.bf16.mxu1 %v7274_v21  ;;  %v60_v21 = vld [vmem:[%s9419_s0 + $0x168] sm:$0xff] }
  0xb0   :  { %6624 = vmatpush3.bf16.msra.mxu0 %v7275_v22  ;;  %v5847_v22 = vcombine.low %v28_v18, %v60_v21 }
  0xb1   :  { %6646 = vmatpush3.bf16.msra.mxu1 %v7276_v23  ;;  %6625 = vmatprep.subr.bf16.mxu0 %v7277_v24  ;;  %v5848_v23 = vcombine.high %v28_v18, %v60_v21  ;;  %v7325_v24 = vld [vmem:[%s9418_s1 + $0x740] sm:$0xff]   ;;  %v7361_v21 = vld [vmem:[%s9418_s1 + $0x848] sm:$0xff]  }
  0xb2   :  { %6647 = vmatprep.subr.bf16.mxu1 %v7278_v25  ;;  %v7326_v25 = vld [vmem:[%s9418_s1 + $0x7c0] sm:$0xff]  }
  0xb3   :  { %v7358_v18 = vld [vmem:[%s9418_s1 + $0x8c0] sm:$0xff]  }
  0xb4   :  { %6626 = vmatpush3.bf16.msra.mxu0 %v7279_v26  ;;  %v7327_v26 = vld [vmem:[%s9418_s1 + $0x700] sm:$0xff]  }
  0xb5   :  { %6648 = vmatpush3.bf16.msra.mxu1 %v7280_v27  ;;  %6627 = vmatprep.subr.bf16.mxu0 %v7281_v28  ;;  %v7328_v27 = vld [vmem:[%s9418_s1 + $0x780] sm:$0xff]   ;;  %v7329_v28 = vld [vmem:[%s9418_s1 + $0x748] sm:$0xff]  }
  0xb6   :  { %6649 = vmatprep.subr.bf16.mxu1 %v7282_v29  ;;  %v7330_v29 = vld [vmem:[%s9418_s1 + $0x7c8] sm:$0xff]  }
  0xb8   :  { %6628 = vmatpush3.bf16.msra.mxu0 %v7283_v30  ;;  %v7331_v30 = vld [vmem:[%s9418_s1 + $0x708] sm:$0xff]  }
  0xb9   :  { %6650 = vmatpush3.bf16.msra.mxu1 %v7284_v31  ;;  %6629 = vmatprep.subr.bf16.mxu0 %v7285_v32  ;;  %v7332_v31 = vld [vmem:[%s9418_s1 + $0x788] sm:$0xff]   ;;  %v7333_v32 = vld [vmem:[%s9418_s1 + $0x750] sm:$0xff]  }
  0xba   :  { %6651 = vmatprep.subr.bf16.mxu1 %v7286_v33  ;;  %v7334_v33 = vld [vmem:[%s9418_s1 + $0x7d0] sm:$0xff]  }
  0xbc   :  { %6630 = vmatpush3.bf16.msra.mxu0 %v7287_v34  ;;  %v7335_v34 = vld [vmem:[%s9418_s1 + $0x710] sm:$0xff]  }
  0xbd   :  { %6652 = vmatpush3.bf16.msra.mxu1 %v7288_v35  ;;  %6631 = vmatprep.subr.bf16.mxu0 %v7289_v36  ;;  %v7336_v35 = vld [vmem:[%s9418_s1 + $0x790] sm:$0xff]   ;;  %v7337_v36 = vld [vmem:[%s9418_s1 + $0x758] sm:$0xff]  }
  0xbe   :  { %6653 = vmatprep.subr.bf16.mxu1 %v7290_v37  ;;  %v7338_v37 = vld [vmem:[%s9418_s1 + $0x7d8] sm:$0xff]  }
  0xc0   :  { %6632 = vmatpush3.bf16.msra.mxu0 %v7291_v38 }
  0xc1   :  { %6654 = vmatpush3.bf16.msra.mxu1 %v7292_v39  ;;  %6661 = vmatprep.subr.bf16.mxu0 %v7293_v48  ;;  %v7339_v39 = vld [vmem:[%s9418_s1 + $0x718] sm:$0xff]  }
  0xc2   :  { %6683 = vmatprep.subr.bf16.mxu1 %v7294_v49  ;;  %v7343_v49 = vld [vmem:[%s9418_s1 + $0x720] sm:$0xff]  }
  0xc3   :  { %4945 = vmatmul.mubr.bf16.vlgmr.msra.gmra.mrb[20].mxu0 %v5841_v44 }
  0xc4   :  { %4986 = vmatmul.mubr.bf16.vlgmr.msra.gmra.mrb[20].mxu1 %v5843_v46  ;;  %6662 = vmatpush3.bf16.msra.mxu0 %v7295_v50  ;;  %v7342_v46 = vld [vmem:[%s9418_s1 + $0x7e0] sm:$0xff]  }
  0xc5   :  { %6684 = vmatpush3.bf16.msra.mxu1 %v7296_v51  ;;  %6663 = vmatprep.subr.bf16.mxu0 %v7297_v52  ;;  %v7344_v51 = vld [vmem:[%s9418_s1 + $0x7a0] sm:$0xff]  }
  0xc6   :  { %6685 = vmatprep.subr.bf16.mxu1 %v7298_v53  ;;  %5026 = vmatprep.mubr.bf16.mxu0 %v5846_v20  ;;  %v5820_v52 = vld [vmem:[%s9420_s2] ss:$0 sm:$0xff] }
  0xc7   :  { %5067 = vmatprep.mubr.bf16.mxu1 %v5848_v23  ;;  %v7360_v20 = vld [vmem:[%s9418_s1 + $0x880] sm:$0xff]   ;;  %v7363_v23 = vld [vmem:[%s9418_s1 + $0x808] sm:$0xff]  }
  0xc8   :  { %6664 = vmatpush3.bf16.msra.mxu0 %v7299_v54 }
  0xc9   :  { %6686 = vmatpush3.bf16.msra.mxu1 %v7300_v55  ;;  %6665 = vmatprep.subr.bf16.mxu0 %v7301_v56  ;;  %v7345_v55 = vld [vmem:[%s9418_s1 + $0x768] sm:$0xff]  }
  0xca   :  { %6687 = vmatprep.subr.bf16.mxu1 %v7302_v57 }
  0xcc   :  { %6666 = vmatpush3.bf16.msra.mxu0 %v7303_v58  ;;  %v7346_v58 = vld [vmem:[%s9418_s1 + $0x7e8] sm:$0xff]  }
  0xcd   :  { %6688 = vmatpush3.bf16.msra.mxu1 %v7304_v59  ;;  %6667 = vmatprep.subr.bf16.mxu0 %v7305_v60 }
  0xce   :  { %6689 = vmatprep.subr.bf16.mxu1 %v7306_v61  ;;  %v7347_v61 = vld [vmem:[%s9418_s1 + $0x728] sm:$0xff]  }
  0xd0   :  { %6668 = vmatpush3.bf16.msra.mxu0 %v7307_v62 }
  0xd1   :  { %6690 = vmatpush3.bf16.msra.mxu1 %v7308_v63  ;;  %6669 = vmatprep.subr.bf16.mxu0 %v7309_v0  ;;  %v7348_v63 = vld [vmem:[%s9418_s1 + $0x7a8] sm:$0xff]  }
  0xd2   :  { %6691 = vmatprep.subr.bf16.mxu1 %v7310_v1  ;;  %v7349_v1 = vld [vmem:[%s9418_s1 + $0x770] sm:$0xff]  }
  0xd4   :  { %6670 = vmatpush3.bf16.msra.mxu0 %v7311_v2  ;;  %v7350_v2 = vld [vmem:[%s9418_s1 + $0x7f0] sm:$0xff]  }
  0xd5   :  { %6692 = vmatpush3.bf16.msra.mxu1 %v7312_v3  ;;  %6671 = vmatprep.subr.bf16.mxu0 %v7313_v4  ;;  %v7351_v3 = vld [vmem:[%s9418_s1 + $0x730] sm:$0xff]  }
  0xd6   :  { %6693 = vmatprep.subr.bf16.mxu1 %v7314_v5  ;;  %v7352_v4 = vld [vmem:[%s9418_s1 + $0x7b0] sm:$0xff]   ;;  %v7353_v5 = vld [vmem:[%s9418_s1 + $0x778] sm:$0xff]  }
  0xd8   :  { %6672 = vmatpush3.bf16.msra.mxu0 %v7315_v6  ;;  %v7354_v6 = vld [vmem:[%s9418_s1 + $0x7f8] sm:$0xff]  }
  0xd9   :  { %6694 = vmatpush3.bf16.msra.mxu1 %v7316_v7  ;;  %6673 = vmatprep.subr.bf16.mxu0 %v7317_v8  ;;  %v7355_v7 = vld [vmem:[%s9418_s1 + $0x738] sm:$0xff]  }
  0xda   :  { %6695 = vmatprep.subr.bf16.mxu1 %v7318_v9  ;;  %v7356_v8 = vld [vmem:[%s9418_s1 + $0x7b8] sm:$0xff]   ;;  %v29_v9 = vld [vmem:[%s9419_s0 + $0x70] sm:$0xff] }
  0xdc   :  { %6674 = vmatpush3.bf16.msra.mxu0 %v7319_v10  ;;  %v61_v10 = vld [vmem:[%s9419_s0 + $0x170] sm:$0xff] }
  0xdd   :  { %6696 = vmatpush3.bf16.msra.mxu1 %v7320_v11  ;;  %6675 = vmatprep.subr.bf16.mxu0 %v7321_v12  ;;  %v30_v11 = vld [vmem:[%s9419_s0 + $0x78] sm:$0xff] }
  0xde   :  { %6697 = vmatprep.subr.bf16.mxu1 %v7322_v13  ;;  %v62_v12 = vld [vmem:[%s9419_s0 + $0x178] sm:$0xff]  ;;  %v5849_v13 = vcombine.low %v29_v9, %v61_v10 }
  0xdf   :  { %v5852_v16 = vcombine.high %v30_v11, %v62_v12 }
  0xe0   :  { %6676 = vmatpush3.bf16.msra.mxu0 %v7323_v14  ;;  %v5850_v14 = vcombine.high %v29_v9, %v61_v10  ;;  %v7389_v9 = vld [vmem:[%s9418_s1 + $0x940] sm:$0xff]  }
  0xe1   :  { %6698 = vmatpush3.bf16.msra.mxu1 %v7324_v15  ;;  %6705 = vmatprep.subr.bf16.mxu0 %v7325_v24  ;;  %v5851_v15 = vcombine.low %v30_v11, %v62_v12  ;;  %v7364_v24 = vld [vmem:[%s9418_s1 + $0x888] sm:$0xff]   ;;  %v7390_v10 = vld [vmem:[%s9418_s1 + $0x9c0] sm:$0xff]  }
  0xe2   :  { %6727 = vmatprep.subr.bf16.mxu1 %v7326_v25  ;;  %v7365_v25 = vld [vmem:[%s9418_s1 + $0x850] sm:$0xff]   ;;  %v7391_v11 = vld [vmem:[%s9418_s1 + $0x900] sm:$0xff]  }
  0xe3   :  { %5027 = vmatmul.mubr.bf16.vlgmr.msra.gmra.mrb[24].mxu0 %v5845_v19  ;;  %v7359_v19 = vld [vmem:[%s9418_s1 + $0x800] sm:$0xff]  }
  0xe4   :  { %5068 = vmatmul.mubr.bf16.vlgmr.msra.gmra.mrb[24].mxu1 %v5847_v22  ;;  %6706 = vmatpush3.bf16.msra.mxu0 %v7327_v26  ;;  %v7362_v22 = vld [vmem:[%s9418_s1 + $0x8c8] sm:$0xff]   ;;  %v7366_v26 = vld [vmem:[%s9418_s1 + $0x8d0] sm:$0xff]   ;;  %v7392_v12 = vld [vmem:[%s9418_s1 + $0x980] sm:$0xff]  }
  0xe5   :  { %6728 = vmatpush3.bf16.msra.mxu1 %v7328_v27  ;;  %6707 = vmatprep.subr.bf16.mxu0 %v7329_v28  ;;  %v7367_v27 = vld [vmem:[%s9418_s1 + $0x810] sm:$0xff]  }
  0xe6   :  { %6729 = vmatprep.subr.bf16.mxu1 %v7330_v29  ;;  %5108 = vmatprep.mubr.bf16.mxu0 %v5850_v14  ;;  %v7368_v28 = vld [vmem:[%s9418_s1 + $0x890] sm:$0xff]   ;;  %v7369_v29 = vld [vmem:[%s9418_s1 + $0x858] sm:$0xff]   ;;  %v7394_v14 = vld [vmem:[%s9418_s1 + $0x9c8] sm:$0xff]  }
  0xe7   :  { %5149 = vmatprep.mubr.bf16.mxu1 %v5852_v16  ;;  %v7396_v16 = vld [vmem:[%s9418_s1 + $0x988] sm:$0xff]  }
  0xe8   :  { %6708 = vmatpush3.bf16.msra.mxu0 %v7331_v30  ;;  %v7370_v30 = vld [vmem:[%s9418_s1 + $0x8d8] sm:$0xff]  }
  0xe9   :  { %6730 = vmatpush3.bf16.msra.mxu1 %v7332_v31  ;;  %6709 = vmatprep.subr.bf16.mxu0 %v7333_v32  ;;  %v7371_v32 = vld [vmem:[%s9418_s1 + $0x818] sm:$0xff]  }
  0xea   :  { %6731 = vmatprep.subr.bf16.mxu1 %v7334_v33 }
  0xec   :  { %6710 = vmatpush3.bf16.msra.mxu0 %v7335_v34  ;;  %v7372_v34 = vld [vmem:[%s9418_s1 + $0x898] sm:$0xff]  }
  0xed   :  { %6732 = vmatpush3.bf16.msra.mxu1 %v7336_v35  ;;  %6711 = vmatprep.subr.bf16.mxu0 %v7337_v36  ;;  %v7373_v36 = vld [vmem:[%s9418_s1 + $0x860] sm:$0xff]  }
  0xee   :  { %6733 = vmatprep.subr.bf16.mxu1 %v7338_v37 }
  0xf0   :  { %6712 = vmatpush3.bf16.msra.mxu0 %v7339_v39  ;;  %v7374_v39 = vld [vmem:[%s9418_s1 + $0x8e0] sm:$0xff]  }
  0xf1   :  { %6734 = vmatpush3.bf16.msra.mxu1 %v7340_v41  ;;  %6713 = vmatprep.subr.bf16.mxu0 %v7341_v43 }
  0xf2   :  { %6735 = vmatprep.subr.bf16.mxu1 %v7342_v46 }
  0xf4   :  { %6714 = vmatpush3.bf16.msra.mxu0 %v7343_v49 }
  0xf5   :  { %6736 = vmatpush3.bf16.msra.mxu1 %v7344_v51  ;;  %6715 = vmatprep.subr.bf16.mxu0 %v7345_v55  ;;  %v7378_v51 = vld [vmem:[%s9418_s1 + $0x8e8] sm:$0xff]  }
  0xf6   :  { %v6413_v38 = vpop.f32.mrb[0].mxu0  ;;  %6737 = vmatprep.subr.bf16.mxu1 %v7346_v58  ;;  %v7380_v55 = vld [vmem:[%s9418_s1 + $0x8a8] sm:$0xff]   ;;  %v7382_v58 = vld [vmem:[%s9418_s1 + $0x8f0] sm:$0xff]  }
  0xf7   :  { %v6435_v40 = vpop.f32.mrb[0].mxu1  ;;  %v6414_v42 = vpop.f32.mrb[1].mxu0 }
  0xf8   :  { %v6415_v44 = vadd.f32 %v6414_v42, %v6413_v38  ;;  %v6436_v45 = vpop.f32.mrb[1].mxu1  ;;  %v6416_v48 = vpop.f32.mrb[2].mxu0  ;;  %6716 = vmatpush3.bf16.msra.mxu0 %v7347_v61  ;;  %v7375_v42 = vld [vmem:[%s9418_s1 + $0x820] sm:$0xff]   ;;  %v7385_v61 = vld [vmem:[%s9418_s1 + $0x878] sm:$0xff]  }
  0xf9   :  { %v6437_v47 = vadd.f32 %v6436_v45, %v6435_v40  ;;  %v6438_v50 = vpop.f32.mrb[2].mxu1  ;;  %v6417_v53 = vpop.f32.mrb[3].mxu0  ;;  %6738 = vmatpush3.bf16.msra.mxu1 %v7348_v63  ;;  %6717 = vmatprep.subr.bf16.mxu0 %v7349_v1  ;;  %v7376_v45 = vld [vmem:[%s9418_s1 + $0x8a0] sm:$0xff]   ;;  %v7387_v63 = vld [vmem:[%s9418_s1 + $0x838] sm:$0xff]  }
  0xfa   :  { %v4537_v54 = vadd.f32 %v6415_v44, %v5820_v52  ;;  %v6418_v56 = vadd.f32 %v6417_v53, %v6416_v48  ;;  %v6439_v57 = vpop.f32.mrb[3].mxu1  ;;  %6739 = vmatprep.subr.bf16.mxu1 %v7350_v2  ;;  %v7377_v48 = vld [vmem:[%s9418_s1 + $0x868] sm:$0xff]   ;;  %v31_v1 = vld [vmem:[%s9419_s0 + $0x80] sm:$0xff] }
  0xfb   :  { %v6440_v59 = vadd.f32 %v6439_v57, %v6438_v50  ;;  %v7379_v53 = vld [vmem:[%s9418_s1 + $0x828] sm:$0xff]   ;;  %v7381_v57 = vld [vmem:[%s9418_s1 + $0x870] sm:$0xff]   ;;  %v63_v2 = vld [vmem:[%s9419_s0 + $0x180] sm:$0xff] }
  0xfc   :  { %v8458_v60 = vadd.f32 %v6437_v47, %v4537_v54  ;;  %v4540_v62 = vadd.f32 %v6418_v56, %v5820_v52  ;;  %6718 = vmatpush3.bf16.msra.mxu0 %v7351_v3  ;;  %v32_v3 = vld [vmem:[%s9419_s0 + $0x88] sm:$0xff] }
  0xfd   :  { %6740 = vmatpush3.bf16.msra.mxu1 %v7352_v4  ;;  %6719 = vmatprep.subr.bf16.mxu0 %v7353_v5  ;;  %v5853_v4 = vcombine.low %v31_v1, %v63_v2  ;;  %v5854_v5 = vcombine.high %v31_v1, %v63_v2  ;;  %v7421_v1 = vld [vmem:[%s9418_s1 + $0xa40] sm:$0xff]  }
  0xfe   :  { %v8466_v0 = vadd.f32 %v6440_v59, %v4540_v62  ;;  %6741 = vmatprep.subr.bf16.mxu1 %v7354_v6  ;;  %v7383_v59 = vld [vmem:[%s9418_s1 + $0x830] sm:$0xff]   ;;  %v7386_v62 = vld [vmem:[%s9418_s1 + $0x8f8] sm:$0xff]   ;;  %v64_v6 = vld [vmem:[%s9419_s0 + $0x188] sm:$0xff] }
  0xff   :  { %v7422_v2 = vld [vmem:[%s9418_s1 + $0xac0] sm:$0xff]  }
 0x100   :  { %6720 = vmatpush3.bf16.msra.mxu0 %v7355_v7  ;;  %v5855_v7 = vcombine.low %v32_v3, %v64_v6 }
 0x101   :  { %6742 = vmatpush3.bf16.msra.mxu1 %v7356_v8  ;;  %6749 = vmatprep.subr.bf16.mxu0 %v7357_v17  ;;  %v5856_v8 = vcombine.high %v32_v3, %v64_v6  ;;  %v7397_v17 = vld [vmem:[%s9418_s1 + $0x950] sm:$0xff]   ;;  %v7423_v3 = vld [vmem:[%s9418_s1 + $0xa00] sm:$0xff]   ;;  %v7426_v6 = vld [vmem:[%s9418_s1 + $0xac8] sm:$0xff]  }
 0x102   :  { %6771 = vmatprep.subr.bf16.mxu1 %v7358_v18  ;;  %v7398_v18 = vld [vmem:[%s9418_s1 + $0x9d0] sm:$0xff]  }
 0x103   :  { %5109 = vmatmul.mubr.bf16.vlgmr.msra.gmra.mrb[28].mxu0 %v5849_v13  ;;  %v7393_v13 = vld [vmem:[%s9418_s1 + $0x948] sm:$0xff]  }
 0x104   :  { %5150 = vmatmul.mubr.bf16.vlgmr.msra.gmra.mrb[28].mxu1 %v5851_v15  ;;  %6750 = vmatpush3.bf16.msra.mxu0 %v7359_v19  ;;  %v7395_v15 = vld [vmem:[%s9418_s1 + $0x908] sm:$0xff]   ;;  %v7399_v19 = vld [vmem:[%s9418_s1 + $0x910] sm:$0xff]  }
 0x105   :  { %6772 = vmatpush3.bf16.msra.mxu1 %v7360_v20  ;;  %6751 = vmatprep.subr.bf16.mxu0 %v7361_v21  ;;  %v7400_v20 = vld [vmem:[%s9418_s1 + $0x990] sm:$0xff]   ;;  %v7401_v21 = vld [vmem:[%s9418_s1 + $0x958] sm:$0xff]  }
 0x106   :  { %6773 = vmatprep.subr.bf16.mxu1 %v7362_v22  ;;  %5190 = vmatprep.mubr.bf16.mxu0 %v5854_v5  ;;  %v7402_v22 = vld [vmem:[%s9418_s1 + $0x9d8] sm:$0xff]   ;;  %v7425_v5 = vld [vmem:[%s9418_s1 + $0xa48] sm:$0xff]  }
 0x107   :  { %5231 = vmatprep.mubr.bf16.mxu1 %v5856_v8  ;;  %v7428_v8 = vld [vmem:[%s9418_s1 + $0xa88] sm:$0xff]  }
 0x108   :  { %6752 = vmatpush3.bf16.msra.mxu0 %v7363_v23 }
 0x109   :  { %6774 = vmatpush3.bf16.msra.mxu1 %v7364_v24  ;;  %6753 = vmatprep.subr.bf16.mxu0 %v7365_v25  ;;  %v7403_v24 = vld [vmem:[%s9418_s1 + $0x918] sm:$0xff]  }
 0x10a   :  { %6775 = vmatprep.subr.bf16.mxu1 %v7366_v26  ;;  %v7404_v26 = vld [vmem:[%s9418_s1 + $0x998] sm:$0xff]  }
 0x10c   :  { %6754 = vmatpush3.bf16.msra.mxu0 %v7367_v27 }
 0x10d   :  { %6776 = vmatpush3.bf16.msra.mxu1 %v7368_v28  ;;  %6755 = vmatprep.subr.bf16.mxu0 %v7369_v29  ;;  %v7405_v28 = vld [vmem:[%s9418_s1 + $0x960] sm:$0xff]  }
 0x10e   :  { %6777 = vmatprep.subr.bf16.mxu1 %v7370_v30 }
 0x110   :  { %6756 = vmatpush3.bf16.msra.mxu0 %v7371_v32 }
 0x111   :  { %6778 = vmatpush3.bf16.msra.mxu1 %v7372_v34  ;;  %6757 = vmatprep.subr.bf16.mxu0 %v7373_v36  ;;  %v7407_v34 = vld [vmem:[%s9418_s1 + $0x920] sm:$0xff]  }
 0x112   :  { %6779 = vmatprep.subr.bf16.mxu1 %v7374_v39 }
 0x114   :  { %6758 = vmatpush3.bf16.msra.mxu0 %v7375_v42 }
 0x115   :  { %6780 = vmatpush3.bf16.msra.mxu1 %v7376_v45  ;;  %6759 = vmatprep.subr.bf16.mxu0 %v7377_v48  ;;  %v7411_v45 = vld [vmem:[%s9418_s1 + $0x928] sm:$0xff]  }
 0x116   :  { %v6457_v31 = vpop.f32.mrb[4].mxu0  ;;  %6781 = vmatprep.subr.bf16.mxu1 %v7378_v51  ;;  %v7415_v51 = vld [vmem:[%s9418_s1 + $0x930] sm:$0xff]  }
 0x117   :  { %v6479_v33 = vpop.f32.mrb[4].mxu1  ;;  %v6458_v35 = vpop.f32.mrb[5].mxu0 }
 0x118   :  { %v6459_v37 = vadd.f32 %v6458_v35, %v6457_v31  ;;  %v6480_v38 = vpop.f32.mrb[5].mxu1  ;;  %v6460_v41 = vpop.f32.mrb[6].mxu0  ;;  %6760 = vmatpush3.bf16.msra.mxu0 %v7379_v53  ;;  %v7406_v31 = vld [vmem:[%s9418_s1 + $0x9e0] sm:$0xff]   ;;  %v7417_v53 = vld [vmem:[%s9418_s1 + $0x978] sm:$0xff]  }
 0x119   :  { %v6481_v40 = vadd.f32 %v6480_v38, %v6479_v33  ;;  %v6482_v44 = vpop.f32.mrb[6].mxu1  ;;  %v6461_v46 = vpop.f32.mrb[7].mxu0  ;;  %6782 = vmatpush3.bf16.msra.mxu1 %v7380_v55  ;;  %6761 = vmatprep.subr.bf16.mxu0 %v7381_v57  ;;  %v7419_v55 = vld [vmem:[%s9418_s1 + $0x938] sm:$0xff]   ;;  %v33_v57 = vld [vmem:[%s9419_s0 + $0x90] sm:$0xff] }
 0x11a   :  { %v4619_v43 = vadd.f32 %v6459_v37, %v8458_v60  ;;  %v6462_v49 = vadd.f32 %v6461_v46, %v6460_v41  ;;  %v6483_v50 = vpop.f32.mrb[7].mxu1  ;;  %6783 = vmatprep.subr.bf16.mxu1 %v7382_v58  ;;  %v7384_v60 = vld [vmem:[%s9418_s1 + $0x8b0] sm:$0xff]   ;;  %v7408_v37 = vld [vmem:[%s9418_s1 + $0x9a0] sm:$0xff]  }
 0x11b   :  { %v6484_v52 = vadd.f32 %v6483_v50, %v6482_v44  ;;  %v7414_v50 = vld [vmem:[%s9418_s1 + $0x9f0] sm:$0xff]  }
 0x11c   :  { %v8565_v47 = vadd.f32 %v6481_v40, %v4619_v43  ;;  %v4622_v54 = vadd.f32 %v6462_v49, %v8466_v0  ;;  %6762 = vmatpush3.bf16.msra.mxu0 %v7383_v59  ;;  %v7388_v0 = vld [vmem:[%s9418_s1 + $0x8b8] sm:$0xff]   ;;  %v7409_v40 = vld [vmem:[%s9418_s1 + $0x968] sm:$0xff]   ;;  %v7413_v49 = vld [vmem:[%s9418_s1 + $0x970] sm:$0xff]  }
 0x11d   :  { %6784 = vmatpush3.bf16.msra.mxu1 %v7384_v60  ;;  %6763 = vmatprep.subr.bf16.mxu0 %v7385_v61  ;;  %v7410_v43 = vld [vmem:[%s9418_s1 + $0x9e8] sm:$0xff]   ;;  %v65_v58 = vld [vmem:[%s9419_s0 + $0x190] sm:$0xff]  ;;  %v34_v61 = vld [vmem:[%s9419_s0 + $0x98] sm:$0xff] }
 0x11e   :  { %v8580_v56 = vadd.f32 %v6484_v52, %v4622_v54  ;;  %6785 = vmatprep.subr.bf16.mxu1 %v7386_v62  ;;  %v7416_v52 = vld [vmem:[%s9418_s1 + $0x9b0] sm:$0xff]   ;;  %v7418_v54 = vld [vmem:[%s9418_s1 + $0x9f8] sm:$0xff]   ;;  %v5857_v59 = vcombine.low %v33_v57, %v65_v58  ;;  %v5858_v60 = vcombine.high %v33_v57, %v65_v58  ;;  %v7453_v57 = vld [vmem:[%s9418_s1 + $0xb40] sm:$0xff]  }
 0x11f   :  { %v66_v62 = vld [vmem:[%s9419_s0 + $0x198] sm:$0xff]  ;;  %v7454_v58 = vld [vmem:[%s9418_s1 + $0xbc0] sm:$0xff]  }
 0x120   :  { %6764 = vmatpush3.bf16.msra.mxu0 %v7387_v63  ;;  %v5859_v63 = vcombine.low %v34_v61, %v66_v62 }
 0x121   :  { %6786 = vmatpush3.bf16.msra.mxu1 %v7388_v0  ;;  %6793 = vmatprep.subr.bf16.mxu0 %v7389_v9  ;;  %v5860_v0 = vcombine.high %v34_v61, %v66_v62  ;;  %v7429_v9 = vld [vmem:[%s9418_s1 + $0xa50] sm:$0xff]   ;;  %v7457_v61 = vld [vmem:[%s9418_s1 + $0xb48] sm:$0xff]  }
 0x122   :  { %6815 = vmatprep.subr.bf16.mxu1 %v7390_v10  ;;  %v7430_v10 = vld [vmem:[%s9418_s1 + $0xad0] sm:$0xff]   ;;  %v7458_v62 = vld [vmem:[%s9418_s1 + $0xbc8] sm:$0xff]  }
 0x123   :  { %5191 = vmatmul.mubr.bf16.vlgmr.msra.gmra.mrb[32].mxu0 %v5853_v4  ;;  %v7424_v4 = vld [vmem:[%s9418_s1 + $0xa80] sm:$0xff]  }
 0x124   :  { %5232 = vmatmul.mubr.bf16.vlgmr.msra.gmra.mrb[32].mxu1 %v5855_v7  ;;  %6794 = vmatpush3.bf16.msra.mxu0 %v7391_v11  ;;  %v7427_v7 = vld [vmem:[%s9418_s1 + $0xa08] sm:$0xff]   ;;  %v7431_v11 = vld [vmem:[%s9418_s1 + $0xa10] sm:$0xff]  }
 0x125   :  { %6816 = vmatpush3.bf16.msra.mxu1 %v7392_v12  ;;  %6795 = vmatprep.subr.bf16.mxu0 %v7393_v13  ;;  %v7432_v12 = vld [vmem:[%s9418_s1 + $0xa90] sm:$0xff]   ;;  %v7433_v13 = vld [vmem:[%s9418_s1 + $0xa58] sm:$0xff]  }
 0x126   :  { %6817 = vmatprep.subr.bf16.mxu1 %v7394_v14  ;;  %5272 = vmatprep.mubr.bf16.mxu0 %v5858_v60  ;;  %v7434_v14 = vld [vmem:[%s9418_s1 + $0xad8] sm:$0xff]   ;;  %v7456_v60 = vld [vmem:[%s9418_s1 + $0xb80] sm:$0xff]  }
 0x127   :  { %5313 = vmatprep.mubr.bf16.mxu1 %v5860_v0  ;;  %v7460_v0 = vld [vmem:[%s9418_s1 + $0xb88] sm:$0xff]  }
 0x128   :  { %6796 = vmatpush3.bf16.msra.mxu0 %v7395_v15 }
 0x129   :  { %6818 = vmatpush3.bf16.msra.mxu1 %v7396_v16  ;;  %6797 = vmatprep.subr.bf16.mxu0 %v7397_v17  ;;  %v7435_v16 = vld [vmem:[%s9418_s1 + $0xa18] sm:$0xff]  }
 0x12a   :  { %6819 = vmatprep.subr.bf16.mxu1 %v7398_v18  ;;  %v7436_v18 = vld [vmem:[%s9418_s1 + $0xa98] sm:$0xff]  }
 0x12c   :  { %6798 = vmatpush3.bf16.msra.mxu0 %v7399_v19 }
 0x12d   :  { %6820 = vmatpush3.bf16.msra.mxu1 %v7400_v20  ;;  %6799 = vmatprep.subr.bf16.mxu0 %v7401_v21  ;;  %v7437_v20 = vld [vmem:[%s9418_s1 + $0xa60] sm:$0xff]  }
 0x12e   :  { %6821 = vmatprep.subr.bf16.mxu1 %v7402_v22 }
 0x130   :  { %6800 = vmatpush3.bf16.msra.mxu0 %v7403_v24 }
 0x131   :  { %6822 = vmatpush3.bf16.msra.mxu1 %v7404_v26  ;;  %6801 = vmatprep.subr.bf16.mxu0 %v7405_v28  ;;  %v7439_v26 = vld [vmem:[%s9418_s1 + $0xa20] sm:$0xff]  }
 0x132   :  { %6823 = vmatprep.subr.bf16.mxu1 %v7406_v31 }
 0x134   :  { %6802 = vmatpush3.bf16.msra.mxu0 %v7407_v34 }
 0x135   :  { %6824 = vmatpush3.bf16.msra.mxu1 %v7408_v37  ;;  %6803 = vmatprep.subr.bf16.mxu0 %v7409_v40  ;;  %v7443_v37 = vld [vmem:[%s9418_s1 + $0xa28] sm:$0xff]  }
 0x136   :  { %v6501_v23 = vpop.f32.mrb[8].mxu0  ;;  %6825 = vmatprep.subr.bf16.mxu1 %v7410_v43  ;;  %v7447_v43 = vld [vmem:[%s9418_s1 + $0xa30] sm:$0xff]  }
 0x137   :  { %v6523_v25 = vpop.f32.mrb[8].mxu1  ;;  %v6502_v27 = vpop.f32.mrb[9].mxu0 }
 0x138   :  { %v6503_v29 = vadd.f32 %v6502_v27, %v6501_v23  ;;  %v6524_v30 = vpop.f32.mrb[9].mxu1  ;;  %v6504_v33 = vpop.f32.mrb[10].mxu0  ;;  %6804 = vmatpush3.bf16.msra.mxu0 %v7411_v45  ;;  %v7438_v23 = vld [vmem:[%s9418_s1 + $0xae0] sm:$0xff]   ;;  %v7449_v45 = vld [vmem:[%s9418_s1 + $0xa78] sm:$0xff]  }
 0x139   :  { %v6525_v32 = vadd.f32 %v6524_v30, %v6523_v25  ;;  %v6526_v36 = vpop.f32.mrb[10].mxu1  ;;  %v6505_v38 = vpop.f32.mrb[11].mxu0  ;;  %6805 = vmatprep.subr.bf16.mxu0 %v7413_v49  ;;  %v35_v49 = vld [vmem:[%s9419_s0 + $0xa0] sm:$0xff] }
 0x13a   :  { %v4701_v35 = vadd.f32 %v6503_v29, %v8565_v47  ;;  %v6506_v41 = vadd.f32 %v6505_v38, %v6504_v33  ;;  %v6527_v42 = vpop.f32.mrb[11].mxu1  ;;  %v7412_v47 = vld [vmem:[%s9418_s1 + $0x9a8] sm:$0xff]   ;;  %v7440_v29 = vld [vmem:[%s9418_s1 + $0xaa0] sm:$0xff]  }
 0x13b   :  { %v6528_v44 = vadd.f32 %v6527_v42, %v6526_v36  ;;  %6826 = vmatpush3.bf16.msra.mxu1 %v7412_v47  ;;  %v7446_v42 = vld [vmem:[%s9418_s1 + $0xaf0] sm:$0xff]   ;;  %v7451_v47 = vld [vmem:[%s9418_s1 + $0xa38] sm:$0xff]  }
 0x13c   :  { %v8679_v39 = vadd.f32 %v6525_v32, %v4701_v35  ;;  %v4704_v46 = vadd.f32 %v6506_v41, %v8580_v56  ;;  %6827 = vmatprep.subr.bf16.mxu1 %v7414_v50  ;;  %6806 = vmatpush3.bf16.msra.mxu0 %v7415_v51  ;;  %v7420_v56 = vld [vmem:[%s9418_s1 + $0x9b8] sm:$0xff]   ;;  %v7441_v32 = vld [vmem:[%s9418_s1 + $0xa68] sm:$0xff]   ;;  %v7445_v41 = vld [vmem:[%s9418_s1 + $0xa70] sm:$0xff]  }
 0x13d   :  { %6807 = vmatprep.subr.bf16.mxu0 %v7417_v53  ;;  %v7442_v35 = vld [vmem:[%s9418_s1 + $0xae8] sm:$0xff]   ;;  %v67_v50 = vld [vmem:[%s9419_s0 + $0x1a0] sm:$0xff] }
 0x13e   :  { %v8694_v48 = vadd.f32 %v6528_v44, %v4704_v46  ;;  %v7448_v44 = vld [vmem:[%s9418_s1 + $0xab0] sm:$0xff]   ;;  %v7450_v46 = vld [vmem:[%s9418_s1 + $0xaf8] sm:$0xff]   ;;  %v36_v51 = vld [vmem:[%s9419_s0 + $0xa8] sm:$0xff]  ;;  %v5861_v53 = vcombine.low %v35_v49, %v67_v50 }
 0x13f   :  { %6828 = vmatpush3.bf16.msra.mxu1 %v7416_v52  ;;  %v68_v52 = vld [vmem:[%s9419_s0 + $0x1a8] sm:$0xff] }
 0x140   :  { %6829 = vmatprep.subr.bf16.mxu1 %v7418_v54  ;;  %6808 = vmatpush3.bf16.msra.mxu0 %v7419_v55  ;;  %v5862_v54 = vcombine.high %v35_v49, %v67_v50  ;;  %v5863_v55 = vcombine.low %v36_v51, %v68_v52  ;;  %v7485_v49 = vld [vmem:[%s9418_s1 + $0xc40] sm:$0xff]  }
 0x141   :  { %6837 = vmatprep.subr.bf16.mxu0 %v7421_v1  ;;  %v7461_v1 = vld [vmem:[%s9418_s1 + $0xb50] sm:$0xff]   ;;  %v7486_v50 = vld [vmem:[%s9418_s1 + $0xcc0] sm:$0xff]  }
 0x143   :  { %6830 = vmatpush3.bf16.msra.mxu1 %v7420_v56  ;;  %5273 = vmatmul.mubr.bf16.vlgmr.msra.gmra.mrb[36].mxu0 %v5857_v59  ;;  %v5864_v56 = vcombine.high %v36_v51, %v68_v52  ;;  %v7455_v59 = vld [vmem:[%s9418_s1 + $0xb00] sm:$0xff]  }
 0x144   :  { %6859 = vmatprep.subr.bf16.mxu1 %v7422_v2  ;;  %6838 = vmatpush3.bf16.msra.mxu0 %v7423_v3  ;;  %v7462_v2 = vld [vmem:[%s9418_s1 + $0xbd0] sm:$0xff]   ;;  %v7487_v51 = vld [vmem:[%s9418_s1 + $0xc00] sm:$0xff]  }
 0x145   :  { %6839 = vmatprep.subr.bf16.mxu0 %v7425_v5  ;;  %5354 = vmatprep.mubr.bf16.mxu0 %v5862_v54  ;;  %v7463_v3 = vld [vmem:[%s9418_s1 + $0xb10] sm:$0xff]   ;;  %v7465_v5 = vld [vmem:[%s9418_s1 + $0xb58] sm:$0xff]   ;;  %v7488_v52 = vld [vmem:[%s9418_s1 + $0xc80] sm:$0xff]  }
 0x146   :  { %5314 = vmatmul.mubr.bf16.vlgmr.msra.gmra.mrb[36].mxu1 %v5859_v63  ;;  %v7459_v63 = vld [vmem:[%s9418_s1 + $0xb08] sm:$0xff]  }
 0x147   :  { %6860 = vmatpush3.bf16.msra.mxu1 %v7424_v4  ;;  %5395 = vmatprep.mubr.bf16.mxu1 %v5864_v56  ;;  %v7464_v4 = vld [vmem:[%s9418_s1 + $0xb90] sm:$0xff]   ;;  %v7490_v54 = vld [vmem:[%s9418_s1 + $0xcc8] sm:$0xff]  }
 0x148   :  { %6861 = vmatprep.subr.bf16.mxu1 %v7426_v6  ;;  %6840 = vmatpush3.bf16.msra.mxu0 %v7427_v7  ;;  %v7466_v6 = vld [vmem:[%s9418_s1 + $0xbd8] sm:$0xff]   ;;  %v7492_v56 = vld [vmem:[%s9418_s1 + $0xc88] sm:$0xff]  }
 0x149   :  { %6841 = vmatprep.subr.bf16.mxu0 %v7429_v9 }
 0x14b   :  { %6862 = vmatpush3.bf16.msra.mxu1 %v7428_v8  ;;  %v7467_v8 = vld [vmem:[%s9418_s1 + $0xb18] sm:$0xff]  }
 0x14c   :  { %6863 = vmatprep.subr.bf16.mxu1 %v7430_v10  ;;  %6842 = vmatpush3.bf16.msra.mxu0 %v7431_v11  ;;  %v7468_v10 = vld [vmem:[%s9418_s1 + $0xb98] sm:$0xff]  }
 0x14d   :  { %6843 = vmatprep.subr.bf16.mxu0 %v7433_v13 }
 0x14f   :  { %6864 = vmatpush3.bf16.msra.mxu1 %v7432_v12  ;;  %v7469_v12 = vld [vmem:[%s9418_s1 + $0xb60] sm:$0xff]  }
 0x150   :  { %6865 = vmatprep.subr.bf16.mxu1 %v7434_v14  ;;  %6844 = vmatpush3.bf16.msra.mxu0 %v7435_v16 }
 0x151   :  { %6845 = vmatprep.subr.bf16.mxu0 %v7437_v20 }
 0x153   :  { %6866 = vmatpush3.bf16.msra.mxu1 %v7436_v18  ;;  %v7471_v18 = vld [vmem:[%s9418_s1 + $0xb20] sm:$0xff]  }
 0x154   :  { %6867 = vmatprep.subr.bf16.mxu1 %v7438_v23  ;;  %6846 = vmatpush3.bf16.msra.mxu0 %v7439_v26 }
 0x155   :  { %6847 = vmatprep.subr.bf16.mxu0 %v7441_v32 }
 0x156   :  { %v6545_v15 = vpop.f32.mrb[12].mxu0 }
 0x157   :  { %v6567_v17 = vpop.f32.mrb[12].mxu1  ;;  %v6546_v19 = vpop.f32.mrb[13].mxu0  ;;  %6868 = vmatpush3.bf16.msra.mxu1 %v7440_v29  ;;  %v7475_v29 = vld [vmem:[%s9418_s1 + $0xb28] sm:$0xff]  }
 0x158   :  { %v6547_v21 = vadd.f32 %v6546_v19, %v6545_v15  ;;  %v6568_v22 = vpop.f32.mrb[13].mxu1  ;;  %v6548_v25 = vpop.f32.mrb[14].mxu0  ;;  %6869 = vmatprep.subr.bf16.mxu1 %v7442_v35  ;;  %6848 = vmatpush3.bf16.msra.mxu0 %v7443_v37  ;;  %v7470_v15 = vld [vmem:[%s9418_s1 + $0xbe0] sm:$0xff]   ;;  %v7479_v35 = vld [vmem:[%s9418_s1 + $0xb30] sm:$0xff]   ;;  %v7481_v37 = vld [vmem:[%s9418_s1 + $0xb78] sm:$0xff]  }
 0x159   :  { %v6569_v24 = vadd.f32 %v6568_v22, %v6567_v17  ;;  %v6570_v28 = vpop.f32.mrb[14].mxu1  ;;  %v6549_v30 = vpop.f32.mrb[15].mxu0  ;;  %6849 = vmatprep.subr.bf16.mxu0 %v7445_v41  ;;  %v37_v41 = vld [vmem:[%s9419_s0 + $0xb0] sm:$0xff] }
 0x15a   :  { %v4783_v27 = vadd.f32 %v6547_v21, %v8679_v39  ;;  %v6550_v33 = vadd.f32 %v6549_v30, %v6548_v25  ;;  %v6571_v34 = vpop.f32.mrb[15].mxu1  ;;  %v7444_v39 = vld [vmem:[%s9418_s1 + $0xaa8] sm:$0xff]   ;;  %v7472_v21 = vld [vmem:[%s9418_s1 + $0xba0] sm:$0xff]  }
 0x15b   :  { %v6572_v36 = vadd.f32 %v6571_v34, %v6570_v28  ;;  %6870 = vmatpush3.bf16.msra.mxu1 %v7444_v39  ;;  %v7478_v34 = vld [vmem:[%s9418_s1 + $0xbf0] sm:$0xff]   ;;  %v7483_v39 = vld [vmem:[%s9418_s1 + $0xb38] sm:$0xff]  }
 0x15c   :  { %v8793_v31 = vadd.f32 %v6569_v24, %v4783_v27  ;;  %v4786_v38 = vadd.f32 %v6550_v33, %v8694_v48  ;;  %6871 = vmatprep.subr.bf16.mxu1 %v7446_v42  ;;  %6850 = vmatpush3.bf16.msra.mxu0 %v7447_v43  ;;  %v7452_v48 = vld [vmem:[%s9418_s1 + $0xab8] sm:$0xff]   ;;  %v7473_v24 = vld [vmem:[%s9418_s1 + $0xb68] sm:$0xff]   ;;  %v7477_v33 = vld [vmem:[%s9418_s1 + $0xb70] sm:$0xff]  }
 0x15d   :  { %6851 = vmatprep.subr.bf16.mxu0 %v7449_v45  ;;  %v7474_v27 = vld [vmem:[%s9418_s1 + $0xbe8] sm:$0xff]   ;;  %v69_v42 = vld [vmem:[%s9419_s0 + $0x1b0] sm:$0xff]  ;;  %v38_v43 = vld [vmem:[%s9419_s0 + $0xb8] sm:$0xff] }
 0x15e   :  { %v8808_v40 = vadd.f32 %v6572_v36, %v4786_v38  ;;  %v7480_v36 = vld [vmem:[%s9418_s1 + $0xbb0] sm:$0xff]   ;;  %v7482_v38 = vld [vmem:[%s9418_s1 + $0xbf8] sm:$0xff]   ;;  %v5866_v45 = vcombine.high %v37_v41, %v69_v42 }
 0x15f   :  { %6872 = vmatpush3.bf16.msra.mxu1 %v7448_v44  ;;  %v5865_v44 = vcombine.low %v37_v41, %v69_v42  ;;  %v7517_v41 = vld [vmem:[%s9418_s1 + $0xd40] sm:$0xff]  }
 0x160   :  { %6873 = vmatprep.subr.bf16.mxu1 %v7450_v46  ;;  %6852 = vmatpush3.bf16.msra.mxu0 %v7451_v47  ;;  %v70_v46 = vld [vmem:[%s9419_s0 + $0x1b8] sm:$0xff]  ;;  %v7518_v42 = vld [vmem:[%s9418_s1 + $0xdc0] sm:$0xff]  }
 0x161   :  { %6881 = vmatprep.subr.bf16.mxu0 %v7453_v57  ;;  %v5867_v47 = vcombine.low %v38_v43, %v70_v46  ;;  %v7493_v57 = vld [vmem:[%s9418_s1 + $0xc50] sm:$0xff]  }
 0x163   :  { %6874 = vmatpush3.bf16.msra.mxu1 %v7452_v48  ;;  %5355 = vmatmul.mubr.bf16.vlgmr.msra.gmra.mrb[40].mxu0 %v5861_v53  ;;  %v5868_v48 = vcombine.high %v38_v43, %v70_v46  ;;  %v7489_v53 = vld [vmem:[%s9418_s1 + $0xc48] sm:$0xff]   ;;  %v7519_v43 = vld [vmem:[%s9418_s1 + $0xd00] sm:$0xff]  }
 0x164   :  { %6903 = vmatprep.subr.bf16.mxu1 %v7454_v58  ;;  %6882 = vmatpush3.bf16.msra.mxu0 %v7455_v59  ;;  %v7494_v58 = vld [vmem:[%s9418_s1 + $0xcd0] sm:$0xff]   ;;  %v7522_v46 = vld [vmem:[%s9418_s1 + $0xdc8] sm:$0xff]  }
 0x165   :  { %6883 = vmatprep.subr.bf16.mxu0 %v7457_v61  ;;  %5436 = vmatprep.mubr.bf16.mxu0 %v5866_v45  ;;  %v7495_v59 = vld [vmem:[%s9418_s1 + $0xc10] sm:$0xff]   ;;  %v7497_v61 = vld [vmem:[%s9418_s1 + $0xc58] sm:$0xff]   ;;  %v7521_v45 = vld [vmem:[%s9418_s1 + $0xd48] sm:$0xff]  }
 0x166   :  { %5396 = vmatmul.mubr.bf16.vlgmr.msra.gmra.mrb[40].mxu1 %v5863_v55  ;;  %v7491_v55 = vld [vmem:[%s9418_s1 + $0xc08] sm:$0xff]  }
 0x167   :  { %6904 = vmatpush3.bf16.msra.mxu1 %v7456_v60  ;;  %5477 = vmatprep.mubr.bf16.mxu1 %v5868_v48  ;;  %v7496_v60 = vld [vmem:[%s9418_s1 + $0xc90] sm:$0xff]   ;;  %v7524_v48 = vld [vmem:[%s9418_s1 + $0xd88] sm:$0xff]  }
 0x168   :  { %6905 = vmatprep.subr.bf16.mxu1 %v7458_v62  ;;  %6884 = vmatpush3.bf16.msra.mxu0 %v7459_v63  ;;  %v7498_v62 = vld [vmem:[%s9418_s1 + $0xcd8] sm:$0xff]  }
 0x169   :  { %6885 = vmatprep.subr.bf16.mxu0 %v7461_v1 }
 0x16b   :  { %6906 = vmatpush3.bf16.msra.mxu1 %v7460_v0  ;;  %v7499_v0 = vld [vmem:[%s9418_s1 + $0xc18] sm:$0xff]  }
 0x16c   :  { %6907 = vmatprep.subr.bf16.mxu1 %v7462_v2  ;;  %6886 = vmatpush3.bf16.msra.mxu0 %v7463_v3  ;;  %v7500_v2 = vld [vmem:[%s9418_s1 + $0xc98] sm:$0xff]  }
 0x16d   :  { %6887 = vmatprep.subr.bf16.mxu0 %v7465_v5 }
 0x16f   :  { %6908 = vmatpush3.bf16.msra.mxu1 %v7464_v4  ;;  %v7501_v4 = vld [vmem:[%s9418_s1 + $0xc60] sm:$0xff]  }
 0x170   :  { %6909 = vmatprep.subr.bf16.mxu1 %v7466_v6  ;;  %6888 = vmatpush3.bf16.msra.mxu0 %v7467_v8 }
 0x171   :  { %6889 = vmatprep.subr.bf16.mxu0 %v7469_v12 }
 0x173   :  { %6910 = vmatpush3.bf16.msra.mxu1 %v7468_v10  ;;  %v7503_v10 = vld [vmem:[%s9418_s1 + $0xc20] sm:$0xff]  }
 0x174   :  { %6911 = vmatprep.subr.bf16.mxu1 %v7470_v15  ;;  %6890 = vmatpush3.bf16.msra.mxu0 %v7471_v18 }
 0x175   :  { %6891 = vmatprep.subr.bf16.mxu0 %v7473_v24 }
 0x176   :  { %v6589_v7 = vpop.f32.mrb[16].mxu0 }
 0x177   :  { %v6611_v9 = vpop.f32.mrb[16].mxu1  ;;  %v6590_v11 = vpop.f32.mrb[17].mxu0  ;;  %6912 = vmatpush3.bf16.msra.mxu1 %v7472_v21  ;;  %v7507_v21 = vld [vmem:[%s9418_s1 + $0xc28] sm:$0xff]  }
 0x178   :  { %v6591_v13 = vadd.f32 %v6590_v11, %v6589_v7  ;;  %v6612_v14 = vpop.f32.mrb[17].mxu1  ;;  %v6592_v17 = vpop.f32.mrb[18].mxu0  ;;  %6913 = vmatprep.subr.bf16.mxu1 %v7474_v27  ;;  %6892 = vmatpush3.bf16.msra.mxu0 %v7475_v29  ;;  %v7502_v7 = vld [vmem:[%s9418_s1 + $0xce0] sm:$0xff]   ;;  %v7511_v27 = vld [vmem:[%s9418_s1 + $0xc30] sm:$0xff]   ;;  %v7513_v29 = vld [vmem:[%s9418_s1 + $0xc78] sm:$0xff]  }
 0x179   :  { %v6613_v16 = vadd.f32 %v6612_v14, %v6611_v9  ;;  %v6614_v20 = vpop.f32.mrb[18].mxu1  ;;  %v6593_v22 = vpop.f32.mrb[19].mxu0  ;;  %6893 = vmatprep.subr.bf16.mxu0 %v7477_v33  ;;  %v39_v33 = vld [vmem:[%s9419_s0 + $0xc0] sm:$0xff] }
 0x17a   :  { %v4865_v19 = vadd.f32 %v6591_v13, %v8793_v31  ;;  %v6594_v25 = vadd.f32 %v6593_v22, %v6592_v17  ;;  %v6615_v26 = vpop.f32.mrb[19].mxu1  ;;  %v7476_v31 = vld [vmem:[%s9418_s1 + $0xba8] sm:$0xff]   ;;  %v7504_v13 = vld [vmem:[%s9418_s1 + $0xca0] sm:$0xff]  }
 0x17b   :  { %v6616_v28 = vadd.f32 %v6615_v26, %v6614_v20  ;;  %6914 = vmatpush3.bf16.msra.mxu1 %v7476_v31  ;;  %v7510_v26 = vld [vmem:[%s9418_s1 + $0xcf0] sm:$0xff]   ;;  %v7515_v31 = vld [vmem:[%s9418_s1 + $0xc38] sm:$0xff]  }
 0x17c   :  { %v8907_v23 = vadd.f32 %v6613_v16, %v4865_v19  ;;  %v4868_v30 = vadd.f32 %v6594_v25, %v8808_v40  ;;  %6915 = vmatprep.subr.bf16.mxu1 %v7478_v34  ;;  %6894 = vmatpush3.bf16.msra.mxu0 %v7479_v35  ;;  %v7484_v40 = vld [vmem:[%s9418_s1 + $0xbb8] sm:$0xff]   ;;  %v7505_v16 = vld [vmem:[%s9418_s1 + $0xc68] sm:$0xff]   ;;  %v7509_v25 = vld [vmem:[%s9418_s1 + $0xc70] sm:$0xff]  }
 0x17d   :  { %6895 = vmatprep.subr.bf16.mxu0 %v7481_v37  ;;  %v7506_v19 = vld [vmem:[%s9418_s1 + $0xce8] sm:$0xff]   ;;  %v71_v34 = vld [vmem:[%s9419_s0 + $0x1c0] sm:$0xff] }
 0x17e   :  { %v8922_v32 = vadd.f32 %v6616_v28, %v4868_v30  ;;  %v7512_v28 = vld [vmem:[%s9418_s1 + $0xcb0] sm:$0xff]   ;;  %v7514_v30 = vld [vmem:[%s9418_s1 + $0xcf8] sm:$0xff]   ;;  %v5869_v35 = vcombine.low %v39_v33, %v71_v34  ;;  %v40_v37 = vld [vmem:[%s9419_s0 + $0xc8] sm:$0xff] }
 0x17f   :  { %6916 = vmatpush3.bf16.msra.mxu1 %v7480_v36  ;;  %v5870_v36 = vcombine.high %v39_v33, %v71_v34  ;;  %v7549_v33 = vld [vmem:[%s9418_s1 + $0xe40] sm:$0xff]  }
 0x180   :  { %6917 = vmatprep.subr.bf16.mxu1 %v7482_v38  ;;  %6896 = vmatpush3.bf16.msra.mxu0 %v7483_v39  ;;  %v72_v38 = vld [vmem:[%s9419_s0 + $0x1c8] sm:$0xff]  ;;  %v7550_v34 = vld [vmem:[%s9418_s1 + $0xec0] sm:$0xff]  }
 0x181   :  { %6925 = vmatprep.subr.bf16.mxu0 %v7485_v49  ;;  %v5871_v39 = vcombine.low %v40_v37, %v72_v38  ;;  %v7525_v49 = vld [vmem:[%s9418_s1 + $0xd50] sm:$0xff]  }
 0x183   :  { %6918 = vmatpush3.bf16.msra.mxu1 %v7484_v40  ;;  %5437 = vmatmul.mubr.bf16.vlgmr.msra.gmra.mrb[44].mxu0 %v5865_v44  ;;  %v5872_v40 = vcombine.high %v40_v37, %v72_v38  ;;  %v7520_v44 = vld [vmem:[%s9418_s1 + $0xd80] sm:$0xff]   ;;  %v7553_v37 = vld [vmem:[%s9418_s1 + $0xe48] sm:$0xff]  }
 0x184   :  { %6947 = vmatprep.subr.bf16.mxu1 %v7486_v50  ;;  %6926 = vmatpush3.bf16.msra.mxu0 %v7487_v51  ;;  %v7526_v50 = vld [vmem:[%s9418_s1 + $0xdd0] sm:$0xff]   ;;  %v7554_v38 = vld [vmem:[%s9418_s1 + $0xec8] sm:$0xff]  }
 0x185   :  { %6927 = vmatprep.subr.bf16.mxu0 %v7489_v53  ;;  %5518 = vmatprep.mubr.bf16.mxu0 %v5870_v36  ;;  %v7527_v51 = vld [vmem:[%s9418_s1 + $0xd10] sm:$0xff]   ;;  %v7529_v53 = vld [vmem:[%s9418_s1 + $0xd58] sm:$0xff]   ;;  %v7552_v36 = vld [vmem:[%s9418_s1 + $0xe80] sm:$0xff]  }
 0x186   :  { %5478 = vmatmul.mubr.bf16.vlgmr.msra.gmra.mrb[44].mxu1 %v5867_v47  ;;  %v7523_v47 = vld [vmem:[%s9418_s1 + $0xd08] sm:$0xff]  }
 0x187   :  { %6948 = vmatpush3.bf16.msra.mxu1 %v7488_v52  ;;  %5559 = vmatprep.mubr.bf16.mxu1 %v5872_v40  ;;  %v7528_v52 = vld [vmem:[%s9418_s1 + $0xd90] sm:$0xff]   ;;  %v7556_v40 = vld [vmem:[%s9418_s1 + $0xe88] sm:$0xff]  }
 0x188   :  { %6949 = vmatprep.subr.bf16.mxu1 %v7490_v54  ;;  %6928 = vmatpush3.bf16.msra.mxu0 %v7491_v55  ;;  %v7530_v54 = vld [vmem:[%s9418_s1 + $0xdd8] sm:$0xff]  }
 0x189   :  { %6929 = vmatprep.subr.bf16.mxu0 %v7493_v57 }
 0x18b   :  { %6950 = vmatpush3.bf16.msra.mxu1 %v7492_v56  ;;  %v7531_v56 = vld [vmem:[%s9418_s1 + $0xd18] sm:$0xff]  }
 0x18c   :  { %6951 = vmatprep.subr.bf16.mxu1 %v7494_v58  ;;  %6930 = vmatpush3.bf16.msra.mxu0 %v7495_v59  ;;  %v7532_v58 = vld [vmem:[%s9418_s1 + $0xd98] sm:$0xff]  }
 0x18d   :  { %6931 = vmatprep.subr.bf16.mxu0 %v7497_v61 }
 0x18f   :  { %6952 = vmatpush3.bf16.msra.mxu1 %v7496_v60  ;;  %v7533_v60 = vld [vmem:[%s9418_s1 + $0xd60] sm:$0xff]  }
 0x190   :  { %6953 = vmatprep.subr.bf16.mxu1 %v7498_v62  ;;  %6932 = vmatpush3.bf16.msra.mxu0 %v7499_v0 }
 0x191   :  { %6933 = vmatprep.subr.bf16.mxu0 %v7501_v4 }
 0x193   :  { %6954 = vmatpush3.bf16.msra.mxu1 %v7500_v2  ;;  %v7535_v2 = vld [vmem:[%s9418_s1 + $0xd20] sm:$0xff]  }
 0x194   :  { %6955 = vmatprep.subr.bf16.mxu1 %v7502_v7  ;;  %6934 = vmatpush3.bf16.msra.mxu0 %v7503_v10 }
 0x195   :  { %6935 = vmatprep.subr.bf16.mxu0 %v7505_v16 }
 0x196   :  { %v6633_v63 = vpop.f32.mrb[20].mxu0 }
 0x197   :  { %v6655_v1 = vpop.f32.mrb[20].mxu1  ;;  %v6634_v3 = vpop.f32.mrb[21].mxu0  ;;  %6956 = vmatpush3.bf16.msra.mxu1 %v7504_v13  ;;  %v7539_v13 = vld [vmem:[%s9418_s1 + $0xd28] sm:$0xff]  }
 0x198   :  { %v6635_v5 = vadd.f32 %v6634_v3, %v6633_v63  ;;  %v6656_v6 = vpop.f32.mrb[21].mxu1  ;;  %v6636_v9 = vpop.f32.mrb[22].mxu0  ;;  %6957 = vmatprep.subr.bf16.mxu1 %v7506_v19  ;;  %6936 = vmatpush3.bf16.msra.mxu0 %v7507_v21  ;;  %v7534_v63 = vld [vmem:[%s9418_s1 + $0xde0] sm:$0xff]   ;;  %v7543_v19 = vld [vmem:[%s9418_s1 + $0xd30] sm:$0xff]   ;;  %v7545_v21 = vld [vmem:[%s9418_s1 + $0xd78] sm:$0xff]  }
 0x199   :  { %v6657_v8 = vadd.f32 %v6656_v6, %v6655_v1  ;;  %v6658_v12 = vpop.f32.mrb[22].mxu1  ;;  %v6637_v14 = vpop.f32.mrb[23].mxu0  ;;  %6937 = vmatprep.subr.bf16.mxu0 %v7509_v25  ;;  %v41_v25 = vld [vmem:[%s9419_s0 + $0xd0] sm:$0xff] }
 0x19a   :  { %v4947_v11 = vadd.f32 %v6635_v5, %v8907_v23  ;;  %v6638_v17 = vadd.f32 %v6637_v14, %v6636_v9  ;;  %v6659_v18 = vpop.f32.mrb[23].mxu1  ;;  %v7508_v23 = vld [vmem:[%s9418_s1 + $0xca8] sm:$0xff]   ;;  %v7536_v5 = vld [vmem:[%s9418_s1 + $0xda0] sm:$0xff]  }
 0x19b   :  { %v6660_v20 = vadd.f32 %v6659_v18, %v6658_v12  ;;  %6958 = vmatpush3.bf16.msra.mxu1 %v7508_v23  ;;  %v7542_v18 = vld [vmem:[%s9418_s1 + $0xdf0] sm:$0xff]   ;;  %v7547_v23 = vld [vmem:[%s9418_s1 + $0xd38] sm:$0xff]  }
 0x19c   :  { %v9021_v15 = vadd.f32 %v6657_v8, %v4947_v11  ;;  %v4950_v22 = vadd.f32 %v6638_v17, %v8922_v32  ;;  %6959 = vmatprep.subr.bf16.mxu1 %v7510_v26  ;;  %6938 = vmatpush3.bf16.msra.mxu0 %v7511_v27  ;;  %v7516_v32 = vld [vmem:[%s9418_s1 + $0xcb8] sm:$0xff]   ;;  %v7537_v8 = vld [vmem:[%s9418_s1 + $0xd68] sm:$0xff]   ;;  %v7541_v17 = vld [vmem:[%s9418_s1 + $0xd70] sm:$0xff]  }
 0x19d   :  { %6939 = vmatprep.subr.bf16.mxu0 %v7513_v29  ;;  %v7538_v11 = vld [vmem:[%s9418_s1 + $0xde8] sm:$0xff]   ;;  %v73_v26 = vld [vmem:[%s9419_s0 + $0x1d0] sm:$0xff]  ;;  %v42_v27 = vld [vmem:[%s9419_s0 + $0xd8] sm:$0xff] }
 0x19e   :  { %v9036_v24 = vadd.f32 %v6660_v20, %v4950_v22  ;;  %v7544_v20 = vld [vmem:[%s9418_s1 + $0xdb0] sm:$0xff]   ;;  %v7546_v22 = vld [vmem:[%s9418_s1 + $0xdf8] sm:$0xff]   ;;  %v5873_v29 = vcombine.low %v41_v25, %v73_v26 }
 0x19f   :  { %6960 = vmatpush3.bf16.msra.mxu1 %v7512_v28  ;;  %v74_v28 = vld [vmem:[%s9419_s0 + $0x1d8] sm:$0xff] }
 0x1a0   :  { %6961 = vmatprep.subr.bf16.mxu1 %v7514_v30  ;;  %6940 = vmatpush3.bf16.msra.mxu0 %v7515_v31  ;;  %v5874_v30 = vcombine.high %v41_v25, %v73_v26  ;;  %v5875_v31 = vcombine.low %v42_v27, %v74_v28  ;;  %v7581_v25 = vld [vmem:[%s9418_s1 + $0xf40] sm:$0xff]  }
 0x1a1   :  { %6969 = vmatprep.subr.bf16.mxu0 %v7517_v41  ;;  %v7557_v41 = vld [vmem:[%s9418_s1 + $0xe50] sm:$0xff]   ;;  %v7582_v26 = vld [vmem:[%s9418_s1 + $0xfc0] sm:$0xff]  }
 0x1a3   :  { %6962 = vmatpush3.bf16.msra.mxu1 %v7516_v32  ;;  %5519 = vmatmul.mubr.bf16.vlgmr.msra.gmra.mrb[48].mxu0 %v5869_v35  ;;  %v5876_v32 = vcombine.high %v42_v27, %v74_v28  ;;  %v7551_v35 = vld [vmem:[%s9418_s1 + $0xe00] sm:$0xff]  }
 0x1a4   :  { %6991 = vmatprep.subr.bf16.mxu1 %v7518_v42  ;;  %6970 = vmatpush3.bf16.msra.mxu0 %v7519_v43  ;;  %v7558_v42 = vld [vmem:[%s9418_s1 + $0xed0] sm:$0xff]   ;;  %v7583_v27 = vld [vmem:[%s9418_s1 + $0xf00] sm:$0xff]  }
 0x1a5   :  { %6971 = vmatprep.subr.bf16.mxu0 %v7521_v45  ;;  %5600 = vmatprep.mubr.bf16.mxu0 %v5874_v30  ;;  %v7559_v43 = vld [vmem:[%s9418_s1 + $0xe10] sm:$0xff]   ;;  %v7561_v45 = vld [vmem:[%s9418_s1 + $0xe58] sm:$0xff]   ;;  %v7584_v28 = vld [vmem:[%s9418_s1 + $0xf80] sm:$0xff]  }
 0x1a6   :  { %5560 = vmatmul.mubr.bf16.vlgmr.msra.gmra.mrb[48].mxu1 %v5871_v39  ;;  %v7555_v39 = vld [vmem:[%s9418_s1 + $0xe08] sm:$0xff]  }
 0x1a7   :  { %6992 = vmatpush3.bf16.msra.mxu1 %v7520_v44  ;;  %5641 = vmatprep.mubr.bf16.mxu1 %v5876_v32  ;;  %v7560_v44 = vld [vmem:[%s9418_s1 + $0xe90] sm:$0xff]   ;;  %v7586_v30 = vld [vmem:[%s9418_s1 + $0xfc8] sm:$0xff]  }
 0x1a8   :  { %6993 = vmatprep.subr.bf16.mxu1 %v7522_v46  ;;  %6972 = vmatpush3.bf16.msra.mxu0 %v7523_v47  ;;  %v7562_v46 = vld [vmem:[%s9418_s1 + $0xed8] sm:$0xff]   ;;  %v7588_v32 = vld [vmem:[%s9418_s1 + $0xf88] sm:$0xff]  }
 0x1a9   :  { %6973 = vmatprep.subr.bf16.mxu0 %v7525_v49  ;;  %v7563_v47 = vld [vmem:[%s9418_s1 + $0xe18] sm:$0xff]  }
 0x1aa   :  { %v7564_v49 = vld [vmem:[%s9418_s1 + $0xe98] sm:$0xff]  }
 0x1ab   :  { %6994 = vmatpush3.bf16.msra.mxu1 %v7524_v48 }
 0x1ac   :  { %6995 = vmatprep.subr.bf16.mxu1 %v7526_v50  ;;  %6974 = vmatpush3.bf16.msra.mxu0 %v7527_v51  ;;  %v7565_v51 = vld [vmem:[%s9418_s1 + $0xe60] sm:$0xff]  }
 0x1ad   :  { %6975 = vmatprep.subr.bf16.mxu0 %v7529_v53  ;;  %v7566_v53 = vld [vmem:[%s9418_s1 + $0xee0] sm:$0xff]  }
 0x1af   :  { %6996 = vmatpush3.bf16.msra.mxu1 %v7528_v52 }
 0x1b0   :  { %6997 = vmatprep.subr.bf16.mxu1 %v7530_v54  ;;  %6976 = vmatpush3.bf16.msra.mxu0 %v7531_v56  ;;  %v7567_v56 = vld [vmem:[%s9418_s1 + $0xe20] sm:$0xff]  }
 0x1b1   :  { %6977 = vmatprep.subr.bf16.mxu0 %v7533_v60 }
 0x1b3   :  { %6998 = vmatpush3.bf16.msra.mxu1 %v7532_v58 }
 0x1b4   :  { %6999 = vmatprep.subr.bf16.mxu1 %v7534_v63  ;;  %6978 = vmatpush3.bf16.msra.mxu0 %v7535_v2 }
 0x1b5   :  { %6979 = vmatprep.subr.bf16.mxu0 %v7537_v8  ;;  %v7573_v8 = vld [vmem:[%s9418_s1 + $0xe70] sm:$0xff]  }
 0x1b6   :  { %v6677_v55 = vpop.f32.mrb[24].mxu0 }
 0x1b7   :  { %v6699_v57 = vpop.f32.mrb[24].mxu1  ;;  %v6678_v59 = vpop.f32.mrb[25].mxu0  ;;  %7000 = vmatpush3.bf16.msra.mxu1 %v7536_v5 }
 0x1b8   :  { %v6679_v61 = vadd.f32 %v6678_v59, %v6677_v55  ;;  %v6700_v62 = vpop.f32.mrb[25].mxu1  ;;  %v6680_v1 = vpop.f32.mrb[26].mxu0  ;;  %7001 = vmatprep.subr.bf16.mxu1 %v7538_v11  ;;  %6980 = vmatpush3.bf16.msra.mxu0 %v7539_v13  ;;  %v7568_v59 = vld [vmem:[%s9418_s1 + $0xea0] sm:$0xff]   ;;  %v7575_v11 = vld [vmem:[%s9418_s1 + $0xe30] sm:$0xff]   ;;  %v7577_v13 = vld [vmem:[%s9418_s1 + $0xe78] sm:$0xff]  }
 0x1b9   :  { %v6701_v0 = vadd.f32 %v6700_v62, %v6699_v57  ;;  %v6702_v4 = vpop.f32.mrb[26].mxu1  ;;  %v6681_v6 = vpop.f32.mrb[27].mxu0  ;;  %6981 = vmatprep.subr.bf16.mxu0 %v7541_v17  ;;  %v7569_v62 = vld [vmem:[%s9418_s1 + $0xe68] sm:$0xff]   ;;  %v43_v17 = vld [vmem:[%s9419_s0 + $0xe0] sm:$0xff] }
 0x1ba   :  { %v5029_v3 = vadd.f32 %v6679_v61, %v9021_v15  ;;  %v6682_v9 = vadd.f32 %v6681_v6, %v6680_v1  ;;  %v6703_v10 = vpop.f32.mrb[27].mxu1  ;;  %v7540_v15 = vld [vmem:[%s9418_s1 + $0xda8] sm:$0xff]  }
 0x1bb   :  { %v6704_v12 = vadd.f32 %v6703_v10, %v6702_v4  ;;  %7002 = vmatpush3.bf16.msra.mxu1 %v7540_v15  ;;  %v7570_v1 = vld [vmem:[%s9418_s1 + $0xee8] sm:$0xff]   ;;  %v7574_v10 = vld [vmem:[%s9418_s1 + $0xef0] sm:$0xff]   ;;  %v7579_v15 = vld [vmem:[%s9418_s1 + $0xe38] sm:$0xff]  }
 0x1bc   :  { %v9135_v7 = vadd.f32 %v6701_v0, %v5029_v3  ;;  %v5032_v14 = vadd.f32 %v6682_v9, %v9036_v24  ;;  %7003 = vmatprep.subr.bf16.mxu1 %v7542_v18  ;;  %6982 = vmatpush3.bf16.msra.mxu0 %v7543_v19  ;;  %v7548_v24 = vld [vmem:[%s9418_s1 + $0xdb8] sm:$0xff]   ;;  %v7571_v4 = vld [vmem:[%s9418_s1 + $0xe28] sm:$0xff]   ;;  %v75_v18 = vld [vmem:[%s9419_s0 + $0x1e0] sm:$0xff] }
 0x1bd   :  { %6983 = vmatprep.subr.bf16.mxu0 %v7545_v21  ;;  %v7572_v6 = vld [vmem:[%s9418_s1 + $0xea8] sm:$0xff]   ;;  %v5878_v21 = vcombine.high %v43_v17, %v75_v18 }
 0x1be   :  { %v9150_v16 = vadd.f32 %v6704_v12, %v5032_v14  ;;  %v7576_v12 = vld [vmem:[%s9418_s1 + $0xeb0] sm:$0xff]   ;;  %v7578_v14 = vld [vmem:[%s9418_s1 + $0xef8] sm:$0xff]   ;;  %v44_v19 = vld [vmem:[%s9419_s0 + $0xe8] sm:$0xff] }
 0x1bf   :  { %7004 = vmatpush3.bf16.msra.mxu1 %v7544_v20  ;;  %v5877_v20 = vcombine.low %v43_v17, %v75_v18 }
 0x1c0   :  { %7005 = vmatprep.subr.bf16.mxu1 %v7546_v22  ;;  %6984 = vmatpush3.bf16.msra.mxu0 %v7547_v23  ;;  %v76_v22 = vld [vmem:[%s9419_s0 + $0x1e8] sm:$0xff] }
 0x1c1   :  { %7013 = vmatprep.subr.bf16.mxu0 %v7549_v33  ;;  %v5879_v23 = vcombine.low %v44_v19, %v76_v22  ;;  %v7589_v33 = vld [vmem:[%s9418_s1 + $0xf50] sm:$0xff]  }
 0x1c3   :  { %7006 = vmatpush3.bf16.msra.mxu1 %v7548_v24  ;;  %5601 = vmatmul.mubr.bf16.vlgmr.msra.gmra.mrb[52].mxu0 %v5873_v29  ;;  %v5880_v24 = vcombine.high %v44_v19, %v76_v22  ;;  %v7585_v29 = vld [vmem:[%s9418_s1 + $0xf48] sm:$0xff]  }
 0x1c4   :  { %7035 = vmatprep.subr.bf16.mxu1 %v7550_v34  ;;  %7014 = vmatpush3.bf16.msra.mxu0 %v7551_v35  ;;  %v7590_v34 = vld [vmem:[%s9418_s1 + $0xfd0] sm:$0xff]  }
 0x1c5   :  { %7015 = vmatprep.subr.bf16.mxu0 %v7553_v37  ;;  %5682 = vmatprep.mubr.bf16.mxu0 %v5878_v21  ;;  %v7591_v35 = vld [vmem:[%s9418_s1 + $0xf10] sm:$0xff]   ;;  %v7593_v37 = vld [vmem:[%s9418_s1 + $0xf58] sm:$0xff]  }
 0x1c6   :  { %5642 = vmatmul.mubr.bf16.vlgmr.msra.gmra.mrb[52].mxu1 %v5875_v31  ;;  %v7587_v31 = vld [vmem:[%s9418_s1 + $0xf08] sm:$0xff]  }
 0x1c7   :  { %7036 = vmatpush3.bf16.msra.mxu1 %v7552_v36  ;;  %5723 = vmatprep.mubr.bf16.mxu1 %v5880_v24  ;;  %v7592_v36 = vld [vmem:[%s9418_s1 + $0xf90] sm:$0xff]  }
 0x1c8   :  { %7037 = vmatprep.subr.bf16.mxu1 %v7554_v38  ;;  %7016 = vmatpush3.bf16.msra.mxu0 %v7555_v39  ;;  %v7594_v38 = vld [vmem:[%s9418_s1 + $0xfd8] sm:$0xff]  }
 0x1c9   :  { %7017 = vmatprep.subr.bf16.mxu0 %v7557_v41 }
 0x1cb   :  { %7038 = vmatpush3.bf16.msra.mxu1 %v7556_v40  ;;  %v7595_v40 = vld [vmem:[%s9418_s1 + $0xf18] sm:$0xff]  }
 0x1cc   :  { %7039 = vmatprep.subr.bf16.mxu1 %v7558_v42  ;;  %7018 = vmatpush3.bf16.msra.mxu0 %v7559_v43  ;;  %v7596_v42 = vld [vmem:[%s9418_s1 + $0xf98] sm:$0xff]  }
 0x1cd   :  { %7019 = vmatprep.subr.bf16.mxu0 %v7561_v45 }
 0x1cf   :  { %7040 = vmatpush3.bf16.msra.mxu1 %v7560_v44  ;;  %v7597_v44 = vld [vmem:[%s9418_s1 + $0xf60] sm:$0xff]  }
 0x1d0   :  { %7041 = vmatprep.subr.bf16.mxu1 %v7562_v46  ;;  %7020 = vmatpush3.bf16.msra.mxu0 %v7563_v47  ;;  %v7598_v47 = vld [vmem:[%s9418_s1 + $0xfe0] sm:$0xff]  }
 0x1d1   :  { %7021 = vmatprep.subr.bf16.mxu0 %v7565_v51 }
 0x1d3   :  { %7042 = vmatpush3.bf16.msra.mxu1 %v7564_v49 }
 0x1d4   :  { %7043 = vmatprep.subr.bf16.mxu1 %v7566_v53  ;;  %7022 = vmatpush3.bf16.msra.mxu0 %v7567_v56  ;;  %v7600_v53 = vld [vmem:[%s9418_s1 + $0xfa0] sm:$0xff]   ;;  %v7601_v56 = vld [vmem:[%s9418_s1 + $0xf68] sm:$0xff]  }
 0x1d5   :  { %7023 = vmatprep.subr.bf16.mxu0 %v7569_v62 }
 0x1d6   :  { %v6721_v48 = vpop.f32.mrb[28].mxu0 }
 0x1d7   :  { %v6743_v50 = vpop.f32.mrb[28].mxu1  ;;  %v6722_v52 = vpop.f32.mrb[29].mxu0  ;;  %7044 = vmatpush3.bf16.msra.mxu1 %v7568_v59  ;;  %v7602_v59 = vld [vmem:[%s9418_s1 + $0xfe8] sm:$0xff]  }
 0x1d8   :  { %v6723_v54 = vadd.f32 %v6722_v52, %v6721_v48  ;;  %v6744_v55 = vpop.f32.mrb[29].mxu1  ;;  %v6724_v58 = vpop.f32.mrb[30].mxu0  ;;  %7045 = vmatprep.subr.bf16.mxu1 %v7570_v1  ;;  %7024 = vmatpush3.bf16.msra.mxu0 %v7571_v4  ;;  %v7605_v1 = vld [vmem:[%s9418_s1 + $0xf70] sm:$0xff]  }
 0x1d9   :  { %v6745_v57 = vadd.f32 %v6744_v55, %v6743_v50  ;;  %v6746_v61 = vpop.f32.mrb[30].mxu1  ;;  %v6725_v63 = vpop.f32.mrb[31].mxu0  ;;  %7025 = vmatprep.subr.bf16.mxu0 %v7573_v8  ;;  %v7599_v50 = vld [vmem:[%s9418_s1 + $0xf20] sm:$0xff]   ;;  %v7608_v4 = vld [vmem:[%s9418_s1 + $0xfb0] sm:$0xff]   ;;  %v7612_v8 = vld [vmem:[%s9418_s1 + $0xfb8] sm:$0xff]  }
 0x1da   :  { %v5111_v60 = vadd.f32 %v6723_v54, %v9135_v7  ;;  %v6726_v2 = vadd.f32 %v6725_v63, %v6724_v58  ;;  %v6747_v3 = vpop.f32.mrb[31].mxu1  ;;  %v7604_v63 = vld [vmem:[%s9418_s1 + $0xfa8] sm:$0xff]  }
 0x1db   :  { %v6748_v5 = vadd.f32 %v6747_v3, %v6746_v61  ;;  %7046 = vmatpush3.bf16.msra.mxu1 %v7572_v6  ;;  %v7603_v61 = vld [vmem:[%s9418_s1 + $0xf28] sm:$0xff]   ;;  %v7607_v3 = vld [vmem:[%s9418_s1 + $0xf30] sm:$0xff]   ;;  %v7610_v6 = vld [vmem:[%s9418_s1 + $0xff8] sm:$0xff]  }
 0x1dc   :  { %v9252_v0 = vadd.f32 %v6745_v57, %v5111_v60  ;;  %v5114_v7 = vadd.f32 %v6726_v2, %v9150_v16  ;;  %7047 = vmatprep.subr.bf16.mxu1 %v7574_v10  ;;  %7026 = vmatpush3.bf16.msra.mxu0 %v7575_v11  ;;  %v7580_v16 = vld [vmem:[%s9418_s1 + $0xeb8] sm:$0xff]   ;;  %v7606_v2 = vld [vmem:[%s9418_s1 + $0xff0] sm:$0xff]  }
 0x1dd   :  { %7027 = vmatprep.subr.bf16.mxu0 %v7577_v13  ;;  %v77_v10 = vld [vmem:[%s9419_s0 + $0x1f0] sm:$0xff]  ;;  %v46_v13 = vld [vmem:[%s9419_s0 + $0xf8] sm:$0xff] }
 0x1de   :  { %v9267_v9 = vadd.f32 %v6748_v5, %v5114_v7  ;;  %v7609_v5 = vld [vmem:[%s9418_s1 + $0xf78] sm:$0xff]  }
 0x1df   :  { %7048 = vmatpush3.bf16.msra.mxu1 %v7576_v12  ;;  %v7611_v7 = vld [vmem:[%s9418_s1 + $0xf38] sm:$0xff]  }
 0x1e0   :  { %7049 = vmatprep.subr.bf16.mxu1 %v7578_v14  ;;  %7028 = vmatpush3.bf16.msra.mxu0 %v7579_v15  ;;  %v78_v14 = vld [vmem:[%s9419_s0 + $0x1f8] sm:$0xff] }
 0x1e1   :  { %7057 = vmatprep.subr.bf16.mxu0 %v7581_v25  ;;  %v5883_v15 = vcombine.low %v46_v13, %v78_v14 }
 0x1e3   :  { %7050 = vmatpush3.bf16.msra.mxu1 %v7580_v16  ;;  %5683 = vmatmul.mubr.bf16.vlgmr.msra.gmra.mrb[56].mxu0 %v5877_v20  ;;  %v5884_v16 = vcombine.high %v46_v13, %v78_v14 }
 0x1e4   :  { %7079 = vmatprep.subr.bf16.mxu1 %v7582_v26  ;;  %7058 = vmatpush3.bf16.msra.mxu0 %v7583_v27 }
 0x1e5   :  { %7059 = vmatprep.subr.bf16.mxu0 %v7585_v29 }
 0x1e6   :  { %5724 = vmatmul.mubr.bf16.vlgmr.msra.gmra.mrb[56].mxu1 %v5879_v23 }
 0x1e7   :  { %7080 = vmatpush3.bf16.msra.mxu1 %v7584_v28  ;;  %5805 = vmatprep.mubr.bf16.mxu1 %v5884_v16 }
 0x1e8   :  { %7081 = vmatprep.subr.bf16.mxu1 %v7586_v30  ;;  %7060 = vmatpush3.bf16.msra.mxu0 %v7587_v31 }
 0x1e9   :  { %7061 = vmatprep.subr.bf16.mxu0 %v7589_v33 }
 0x1eb   :  { %7082 = vmatpush3.bf16.msra.mxu1 %v7588_v32 }
 0x1ec   :  { %7083 = vmatprep.subr.bf16.mxu1 %v7590_v34  ;;  %7062 = vmatpush3.bf16.msra.mxu0 %v7591_v35 }
 0x1ed   :  { %7063 = vmatprep.subr.bf16.mxu0 %v7593_v37 }
 0x1ef   :  { %7084 = vmatpush3.bf16.msra.mxu1 %v7592_v36 }
 0x1f0   :  { %7085 = vmatprep.subr.bf16.mxu1 %v7594_v38  ;;  %7064 = vmatpush3.bf16.msra.mxu0 %v7595_v40 }
 0x1f1   :  { %7065 = vmatprep.subr.bf16.mxu0 %v7597_v44 }
 0x1f3   :  { %7086 = vmatpush3.bf16.msra.mxu1 %v7596_v42 }
 0x1f4   :  { %7087 = vmatprep.subr.bf16.mxu1 %v7598_v47  ;;  %7066 = vmatpush3.bf16.msra.mxu0 %v7599_v50 }
 0x1f5   :  { %7067 = vmatprep.subr.bf16.mxu0 %v7601_v56 }
 0x1f6   :  { %v6765_v39 = vpop.f32.mrb[32].mxu0 }
 0x1f7   :  { %v6787_v41 = vpop.f32.mrb[32].mxu1  ;;  %v6766_v43 = vpop.f32.mrb[33].mxu0  ;;  %7088 = vmatpush3.bf16.msra.mxu1 %v7600_v53 }
 0x1f8   :  { %v6767_v45 = vadd.f32 %v6766_v43, %v6765_v39  ;;  %v6788_v46 = vpop.f32.mrb[33].mxu1  ;;  %v6768_v49 = vpop.f32.mrb[34].mxu0  ;;  %7089 = vmatprep.subr.bf16.mxu1 %v7602_v59  ;;  %7068 = vmatpush3.bf16.msra.mxu0 %v7603_v61 }
 0x1f9   :  { %v6789_v48 = vadd.f32 %v6788_v46, %v6787_v41  ;;  %v6790_v52 = vpop.f32.mrb[34].mxu1  ;;  %v6769_v54 = vpop.f32.mrb[35].mxu0  ;;  %7069 = vmatprep.subr.bf16.mxu0 %v7605_v1 }
 0x1fa   :  { %v5193_v51 = vadd.f32 %v6767_v45, %v9252_v0  ;;  %v6770_v57 = vadd.f32 %v6769_v54, %v6768_v49  ;;  %v6791_v58 = vpop.f32.mrb[35].mxu1 }
 0x1fb   :  { %v6792_v60 = vadd.f32 %v6791_v58, %v6790_v52  ;;  %7090 = vmatpush3.bf16.msra.mxu1 %v7604_v63 }
 0x1fc   :  { %v5234_v55 = vadd.f32 %v6789_v48, %v5193_v51  ;;  %v5196_v62 = vadd.f32 %v6770_v57, %v9267_v9  ;;  %7091 = vmatprep.subr.bf16.mxu1 %v7606_v2  ;;  %7070 = vmatpush3.bf16.msra.mxu0 %v7607_v3  ;;  %v45_v9 = vld [vmem:[%s9419_s0 + $0xf0] sm:$0xff] }
 0x1fd   :  { %7071 = vmatprep.subr.bf16.mxu0 %v7609_v5  ;;  %v5881_v11 = vcombine.low %v45_v9, %v77_v10  ;;  %v5882_v12 = vcombine.high %v45_v9, %v77_v10 }
 0x1fe   :  { %v5237_v0 = vadd.f32 %v6792_v60, %v5196_v62 }
 0x1ff   :  { %7092 = vmatpush3.bf16.msra.mxu1 %v7608_v4  ;;  %5764 = vmatprep.mubr.bf16.mxu0 %v5882_v12 }
 0x200   :  { %7093 = vmatprep.subr.bf16.mxu1 %v7610_v6  ;;  %7072 = vmatpush3.bf16.msra.mxu0 %v7611_v7 }
 0x203   :  { %7094 = vmatpush3.bf16.msra.mxu1 %v7612_v8  ;;  %5765 = vmatmul.mubr.bf16.vlgmr.msra.gmra.mrb[60].mxu0 %v5881_v11 }
 0x206   :  { %5806 = vmatmul.mubr.bf16.vlgmr.msra.gmra.mrb[60].mxu1 %v5883_v15 }
 0x216   :  { %v6809_v17 = vpop.f32.mrb[36].mxu0 }
 0x217   :  { %v6810_v19 = vpop.f32.mrb[37].mxu0 }
 0x218   :  { %v6811_v20 = vadd.f32 %v6810_v19, %v6809_v17  ;;  %v6812_v22 = vpop.f32.mrb[38].mxu0 }
 0x219   :  { %v6831_v18 = vpop.f32.mrb[36].mxu1  ;;  %v6813_v25 = vpop.f32.mrb[39].mxu0 }
 0x21a   :  { %v6832_v21 = vpop.f32.mrb[37].mxu1  ;;  %v5275_v26 = vadd.f32 %v6811_v20, %v5234_v55  ;;  %v6814_v27 = vadd.f32 %v6813_v25, %v6812_v22 }
 0x21b   :  { %v6833_v23 = vadd.f32 %v6832_v21, %v6831_v18  ;;  %v6834_v24 = vpop.f32.mrb[38].mxu1 }
 0x21c   :  { %v6835_v28 = vpop.f32.mrb[39].mxu1  ;;  %v5278_v31 = vadd.f32 %v6814_v27, %v5237_v0 }
 0x21d   :  { %v6836_v29 = vadd.f32 %v6835_v28, %v6834_v24  ;;  %v5316_v30 = vadd.f32 %v6833_v23, %v5275_v26 }
 0x21f   :  { %v5319_v32 = vadd.f32 %v6836_v29, %v5278_v31 }
 0x236   :  { %v6853_v33 = vpop.f32.mrb[40].mxu0 }
 0x237   :  { %v6854_v35 = vpop.f32.mrb[41].mxu0 }
 0x238   :  { %v6855_v37 = vadd.f32 %v6854_v35, %v6853_v33  ;;  %v6856_v39 = vpop.f32.mrb[42].mxu0 }
 0x239   :  { %v6875_v34 = vpop.f32.mrb[40].mxu1  ;;  %v6857_v41 = vpop.f32.mrb[43].mxu0 }
 0x23a   :  { %v6876_v36 = vpop.f32.mrb[41].mxu1  ;;  %v5357_v43 = vadd.f32 %v6855_v37, %v5316_v30  ;;  %v6858_v44 = vadd.f32 %v6857_v41, %v6856_v39 }
 0x23b   :  { %v6877_v38 = vadd.f32 %v6876_v36, %v6875_v34  ;;  %v6878_v40 = vpop.f32.mrb[42].mxu1 }
 0x23c   :  { %v6879_v42 = vpop.f32.mrb[43].mxu1  ;;  %v5360_v47 = vadd.f32 %v6858_v44, %v5319_v32 }
 0x23d   :  { %v6880_v45 = vadd.f32 %v6879_v42, %v6878_v40  ;;  %v5398_v46 = vadd.f32 %v6877_v38, %v5357_v43 }
 0x23f   :  { %v5401_v48 = vadd.f32 %v6880_v45, %v5360_v47 }
 0x256   :  { %v6897_v49 = vpop.f32.mrb[44].mxu0 }
 0x257   :  { %v6898_v51 = vpop.f32.mrb[45].mxu0 }
 0x258   :  { %v6899_v52 = vadd.f32 %v6898_v51, %v6897_v49  ;;  %v6900_v54 = vpop.f32.mrb[46].mxu0 }
 0x259   :  { %v6919_v50 = vpop.f32.mrb[44].mxu1  ;;  %v6901_v57 = vpop.f32.mrb[47].mxu0 }
 0x25a   :  { %v6920_v53 = vpop.f32.mrb[45].mxu1  ;;  %v5439_v58 = vadd.f32 %v6899_v52, %v5398_v46  ;;  %v6902_v59 = vadd.f32 %v6901_v57, %v6900_v54 }
 0x25b   :  { %v6921_v55 = vadd.f32 %v6920_v53, %v6919_v50  ;;  %v6922_v56 = vpop.f32.mrb[46].mxu1 }
 0x25c   :  { %v6923_v60 = vpop.f32.mrb[47].mxu1  ;;  %v5442_v63 = vadd.f32 %v6902_v59, %v5401_v48 }
 0x25d   :  { %v6924_v61 = vadd.f32 %v6923_v60, %v6922_v56  ;;  %v5480_v62 = vadd.f32 %v6921_v55, %v5439_v58 }
 0x25f   :  { %v5483_v0 = vadd.f32 %v6924_v61, %v5442_v63 }
 0x276   :  { %v6941_v1 = vpop.f32.mrb[48].mxu0 }
 0x277   :  { %v6942_v3 = vpop.f32.mrb[49].mxu0 }
 0x278   :  { %v6943_v4 = vadd.f32 %v6942_v3, %v6941_v1  ;;  %v6944_v6 = vpop.f32.mrb[50].mxu0 }
 0x279   :  { %v6963_v2 = vpop.f32.mrb[48].mxu1  ;;  %v6945_v9 = vpop.f32.mrb[51].mxu0 }
 0x27a   :  { %v6964_v5 = vpop.f32.mrb[49].mxu1  ;;  %v5521_v10 = vadd.f32 %v6943_v4, %v5480_v62  ;;  %v6946_v11 = vadd.f32 %v6945_v9, %v6944_v6 }
 0x27b   :  { %v6965_v7 = vadd.f32 %v6964_v5, %v6963_v2  ;;  %v6966_v8 = vpop.f32.mrb[50].mxu1 }
 0x27c   :  { %v6967_v12 = vpop.f32.mrb[51].mxu1  ;;  %v5524_v15 = vadd.f32 %v6946_v11, %v5483_v0 }
 0x27d   :  { %v6968_v13 = vadd.f32 %v6967_v12, %v6966_v8  ;;  %v5562_v14 = vadd.f32 %v6965_v7, %v5521_v10 }
 0x27f   :  { %v5565_v16 = vadd.f32 %v6968_v13, %v5524_v15 }
 0x296   :  { %v6985_v17 = vpop.f32.mrb[52].mxu0 }
 0x297   :  { %v6986_v19 = vpop.f32.mrb[53].mxu0 }
 0x298   :  { %v6987_v21 = vadd.f32 %v6986_v19, %v6985_v17  ;;  %v6988_v23 = vpop.f32.mrb[54].mxu0 }
 0x299   :  { %v7007_v18 = vpop.f32.mrb[52].mxu1  ;;  %v6989_v25 = vpop.f32.mrb[55].mxu0 }
 0x29a   :  { %v7008_v20 = vpop.f32.mrb[53].mxu1  ;;  %v5603_v27 = vadd.f32 %v6987_v21, %v5562_v14  ;;  %v6990_v28 = vadd.f32 %v6989_v25, %v6988_v23 }
 0x29b   :  { %v7009_v22 = vadd.f32 %v7008_v20, %v7007_v18  ;;  %v7010_v24 = vpop.f32.mrb[54].mxu1 }
 0x29c   :  { %v7011_v26 = vpop.f32.mrb[55].mxu1  ;;  %v5606_v31 = vadd.f32 %v6990_v28, %v5565_v16 }
 0x29d   :  { %v7012_v29 = vadd.f32 %v7011_v26, %v7010_v24  ;;  %v5644_v30 = vadd.f32 %v7009_v22, %v5603_v27 }
 0x29f   :  { %v5647_v32 = vadd.f32 %v7012_v29, %v5606_v31 }
 0x2b6   :  { %v7029_v33 = vpop.f32.mrb[56].mxu0 }
 0x2b7   :  { %v7030_v35 = vpop.f32.mrb[57].mxu0 }
 0x2b8   :  { %v7031_v36 = vadd.f32 %v7030_v35, %v7029_v33  ;;  %v7032_v38 = vpop.f32.mrb[58].mxu0 }
 0x2b9   :  { %v7051_v34 = vpop.f32.mrb[56].mxu1  ;;  %v7033_v41 = vpop.f32.mrb[59].mxu0 }
 0x2ba   :  { %v7052_v37 = vpop.f32.mrb[57].mxu1  ;;  %v5685_v42 = vadd.f32 %v7031_v36, %v5644_v30  ;;  %v7034_v43 = vadd.f32 %v7033_v41, %v7032_v38 }
 0x2bb   :  { %v7053_v39 = vadd.f32 %v7052_v37, %v7051_v34  ;;  %v7054_v40 = vpop.f32.mrb[58].mxu1 }
 0x2bc   :  { %v7055_v44 = vpop.f32.mrb[59].mxu1  ;;  %v5688_v47 = vadd.f32 %v7034_v43, %v5647_v32 }
 0x2bd   :  { %v7056_v45 = vadd.f32 %v7055_v44, %v7054_v40  ;;  %v5726_v46 = vadd.f32 %v7053_v39, %v5685_v42 }
 0x2bf   :  { %v5729_v48 = vadd.f32 %v7056_v45, %v5688_v47 }
 0x2d6   :  { %v7073_v49 = vpop.f32.mrb[60].mxu0 }
 0x2d7   :  { %v7074_v51 = vpop.f32.mrb[61].mxu0 }
 0x2d8   :  { %v7075_v52 = vadd.f32 %v7074_v51, %v7073_v49  ;;  %v7076_v54 = vpop.f32.mrb[62].mxu0 }
 0x2d9   :  { %v7095_v50 = vpop.f32.mrb[60].mxu1  ;;  %v7077_v57 = vpop.f32.mrb[63].mxu0 }
 0x2da   :  { %v7096_v53 = vpop.f32.mrb[61].mxu1  ;;  %v5767_v58 = vadd.f32 %v7075_v52, %v5726_v46  ;;  %v7078_v59 = vadd.f32 %v7077_v57, %v7076_v54 }
 0x2db   :  { %v7097_v55 = vadd.f32 %v7096_v53, %v7095_v50  ;;  %v7098_v56 = vpop.f32.mrb[62].mxu1 }
 0x2dc   :  { %v7099_v60 = vpop.f32.mrb[63].mxu1  ;;  %v5770_v63 = vadd.f32 %v7078_v59, %v5729_v48 }
 0x2dd   :  { %v7100_v61 = vadd.f32 %v7099_v60, %v7098_v56  ;;  %v5808_v62 = vadd.f32 %v7097_v55, %v5767_v58 }
 0x2df   :  { %5814 = vst [vmem:[%s9421_s3] sm:$0xff] %v5808_v62  ;;  %v5811_v0 = vadd.f32 %v7100_v61, %v5770_v63 }
 0x2e1   :  { %5815 = vst [vmem:[%s9421_s3 + $0x8] sm:$0xff] %v5811_v0 }

</bundles_post_ra>
